<compile_context>
chip_gen: v5e
topology: v5e:2x2
jax: 0.10.0
libtpu: 0.0.40
codegen_flags: <defaults>
</compile_context>

<pallas_src>
import jax
import jax.numpy as jnp
from jax.experimental import pallas as pl
from jax.experimental.pallas import tpu as pltpu

EMBED = 50        # self.embed_len
HIDDEN = 100      # self.hidden_dim
EMBED_PAD = 128   # lane-padded embed dim (padded cols are zero)
HIDDEN_PAD = 128  # lane-padded hidden dim (padded lanes are zero)


def _attention_kernel(emb_ref, mask_ref,
                      wi_ref, b_ref,
                      wh_f_ref, wh_b_ref,
                      waf_ref, wab_ref, batt_ref,
                      wlf_ref, wlb_ref, bl_ref,
                      out_ref,
                      xgf_ref, xgb_ref, hf_ref, hb_ref):
    T, B, HP = hf_ref.shape
    G = 4 * HP

    # ---- hoisted input projections for both directions: ONE bf16 MXU matmul ----
    # [T*B, EP] @ [EP, 8*HP]; fwd gates occupy lanes [0, 4HP), bwd [4HP, 8HP).
    xg = (jnp.dot(emb_ref[...], wi_ref[...],
                  preferred_element_type=jnp.float32) + b_ref[...])
    xgf_ref[...] = xg[:, :G]
    xgb_ref[...] = xg[:, G:]

    def cell(t, h, c, xg_ref, wh_ref, h_store_ref):
        m = mask_ref[t] > 0.0                                      # [B, HP] bool
        # gates = (precomputed X@Wi + b) + h @ Wh   -> [B, 4*HP], gate order i,f,g,o
        gates = (xg_ref[pl.ds(t * B, B), :]
                 + jnp.dot(h.astype(jnp.bfloat16), wh_ref[...],
                           preferred_element_type=jnp.float32))
        i_g = jax.nn.sigmoid(gates[:, 0 * HP:1 * HP])
        f_g = jax.nn.sigmoid(gates[:, 1 * HP:2 * HP])
        g_g = jnp.tanh(gates[:, 2 * HP:3 * HP])
        o_g = jax.nn.sigmoid(gates[:, 3 * HP:4 * HP])
        c_new = f_g * c + i_g * g_g
        h_new = o_g * jnp.tanh(c_new)
        h_store_ref[t] = jnp.where(m, h_new, 0.0)   # padded steps emit zeros
        h = jnp.where(m, h_new, h)                  # padded steps freeze state
        c = jnp.where(m, c_new, c)
        return h, c

    zeros = jnp.zeros((B, HP), jnp.float32)
    h_f = c_f = zeros
    h_b = c_b = zeros
    # Interleaved forward/backward recurrence, fully unrolled (T is small & static).
    for s in range(T):
        h_f, c_f = cell(s,         h_f, c_f, xgf_ref, wh_f_ref, hf_ref)
        h_b, c_b = cell(T - 1 - s, h_b, c_b, xgb_ref, wh_b_ref, hb_ref)

    # ---- attention logits + softmax over (padded) time + weighted sum ----
    hf = hf_ref[...]                                               # [T, B, HP]
    hb = hb_ref[...]
    logits = (jnp.sum(hf * waf_ref[...], axis=-1, keepdims=True)
              + jnp.sum(hb * wab_ref[...], axis=-1, keepdims=True)
              + batt_ref[...])                                     # [T, B, 1]
    mx = jnp.max(logits, axis=0, keepdims=True)
    e = jnp.exp(logits - mx)
    alpha = e * pl.reciprocal(jnp.sum(e, axis=0, keepdims=True), approx=True)

    # TODO(synk): nn.Dropout(0.5) is identity in eval mode; training-mode
    # stochastic dropout is not implemented here.
    ctx_f = jnp.sum(alpha * hf, axis=0)                            # [B, HP]
    ctx_b = jnp.sum(alpha * hb, axis=0)                            # [B, HP]

    out_ref[...] = (jnp.dot(ctx_f, wlf_ref[...], preferred_element_type=jnp.float32)
                    + jnp.dot(ctx_b, wlb_ref[...], preferred_element_type=jnp.float32)
                    + bl_ref[...])


def _prep_kernel_params(params):
    """Fuse gate weights along the output dim, zero-pad to lane-dense shapes,
    and cast matmul weights to bf16 (biases / small epilogue weights stay f32)."""
    E, H = EMBED, HIDDEN
    EP, HP = EMBED_PAD, HIDDEN_PAD
    C = params["b_lin"].shape[-1]

    def fuse_gates(w, rows, rows_pad):
        # w: [4, rows, H] -> [rows_pad, 4*HP]; gate k occupies cols [k*HP, k*HP+H)
        out = jnp.zeros((rows_pad, 4 * HP), jnp.float32)
        for k in range(4):
            out = out.at[:rows, k * HP:k * HP + H].set(w[k])
        return out

    def fuse_bias(b):
        out = jnp.zeros((1, 4 * HP), jnp.float32)
        for k in range(4):
            out = out.at[0, k * HP:k * HP + H].set(b[k, 0])
        return out

    def pad_rows(w):
        return jnp.zeros((HP, w.shape[-1]), jnp.float32).at[:H].set(w)

    wi_f = fuse_gates(params["wi_f"], E, EP)
    wi_b = fuse_gates(params["wi_b"], E, EP)
    b_f = fuse_bias(params["b_f"])
    b_b = fuse_bias(params["b_b"])

    return {
        # both directions fused along lanes: fwd gates in [0,4HP), bwd in [4HP,8HP)
        "wi_fb": jnp.concatenate([wi_f, wi_b], axis=1).astype(jnp.bfloat16),
        "b_fb":  jnp.concatenate([b_f, b_b], axis=1),
        "wh_f":  fuse_gates(params["wh_f"], H, HP).astype(jnp.bfloat16),
        "wh_b":  fuse_gates(params["wh_b"], H, HP).astype(jnp.bfloat16),
        "w_att_f": jnp.zeros((1, 1, HP), jnp.float32).at[0, 0, :H].set(
            params["w_att_f"].reshape(H)),
        "w_att_b": jnp.zeros((1, 1, HP), jnp.float32).at[0, 0, :H].set(
            params["w_att_b"].reshape(H)),
        "b_att":   params["b_att"].reshape(1, 1, 1),
        "w_lin_f": pad_rows(params["w_lin_f"]),
        "w_lin_b": pad_rows(params["w_lin_b"]),
        "b_lin":   params["b_lin"].reshape(1, C),
    }


def attention_forward(inputs, inputs_len, params):
    """inputs: int32 [B, T] token ids; inputs_len: int32 [B]."""
    kp = _prep_kernel_params(params)

    emb = jnp.take(params["embedding"], inputs, axis=0)            # [B, T, E]  (glue)
    B, T, E = emb.shape
    HP = HIDDEN_PAD
    C = params["b_lin"].shape[-1]

    # time-major, lane-padded, bf16 for the hoisted MXU matmul
    emb_t = jnp.transpose(emb, (1, 0, 2)).astype(jnp.float32)      # [T, B, E]
    emb_p = jnp.zeros((T, B, EMBED_PAD), jnp.float32).at[:, :, :E].set(emb_t)
    emb2 = emb_p.reshape(T * B, EMBED_PAD).astype(jnp.bfloat16)    # [T*B, EP]

    t_idx = jnp.arange(T, dtype=jnp.int32)[:, None]
    mask = (t_idx < inputs_len[None, :]).astype(jnp.float32)       # [T, B]
    mask = jnp.broadcast_to(mask[:, :, None], (T, B, HP))          # lane-dense mask

    kernel_args = (emb2, mask,
                   kp["wi_fb"], kp["b_fb"],
                   kp["wh_f"], kp["wh_b"],
                   kp["w_att_f"], kp["w_att_b"], kp["b_att"],
                   kp["w_lin_f"], kp["w_lin_b"], kp["b_lin"])

    vmem = pl.BlockSpec(memory_space=pltpu.MemorySpace.VMEM)
    out = pl.pallas_call(
        _attention_kernel,
        out_shape=jax.ShapeDtypeStruct((B, C), jnp.float32),
        in_specs=[vmem] * len(kernel_args),
        out_specs=vmem,
        scratch_shapes=[pltpu.VMEM((T * B, 4 * HP), jnp.float32),  # X@Wi + b (fwd)
                        pltpu.VMEM((T * B, 4 * HP), jnp.float32),  # X@Wi + b (bwd)
                        pltpu.VMEM((T, B, HP), jnp.float32),       # fwd hidden states
                        pltpu.VMEM((T, B, HP), jnp.float32)],      # bwd hidden states
    )(*kernel_args)
    return out


def init_params(key, vocab_size, num_classes):
    E, H, C = EMBED, HIDDEN, num_classes
    ks = jax.random.split(key, 14)
    s = 1.0 / (H ** 0.5)

    def u(k, shape):
        return jax.random.uniform(k, shape, jnp.float32, -s, s)

    return {
        "embedding": jax.random.normal(ks[0], (vocab_size, E), jnp.float32),
        # forward-direction LSTM (gates stacked on axis 0: i, f, g, o)
        "wi_f": u(ks[1], (4, E, H)),
        "wh_f": u(ks[2], (4, H, H)),
        "b_f":  u(ks[3], (4, 1, H)),   # bias_ih + bias_hh combined
        # backward-direction LSTM
        "wi_b": u(ks[4], (4, E, H)),
        "wh_b": u(ks[5], (4, H, H)),
        "b_b":  u(ks[6], (4, 1, H)),
        # attention = nn.Linear(2H, 1), split into forward/backward halves
        "w_att_f": u(ks[7], (1, 1, H)),
        "w_att_b": u(ks[8], (1, 1, H)),
        "b_att":   u(ks[9], (1, 1, 1)),
        # classifier = nn.Linear(2H, C), split into forward/backward halves
        "w_lin_f": u(ks[10], (H, C)),
        "w_lin_b": u(ks[11], (H, C)),
        "b_lin":   u(ks[12], (1, C)),
    }


def reference_forward(inputs, inputs_len, params):
    """Pure-JAX f32 reference mirroring the PyTorch forward (eval mode)."""
    emb = jnp.take(params["embedding"], inputs, axis=0)            # [B, T, E]
    B, T, _E = emb.shape
    H = HIDDEN
    mask = (jnp.arange(T)[None, :] < inputs_len[:, None]).astype(jnp.float32)[..., None]

    def cell(x, m, h, c, wi, wh, b):
        g = [x @ wi[k] + h @ wh[k] + b[k] for k in range(4)]
        i = jax.nn.sigmoid(g[0]); f = jax.nn.sigmoid(g[1])
        gg = jnp.tanh(g[2]); o = jax.nn.sigmoid(g[3])
        cn = f * c + i * gg
        hn = o * jnp.tanh(cn)
        return hn * m, m * hn + (1 - m) * h, m * cn + (1 - m) * c

    h = c = jnp.zeros((B, H), jnp.float32)
    hf = []
    for t in range(T):
        ho, h, c = cell(emb[:, t], mask[:, t], h, c,
                        params["wi_f"], params["wh_f"], params["b_f"])
        hf.append(ho)
    h = c = jnp.zeros((B, H), jnp.float32)
    hb = [None] * T
    for t in range(T - 1, -1, -1):
        ho, h, c = cell(emb[:, t], mask[:, t], h, c,
                        params["wi_b"], params["wh_b"], params["b_b"])
        hb[t] = ho
    hf = jnp.stack(hf, axis=1)   # [B, T, H]
    hb = jnp.stack(hb, axis=1)   # [B, T, H]

    logits = ((hf * params["w_att_f"].reshape(1, 1, H)).sum(-1)
              + (hb * params["w_att_b"].reshape(1, 1, H)).sum(-1)
              + params["b_att"].reshape(()))
    alpha = jax.nn.softmax(logits, axis=1)[..., None]
    ctx_f = (alpha * hf).sum(axis=1)
    ctx_b = (alpha * hb).sum(axis=1)
    return ctx_f @ params["w_lin_f"] + ctx_b @ params["w_lin_b"] + params["b_lin"]


if __name__ == "__main__":
    VOCAB, NUM_CLASSES = 30, 4
    B, T = 2, 8

    key = jax.random.PRNGKey(0)
    k_par, k_tok = jax.random.split(key)
    params = init_params(k_par, VOCAB, NUM_CLASSES)

    inputs = jax.random.randint(k_tok, (B, T), 0, VOCAB, dtype=jnp.int32)
    inputs_len = jnp.array([T, 5], dtype=jnp.int32)   # max length == T

    out = attention_forward(inputs, inputs_len, params)
    out = jax.block_until_ready(out)

    ref = reference_forward(inputs, inputs_len, params)
    assert out.shape == (B, NUM_CLASSES)
    assert bool(jnp.all(jnp.isfinite(out)))
    max_err = float(jnp.max(jnp.abs(out - ref)))
    assert max_err < 5e-2, f"kernel/reference mismatch: {max_err}"

    print("KERNEL_OK")
</pallas_src>

<mosaic_0001>
module attributes {stable_mosaic.version = 11 : i64} {
  func.func @_attention_kernel(%arg0: memref<16x128xbf16, #tpu.memory_space<vmem>>, %arg1: memref<8x2x128xf32, #tpu.memory_space<vmem>>, %arg2: memref<128x1024xbf16, #tpu.memory_space<vmem>>, %arg3: memref<1x1024xf32, #tpu.memory_space<vmem>>, %arg4: memref<128x512xbf16, #tpu.memory_space<vmem>>, %arg5: memref<128x512xbf16, #tpu.memory_space<vmem>>, %arg6: memref<1x1x128xf32, #tpu.memory_space<vmem>>, %arg7: memref<1x1x128xf32, #tpu.memory_space<vmem>>, %arg8: memref<1x1x1xf32, #tpu.memory_space<vmem>>, %arg9: memref<128x4xf32, #tpu.memory_space<vmem>>, %arg10: memref<128x4xf32, #tpu.memory_space<vmem>>, %arg11: memref<1x4xf32, #tpu.memory_space<vmem>>, %arg12: memref<2x4xf32, #tpu.memory_space<vmem>>, %arg13: memref<16x512xf32, #tpu.memory_space<vmem>>, %arg14: memref<16x512xf32, #tpu.memory_space<vmem>>, %arg15: memref<8x2x128xf32, #tpu.memory_space<vmem>>, %arg16: memref<8x2x128xf32, #tpu.memory_space<vmem>>) attributes {dimension_semantics = [], scalar_prefetch = 0 : i64, scratch_operands = 4 : i64, tpu.core_type = #tpu.core_type<tc>} {
    %c0 = arith.constant 0 : index
    %c0_0 = arith.constant 0 : index
    %0 = vector.load %arg0[%c0, %c0_0] : memref<16x128xbf16, #tpu.memory_space<vmem>>, vector<16x128xbf16>
    %c0_1 = arith.constant 0 : index
    %c0_2 = arith.constant 0 : index
    %1 = vector.load %arg2[%c0_1, %c0_2] : memref<128x1024xbf16, #tpu.memory_space<vmem>>, vector<128x1024xbf16>
    %cst = arith.constant dense<0.000000e+00> : vector<16x1024xf32>
    %2 = tpu.matmul %0, %1, %cst {dimension_numbers = #tpu.dot_dimension_numbers<[1], [0], [0], [1], [0, 0, 1, 1], [], []>} : vector<16x128xbf16>, vector<128x1024xbf16>, vector<16x1024xf32> -> vector<16x1024xf32>
    %c0_3 = arith.constant 0 : index
    %c0_4 = arith.constant 0 : index
    %3 = vector.load %arg3[%c0_3, %c0_4] : memref<1x1024xf32, #tpu.memory_space<vmem>>, vector<1x1024xf32>
    %4 = vector.broadcast %3 : vector<1x1024xf32> to vector<16x1024xf32>
    %5 = arith.addf %2, %4 : vector<16x1024xf32>
    %6 = vector.extract_strided_slice %5 {offsets = [0, 0], sizes = [16, 512], strides = [1, 1]} : vector<16x1024xf32> to vector<16x512xf32>
    %c0_5 = arith.constant 0 : index
    %c0_6 = arith.constant 0 : index
    %7 = vector.load %arg13[%c0_5, %c0_6] : memref<16x512xf32, #tpu.memory_space<vmem>>, vector<16x512xf32>
    tpu.vector_store %arg13[%c0_5, %c0_6], %6 {strides = array<i32>} : memref<16x512xf32, #tpu.memory_space<vmem>>, vector<16x512xf32>,
    %8 = vector.extract_strided_slice %5 {offsets = [0, 512], sizes = [16, 512], strides = [1, 1]} : vector<16x1024xf32> to vector<16x512xf32>
    %c0_7 = arith.constant 0 : index
    %c0_8 = arith.constant 0 : index
    %9 = vector.load %arg14[%c0_7, %c0_8] : memref<16x512xf32, #tpu.memory_space<vmem>>, vector<16x512xf32>
    tpu.vector_store %arg14[%c0_7, %c0_8], %8 {strides = array<i32>} : memref<16x512xf32, #tpu.memory_space<vmem>>, vector<16x512xf32>,
    %cst_9 = arith.constant 0.000000e+00 : f32
    %10 = vector.broadcast %cst_9 : f32 to vector<2x128xf32>
    %c0_10 = arith.constant 0 : index
    %c0_11 = arith.constant 0 : index
    %c0_12 = arith.constant 0 : index
    %11 = vector.load %arg1[%c0_10, %c0_11, %c0_12] : memref<8x2x128xf32, #tpu.memory_space<vmem>>, vector<1x2x128xf32>
    %12 = vector.shape_cast %11 : vector<1x2x128xf32> to vector<2x128xf32>
    %cst_13 = arith.constant 0.000000e+00 : f32
    %13 = vector.broadcast %cst_13 : f32 to vector<2x128xf32>
    %14 = arith.cmpf ogt, %12, %13 : vector<2x128xf32>
    %c0_14 = arith.constant 0 : index
    %c0_15 = arith.constant 0 : index
    %15 = vector.load %arg13[%c0_14, %c0_15] : memref<16x512xf32, #tpu.memory_space<vmem>>, vector<2x512xf32>
    %16 = arith.truncf %10 : vector<2x128xf32> to vector<2x128xbf16>
    %c0_16 = arith.constant 0 : index
    %c0_17 = arith.constant 0 : index
    %17 = vector.load %arg4[%c0_16, %c0_17] : memref<128x512xbf16, #tpu.memory_space<vmem>>, vector<128x512xbf16>
    %cst_18 = arith.constant dense<0.000000e+00> : vector<2x512xf32>
    %18 = tpu.matmul %16, %17, %cst_18 {dimension_numbers = #tpu.dot_dimension_numbers<[1], [0], [0], [1], [0, 0, 1, 1], [], []>} : vector<2x128xbf16>, vector<128x512xbf16>, vector<2x512xf32> -> vector<2x512xf32>
    %19 = arith.addf %15, %18 : vector<2x512xf32>
    %20 = vector.extract_strided_slice %19 {offsets = [0, 0], sizes = [2, 128], strides = [1, 1]} : vector<2x512xf32> to vector<2x128xf32>
    %21 = arith.negf %20 : vector<2x128xf32>
    %22 = math.exp %21 : vector<2x128xf32>
    %cst_19 = arith.constant 1.000000e+00 : f32
    %23 = vector.broadcast %cst_19 : f32 to vector<2x128xf32>
    %24 = arith.addf %23, %22 : vector<2x128xf32>
    %25 = arith.divf %23, %24 : vector<2x128xf32>
    %26 = vector.extract_strided_slice %19 {offsets = [0, 128], sizes = [2, 128], strides = [1, 1]} : vector<2x512xf32> to vector<2x128xf32>
    %27 = arith.negf %26 : vector<2x128xf32>
    %28 = math.exp %27 : vector<2x128xf32>
    %cst_20 = arith.constant 1.000000e+00 : f32
    %29 = vector.broadcast %cst_20 : f32 to vector<2x128xf32>
    %30 = arith.addf %29, %28 : vector<2x128xf32>
    %31 = arith.divf %29, %30 : vector<2x128xf32>
    %32 = vector.extract_strided_slice %19 {offsets = [0, 256], sizes = [2, 128], strides = [1, 1]} : vector<2x512xf32> to vector<2x128xf32>
    %33 = math.tanh %32 : vector<2x128xf32>
    %34 = vector.extract_strided_slice %19 {offsets = [0, 384], sizes = [2, 128], strides = [1, 1]} : vector<2x512xf32> to vector<2x128xf32>
    %35 = arith.negf %34 : vector<2x128xf32>
    %36 = math.exp %35 : vector<2x128xf32>
    %cst_21 = arith.constant 1.000000e+00 : f32
    %37 = vector.broadcast %cst_21 : f32 to vector<2x128xf32>
    %38 = arith.addf %37, %36 : vector<2x128xf32>
    %39 = arith.divf %37, %38 : vector<2x128xf32>
    %40 = arith.mulf %31, %10 : vector<2x128xf32>
    %41 = arith.mulf %25, %33 : vector<2x128xf32>
    %42 = arith.addf %40, %41 : vector<2x128xf32>
    %43 = math.tanh %42 : vector<2x128xf32>
    %44 = arith.mulf %39, %43 : vector<2x128xf32>
    %cst_22 = arith.constant 0.000000e+00 : f32
    %45 = vector.broadcast %cst_22 : f32 to vector<2x128xf32>
    %46 = arith.select %14, %44, %45 : vector<2x128xi1>, vector<2x128xf32>
    %c0_23 = arith.constant 0 : index
    %c0_24 = arith.constant 0 : index
    %c0_25 = arith.constant 0 : index
    %47 = vector.load %arg15[%c0_23, %c0_24, %c0_25] : memref<8x2x128xf32, #tpu.memory_space<vmem>>, vector<1x2x128xf32>
    %48 = vector.shape_cast %47 : vector<1x2x128xf32> to vector<2x128xf32>
    %49 = vector.shape_cast %46 : vector<2x128xf32> to vector<1x2x128xf32>
    tpu.vector_store %arg15[%c0_23, %c0_24, %c0_25], %49 {strides = array<i32>} : memref<8x2x128xf32, #tpu.memory_space<vmem>>, vector<1x2x128xf32>,
    %50 = arith.select %14, %44, %10 : vector<2x128xi1>, vector<2x128xf32>
    %51 = arith.select %14, %42, %10 : vector<2x128xi1>, vector<2x128xf32>
    %c7 = arith.constant 7 : index
    %c0_26 = arith.constant 0 : index
    %c0_27 = arith.constant 0 : index
    %52 = vector.load %arg1[%c7, %c0_26, %c0_27] : memref<8x2x128xf32, #tpu.memory_space<vmem>>, vector<1x2x128xf32>
    %53 = vector.shape_cast %52 : vector<1x2x128xf32> to vector<2x128xf32>
    %cst_28 = arith.constant 0.000000e+00 : f32
    %54 = vector.broadcast %cst_28 : f32 to vector<2x128xf32>
    %55 = arith.cmpf ogt, %53, %54 : vector<2x128xf32>
    %c14 = arith.constant 14 : index
    %c0_29 = arith.constant 0 : index
    %56 = vector.load %arg14[%c14, %c0_29] : memref<16x512xf32, #tpu.memory_space<vmem>>, vector<2x512xf32>
    %57 = arith.truncf %10 : vector<2x128xf32> to vector<2x128xbf16>
    %c0_30 = arith.constant 0 : index
    %c0_31 = arith.constant 0 : index
    %58 = vector.load %arg5[%c0_30, %c0_31] : memref<128x512xbf16, #tpu.memory_space<vmem>>, vector<128x512xbf16>
    %cst_32 = arith.constant dense<0.000000e+00> : vector<2x512xf32>
    %59 = tpu.matmul %57, %58, %cst_32 {dimension_numbers = #tpu.dot_dimension_numbers<[1], [0], [0], [1], [0, 0, 1, 1], [], []>} : vector<2x128xbf16>, vector<128x512xbf16>, vector<2x512xf32> -> vector<2x512xf32>
    %60 = arith.addf %56, %59 : vector<2x512xf32>
    %61 = vector.extract_strided_slice %60 {offsets = [0, 0], sizes = [2, 128], strides = [1, 1]} : vector<2x512xf32> to vector<2x128xf32>
    %62 = arith.negf %61 : vector<2x128xf32>
    %63 = math.exp %62 : vector<2x128xf32>
    %cst_33 = arith.constant 1.000000e+00 : f32
    %64 = vector.broadcast %cst_33 : f32 to vector<2x128xf32>
    %65 = arith.addf %64, %63 : vector<2x128xf32>
    %66 = arith.divf %64, %65 : vector<2x128xf32>
    %67 = vector.extract_strided_slice %60 {offsets = [0, 128], sizes = [2, 128], strides = [1, 1]} : vector<2x512xf32> to vector<2x128xf32>
    %68 = arith.negf %67 : vector<2x128xf32>
    %69 = math.exp %68 : vector<2x128xf32>
    %cst_34 = arith.constant 1.000000e+00 : f32
    %70 = vector.broadcast %cst_34 : f32 to vector<2x128xf32>
    %71 = arith.addf %70, %69 : vector<2x128xf32>
    %72 = arith.divf %70, %71 : vector<2x128xf32>
    %73 = vector.extract_strided_slice %60 {offsets = [0, 256], sizes = [2, 128], strides = [1, 1]} : vector<2x512xf32> to vector<2x128xf32>
    %74 = math.tanh %73 : vector<2x128xf32>
    %75 = vector.extract_strided_slice %60 {offsets = [0, 384], sizes = [2, 128], strides = [1, 1]} : vector<2x512xf32> to vector<2x128xf32>
    %76 = arith.negf %75 : vector<2x128xf32>
    %77 = math.exp %76 : vector<2x128xf32>
    %cst_35 = arith.constant 1.000000e+00 : f32
    %78 = vector.broadcast %cst_35 : f32 to vector<2x128xf32>
    %79 = arith.addf %78, %77 : vector<2x128xf32>
    %80 = arith.divf %78, %79 : vector<2x128xf32>
    %81 = arith.mulf %72, %10 : vector<2x128xf32>
    %82 = arith.mulf %66, %74 : vector<2x128xf32>
    %83 = arith.addf %81, %82 : vector<2x128xf32>
    %84 = math.tanh %83 : vector<2x128xf32>
    %85 = arith.mulf %80, %84 : vector<2x128xf32>
    %cst_36 = arith.constant 0.000000e+00 : f32
    %86 = vector.broadcast %cst_36 : f32 to vector<2x128xf32>
    %87 = arith.select %55, %85, %86 : vector<2x128xi1>, vector<2x128xf32>
    %c7_37 = arith.constant 7 : index
    %c0_38 = arith.constant 0 : index
    %c0_39 = arith.constant 0 : index
    %88 = vector.load %arg16[%c7_37, %c0_38, %c0_39] : memref<8x2x128xf32, #tpu.memory_space<vmem>>, vector<1x2x128xf32>
    %89 = vector.shape_cast %88 : vector<1x2x128xf32> to vector<2x128xf32>
    %90 = vector.shape_cast %87 : vector<2x128xf32> to vector<1x2x128xf32>
    tpu.vector_store %arg16[%c7_37, %c0_38, %c0_39], %90 {strides = array<i32>} : memref<8x2x128xf32, #tpu.memory_space<vmem>>, vector<1x2x128xf32>,
    %91 = arith.select %55, %85, %10 : vector<2x128xi1>, vector<2x128xf32>
    %92 = arith.select %55, %83, %10 : vector<2x128xi1>, vector<2x128xf32>
    %c1 = arith.constant 1 : index
    %c0_40 = arith.constant 0 : index
    %c0_41 = arith.constant 0 : index
    %93 = vector.load %arg1[%c1, %c0_40, %c0_41] : memref<8x2x128xf32, #tpu.memory_space<vmem>>, vector<1x2x128xf32>
    %94 = vector.shape_cast %93 : vector<1x2x128xf32> to vector<2x128xf32>
    %cst_42 = arith.constant 0.000000e+00 : f32
    %95 = vector.broadcast %cst_42 : f32 to vector<2x128xf32>
    %96 = arith.cmpf ogt, %94, %95 : vector<2x128xf32>
    %c2 = arith.constant 2 : index
    %c0_43 = arith.constant 0 : index
    %97 = vector.load %arg13[%c2, %c0_43] : memref<16x512xf32, #tpu.memory_space<vmem>>, vector<2x512xf32>
    %98 = arith.truncf %50 : vector<2x128xf32> to vector<2x128xbf16>
    %c0_44 = arith.constant 0 : index
    %c0_45 = arith.constant 0 : index
    %99 = vector.load %arg4[%c0_44, %c0_45] : memref<128x512xbf16, #tpu.memory_space<vmem>>, vector<128x512xbf16>
    %cst_46 = arith.constant dense<0.000000e+00> : vector<2x512xf32>
    %100 = tpu.matmul %98, %99, %cst_46 {dimension_numbers = #tpu.dot_dimension_numbers<[1], [0], [0], [1], [0, 0, 1, 1], [], []>} : vector<2x128xbf16>, vector<128x512xbf16>, vector<2x512xf32> -> vector<2x512xf32>
    %101 = arith.addf %97, %100 : vector<2x512xf32>
    %102 = vector.extract_strided_slice %101 {offsets = [0, 0], sizes = [2, 128], strides = [1, 1]} : vector<2x512xf32> to vector<2x128xf32>
    %103 = arith.negf %102 : vector<2x128xf32>
    %104 = math.exp %103 : vector<2x128xf32>
    %cst_47 = arith.constant 1.000000e+00 : f32
    %105 = vector.broadcast %cst_47 : f32 to vector<2x128xf32>
    %106 = arith.addf %105, %104 : vector<2x128xf32>
    %107 = arith.divf %105, %106 : vector<2x128xf32>
    %108 = vector.extract_strided_slice %101 {offsets = [0, 128], sizes = [2, 128], strides = [1, 1]} : vector<2x512xf32> to vector<2x128xf32>
    %109 = arith.negf %108 : vector<2x128xf32>
    %110 = math.exp %109 : vector<2x128xf32>
    %cst_48 = arith.constant 1.000000e+00 : f32
    %111 = vector.broadcast %cst_48 : f32 to vector<2x128xf32>
    %112 = arith.addf %111, %110 : vector<2x128xf32>
    %113 = arith.divf %111, %112 : vector<2x128xf32>
    %114 = vector.extract_strided_slice %101 {offsets = [0, 256], sizes = [2, 128], strides = [1, 1]} : vector<2x512xf32> to vector<2x128xf32>
    %115 = math.tanh %114 : vector<2x128xf32>
    %116 = vector.extract_strided_slice %101 {offsets = [0, 384], sizes = [2, 128], strides = [1, 1]} : vector<2x512xf32> to vector<2x128xf32>
    %117 = arith.negf %116 : vector<2x128xf32>
    %118 = math.exp %117 : vector<2x128xf32>
    %cst_49 = arith.constant 1.000000e+00 : f32
    %119 = vector.broadcast %cst_49 : f32 to vector<2x128xf32>
    %120 = arith.addf %119, %118 : vector<2x128xf32>
    %121 = arith.divf %119, %120 : vector<2x128xf32>
    %122 = arith.mulf %113, %51 : vector<2x128xf32>
    %123 = arith.mulf %107, %115 : vector<2x128xf32>
    %124 = arith.addf %122, %123 : vector<2x128xf32>
    %125 = math.tanh %124 : vector<2x128xf32>
    %126 = arith.mulf %121, %125 : vector<2x128xf32>
    %cst_50 = arith.constant 0.000000e+00 : f32
    %127 = vector.broadcast %cst_50 : f32 to vector<2x128xf32>
    %128 = arith.select %96, %126, %127 : vector<2x128xi1>, vector<2x128xf32>
    %c1_51 = arith.constant 1 : index
    %c0_52 = arith.constant 0 : index
    %c0_53 = arith.constant 0 : index
    %129 = vector.load %arg15[%c1_51, %c0_52, %c0_53] : memref<8x2x128xf32, #tpu.memory_space<vmem>>, vector<1x2x128xf32>
    %130 = vector.shape_cast %129 : vector<1x2x128xf32> to vector<2x128xf32>
    %131 = vector.shape_cast %128 : vector<2x128xf32> to vector<1x2x128xf32>
    tpu.vector_store %arg15[%c1_51, %c0_52, %c0_53], %131 {strides = array<i32>} : memref<8x2x128xf32, #tpu.memory_space<vmem>>, vector<1x2x128xf32>,
    %132 = arith.select %96, %126, %50 : vector<2x128xi1>, vector<2x128xf32>
    %133 = arith.select %96, %124, %51 : vector<2x128xi1>, vector<2x128xf32>
    %c6 = arith.constant 6 : index
    %c0_54 = arith.constant 0 : index
    %c0_55 = arith.constant 0 : index
    %134 = vector.load %arg1[%c6, %c0_54, %c0_55] : memref<8x2x128xf32, #tpu.memory_space<vmem>>, vector<1x2x128xf32>
    %135 = vector.shape_cast %134 : vector<1x2x128xf32> to vector<2x128xf32>
    %cst_56 = arith.constant 0.000000e+00 : f32
    %136 = vector.broadcast %cst_56 : f32 to vector<2x128xf32>
    %137 = arith.cmpf ogt, %135, %136 : vector<2x128xf32>
    %c12 = arith.constant 12 : index
    %c0_57 = arith.constant 0 : index
    %138 = vector.load %arg14[%c12, %c0_57] : memref<16x512xf32, #tpu.memory_space<vmem>>, vector<2x512xf32>
    %139 = arith.truncf %91 : vector<2x128xf32> to vector<2x128xbf16>
    %c0_58 = arith.constant 0 : index
    %c0_59 = arith.constant 0 : index
    %140 = vector.load %arg5[%c0_58, %c0_59] : memref<128x512xbf16, #tpu.memory_space<vmem>>, vector<128x512xbf16>
    %cst_60 = arith.constant dense<0.000000e+00> : vector<2x512xf32>
    %141 = tpu.matmul %139, %140, %cst_60 {dimension_numbers = #tpu.dot_dimension_numbers<[1], [0], [0], [1], [0, 0, 1, 1], [], []>} : vector<2x128xbf16>, vector<128x512xbf16>, vector<2x512xf32> -> vector<2x512xf32>
    %142 = arith.addf %138, %141 : vector<2x512xf32>
    %143 = vector.extract_strided_slice %142 {offsets = [0, 0], sizes = [2, 128], strides = [1, 1]} : vector<2x512xf32> to vector<2x128xf32>
    %144 = arith.negf %143 : vector<2x128xf32>
    %145 = math.exp %144 : vector<2x128xf32>
    %cst_61 = arith.constant 1.000000e+00 : f32
    %146 = vector.broadcast %cst_61 : f32 to vector<2x128xf32>
    %147 = arith.addf %146, %145 : vector<2x128xf32>
    %148 = arith.divf %146, %147 : vector<2x128xf32>
    %149 = vector.extract_strided_slice %142 {offsets = [0, 128], sizes = [2, 128], strides = [1, 1]} : vector<2x512xf32> to vector<2x128xf32>
    %150 = arith.negf %149 : vector<2x128xf32>
    %151 = math.exp %150 : vector<2x128xf32>
    %cst_62 = arith.constant 1.000000e+00 : f32
    %152 = vector.broadcast %cst_62 : f32 to vector<2x128xf32>
    %153 = arith.addf %152, %151 : vector<2x128xf32>
    %154 = arith.divf %152, %153 : vector<2x128xf32>
    %155 = vector.extract_strided_slice %142 {offsets = [0, 256], sizes = [2, 128], strides = [1, 1]} : vector<2x512xf32> to vector<2x128xf32>
    %156 = math.tanh %155 : vector<2x128xf32>
    %157 = vector.extract_strided_slice %142 {offsets = [0, 384], sizes = [2, 128], strides = [1, 1]} : vector<2x512xf32> to vector<2x128xf32>
    %158 = arith.negf %157 : vector<2x128xf32>
    %159 = math.exp %158 : vector<2x128xf32>
    %cst_63 = arith.constant 1.000000e+00 : f32
    %160 = vector.broadcast %cst_63 : f32 to vector<2x128xf32>
    %161 = arith.addf %160, %159 : vector<2x128xf32>
    %162 = arith.divf %160, %161 : vector<2x128xf32>
    %163 = arith.mulf %154, %92 : vector<2x128xf32>
    %164 = arith.mulf %148, %156 : vector<2x128xf32>
    %165 = arith.addf %163, %164 : vector<2x128xf32>
    %166 = math.tanh %165 : vector<2x128xf32>
    %167 = arith.mulf %162, %166 : vector<2x128xf32>
    %cst_64 = arith.constant 0.000000e+00 : f32
    %168 = vector.broadcast %cst_64 : f32 to vector<2x128xf32>
    %169 = arith.select %137, %167, %168 : vector<2x128xi1>, vector<2x128xf32>
    %c6_65 = arith.constant 6 : index
    %c0_66 = arith.constant 0 : index
    %c0_67 = arith.constant 0 : index
    %170 = vector.load %arg16[%c6_65, %c0_66, %c0_67] : memref<8x2x128xf32, #tpu.memory_space<vmem>>, vector<1x2x128xf32>
    %171 = vector.shape_cast %170 : vector<1x2x128xf32> to vector<2x128xf32>
    %172 = vector.shape_cast %169 : vector<2x128xf32> to vector<1x2x128xf32>
    tpu.vector_store %arg16[%c6_65, %c0_66, %c0_67], %172 {strides = array<i32>} : memref<8x2x128xf32, #tpu.memory_space<vmem>>, vector<1x2x128xf32>,
    %173 = arith.select %137, %167, %91 : vector<2x128xi1>, vector<2x128xf32>
    %174 = arith.select %137, %165, %92 : vector<2x128xi1>, vector<2x128xf32>
    %c2_68 = arith.constant 2 : index
    %c0_69 = arith.constant 0 : index
    %c0_70 = arith.constant 0 : index
    %175 = vector.load %arg1[%c2_68, %c0_69, %c0_70] : memref<8x2x128xf32, #tpu.memory_space<vmem>>, vector<1x2x128xf32>
    %176 = vector.shape_cast %175 : vector<1x2x128xf32> to vector<2x128xf32>
    %cst_71 = arith.constant 0.000000e+00 : f32
    %177 = vector.broadcast %cst_71 : f32 to vector<2x128xf32>
    %178 = arith.cmpf ogt, %176, %177 : vector<2x128xf32>
    %c4 = arith.constant 4 : index
    %c0_72 = arith.constant 0 : index
    %179 = vector.load %arg13[%c4, %c0_72] : memref<16x512xf32, #tpu.memory_space<vmem>>, vector<2x512xf32>
    %180 = arith.truncf %132 : vector<2x128xf32> to vector<2x128xbf16>
    %c0_73 = arith.constant 0 : index
    %c0_74 = arith.constant 0 : index
    %181 = vector.load %arg4[%c0_73, %c0_74] : memref<128x512xbf16, #tpu.memory_space<vmem>>, vector<128x512xbf16>
    %cst_75 = arith.constant dense<0.000000e+00> : vector<2x512xf32>
    %182 = tpu.matmul %180, %181, %cst_75 {dimension_numbers = #tpu.dot_dimension_numbers<[1], [0], [0], [1], [0, 0, 1, 1], [], []>} : vector<2x128xbf16>, vector<128x512xbf16>, vector<2x512xf32> -> vector<2x512xf32>
    %183 = arith.addf %179, %182 : vector<2x512xf32>
    %184 = vector.extract_strided_slice %183 {offsets = [0, 0], sizes = [2, 128], strides = [1, 1]} : vector<2x512xf32> to vector<2x128xf32>
    %185 = arith.negf %184 : vector<2x128xf32>
    %186 = math.exp %185 : vector<2x128xf32>
    %cst_76 = arith.constant 1.000000e+00 : f32
    %187 = vector.broadcast %cst_76 : f32 to vector<2x128xf32>
    %188 = arith.addf %187, %186 : vector<2x128xf32>
    %189 = arith.divf %187, %188 : vector<2x128xf32>
    %190 = vector.extract_strided_slice %183 {offsets = [0, 128], sizes = [2, 128], strides = [1, 1]} : vector<2x512xf32> to vector<2x128xf32>
    %191 = arith.negf %190 : vector<2x128xf32>
    %192 = math.exp %191 : vector<2x128xf32>
    %cst_77 = arith.constant 1.000000e+00 : f32
    %193 = vector.broadcast %cst_77 : f32 to vector<2x128xf32>
    %194 = arith.addf %193, %192 : vector<2x128xf32>
    %195 = arith.divf %193, %194 : vector<2x128xf32>
    %196 = vector.extract_strided_slice %183 {offsets = [0, 256], sizes = [2, 128], strides = [1, 1]} : vector<2x512xf32> to vector<2x128xf32>
    %197 = math.tanh %196 : vector<2x128xf32>
    %198 = vector.extract_strided_slice %183 {offsets = [0, 384], sizes = [2, 128], strides = [1, 1]} : vector<2x512xf32> to vector<2x128xf32>
    %199 = arith.negf %198 : vector<2x128xf32>
    %200 = math.exp %199 : vector<2x128xf32>
    %cst_78 = arith.constant 1.000000e+00 : f32
    %201 = vector.broadcast %cst_78 : f32 to vector<2x128xf32>
    %202 = arith.addf %201, %200 : vector<2x128xf32>
    %203 = arith.divf %201, %202 : vector<2x128xf32>
    %204 = arith.mulf %195, %133 : vector<2x128xf32>
    %205 = arith.mulf %189, %197 : vector<2x128xf32>
    %206 = arith.addf %204, %205 : vector<2x128xf32>
    %207 = math.tanh %206 : vector<2x128xf32>
    %208 = arith.mulf %203, %207 : vector<2x128xf32>
    %cst_79 = arith.constant 0.000000e+00 : f32
    %209 = vector.broadcast %cst_79 : f32 to vector<2x128xf32>
    %210 = arith.select %178, %208, %209 : vector<2x128xi1>, vector<2x128xf32>
    %c2_80 = arith.constant 2 : index
    %c0_81 = arith.constant 0 : index
    %c0_82 = arith.constant 0 : index
    %211 = vector.load %arg15[%c2_80, %c0_81, %c0_82] : memref<8x2x128xf32, #tpu.memory_space<vmem>>, vector<1x2x128xf32>
    %212 = vector.shape_cast %211 : vector<1x2x128xf32> to vector<2x128xf32>
    %213 = vector.shape_cast %210 : vector<2x128xf32> to vector<1x2x128xf32>
    tpu.vector_store %arg15[%c2_80, %c0_81, %c0_82], %213 {strides = array<i32>} : memref<8x2x128xf32, #tpu.memory_space<vmem>>, vector<1x2x128xf32>,
    %214 = arith.select %178, %208, %132 : vector<2x128xi1>, vector<2x128xf32>
    %215 = arith.select %178, %206, %133 : vector<2x128xi1>, vector<2x128xf32>
    %c5 = arith.constant 5 : index
    %c0_83 = arith.constant 0 : index
    %c0_84 = arith.constant 0 : index
    %216 = vector.load %arg1[%c5, %c0_83, %c0_84] : memref<8x2x128xf32, #tpu.memory_space<vmem>>, vector<1x2x128xf32>
    %217 = vector.shape_cast %216 : vector<1x2x128xf32> to vector<2x128xf32>
    %cst_85 = arith.constant 0.000000e+00 : f32
    %218 = vector.broadcast %cst_85 : f32 to vector<2x128xf32>
    %219 = arith.cmpf ogt, %217, %218 : vector<2x128xf32>
    %c10 = arith.constant 10 : index
    %c0_86 = arith.constant 0 : index
    %220 = vector.load %arg14[%c10, %c0_86] : memref<16x512xf32, #tpu.memory_space<vmem>>, vector<2x512xf32>
    %221 = arith.truncf %173 : vector<2x128xf32> to vector<2x128xbf16>
    %c0_87 = arith.constant 0 : index
    %c0_88 = arith.constant 0 : index
    %222 = vector.load %arg5[%c0_87, %c0_88] : memref<128x512xbf16, #tpu.memory_space<vmem>>, vector<128x512xbf16>
    %cst_89 = arith.constant dense<0.000000e+00> : vector<2x512xf32>
    %223 = tpu.matmul %221, %222, %cst_89 {dimension_numbers = #tpu.dot_dimension_numbers<[1], [0], [0], [1], [0, 0, 1, 1], [], []>} : vector<2x128xbf16>, vector<128x512xbf16>, vector<2x512xf32> -> vector<2x512xf32>
    %224 = arith.addf %220, %223 : vector<2x512xf32>
    %225 = vector.extract_strided_slice %224 {offsets = [0, 0], sizes = [2, 128], strides = [1, 1]} : vector<2x512xf32> to vector<2x128xf32>
    %226 = arith.negf %225 : vector<2x128xf32>
    %227 = math.exp %226 : vector<2x128xf32>
    %cst_90 = arith.constant 1.000000e+00 : f32
    %228 = vector.broadcast %cst_90 : f32 to vector<2x128xf32>
    %229 = arith.addf %228, %227 : vector<2x128xf32>
    %230 = arith.divf %228, %229 : vector<2x128xf32>
    %231 = vector.extract_strided_slice %224 {offsets = [0, 128], sizes = [2, 128], strides = [1, 1]} : vector<2x512xf32> to vector<2x128xf32>
    %232 = arith.negf %231 : vector<2x128xf32>
    %233 = math.exp %232 : vector<2x128xf32>
    %cst_91 = arith.constant 1.000000e+00 : f32
    %234 = vector.broadcast %cst_91 : f32 to vector<2x128xf32>
    %235 = arith.addf %234, %233 : vector<2x128xf32>
    %236 = arith.divf %234, %235 : vector<2x128xf32>
    %237 = vector.extract_strided_slice %224 {offsets = [0, 256], sizes = [2, 128], strides = [1, 1]} : vector<2x512xf32> to vector<2x128xf32>
    %238 = math.tanh %237 : vector<2x128xf32>
    %239 = vector.extract_strided_slice %224 {offsets = [0, 384], sizes = [2, 128], strides = [1, 1]} : vector<2x512xf32> to vector<2x128xf32>
    %240 = arith.negf %239 : vector<2x128xf32>
    %241 = math.exp %240 : vector<2x128xf32>
    %cst_92 = arith.constant 1.000000e+00 : f32
    %242 = vector.broadcast %cst_92 : f32 to vector<2x128xf32>
    %243 = arith.addf %242, %241 : vector<2x128xf32>
    %244 = arith.divf %242, %243 : vector<2x128xf32>
    %245 = arith.mulf %236, %174 : vector<2x128xf32>
    %246 = arith.mulf %230, %238 : vector<2x128xf32>
    %247 = arith.addf %245, %246 : vector<2x128xf32>
    %248 = math.tanh %247 : vector<2x128xf32>
    %249 = arith.mulf %244, %248 : vector<2x128xf32>
    %cst_93 = arith.constant 0.000000e+00 : f32
    %250 = vector.broadcast %cst_93 : f32 to vector<2x128xf32>
    %251 = arith.select %219, %249, %250 : vector<2x128xi1>, vector<2x128xf32>
    %c5_94 = arith.constant 5 : index
    %c0_95 = arith.constant 0 : index
    %c0_96 = arith.constant 0 : index
    %252 = vector.load %arg16[%c5_94, %c0_95, %c0_96] : memref<8x2x128xf32, #tpu.memory_space<vmem>>, vector<1x2x128xf32>
    %253 = vector.shape_cast %252 : vector<1x2x128xf32> to vector<2x128xf32>
    %254 = vector.shape_cast %251 : vector<2x128xf32> to vector<1x2x128xf32>
    tpu.vector_store %arg16[%c5_94, %c0_95, %c0_96], %254 {strides = array<i32>} : memref<8x2x128xf32, #tpu.memory_space<vmem>>, vector<1x2x128xf32>,
    %255 = arith.select %219, %249, %173 : vector<2x128xi1>, vector<2x128xf32>
    %256 = arith.select %219, %247, %174 : vector<2x128xi1>, vector<2x128xf32>
    %c3 = arith.constant 3 : index
    %c0_97 = arith.constant 0 : index
    %c0_98 = arith.constant 0 : index
    %257 = vector.load %arg1[%c3, %c0_97, %c0_98] : memref<8x2x128xf32, #tpu.memory_space<vmem>>, vector<1x2x128xf32>
    %258 = vector.shape_cast %257 : vector<1x2x128xf32> to vector<2x128xf32>
    %cst_99 = arith.constant 0.000000e+00 : f32
    %259 = vector.broadcast %cst_99 : f32 to vector<2x128xf32>
    %260 = arith.cmpf ogt, %258, %259 : vector<2x128xf32>
    %c6_100 = arith.constant 6 : index
    %c0_101 = arith.constant 0 : index
    %261 = vector.load %arg13[%c6_100, %c0_101] : memref<16x512xf32, #tpu.memory_space<vmem>>, vector<2x512xf32>
    %262 = arith.truncf %214 : vector<2x128xf32> to vector<2x128xbf16>
    %c0_102 = arith.constant 0 : index
    %c0_103 = arith.constant 0 : index
    %263 = vector.load %arg4[%c0_102, %c0_103] : memref<128x512xbf16, #tpu.memory_space<vmem>>, vector<128x512xbf16>
    %cst_104 = arith.constant dense<0.000000e+00> : vector<2x512xf32>
    %264 = tpu.matmul %262, %263, %cst_104 {dimension_numbers = #tpu.dot_dimension_numbers<[1], [0], [0], [1], [0, 0, 1, 1], [], []>} : vector<2x128xbf16>, vector<128x512xbf16>, vector<2x512xf32> -> vector<2x512xf32>
    %265 = arith.addf %261, %264 : vector<2x512xf32>
    %266 = vector.extract_strided_slice %265 {offsets = [0, 0], sizes = [2, 128], strides = [1, 1]} : vector<2x512xf32> to vector<2x128xf32>
    %267 = arith.negf %266 : vector<2x128xf32>
    %268 = math.exp %267 : vector<2x128xf32>
    %cst_105 = arith.constant 1.000000e+00 : f32
    %269 = vector.broadcast %cst_105 : f32 to vector<2x128xf32>
    %270 = arith.addf %269, %268 : vector<2x128xf32>
    %271 = arith.divf %269, %270 : vector<2x128xf32>
    %272 = vector.extract_strided_slice %265 {offsets = [0, 128], sizes = [2, 128], strides = [1, 1]} : vector<2x512xf32> to vector<2x128xf32>
    %273 = arith.negf %272 : vector<2x128xf32>
    %274 = math.exp %273 : vector<2x128xf32>
    %cst_106 = arith.constant 1.000000e+00 : f32
    %275 = vector.broadcast %cst_106 : f32 to vector<2x128xf32>
    %276 = arith.addf %275, %274 : vector<2x128xf32>
    %277 = arith.divf %275, %276 : vector<2x128xf32>
    %278 = vector.extract_strided_slice %265 {offsets = [0, 256], sizes = [2, 128], strides = [1, 1]} : vector<2x512xf32> to vector<2x128xf32>
    %279 = math.tanh %278 : vector<2x128xf32>
    %280 = vector.extract_strided_slice %265 {offsets = [0, 384], sizes = [2, 128], strides = [1, 1]} : vector<2x512xf32> to vector<2x128xf32>
    %281 = arith.negf %280 : vector<2x128xf32>
    %282 = math.exp %281 : vector<2x128xf32>
    %cst_107 = arith.constant 1.000000e+00 : f32
    %283 = vector.broadcast %cst_107 : f32 to vector<2x128xf32>
    %284 = arith.addf %283, %282 : vector<2x128xf32>
    %285 = arith.divf %283, %284 : vector<2x128xf32>
    %286 = arith.mulf %277, %215 : vector<2x128xf32>
    %287 = arith.mulf %271, %279 : vector<2x128xf32>
    %288 = arith.addf %286, %287 : vector<2x128xf32>
    %289 = math.tanh %288 : vector<2x128xf32>
    %290 = arith.mulf %285, %289 : vector<2x128xf32>
    %cst_108 = arith.constant 0.000000e+00 : f32
    %291 = vector.broadcast %cst_108 : f32 to vector<2x128xf32>
    %292 = arith.select %260, %290, %291 : vector<2x128xi1>, vector<2x128xf32>
    %c3_109 = arith.constant 3 : index
    %c0_110 = arith.constant 0 : index
    %c0_111 = arith.constant 0 : index
    %293 = vector.load %arg15[%c3_109, %c0_110, %c0_111] : memref<8x2x128xf32, #tpu.memory_space<vmem>>, vector<1x2x128xf32>
    %294 = vector.shape_cast %293 : vector<1x2x128xf32> to vector<2x128xf32>
    %295 = vector.shape_cast %292 : vector<2x128xf32> to vector<1x2x128xf32>
    tpu.vector_store %arg15[%c3_109, %c0_110, %c0_111], %295 {strides = array<i32>} : memref<8x2x128xf32, #tpu.memory_space<vmem>>, vector<1x2x128xf32>,
    %296 = arith.select %260, %290, %214 : vector<2x128xi1>, vector<2x128xf32>
    %297 = arith.select %260, %288, %215 : vector<2x128xi1>, vector<2x128xf32>
    %c4_112 = arith.constant 4 : index
    %c0_113 = arith.constant 0 : index
    %c0_114 = arith.constant 0 : index
    %298 = vector.load %arg1[%c4_112, %c0_113, %c0_114] : memref<8x2x128xf32, #tpu.memory_space<vmem>>, vector<1x2x128xf32>
    %299 = vector.shape_cast %298 : vector<1x2x128xf32> to vector<2x128xf32>
    %cst_115 = arith.constant 0.000000e+00 : f32
    %300 = vector.broadcast %cst_115 : f32 to vector<2x128xf32>
    %301 = arith.cmpf ogt, %299, %300 : vector<2x128xf32>
    %c8 = arith.constant 8 : index
    %c0_116 = arith.constant 0 : index
    %302 = vector.load %arg14[%c8, %c0_116] : memref<16x512xf32, #tpu.memory_space<vmem>>, vector<2x512xf32>
    %303 = arith.truncf %255 : vector<2x128xf32> to vector<2x128xbf16>
    %c0_117 = arith.constant 0 : index
    %c0_118 = arith.constant 0 : index
    %304 = vector.load %arg5[%c0_117, %c0_118] : memref<128x512xbf16, #tpu.memory_space<vmem>>, vector<128x512xbf16>
    %cst_119 = arith.constant dense<0.000000e+00> : vector<2x512xf32>
    %305 = tpu.matmul %303, %304, %cst_119 {dimension_numbers = #tpu.dot_dimension_numbers<[1], [0], [0], [1], [0, 0, 1, 1], [], []>} : vector<2x128xbf16>, vector<128x512xbf16>, vector<2x512xf32> -> vector<2x512xf32>
    %306 = arith.addf %302, %305 : vector<2x512xf32>
    %307 = vector.extract_strided_slice %306 {offsets = [0, 0], sizes = [2, 128], strides = [1, 1]} : vector<2x512xf32> to vector<2x128xf32>
    %308 = arith.negf %307 : vector<2x128xf32>
    %309 = math.exp %308 : vector<2x128xf32>
    %cst_120 = arith.constant 1.000000e+00 : f32
    %310 = vector.broadcast %cst_120 : f32 to vector<2x128xf32>
    %311 = arith.addf %310, %309 : vector<2x128xf32>
    %312 = arith.divf %310, %311 : vector<2x128xf32>
    %313 = vector.extract_strided_slice %306 {offsets = [0, 128], sizes = [2, 128], strides = [1, 1]} : vector<2x512xf32> to vector<2x128xf32>
    %314 = arith.negf %313 : vector<2x128xf32>
    %315 = math.exp %314 : vector<2x128xf32>
    %cst_121 = arith.constant 1.000000e+00 : f32
    %316 = vector.broadcast %cst_121 : f32 to vector<2x128xf32>
    %317 = arith.addf %316, %315 : vector<2x128xf32>
    %318 = arith.divf %316, %317 : vector<2x128xf32>
    %319 = vector.extract_strided_slice %306 {offsets = [0, 256], sizes = [2, 128], strides = [1, 1]} : vector<2x512xf32> to vector<2x128xf32>
    %320 = math.tanh %319 : vector<2x128xf32>
    %321 = vector.extract_strided_slice %306 {offsets = [0, 384], sizes = [2, 128], strides = [1, 1]} : vector<2x512xf32> to vector<2x128xf32>
    %322 = arith.negf %321 : vector<2x128xf32>
    %323 = math.exp %322 : vector<2x128xf32>
    %cst_122 = arith.constant 1.000000e+00 : f32
    %324 = vector.broadcast %cst_122 : f32 to vector<2x128xf32>
    %325 = arith.addf %324, %323 : vector<2x128xf32>
    %326 = arith.divf %324, %325 : vector<2x128xf32>
    %327 = arith.mulf %318, %256 : vector<2x128xf32>
    %328 = arith.mulf %312, %320 : vector<2x128xf32>
    %329 = arith.addf %327, %328 : vector<2x128xf32>
    %330 = math.tanh %329 : vector<2x128xf32>
    %331 = arith.mulf %326, %330 : vector<2x128xf32>
    %cst_123 = arith.constant 0.000000e+00 : f32
    %332 = vector.broadcast %cst_123 : f32 to vector<2x128xf32>
    %333 = arith.select %301, %331, %332 : vector<2x128xi1>, vector<2x128xf32>
    %c4_124 = arith.constant 4 : index
    %c0_125 = arith.constant 0 : index
    %c0_126 = arith.constant 0 : index
    %334 = vector.load %arg16[%c4_124, %c0_125, %c0_126] : memref<8x2x128xf32, #tpu.memory_space<vmem>>, vector<1x2x128xf32>
    %335 = vector.shape_cast %334 : vector<1x2x128xf32> to vector<2x128xf32>
    %336 = vector.shape_cast %333 : vector<2x128xf32> to vector<1x2x128xf32>
    tpu.vector_store %arg16[%c4_124, %c0_125, %c0_126], %336 {strides = array<i32>} : memref<8x2x128xf32, #tpu.memory_space<vmem>>, vector<1x2x128xf32>,
    %337 = arith.select %301, %331, %255 : vector<2x128xi1>, vector<2x128xf32>
    %338 = arith.select %301, %329, %256 : vector<2x128xi1>, vector<2x128xf32>
    %c4_127 = arith.constant 4 : index
    %c0_128 = arith.constant 0 : index
    %c0_129 = arith.constant 0 : index
    %339 = vector.load %arg1[%c4_127, %c0_128, %c0_129] : memref<8x2x128xf32, #tpu.memory_space<vmem>>, vector<1x2x128xf32>
    %340 = vector.shape_cast %339 : vector<1x2x128xf32> to vector<2x128xf32>
    %cst_130 = arith.constant 0.000000e+00 : f32
    %341 = vector.broadcast %cst_130 : f32 to vector<2x128xf32>
    %342 = arith.cmpf ogt, %340, %341 : vector<2x128xf32>
    %c8_131 = arith.constant 8 : index
    %c0_132 = arith.constant 0 : index
    %343 = vector.load %arg13[%c8_131, %c0_132] : memref<16x512xf32, #tpu.memory_space<vmem>>, vector<2x512xf32>
    %344 = arith.truncf %296 : vector<2x128xf32> to vector<2x128xbf16>
    %c0_133 = arith.constant 0 : index
    %c0_134 = arith.constant 0 : index
    %345 = vector.load %arg4[%c0_133, %c0_134] : memref<128x512xbf16, #tpu.memory_space<vmem>>, vector<128x512xbf16>
    %cst_135 = arith.constant dense<0.000000e+00> : vector<2x512xf32>
    %346 = tpu.matmul %344, %345, %cst_135 {dimension_numbers = #tpu.dot_dimension_numbers<[1], [0], [0], [1], [0, 0, 1, 1], [], []>} : vector<2x128xbf16>, vector<128x512xbf16>, vector<2x512xf32> -> vector<2x512xf32>
    %347 = arith.addf %343, %346 : vector<2x512xf32>
    %348 = vector.extract_strided_slice %347 {offsets = [0, 0], sizes = [2, 128], strides = [1, 1]} : vector<2x512xf32> to vector<2x128xf32>
    %349 = arith.negf %348 : vector<2x128xf32>
    %350 = math.exp %349 : vector<2x128xf32>
    %cst_136 = arith.constant 1.000000e+00 : f32
    %351 = vector.broadcast %cst_136 : f32 to vector<2x128xf32>
    %352 = arith.addf %351, %350 : vector<2x128xf32>
    %353 = arith.divf %351, %352 : vector<2x128xf32>
    %354 = vector.extract_strided_slice %347 {offsets = [0, 128], sizes = [2, 128], strides = [1, 1]} : vector<2x512xf32> to vector<2x128xf32>
    %355 = arith.negf %354 : vector<2x128xf32>
    %356 = math.exp %355 : vector<2x128xf32>
    %cst_137 = arith.constant 1.000000e+00 : f32
    %357 = vector.broadcast %cst_137 : f32 to vector<2x128xf32>
    %358 = arith.addf %357, %356 : vector<2x128xf32>
    %359 = arith.divf %357, %358 : vector<2x128xf32>
    %360 = vector.extract_strided_slice %347 {offsets = [0, 256], sizes = [2, 128], strides = [1, 1]} : vector<2x512xf32> to vector<2x128xf32>
    %361 = math.tanh %360 : vector<2x128xf32>
    %362 = vector.extract_strided_slice %347 {offsets = [0, 384], sizes = [2, 128], strides = [1, 1]} : vector<2x512xf32> to vector<2x128xf32>
    %363 = arith.negf %362 : vector<2x128xf32>
    %364 = math.exp %363 : vector<2x128xf32>
    %cst_138 = arith.constant 1.000000e+00 : f32
    %365 = vector.broadcast %cst_138 : f32 to vector<2x128xf32>
    %366 = arith.addf %365, %364 : vector<2x128xf32>
    %367 = arith.divf %365, %366 : vector<2x128xf32>
    %368 = arith.mulf %359, %297 : vector<2x128xf32>
    %369 = arith.mulf %353, %361 : vector<2x128xf32>
    %370 = arith.addf %368, %369 : vector<2x128xf32>
    %371 = math.tanh %370 : vector<2x128xf32>
    %372 = arith.mulf %367, %371 : vector<2x128xf32>
    %cst_139 = arith.constant 0.000000e+00 : f32
    %373 = vector.broadcast %cst_139 : f32 to vector<2x128xf32>
    %374 = arith.select %342, %372, %373 : vector<2x128xi1>, vector<2x128xf32>
    %c4_140 = arith.constant 4 : index
    %c0_141 = arith.constant 0 : index
    %c0_142 = arith.constant 0 : index
    %375 = vector.load %arg15[%c4_140, %c0_141, %c0_142] : memref<8x2x128xf32, #tpu.memory_space<vmem>>, vector<1x2x128xf32>
    %376 = vector.shape_cast %375 : vector<1x2x128xf32> to vector<2x128xf32>
    %377 = vector.shape_cast %374 : vector<2x128xf32> to vector<1x2x128xf32>
    tpu.vector_store %arg15[%c4_140, %c0_141, %c0_142], %377 {strides = array<i32>} : memref<8x2x128xf32, #tpu.memory_space<vmem>>, vector<1x2x128xf32>,
    %378 = arith.select %342, %372, %296 : vector<2x128xi1>, vector<2x128xf32>
    %379 = arith.select %342, %370, %297 : vector<2x128xi1>, vector<2x128xf32>
    %c3_143 = arith.constant 3 : index
    %c0_144 = arith.constant 0 : index
    %c0_145 = arith.constant 0 : index
    %380 = vector.load %arg1[%c3_143, %c0_144, %c0_145] : memref<8x2x128xf32, #tpu.memory_space<vmem>>, vector<1x2x128xf32>
    %381 = vector.shape_cast %380 : vector<1x2x128xf32> to vector<2x128xf32>
    %cst_146 = arith.constant 0.000000e+00 : f32
    %382 = vector.broadcast %cst_146 : f32 to vector<2x128xf32>
    %383 = arith.cmpf ogt, %381, %382 : vector<2x128xf32>
    %c6_147 = arith.constant 6 : index
    %c0_148 = arith.constant 0 : index
    %384 = vector.load %arg14[%c6_147, %c0_148] : memref<16x512xf32, #tpu.memory_space<vmem>>, vector<2x512xf32>
    %385 = arith.truncf %337 : vector<2x128xf32> to vector<2x128xbf16>
    %c0_149 = arith.constant 0 : index
    %c0_150 = arith.constant 0 : index
    %386 = vector.load %arg5[%c0_149, %c0_150] : memref<128x512xbf16, #tpu.memory_space<vmem>>, vector<128x512xbf16>
    %cst_151 = arith.constant dense<0.000000e+00> : vector<2x512xf32>
    %387 = tpu.matmul %385, %386, %cst_151 {dimension_numbers = #tpu.dot_dimension_numbers<[1], [0], [0], [1], [0, 0, 1, 1], [], []>} : vector<2x128xbf16>, vector<128x512xbf16>, vector<2x512xf32> -> vector<2x512xf32>
    %388 = arith.addf %384, %387 : vector<2x512xf32>
    %389 = vector.extract_strided_slice %388 {offsets = [0, 0], sizes = [2, 128], strides = [1, 1]} : vector<2x512xf32> to vector<2x128xf32>
    %390 = arith.negf %389 : vector<2x128xf32>
    %391 = math.exp %390 : vector<2x128xf32>
    %cst_152 = arith.constant 1.000000e+00 : f32
    %392 = vector.broadcast %cst_152 : f32 to vector<2x128xf32>
    %393 = arith.addf %392, %391 : vector<2x128xf32>
    %394 = arith.divf %392, %393 : vector<2x128xf32>
    %395 = vector.extract_strided_slice %388 {offsets = [0, 128], sizes = [2, 128], strides = [1, 1]} : vector<2x512xf32> to vector<2x128xf32>
    %396 = arith.negf %395 : vector<2x128xf32>
    %397 = math.exp %396 : vector<2x128xf32>
    %cst_153 = arith.constant 1.000000e+00 : f32
    %398 = vector.broadcast %cst_153 : f32 to vector<2x128xf32>
    %399 = arith.addf %398, %397 : vector<2x128xf32>
    %400 = arith.divf %398, %399 : vector<2x128xf32>
    %401 = vector.extract_strided_slice %388 {offsets = [0, 256], sizes = [2, 128], strides = [1, 1]} : vector<2x512xf32> to vector<2x128xf32>
    %402 = math.tanh %401 : vector<2x128xf32>
    %403 = vector.extract_strided_slice %388 {offsets = [0, 384], sizes = [2, 128], strides = [1, 1]} : vector<2x512xf32> to vector<2x128xf32>
    %404 = arith.negf %403 : vector<2x128xf32>
    %405 = math.exp %404 : vector<2x128xf32>
    %cst_154 = arith.constant 1.000000e+00 : f32
    %406 = vector.broadcast %cst_154 : f32 to vector<2x128xf32>
    %407 = arith.addf %406, %405 : vector<2x128xf32>
    %408 = arith.divf %406, %407 : vector<2x128xf32>
    %409 = arith.mulf %400, %338 : vector<2x128xf32>
    %410 = arith.mulf %394, %402 : vector<2x128xf32>
    %411 = arith.addf %409, %410 : vector<2x128xf32>
    %412 = math.tanh %411 : vector<2x128xf32>
    %413 = arith.mulf %408, %412 : vector<2x128xf32>
    %cst_155 = arith.constant 0.000000e+00 : f32
    %414 = vector.broadcast %cst_155 : f32 to vector<2x128xf32>
    %415 = arith.select %383, %413, %414 : vector<2x128xi1>, vector<2x128xf32>
    %c3_156 = arith.constant 3 : index
    %c0_157 = arith.constant 0 : index
    %c0_158 = arith.constant 0 : index
    %416 = vector.load %arg16[%c3_156, %c0_157, %c0_158] : memref<8x2x128xf32, #tpu.memory_space<vmem>>, vector<1x2x128xf32>
    %417 = vector.shape_cast %416 : vector<1x2x128xf32> to vector<2x128xf32>
    %418 = vector.shape_cast %415 : vector<2x128xf32> to vector<1x2x128xf32>
    tpu.vector_store %arg16[%c3_156, %c0_157, %c0_158], %418 {strides = array<i32>} : memref<8x2x128xf32, #tpu.memory_space<vmem>>, vector<1x2x128xf32>,
    %419 = arith.select %383, %413, %337 : vector<2x128xi1>, vector<2x128xf32>
    %420 = arith.select %383, %411, %338 : vector<2x128xi1>, vector<2x128xf32>
    %c5_159 = arith.constant 5 : index
    %c0_160 = arith.constant 0 : index
    %c0_161 = arith.constant 0 : index
    %421 = vector.load %arg1[%c5_159, %c0_160, %c0_161] : memref<8x2x128xf32, #tpu.memory_space<vmem>>, vector<1x2x128xf32>
    %422 = vector.shape_cast %421 : vector<1x2x128xf32> to vector<2x128xf32>
    %cst_162 = arith.constant 0.000000e+00 : f32
    %423 = vector.broadcast %cst_162 : f32 to vector<2x128xf32>
    %424 = arith.cmpf ogt, %422, %423 : vector<2x128xf32>
    %c10_163 = arith.constant 10 : index
    %c0_164 = arith.constant 0 : index
    %425 = vector.load %arg13[%c10_163, %c0_164] : memref<16x512xf32, #tpu.memory_space<vmem>>, vector<2x512xf32>
    %426 = arith.truncf %378 : vector<2x128xf32> to vector<2x128xbf16>
    %c0_165 = arith.constant 0 : index
    %c0_166 = arith.constant 0 : index
    %427 = vector.load %arg4[%c0_165, %c0_166] : memref<128x512xbf16, #tpu.memory_space<vmem>>, vector<128x512xbf16>
    %cst_167 = arith.constant dense<0.000000e+00> : vector<2x512xf32>
    %428 = tpu.matmul %426, %427, %cst_167 {dimension_numbers = #tpu.dot_dimension_numbers<[1], [0], [0], [1], [0, 0, 1, 1], [], []>} : vector<2x128xbf16>, vector<128x512xbf16>, vector<2x512xf32> -> vector<2x512xf32>
    %429 = arith.addf %425, %428 : vector<2x512xf32>
    %430 = vector.extract_strided_slice %429 {offsets = [0, 0], sizes = [2, 128], strides = [1, 1]} : vector<2x512xf32> to vector<2x128xf32>
    %431 = arith.negf %430 : vector<2x128xf32>
    %432 = math.exp %431 : vector<2x128xf32>
    %cst_168 = arith.constant 1.000000e+00 : f32
    %433 = vector.broadcast %cst_168 : f32 to vector<2x128xf32>
    %434 = arith.addf %433, %432 : vector<2x128xf32>
    %435 = arith.divf %433, %434 : vector<2x128xf32>
    %436 = vector.extract_strided_slice %429 {offsets = [0, 128], sizes = [2, 128], strides = [1, 1]} : vector<2x512xf32> to vector<2x128xf32>
    %437 = arith.negf %436 : vector<2x128xf32>
    %438 = math.exp %437 : vector<2x128xf32>
    %cst_169 = arith.constant 1.000000e+00 : f32
    %439 = vector.broadcast %cst_169 : f32 to vector<2x128xf32>
    %440 = arith.addf %439, %438 : vector<2x128xf32>
    %441 = arith.divf %439, %440 : vector<2x128xf32>
    %442 = vector.extract_strided_slice %429 {offsets = [0, 256], sizes = [2, 128], strides = [1, 1]} : vector<2x512xf32> to vector<2x128xf32>
    %443 = math.tanh %442 : vector<2x128xf32>
    %444 = vector.extract_strided_slice %429 {offsets = [0, 384], sizes = [2, 128], strides = [1, 1]} : vector<2x512xf32> to vector<2x128xf32>
    %445 = arith.negf %444 : vector<2x128xf32>
    %446 = math.exp %445 : vector<2x128xf32>
    %cst_170 = arith.constant 1.000000e+00 : f32
    %447 = vector.broadcast %cst_170 : f32 to vector<2x128xf32>
    %448 = arith.addf %447, %446 : vector<2x128xf32>
    %449 = arith.divf %447, %448 : vector<2x128xf32>
    %450 = arith.mulf %441, %379 : vector<2x128xf32>
    %451 = arith.mulf %435, %443 : vector<2x128xf32>
    %452 = arith.addf %450, %451 : vector<2x128xf32>
    %453 = math.tanh %452 : vector<2x128xf32>
    %454 = arith.mulf %449, %453 : vector<2x128xf32>
    %cst_171 = arith.constant 0.000000e+00 : f32
    %455 = vector.broadcast %cst_171 : f32 to vector<2x128xf32>
    %456 = arith.select %424, %454, %455 : vector<2x128xi1>, vector<2x128xf32>
    %c5_172 = arith.constant 5 : index
    %c0_173 = arith.constant 0 : index
    %c0_174 = arith.constant 0 : index
    %457 = vector.load %arg15[%c5_172, %c0_173, %c0_174] : memref<8x2x128xf32, #tpu.memory_space<vmem>>, vector<1x2x128xf32>
    %458 = vector.shape_cast %457 : vector<1x2x128xf32> to vector<2x128xf32>
    %459 = vector.shape_cast %456 : vector<2x128xf32> to vector<1x2x128xf32>
    tpu.vector_store %arg15[%c5_172, %c0_173, %c0_174], %459 {strides = array<i32>} : memref<8x2x128xf32, #tpu.memory_space<vmem>>, vector<1x2x128xf32>,
    %460 = arith.select %424, %454, %378 : vector<2x128xi1>, vector<2x128xf32>
    %461 = arith.select %424, %452, %379 : vector<2x128xi1>, vector<2x128xf32>
    %c2_175 = arith.constant 2 : index
    %c0_176 = arith.constant 0 : index
    %c0_177 = arith.constant 0 : index
    %462 = vector.load %arg1[%c2_175, %c0_176, %c0_177] : memref<8x2x128xf32, #tpu.memory_space<vmem>>, vector<1x2x128xf32>
    %463 = vector.shape_cast %462 : vector<1x2x128xf32> to vector<2x128xf32>
    %cst_178 = arith.constant 0.000000e+00 : f32
    %464 = vector.broadcast %cst_178 : f32 to vector<2x128xf32>
    %465 = arith.cmpf ogt, %463, %464 : vector<2x128xf32>
    %c4_179 = arith.constant 4 : index
    %c0_180 = arith.constant 0 : index
    %466 = vector.load %arg14[%c4_179, %c0_180] : memref<16x512xf32, #tpu.memory_space<vmem>>, vector<2x512xf32>
    %467 = arith.truncf %419 : vector<2x128xf32> to vector<2x128xbf16>
    %c0_181 = arith.constant 0 : index
    %c0_182 = arith.constant 0 : index
    %468 = vector.load %arg5[%c0_181, %c0_182] : memref<128x512xbf16, #tpu.memory_space<vmem>>, vector<128x512xbf16>
    %cst_183 = arith.constant dense<0.000000e+00> : vector<2x512xf32>
    %469 = tpu.matmul %467, %468, %cst_183 {dimension_numbers = #tpu.dot_dimension_numbers<[1], [0], [0], [1], [0, 0, 1, 1], [], []>} : vector<2x128xbf16>, vector<128x512xbf16>, vector<2x512xf32> -> vector<2x512xf32>
    %470 = arith.addf %466, %469 : vector<2x512xf32>
    %471 = vector.extract_strided_slice %470 {offsets = [0, 0], sizes = [2, 128], strides = [1, 1]} : vector<2x512xf32> to vector<2x128xf32>
    %472 = arith.negf %471 : vector<2x128xf32>
    %473 = math.exp %472 : vector<2x128xf32>
    %cst_184 = arith.constant 1.000000e+00 : f32
    %474 = vector.broadcast %cst_184 : f32 to vector<2x128xf32>
    %475 = arith.addf %474, %473 : vector<2x128xf32>
    %476 = arith.divf %474, %475 : vector<2x128xf32>
    %477 = vector.extract_strided_slice %470 {offsets = [0, 128], sizes = [2, 128], strides = [1, 1]} : vector<2x512xf32> to vector<2x128xf32>
    %478 = arith.negf %477 : vector<2x128xf32>
    %479 = math.exp %478 : vector<2x128xf32>
    %cst_185 = arith.constant 1.000000e+00 : f32
    %480 = vector.broadcast %cst_185 : f32 to vector<2x128xf32>
    %481 = arith.addf %480, %479 : vector<2x128xf32>
    %482 = arith.divf %480, %481 : vector<2x128xf32>
    %483 = vector.extract_strided_slice %470 {offsets = [0, 256], sizes = [2, 128], strides = [1, 1]} : vector<2x512xf32> to vector<2x128xf32>
    %484 = math.tanh %483 : vector<2x128xf32>
    %485 = vector.extract_strided_slice %470 {offsets = [0, 384], sizes = [2, 128], strides = [1, 1]} : vector<2x512xf32> to vector<2x128xf32>
    %486 = arith.negf %485 : vector<2x128xf32>
    %487 = math.exp %486 : vector<2x128xf32>
    %cst_186 = arith.constant 1.000000e+00 : f32
    %488 = vector.broadcast %cst_186 : f32 to vector<2x128xf32>
    %489 = arith.addf %488, %487 : vector<2x128xf32>
    %490 = arith.divf %488, %489 : vector<2x128xf32>
    %491 = arith.mulf %482, %420 : vector<2x128xf32>
    %492 = arith.mulf %476, %484 : vector<2x128xf32>
    %493 = arith.addf %491, %492 : vector<2x128xf32>
    %494 = math.tanh %493 : vector<2x128xf32>
    %495 = arith.mulf %490, %494 : vector<2x128xf32>
    %cst_187 = arith.constant 0.000000e+00 : f32
    %496 = vector.broadcast %cst_187 : f32 to vector<2x128xf32>
    %497 = arith.select %465, %495, %496 : vector<2x128xi1>, vector<2x128xf32>
    %c2_188 = arith.constant 2 : index
    %c0_189 = arith.constant 0 : index
    %c0_190 = arith.constant 0 : index
    %498 = vector.load %arg16[%c2_188, %c0_189, %c0_190] : memref<8x2x128xf32, #tpu.memory_space<vmem>>, vector<1x2x128xf32>
    %499 = vector.shape_cast %498 : vector<1x2x128xf32> to vector<2x128xf32>
    %500 = vector.shape_cast %497 : vector<2x128xf32> to vector<1x2x128xf32>
    tpu.vector_store %arg16[%c2_188, %c0_189, %c0_190], %500 {strides = array<i32>} : memref<8x2x128xf32, #tpu.memory_space<vmem>>, vector<1x2x128xf32>,
    %501 = arith.select %465, %495, %419 : vector<2x128xi1>, vector<2x128xf32>
    %502 = arith.select %465, %493, %420 : vector<2x128xi1>, vector<2x128xf32>
    %c6_191 = arith.constant 6 : index
    %c0_192 = arith.constant 0 : index
    %c0_193 = arith.constant 0 : index
    %503 = vector.load %arg1[%c6_191, %c0_192, %c0_193] : memref<8x2x128xf32, #tpu.memory_space<vmem>>, vector<1x2x128xf32>
    %504 = vector.shape_cast %503 : vector<1x2x128xf32> to vector<2x128xf32>
    %cst_194 = arith.constant 0.000000e+00 : f32
    %505 = vector.broadcast %cst_194 : f32 to vector<2x128xf32>
    %506 = arith.cmpf ogt, %504, %505 : vector<2x128xf32>
    %c12_195 = arith.constant 12 : index
    %c0_196 = arith.constant 0 : index
    %507 = vector.load %arg13[%c12_195, %c0_196] : memref<16x512xf32, #tpu.memory_space<vmem>>, vector<2x512xf32>
    %508 = arith.truncf %460 : vector<2x128xf32> to vector<2x128xbf16>
    %c0_197 = arith.constant 0 : index
    %c0_198 = arith.constant 0 : index
    %509 = vector.load %arg4[%c0_197, %c0_198] : memref<128x512xbf16, #tpu.memory_space<vmem>>, vector<128x512xbf16>
    %cst_199 = arith.constant dense<0.000000e+00> : vector<2x512xf32>
    %510 = tpu.matmul %508, %509, %cst_199 {dimension_numbers = #tpu.dot_dimension_numbers<[1], [0], [0], [1], [0, 0, 1, 1], [], []>} : vector<2x128xbf16>, vector<128x512xbf16>, vector<2x512xf32> -> vector<2x512xf32>
    %511 = arith.addf %507, %510 : vector<2x512xf32>
    %512 = vector.extract_strided_slice %511 {offsets = [0, 0], sizes = [2, 128], strides = [1, 1]} : vector<2x512xf32> to vector<2x128xf32>
    %513 = arith.negf %512 : vector<2x128xf32>
    %514 = math.exp %513 : vector<2x128xf32>
    %cst_200 = arith.constant 1.000000e+00 : f32
    %515 = vector.broadcast %cst_200 : f32 to vector<2x128xf32>
    %516 = arith.addf %515, %514 : vector<2x128xf32>
    %517 = arith.divf %515, %516 : vector<2x128xf32>
    %518 = vector.extract_strided_slice %511 {offsets = [0, 128], sizes = [2, 128], strides = [1, 1]} : vector<2x512xf32> to vector<2x128xf32>
    %519 = arith.negf %518 : vector<2x128xf32>
    %520 = math.exp %519 : vector<2x128xf32>
    %cst_201 = arith.constant 1.000000e+00 : f32
    %521 = vector.broadcast %cst_201 : f32 to vector<2x128xf32>
    %522 = arith.addf %521, %520 : vector<2x128xf32>
    %523 = arith.divf %521, %522 : vector<2x128xf32>
    %524 = vector.extract_strided_slice %511 {offsets = [0, 256], sizes = [2, 128], strides = [1, 1]} : vector<2x512xf32> to vector<2x128xf32>
    %525 = math.tanh %524 : vector<2x128xf32>
    %526 = vector.extract_strided_slice %511 {offsets = [0, 384], sizes = [2, 128], strides = [1, 1]} : vector<2x512xf32> to vector<2x128xf32>
    %527 = arith.negf %526 : vector<2x128xf32>
    %528 = math.exp %527 : vector<2x128xf32>
    %cst_202 = arith.constant 1.000000e+00 : f32
    %529 = vector.broadcast %cst_202 : f32 to vector<2x128xf32>
    %530 = arith.addf %529, %528 : vector<2x128xf32>
    %531 = arith.divf %529, %530 : vector<2x128xf32>
    %532 = arith.mulf %523, %461 : vector<2x128xf32>
    %533 = arith.mulf %517, %525 : vector<2x128xf32>
    %534 = arith.addf %532, %533 : vector<2x128xf32>
    %535 = math.tanh %534 : vector<2x128xf32>
    %536 = arith.mulf %531, %535 : vector<2x128xf32>
    %cst_203 = arith.constant 0.000000e+00 : f32
    %537 = vector.broadcast %cst_203 : f32 to vector<2x128xf32>
    %538 = arith.select %506, %536, %537 : vector<2x128xi1>, vector<2x128xf32>
    %c6_204 = arith.constant 6 : index
    %c0_205 = arith.constant 0 : index
    %c0_206 = arith.constant 0 : index
    %539 = vector.load %arg15[%c6_204, %c0_205, %c0_206] : memref<8x2x128xf32, #tpu.memory_space<vmem>>, vector<1x2x128xf32>
    %540 = vector.shape_cast %539 : vector<1x2x128xf32> to vector<2x128xf32>
    %541 = vector.shape_cast %538 : vector<2x128xf32> to vector<1x2x128xf32>
    tpu.vector_store %arg15[%c6_204, %c0_205, %c0_206], %541 {strides = array<i32>} : memref<8x2x128xf32, #tpu.memory_space<vmem>>, vector<1x2x128xf32>,
    %542 = arith.select %506, %536, %460 : vector<2x128xi1>, vector<2x128xf32>
    %543 = arith.select %506, %534, %461 : vector<2x128xi1>, vector<2x128xf32>
    %c1_207 = arith.constant 1 : index
    %c0_208 = arith.constant 0 : index
    %c0_209 = arith.constant 0 : index
    %544 = vector.load %arg1[%c1_207, %c0_208, %c0_209] : memref<8x2x128xf32, #tpu.memory_space<vmem>>, vector<1x2x128xf32>
    %545 = vector.shape_cast %544 : vector<1x2x128xf32> to vector<2x128xf32>
    %cst_210 = arith.constant 0.000000e+00 : f32
    %546 = vector.broadcast %cst_210 : f32 to vector<2x128xf32>
    %547 = arith.cmpf ogt, %545, %546 : vector<2x128xf32>
    %c2_211 = arith.constant 2 : index
    %c0_212 = arith.constant 0 : index
    %548 = vector.load %arg14[%c2_211, %c0_212] : memref<16x512xf32, #tpu.memory_space<vmem>>, vector<2x512xf32>
    %549 = arith.truncf %501 : vector<2x128xf32> to vector<2x128xbf16>
    %c0_213 = arith.constant 0 : index
    %c0_214 = arith.constant 0 : index
    %550 = vector.load %arg5[%c0_213, %c0_214] : memref<128x512xbf16, #tpu.memory_space<vmem>>, vector<128x512xbf16>
    %cst_215 = arith.constant dense<0.000000e+00> : vector<2x512xf32>
    %551 = tpu.matmul %549, %550, %cst_215 {dimension_numbers = #tpu.dot_dimension_numbers<[1], [0], [0], [1], [0, 0, 1, 1], [], []>} : vector<2x128xbf16>, vector<128x512xbf16>, vector<2x512xf32> -> vector<2x512xf32>
    %552 = arith.addf %548, %551 : vector<2x512xf32>
    %553 = vector.extract_strided_slice %552 {offsets = [0, 0], sizes = [2, 128], strides = [1, 1]} : vector<2x512xf32> to vector<2x128xf32>
    %554 = arith.negf %553 : vector<2x128xf32>
    %555 = math.exp %554 : vector<2x128xf32>
    %cst_216 = arith.constant 1.000000e+00 : f32
    %556 = vector.broadcast %cst_216 : f32 to vector<2x128xf32>
    %557 = arith.addf %556, %555 : vector<2x128xf32>
    %558 = arith.divf %556, %557 : vector<2x128xf32>
    %559 = vector.extract_strided_slice %552 {offsets = [0, 128], sizes = [2, 128], strides = [1, 1]} : vector<2x512xf32> to vector<2x128xf32>
    %560 = arith.negf %559 : vector<2x128xf32>
    %561 = math.exp %560 : vector<2x128xf32>
    %cst_217 = arith.constant 1.000000e+00 : f32
    %562 = vector.broadcast %cst_217 : f32 to vector<2x128xf32>
    %563 = arith.addf %562, %561 : vector<2x128xf32>
    %564 = arith.divf %562, %563 : vector<2x128xf32>
    %565 = vector.extract_strided_slice %552 {offsets = [0, 256], sizes = [2, 128], strides = [1, 1]} : vector<2x512xf32> to vector<2x128xf32>
    %566 = math.tanh %565 : vector<2x128xf32>
    %567 = vector.extract_strided_slice %552 {offsets = [0, 384], sizes = [2, 128], strides = [1, 1]} : vector<2x512xf32> to vector<2x128xf32>
    %568 = arith.negf %567 : vector<2x128xf32>
    %569 = math.exp %568 : vector<2x128xf32>
    %cst_218 = arith.constant 1.000000e+00 : f32
    %570 = vector.broadcast %cst_218 : f32 to vector<2x128xf32>
    %571 = arith.addf %570, %569 : vector<2x128xf32>
    %572 = arith.divf %570, %571 : vector<2x128xf32>
    %573 = arith.mulf %564, %502 : vector<2x128xf32>
    %574 = arith.mulf %558, %566 : vector<2x128xf32>
    %575 = arith.addf %573, %574 : vector<2x128xf32>
    %576 = math.tanh %575 : vector<2x128xf32>
    %577 = arith.mulf %572, %576 : vector<2x128xf32>
    %cst_219 = arith.constant 0.000000e+00 : f32
    %578 = vector.broadcast %cst_219 : f32 to vector<2x128xf32>
    %579 = arith.select %547, %577, %578 : vector<2x128xi1>, vector<2x128xf32>
    %c1_220 = arith.constant 1 : index
    %c0_221 = arith.constant 0 : index
    %c0_222 = arith.constant 0 : index
    %580 = vector.load %arg16[%c1_220, %c0_221, %c0_222] : memref<8x2x128xf32, #tpu.memory_space<vmem>>, vector<1x2x128xf32>
    %581 = vector.shape_cast %580 : vector<1x2x128xf32> to vector<2x128xf32>
    %582 = vector.shape_cast %579 : vector<2x128xf32> to vector<1x2x128xf32>
    tpu.vector_store %arg16[%c1_220, %c0_221, %c0_222], %582 {strides = array<i32>} : memref<8x2x128xf32, #tpu.memory_space<vmem>>, vector<1x2x128xf32>,
    %583 = arith.select %547, %577, %501 : vector<2x128xi1>, vector<2x128xf32>
    %584 = arith.select %547, %575, %502 : vector<2x128xi1>, vector<2x128xf32>
    %c7_223 = arith.constant 7 : index
    %c0_224 = arith.constant 0 : index
    %c0_225 = arith.constant 0 : index
    %585 = vector.load %arg1[%c7_223, %c0_224, %c0_225] : memref<8x2x128xf32, #tpu.memory_space<vmem>>, vector<1x2x128xf32>
    %586 = vector.shape_cast %585 : vector<1x2x128xf32> to vector<2x128xf32>
    %cst_226 = arith.constant 0.000000e+00 : f32
    %587 = vector.broadcast %cst_226 : f32 to vector<2x128xf32>
    %588 = arith.cmpf ogt, %586, %587 : vector<2x128xf32>
    %c14_227 = arith.constant 14 : index
    %c0_228 = arith.constant 0 : index
    %589 = vector.load %arg13[%c14_227, %c0_228] : memref<16x512xf32, #tpu.memory_space<vmem>>, vector<2x512xf32>
    %590 = arith.truncf %542 : vector<2x128xf32> to vector<2x128xbf16>
    %c0_229 = arith.constant 0 : index
    %c0_230 = arith.constant 0 : index
    %591 = vector.load %arg4[%c0_229, %c0_230] : memref<128x512xbf16, #tpu.memory_space<vmem>>, vector<128x512xbf16>
    %cst_231 = arith.constant dense<0.000000e+00> : vector<2x512xf32>
    %592 = tpu.matmul %590, %591, %cst_231 {dimension_numbers = #tpu.dot_dimension_numbers<[1], [0], [0], [1], [0, 0, 1, 1], [], []>} : vector<2x128xbf16>, vector<128x512xbf16>, vector<2x512xf32> -> vector<2x512xf32>
    %593 = arith.addf %589, %592 : vector<2x512xf32>
    %594 = vector.extract_strided_slice %593 {offsets = [0, 0], sizes = [2, 128], strides = [1, 1]} : vector<2x512xf32> to vector<2x128xf32>
    %595 = arith.negf %594 : vector<2x128xf32>
    %596 = math.exp %595 : vector<2x128xf32>
    %cst_232 = arith.constant 1.000000e+00 : f32
    %597 = vector.broadcast %cst_232 : f32 to vector<2x128xf32>
    %598 = arith.addf %597, %596 : vector<2x128xf32>
    %599 = arith.divf %597, %598 : vector<2x128xf32>
    %600 = vector.extract_strided_slice %593 {offsets = [0, 128], sizes = [2, 128], strides = [1, 1]} : vector<2x512xf32> to vector<2x128xf32>
    %601 = arith.negf %600 : vector<2x128xf32>
    %602 = math.exp %601 : vector<2x128xf32>
    %cst_233 = arith.constant 1.000000e+00 : f32
    %603 = vector.broadcast %cst_233 : f32 to vector<2x128xf32>
    %604 = arith.addf %603, %602 : vector<2x128xf32>
    %605 = arith.divf %603, %604 : vector<2x128xf32>
    %606 = vector.extract_strided_slice %593 {offsets = [0, 256], sizes = [2, 128], strides = [1, 1]} : vector<2x512xf32> to vector<2x128xf32>
    %607 = math.tanh %606 : vector<2x128xf32>
    %608 = vector.extract_strided_slice %593 {offsets = [0, 384], sizes = [2, 128], strides = [1, 1]} : vector<2x512xf32> to vector<2x128xf32>
    %609 = arith.negf %608 : vector<2x128xf32>
    %610 = math.exp %609 : vector<2x128xf32>
    %cst_234 = arith.constant 1.000000e+00 : f32
    %611 = vector.broadcast %cst_234 : f32 to vector<2x128xf32>
    %612 = arith.addf %611, %610 : vector<2x128xf32>
    %613 = arith.divf %611, %612 : vector<2x128xf32>
    %614 = arith.mulf %605, %543 : vector<2x128xf32>
    %615 = arith.mulf %599, %607 : vector<2x128xf32>
    %616 = arith.addf %614, %615 : vector<2x128xf32>
    %617 = math.tanh %616 : vector<2x128xf32>
    %618 = arith.mulf %613, %617 : vector<2x128xf32>
    %cst_235 = arith.constant 0.000000e+00 : f32
    %619 = vector.broadcast %cst_235 : f32 to vector<2x128xf32>
    %620 = arith.select %588, %618, %619 : vector<2x128xi1>, vector<2x128xf32>
    %c7_236 = arith.constant 7 : index
    %c0_237 = arith.constant 0 : index
    %c0_238 = arith.constant 0 : index
    %621 = vector.load %arg15[%c7_236, %c0_237, %c0_238] : memref<8x2x128xf32, #tpu.memory_space<vmem>>, vector<1x2x128xf32>
    %622 = vector.shape_cast %621 : vector<1x2x128xf32> to vector<2x128xf32>
    %623 = vector.shape_cast %620 : vector<2x128xf32> to vector<1x2x128xf32>
    tpu.vector_store %arg15[%c7_236, %c0_237, %c0_238], %623 {strides = array<i32>} : memref<8x2x128xf32, #tpu.memory_space<vmem>>, vector<1x2x128xf32>,
    %c0_239 = arith.constant 0 : index
    %c0_240 = arith.constant 0 : index
    %c0_241 = arith.constant 0 : index
    %624 = vector.load %arg1[%c0_239, %c0_240, %c0_241] : memref<8x2x128xf32, #tpu.memory_space<vmem>>, vector<1x2x128xf32>
    %625 = vector.shape_cast %624 : vector<1x2x128xf32> to vector<2x128xf32>
    %cst_242 = arith.constant 0.000000e+00 : f32
    %626 = vector.broadcast %cst_242 : f32 to vector<2x128xf32>
    %627 = arith.cmpf ogt, %625, %626 : vector<2x128xf32>
    %c0_243 = arith.constant 0 : index
    %c0_244 = arith.constant 0 : index
    %628 = vector.load %arg14[%c0_243, %c0_244] : memref<16x512xf32, #tpu.memory_space<vmem>>, vector<2x512xf32>
    %629 = arith.truncf %583 : vector<2x128xf32> to vector<2x128xbf16>
    %c0_245 = arith.constant 0 : index
    %c0_246 = arith.constant 0 : index
    %630 = vector.load %arg5[%c0_245, %c0_246] : memref<128x512xbf16, #tpu.memory_space<vmem>>, vector<128x512xbf16>
    %cst_247 = arith.constant dense<0.000000e+00> : vector<2x512xf32>
    %631 = tpu.matmul %629, %630, %cst_247 {dimension_numbers = #tpu.dot_dimension_numbers<[1], [0], [0], [1], [0, 0, 1, 1], [], []>} : vector<2x128xbf16>, vector<128x512xbf16>, vector<2x512xf32> -> vector<2x512xf32>
    %632 = arith.addf %628, %631 : vector<2x512xf32>
    %633 = vector.extract_strided_slice %632 {offsets = [0, 0], sizes = [2, 128], strides = [1, 1]} : vector<2x512xf32> to vector<2x128xf32>
    %634 = arith.negf %633 : vector<2x128xf32>
    %635 = math.exp %634 : vector<2x128xf32>
    %cst_248 = arith.constant 1.000000e+00 : f32
    %636 = vector.broadcast %cst_248 : f32 to vector<2x128xf32>
    %637 = arith.addf %636, %635 : vector<2x128xf32>
    %638 = arith.divf %636, %637 : vector<2x128xf32>
    %639 = vector.extract_strided_slice %632 {offsets = [0, 128], sizes = [2, 128], strides = [1, 1]} : vector<2x512xf32> to vector<2x128xf32>
    %640 = arith.negf %639 : vector<2x128xf32>
    %641 = math.exp %640 : vector<2x128xf32>
    %cst_249 = arith.constant 1.000000e+00 : f32
    %642 = vector.broadcast %cst_249 : f32 to vector<2x128xf32>
    %643 = arith.addf %642, %641 : vector<2x128xf32>
    %644 = arith.divf %642, %643 : vector<2x128xf32>
    %645 = vector.extract_strided_slice %632 {offsets = [0, 256], sizes = [2, 128], strides = [1, 1]} : vector<2x512xf32> to vector<2x128xf32>
    %646 = math.tanh %645 : vector<2x128xf32>
    %647 = vector.extract_strided_slice %632 {offsets = [0, 384], sizes = [2, 128], strides = [1, 1]} : vector<2x512xf32> to vector<2x128xf32>
    %648 = arith.negf %647 : vector<2x128xf32>
    %649 = math.exp %648 : vector<2x128xf32>
    %cst_250 = arith.constant 1.000000e+00 : f32
    %650 = vector.broadcast %cst_250 : f32 to vector<2x128xf32>
    %651 = arith.addf %650, %649 : vector<2x128xf32>
    %652 = arith.divf %650, %651 : vector<2x128xf32>
    %653 = arith.mulf %644, %584 : vector<2x128xf32>
    %654 = arith.mulf %638, %646 : vector<2x128xf32>
    %655 = arith.addf %653, %654 : vector<2x128xf32>
    %656 = math.tanh %655 : vector<2x128xf32>
    %657 = arith.mulf %652, %656 : vector<2x128xf32>
    %cst_251 = arith.constant 0.000000e+00 : f32
    %658 = vector.broadcast %cst_251 : f32 to vector<2x128xf32>
    %659 = arith.select %627, %657, %658 : vector<2x128xi1>, vector<2x128xf32>
    %c0_252 = arith.constant 0 : index
    %c0_253 = arith.constant 0 : index
    %c0_254 = arith.constant 0 : index
    %660 = vector.load %arg16[%c0_252, %c0_253, %c0_254] : memref<8x2x128xf32, #tpu.memory_space<vmem>>, vector<1x2x128xf32>
    %661 = vector.shape_cast %660 : vector<1x2x128xf32> to vector<2x128xf32>
    %662 = vector.shape_cast %659 : vector<2x128xf32> to vector<1x2x128xf32>
    tpu.vector_store %arg16[%c0_252, %c0_253, %c0_254], %662 {strides = array<i32>} : memref<8x2x128xf32, #tpu.memory_space<vmem>>, vector<1x2x128xf32>,
    %c0_255 = arith.constant 0 : index
    %c0_256 = arith.constant 0 : index
    %c0_257 = arith.constant 0 : index
    %663 = vector.load %arg15[%c0_255, %c0_256, %c0_257] : memref<8x2x128xf32, #tpu.memory_space<vmem>>, vector<8x2x128xf32>
    %c0_258 = arith.constant 0 : index
    %c0_259 = arith.constant 0 : index
    %c0_260 = arith.constant 0 : index
    %664 = vector.load %arg16[%c0_258, %c0_259, %c0_260] : memref<8x2x128xf32, #tpu.memory_space<vmem>>, vector<8x2x128xf32>
    %c0_261 = arith.constant 0 : index
    %c0_262 = arith.constant 0 : index
    %c0_263 = arith.constant 0 : index
    %665 = vector.load %arg6[%c0_261, %c0_262, %c0_263] : memref<1x1x128xf32, #tpu.memory_space<vmem>>, vector<1x1x128xf32>
    %666 = vector.broadcast %665 : vector<1x1x128xf32> to vector<8x2x128xf32>
    %667 = arith.mulf %663, %666 : vector<8x2x128xf32>
    %cst_264 = arith.constant dense<0.000000e+00> : vector<8x2xf32>
    %668 = vector.multi_reduction <add>, %667, %cst_264 [2] : vector<8x2x128xf32> to vector<8x2xf32>
    %669 = vector.shape_cast %668 : vector<8x2xf32> to vector<8x2x1xf32>
    %c0_265 = arith.constant 0 : index
    %c0_266 = arith.constant 0 : index
    %c0_267 = arith.constant 0 : index
    %670 = vector.load %arg7[%c0_265, %c0_266, %c0_267] : memref<1x1x128xf32, #tpu.memory_space<vmem>>, vector<1x1x128xf32>
    %671 = vector.broadcast %670 : vector<1x1x128xf32> to vector<8x2x128xf32>
    %672 = arith.mulf %664, %671 : vector<8x2x128xf32>
    %cst_268 = arith.constant dense<0.000000e+00> : vector<8x2xf32>
    %673 = vector.multi_reduction <add>, %672, %cst_268 [2] : vector<8x2x128xf32> to vector<8x2xf32>
    %674 = vector.shape_cast %673 : vector<8x2xf32> to vector<8x2x1xf32>
    %675 = arith.addf %669, %674 : vector<8x2x1xf32>
    %c0_269 = arith.constant 0 : index
    %c0_270 = arith.constant 0 : index
    %c0_271 = arith.constant 0 : index
    %676 = vector.load %arg8[%c0_269, %c0_270, %c0_271] : memref<1x1x1xf32, #tpu.memory_space<vmem>>, vector<1x1x1xf32>
    %677 = vector.broadcast %676 : vector<1x1x1xf32> to vector<8x2x1xf32>
    %678 = arith.addf %675, %677 : vector<8x2x1xf32>
    %cst_272 = arith.constant dense<0xFF800000> : vector<2x1xf32>
    %679 = vector.multi_reduction <maximumf>, %678, %cst_272 [0] : vector<8x2x1xf32> to vector<2x1xf32>
    %680 = vector.shape_cast %679 : vector<2x1xf32> to vector<1x2x1xf32>
    %681 = vector.broadcast %680 : vector<1x2x1xf32> to vector<8x2x1xf32>
    %682 = arith.subf %678, %681 : vector<8x2x1xf32>
    %683 = math.exp %682 : vector<8x2x1xf32>
    %cst_273 = arith.constant dense<0.000000e+00> : vector<2x1xf32>
    %684 = vector.multi_reduction <add>, %683, %cst_273 [0] : vector<8x2x1xf32> to vector<2x1xf32>
    %685 = vector.shape_cast %684 : vector<2x1xf32> to vector<1x2x1xf32>
    %686 = tpu.reciprocal %685 {approx = true} : vector<1x2x1xf32> -> vector<1x2x1xf32>
    %687 = vector.broadcast %686 : vector<1x2x1xf32> to vector<8x2x1xf32>
    %688 = arith.mulf %683, %687 : vector<8x2x1xf32>
    %689 = vector.broadcast %688 : vector<8x2x1xf32> to vector<8x2x128xf32>
    %690 = arith.mulf %689, %663 : vector<8x2x128xf32>
    %cst_274 = arith.constant dense<0.000000e+00> : vector<2x128xf32>
    %691 = vector.multi_reduction <add>, %690, %cst_274 [0] : vector<8x2x128xf32> to vector<2x128xf32>
    %692 = vector.broadcast %688 : vector<8x2x1xf32> to vector<8x2x128xf32>
    %693 = arith.mulf %692, %664 : vector<8x2x128xf32>
    %cst_275 = arith.constant dense<0.000000e+00> : vector<2x128xf32>
    %694 = vector.multi_reduction <add>, %693, %cst_275 [0] : vector<8x2x128xf32> to vector<2x128xf32>
    %c0_276 = arith.constant 0 : index
    %c0_277 = arith.constant 0 : index
    %695 = vector.load %arg9[%c0_276, %c0_277] : memref<128x4xf32, #tpu.memory_space<vmem>>, vector<128x4xf32>
    %cst_278 = arith.constant dense<0.000000e+00> : vector<2x4xf32>
    %696 = tpu.matmul %691, %695, %cst_278 {dimension_numbers = #tpu.dot_dimension_numbers<[1], [0], [0], [1], [0, 0, 1, 1], [], []>} : vector<2x128xf32>, vector<128x4xf32>, vector<2x4xf32> -> vector<2x4xf32>
    %c0_279 = arith.constant 0 : index
    %c0_280 = arith.constant 0 : index
    %697 = vector.load %arg10[%c0_279, %c0_280] : memref<128x4xf32, #tpu.memory_space<vmem>>, vector<128x4xf32>
    %cst_281 = arith.constant dense<0.000000e+00> : vector<2x4xf32>
    %698 = tpu.matmul %694, %697, %cst_281 {dimension_numbers = #tpu.dot_dimension_numbers<[1], [0], [0], [1], [0, 0, 1, 1], [], []>} : vector<2x128xf32>, vector<128x4xf32>, vector<2x4xf32> -> vector<2x4xf32>
    %699 = arith.addf %696, %698 : vector<2x4xf32>
    %c0_282 = arith.constant 0 : index
    %c0_283 = arith.constant 0 : index
    %700 = vector.load %arg11[%c0_282, %c0_283] : memref<1x4xf32, #tpu.memory_space<vmem>>, vector<1x4xf32>
    %701 = vector.broadcast %700 : vector<1x4xf32> to vector<2x4xf32>
    %702 = arith.addf %699, %701 : vector<2x4xf32>
    %c0_284 = arith.constant 0 : index
    %c0_285 = arith.constant 0 : index
    %703 = vector.load %arg12[%c0_284, %c0_285] : memref<2x4xf32, #tpu.memory_space<vmem>>, vector<2x4xf32>
    tpu.vector_store %arg12[%c0_284, %c0_285], %702 {strides = array<i32>} : memref<2x4xf32, #tpu.memory_space<vmem>>, vector<2x4xf32>,
    return
  }
}

</mosaic_0001>

<bundles_post_ra>
// kernel: tpu_custom_call.1
= control target key start
LH: loop header
LB: loop body
LE: loop exit
PB: predicated region body
PF: predicated region fallthrough
CT: control target
= control target key end

     0   :  { %s12823_s0 = inlined_call_operand.hbm [shape: bf16[16,128], index: 0, kind: input, shape index: {}]   ;;  %s12824_s1 = inlined_call_operand.hbm [shape: f32[8,2,128], index: 1, kind: input, shape index: {}]   ;;  %s12825_s2 = inlined_call_operand.hbm [shape: bf16[128,1024], index: 2, kind: input, shape index: {}]   ;;  %s12826_s3 = inlined_call_operand.hbm [shape: f32[1,1024], index: 3, kind: input, shape index: {}]   ;;  %s12827_s4 = inlined_call_operand.vmem [shape: bf16[128,512], index: 4, kind: input, shape index: {}]   ;;  %s12828_s5 = inlined_call_operand.hbm [shape: bf16[128,512], index: 5, kind: input, shape index: {}]   ;;  %s12829_s6 = inlined_call_operand.vmem [shape: f32[1,1,128], index: 6, kind: input, shape index: {}]   ;;  %s12830_s7 = inlined_call_operand.vmem [shape: f32[1,1,128], index: 7, kind: input, shape index: {}]   ;;  %s12831_s8 = inlined_call_operand.<no memory space> [shape: f32[1,1,1], index: 8, kind: input, shape index: {}]   ;;  %s12832_s9 = inlined_call_operand.vmem [shape: f32[128,4], index: 9, kind: input, shape index: {}]   ;;  %s12833_s10 = inlined_call_operand.vmem [shape: f32[128,4], index: 10, kind: input, shape index: {}]   ;;  %s12834_s11 = inlined_call_operand.vmem [shape: f32[1,4], index: 11, kind: input, shape index: {}]   ;;  %s12835_s12 = inlined_call_operand.hbm [shape: f32[2,4], index: 12, kind: output, shape index: {}]  }
   0x1   :  { %v17_v0 = vstv %s12831_s8 }
   0x2   :  { %18 = vst [vmem:[#allocation6] sm:$0x1] %v17_v0 }
   0x3   :  { %19 = vsyncpa [#allocation8], 0 }
   0x4   :  { %20 = vsyncpa [#allocation11], 0 }
   0x5   :  { %21 = vsyncpa [#allocation14], 0  ;;  %s40_s25 = sshll.u32 %s12824_s1, 4  ;;  %s41_s25 = int_to_ptr.hbm [resolvable:$true] %s40_s25 }
   0x6   :  { %22 = vsyncpa [#allocation9], 0  ;;  %s9846_s26 = smov [#allocation10]   ;;  %s67_s30 = sshll.u32 %s12826_s3, 4  ;;  %s68_s30 = int_to_ptr.hbm [resolvable:$true] %s67_s30 }
   0x7   :  { %s42_s27 = sshll.u32 %s9846_s26, 4  ;;  %s9847_s13 = smov 32   ;;  %s43_s27 = int_to_ptr.vmem [resolvable:$true] %s42_s27 }
   0x8   :  { %s9848_s14 = smov 2   ;;  %s9849_s8 = smov [#allocation13]  }
   0x9   :  { %48 = dma.hbm_to_vmem [thread:$0]  %s41_s25, 256, %s43_s27, [#allocation11], %s9847_s13, %s9847_s13, %s9848_s14  }
   0xa   :  { %s69_s15 = sshll.u32 %s9849_s8, 4  ;;  %s27_s18 = sshll.u32 %s12823_s0, 4  ;;  %s70_s15 = int_to_ptr.vmem [resolvable:$true] %s69_s15  ;;  %s28_s18 = int_to_ptr.hbm [resolvable:$true] %s27_s18 }
   0xb   :  { %72 = dma.hbm_to_vmem [thread:$0]  %s68_s30, 128, %s70_s15, [#allocation14]  }
   0xc   :  { %s9850_s1 = smov [#allocation7]   ;;  %s53_s3 = sshll.u32 %s12825_s2, 4  ;;  %s54_s3 = int_to_ptr.hbm [resolvable:$true] %s53_s3 }
   0xd   :  { %s29_s19 = sshll.u32 %s9850_s1, 4  ;;  %s9851_s22 = smov 64   ;;  %s30_s19 = int_to_ptr.vmem [resolvable:$true] %s29_s19 }
   0xe   :  { %s9852_s23 = smov 4   ;;  %s9853_s24 = smov [#allocation12]  }
   0xf   :  { %35 = dma.hbm_to_vmem [thread:$0]  %s28_s18, 128, %s30_s19, [#allocation8], %s9851_s22, %s9851_s22, %s9852_s23  }
  0x10   :  { %s55_s25 = sshll.u32 %s9853_s24, 4  ;;  %s79_s0 = sshll.u32 %s12828_s5, 4  ;;  %s56_s25 = int_to_ptr.vmem [resolvable:$true] %s55_s25  ;;  %s80_s0 = int_to_ptr.hbm [resolvable:$true] %s79_s0 }
  0x11   :  { %s9854_s28 = smov 512   ;;  %s9855_s29 = smov [#allocation15]  }
  0x12   :  { %61 = dma.hbm_to_vmem [thread:$0]  %s54_s3, 8192, %s56_s25, [#allocation11], %s9854_s28, %s9854_s28, %s9847_s13  }
  0x13   :  { %s81_s30 = sshll.u32 %s9855_s29, 4  ;;  %s9856_s14 = smov 256   ;;  %s82_s30 = int_to_ptr.vmem [resolvable:$true] %s81_s30 }
  0x14   :  { %s9857_s8 = smov 16  }
  0x15   :  { %87 = dma.hbm_to_vmem [thread:$0]  %s80_s0, 4096, %s82_s30, [#allocation14], %s9856_s14, %s9856_s14, %s9857_s8  }
  0x16   :  { %9838 = dma.done.wait [#allocation8], 128  }
  0x17   :  { %9839 = vsyncadd [#allocation8], 4294967168 }
  0x18   :  { %9840 = dma.done.wait [#allocation11], 8448  }
  0x19   :  { %9841 = vsyncadd [#allocation11], 4294958848 }
  0x1a   :  { %9842 = dma.done.wait [#allocation14], 4224  }
  0x1b   :  { %9843 = vsyncadd [#allocation14], 4294963072  ;;  %v6657_v1 = vld [vmem:[#allocation12 + $0x1c0] sm:$0xf]  ;;  %v8864_v3 = vld [vmem:[#allocation12 + $0x1c4] sm:$0xf] }
  0x1c   :  { %v8868_v2 = vld [vmem:[#allocation12 + $0x1dc] sm:$0xf0]  ;;  %v6659_v5 = vld [vmem:[#allocation12 + $0x1e0] sm:$0xf0]  ;;  %v6665_v6 = vld [vmem:[#allocation12 + $0x1c8] sm:$0xf] }
  0x1d   :  { %v6658_v4 = vor.u32 %v8868_v2, %v6657_v1  ;;  %v8869_v7 = vld [vmem:[#allocation12 + $0x1e4] sm:$0xf0]  ;;  %v6662_v8 = vor.u32 %v8864_v3, %v6659_v5  ;;  %v8865_v10 = vld [vmem:[#allocation12 + $0x1cc] sm:$0xf]  ;;  %v6625_v12 = vld [vmem:[#allocation12 + $0x180] sm:$0xf] }
  0x1e   :  { %v6666_v9 = vor.u32 %v8869_v7, %v6665_v6  ;;  %v6667_v11 = vld [vmem:[#allocation12 + $0x1e8] sm:$0xf0]  ;;  %v8860_v14 = vld [vmem:[#allocation12 + $0x19c] sm:$0xf0]  ;;  %v8856_v15 = vld [vmem:[#allocation12 + $0x184] sm:$0xf] }
  0x1f   :  { %531 = vmatpush.bf16.msra.mxu0 %v6658_v4  ;;  %v6670_v13 = vor.u32 %v8865_v10, %v6667_v11  ;;  %v6627_v16 = vld [vmem:[#allocation12 + $0x1a0] sm:$0xf0]  ;;  %545 = vmatpush.bf16.msra.mxu1 %v6662_v8  ;;  %v6626_v17 = vor.u32 %v8860_v14, %v6625_v12  ;;  %v6633_v19 = vld [vmem:[#allocation12 + $0x188] sm:$0xf]  ;;  %v8857_v21 = vld [vmem:[#allocation12 + $0x18c] sm:$0xf] }
  0x20   :  { %559 = vmatpush.bf16.msra.mxu2 %v6666_v9  ;;  %v6630_v18 = vor.u32 %v8856_v15, %v6627_v16  ;;  %v8861_v20 = vld [vmem:[#allocation12 + $0x1a4] sm:$0xf0]  ;;  %v6635_v23 = vld [vmem:[#allocation12 + $0x1a8] sm:$0xf0]  ;;  %v6593_v24 = vld [vmem:[#allocation12 + $0x140] sm:$0xf] }
  0x21   :  { %573 = vmatpush.bf16.msra.mxu3 %v6670_v13  ;;  %v6634_v22 = vor.u32 %v8861_v20, %v6633_v19  ;;  %v8852_v25 = vld [vmem:[#allocation12 + $0x15c] sm:$0xf0]  ;;  %v6638_v26 = vor.u32 %v8857_v21, %v6635_v23  ;;  %v8848_v27 = vld [vmem:[#allocation12 + $0x144] sm:$0xf]  ;;  %v6601_v29 = vld [vmem:[#allocation12 + $0x148] sm:$0xf] }
  0x22   :  { %v6595_v28 = vld [vmem:[#allocation12 + $0x160] sm:$0xf0]  ;;  %v6594_v30 = vor.u32 %v8852_v25, %v6593_v24  ;;  %v8853_v31 = vld [vmem:[#allocation12 + $0x164] sm:$0xf0]  ;;  %v8849_v32 = vld [vmem:[#allocation12 + $0x14c] sm:$0xf] }
  0x23   :  { %532 = vmatpush.bf16.msra.mxu0 %v6626_v17  ;;  %v6603_v33 = vld [vmem:[#allocation12 + $0x168] sm:$0xf0]  ;;  %546 = vmatpush.bf16.msra.mxu1 %v6630_v18  ;;  %v6598_v34 = vor.u32 %v8848_v27, %v6595_v28  ;;  %v6602_v35 = vor.u32 %v8853_v31, %v6601_v29  ;;  %v6561_v36 = vld [vmem:[#allocation12 + $0x100] sm:$0xf]  ;;  %v8840_v38 = vld [vmem:[#allocation12 + $0x104] sm:$0xf] }
  0x24   :  { %560 = vmatpush.bf16.msra.mxu2 %v6634_v22  ;;  %v8844_v37 = vld [vmem:[#allocation12 + $0x11c] sm:$0xf0]  ;;  %v6606_v39 = vor.u32 %v8849_v32, %v6603_v33  ;;  %v6563_v40 = vld [vmem:[#allocation12 + $0x120] sm:$0xf0]  ;;  %v6569_v41 = vld [vmem:[#allocation12 + $0x108] sm:$0xf] }
  0x25   :  { %574 = vmatpush.bf16.msra.mxu3 %v6638_v26  ;;  %v8845_v42 = vld [vmem:[#allocation12 + $0x124] sm:$0xf0]  ;;  %v8841_v43 = vld [vmem:[#allocation12 + $0x10c] sm:$0xf]  ;;  %v6562_v45 = vor.u32 %v8844_v37, %v6561_v36  ;;  %v6566_v46 = vor.u32 %v8840_v38, %v6563_v40  ;;  %v6529_v48 = vld [vmem:[#allocation12 + $0xc0] sm:$0xf] }
  0x26   :  { %v6571_v44 = vld [vmem:[#allocation12 + $0x128] sm:$0xf0]  ;;  %v6570_v47 = vor.u32 %v8845_v42, %v6569_v41  ;;  %v8836_v49 = vld [vmem:[#allocation12 + $0xdc] sm:$0xf0]  ;;  %v8832_v50 = vld [vmem:[#allocation12 + $0xc4] sm:$0xf] }
  0x27   :  { %533 = vmatpush.bf16.msra.mxu0 %v6594_v30  ;;  %547 = vmatpush.bf16.msra.mxu1 %v6598_v34  ;;  %v6574_v51 = vor.u32 %v8841_v43, %v6571_v44  ;;  %v6531_v52 = vld [vmem:[#allocation12 + $0xe0] sm:$0xf0]  ;;  %v6537_v53 = vld [vmem:[#allocation12 + $0xc8] sm:$0xf]  ;;  %v8833_v55 = vld [vmem:[#allocation12 + $0xcc] sm:$0xf]  ;;  %v6530_v57 = vor.u32 %v8836_v49, %v6529_v48 }
  0x28   :  { %561 = vmatpush.bf16.msra.mxu2 %v6602_v35  ;;  %v8837_v54 = vld [vmem:[#allocation12 + $0xe4] sm:$0xf0]  ;;  %v6539_v56 = vld [vmem:[#allocation12 + $0xe8] sm:$0xf0]  ;;  %v6534_v58 = vor.u32 %v8832_v50, %v6531_v52  ;;  %v6497_v60 = vld [vmem:[#allocation12 + $0x80] sm:$0xf] }
  0x29   :  { %575 = vmatpush.bf16.msra.mxu3 %v6606_v39  ;;  %v6538_v59 = vor.u32 %v8837_v54, %v6537_v53  ;;  %v8828_v61 = vld [vmem:[#allocation12 + $0x9c] sm:$0xf0]  ;;  %v8824_v62 = vld [vmem:[#allocation12 + $0x84] sm:$0xf]  ;;  %v6542_v63 = vor.u32 %v8833_v55, %v6539_v56  ;;  %v6505_v1 = vld [vmem:[#allocation12 + $0x88] sm:$0xf] }
  0x2a   :  { %v6499_v0 = vld [vmem:[#allocation12 + $0xa0] sm:$0xf0]  ;;  %v8829_v2 = vld [vmem:[#allocation12 + $0xa4] sm:$0xf0]  ;;  %v8825_v3 = vld [vmem:[#allocation12 + $0x8c] sm:$0xf]  ;;  %v6498_v5 = vor.u32 %v8828_v61, %v6497_v60 }
  0x2b   :  { %534 = vmatpush.bf16.msra.mxu0 %v6562_v45  ;;  %548 = vmatpush.bf16.msra.mxu1 %v6566_v46  ;;  %v6507_v4 = vld [vmem:[#allocation12 + $0xa8] sm:$0xf0]  ;;  %v6502_v6 = vor.u32 %v8824_v62, %v6499_v0  ;;  %v6506_v7 = vor.u32 %v8829_v2, %v6505_v1  ;;  %v6465_v8 = vld [vmem:[#allocation12 + $0x40] sm:$0xf]  ;;  %v8816_v10 = vld [vmem:[#allocation12 + $0x44] sm:$0xf] }
  0x2c   :  { %562 = vmatpush.bf16.msra.mxu2 %v6570_v47  ;;  %v8820_v9 = vld [vmem:[#allocation12 + $0x5c] sm:$0xf0]  ;;  %v6510_v11 = vor.u32 %v8825_v3, %v6507_v4  ;;  %v6467_v12 = vld [vmem:[#allocation12 + $0x60] sm:$0xf0]  ;;  %v6473_v13 = vld [vmem:[#allocation12 + $0x48] sm:$0xf] }
  0x2d   :  { %576 = vmatpush.bf16.msra.mxu3 %v6574_v51  ;;  %v8821_v14 = vld [vmem:[#allocation12 + $0x64] sm:$0xf0]  ;;  %v8817_v15 = vld [vmem:[#allocation12 + $0x4c] sm:$0xf]  ;;  %v6466_v17 = vor.u32 %v8820_v9, %v6465_v8  ;;  %v6433_v18 = vld [vmem:[#allocation12] sm:$0xf]  ;;  %v6470_v20 = vor.u32 %v8816_v10, %v6467_v12 }
  0x2e   :  { %v6475_v16 = vld [vmem:[#allocation12 + $0x68] sm:$0xf0]  ;;  %v8812_v19 = vld [vmem:[#allocation12 + $0x1c] sm:$0xf0]  ;;  %v6474_v21 = vor.u32 %v8821_v14, %v6473_v13  ;;  %v8808_v22 = vld [vmem:[#allocation12 + $0x4] sm:$0xf] }
  0x2f   :  { %535 = vmatpush.bf16.msra.mxu0 %v6530_v57  ;;  %549 = vmatpush.bf16.msra.mxu1 %v6534_v58  ;;  %v6435_v23 = vld [vmem:[#allocation12 + $0x20] sm:$0xf0]  ;;  %v6441_v24 = vld [vmem:[#allocation12 + $0x8] sm:$0xf]  ;;  %v6478_v25 = vor.u32 %v8817_v15, %v6475_v16  ;;  %v8809_v27 = vld [vmem:[#allocation12 + $0xc] sm:$0xf]  ;;  %v6434_v32 = vor.u32 %v8812_v19, %v6433_v18 }
  0x30   :  { %563 = vmatpush.bf16.msra.mxu2 %v6538_v59  ;;  %v8813_v26 = vld [vmem:[#allocation12 + $0x24] sm:$0xf0]  ;;  %v6443_v28 = vld [vmem:[#allocation12 + $0x28] sm:$0xf0]  ;;  %v6673_v29 = vld [vmem:[#allocation12 + $0x1d0] sm:$0xf]  ;;  %v6438_v36 = vor.u32 %v8808_v22, %v6435_v23 }
  0x31   :  { %577 = vmatpush.bf16.msra.mxu3 %v6542_v63  ;;  %v8870_v30 = vld [vmem:[#allocation12 + $0x1ec] sm:$0xf0]  ;;  %v8866_v31 = vld [vmem:[#allocation12 + $0x1d4] sm:$0xf]  ;;  %v6681_v34 = vld [vmem:[#allocation12 + $0x1d8] sm:$0xf]  ;;  %v6442_v37 = vor.u32 %v8813_v26, %v6441_v24  ;;  %v6446_v40 = vor.u32 %v8809_v27, %v6443_v28 }
  0x32   :  { %v6675_v33 = vld [vmem:[#allocation12 + $0x1f0] sm:$0xf0]  ;;  %v8871_v35 = vld [vmem:[#allocation12 + $0x1f4] sm:$0xf0]  ;;  %v8867_v38 = vld [vmem:[#allocation12 + $0x1dc] sm:$0xf]  ;;  %v6674_v41 = vor.u32 %v8870_v30, %v6673_v29 }
  0x33   :  { %536 = vmatpush.bf16.msra.mxu0 %v6498_v5  ;;  %550 = vmatpush.bf16.msra.mxu1 %v6502_v6  ;;  %v6683_v39 = vld [vmem:[#allocation12 + $0x1f8] sm:$0xf0]  ;;  %v6678_v42 = vor.u32 %v8866_v31, %v6675_v33  ;;  %v6682_v43 = vor.u32 %v8871_v35, %v6681_v34  ;;  %v6641_v44 = vld [vmem:[#allocation12 + $0x190] sm:$0xf]  ;;  %v8858_v46 = vld [vmem:[#allocation12 + $0x194] sm:$0xf] }
  0x34   :  { %564 = vmatpush.bf16.msra.mxu2 %v6506_v7  ;;  %v8862_v45 = vld [vmem:[#allocation12 + $0x1ac] sm:$0xf0]  ;;  %v6686_v47 = vor.u32 %v8867_v38, %v6683_v39  ;;  %v6643_v48 = vld [vmem:[#allocation12 + $0x1b0] sm:$0xf0]  ;;  %v6649_v49 = vld [vmem:[#allocation12 + $0x198] sm:$0xf] }
  0x35   :  { %578 = vmatpush.bf16.msra.mxu3 %v6510_v11  ;;  %v8863_v50 = vld [vmem:[#allocation12 + $0x1b4] sm:$0xf0]  ;;  %v8859_v51 = vld [vmem:[#allocation12 + $0x19c] sm:$0xf]  ;;  %v6642_v53 = vor.u32 %v8862_v45, %v6641_v44  ;;  %v6646_v54 = vor.u32 %v8858_v46, %v6643_v48  ;;  %v6609_v56 = vld [vmem:[#allocation12 + $0x150] sm:$0xf] }
  0x36   :  { %v6651_v52 = vld [vmem:[#allocation12 + $0x1b8] sm:$0xf0]  ;;  %v6650_v55 = vor.u32 %v8863_v50, %v6649_v49  ;;  %v8854_v57 = vld [vmem:[#allocation12 + $0x16c] sm:$0xf0]  ;;  %v8850_v58 = vld [vmem:[#allocation12 + $0x154] sm:$0xf] }
  0x37   :  { %537 = vmatpush.bf16.msra.mxu0 %v6466_v17  ;;  %551 = vmatpush.bf16.msra.mxu1 %v6470_v20  ;;  %v6654_v59 = vor.u32 %v8859_v51, %v6651_v52  ;;  %v6611_v60 = vld [vmem:[#allocation12 + $0x170] sm:$0xf0]  ;;  %v6617_v61 = vld [vmem:[#allocation12 + $0x158] sm:$0xf]  ;;  %v8851_v63 = vld [vmem:[#allocation12 + $0x15c] sm:$0xf]  ;;  %v6610_v1 = vor.u32 %v8854_v57, %v6609_v56 }
  0x38   :  { %565 = vmatpush.bf16.msra.mxu2 %v6474_v21  ;;  %v8855_v62 = vld [vmem:[#allocation12 + $0x174] sm:$0xf0]  ;;  %v6619_v0 = vld [vmem:[#allocation12 + $0x178] sm:$0xf0]  ;;  %v9943_v2 = vld [vmem:[#allocation7] sm:$0xff]  ;;  %v6614_v3 = vor.u32 %v8850_v58, %v6611_v60  ;;  %vm6098_vm14 = vcmask 1041408  }
  0x39   :  { %579 = vmatpush.bf16.msra.mxu3 %v6478_v25  ;;  %v6618_v4 = vor.u32 %v8855_v62, %v6617_v61  ;;  %v6577_v5 = vld [vmem:[#allocation12 + $0x110] sm:$0xf]  ;;  %v8842_v7 = vld [vmem:[#allocation12 + $0x114] sm:$0xf]  ;;  %v6622_v8 = vor.u32 %v8851_v63, %v6619_v0  ;;  %v6585_v10 = vld [vmem:[#allocation12 + $0x118] sm:$0xf] }
  0x3a   :  { %v8846_v6 = vld [vmem:[#allocation12 + $0x12c] sm:$0xf0]  ;;  %v6579_v9 = vld [vmem:[#allocation12 + $0x130] sm:$0xf0]  ;;  %v8847_v11 = vld [vmem:[#allocation12 + $0x134] sm:$0xf0] }
  0x3b   :  { %538 = vmatpush.bf16.msra.mxu0 %v6434_v32  ;;  %552 = vmatpush.bf16.msra.mxu1 %v6438_v36  ;;  %v8843_v12 = vld [vmem:[#allocation12 + $0x11c] sm:$0xf]  ;;  %v6578_v14 = vor.u32 %v8846_v6, %v6577_v5  ;;  %v6582_v15 = vor.u32 %v8842_v7, %v6579_v9  ;;  %v6586_v16 = vor.u32 %v8847_v11, %v6585_v10  ;;  %v6545_v17 = vld [vmem:[#allocation12 + $0xd0] sm:$0xf]  ;;  %v8834_v19 = vld [vmem:[#allocation12 + $0xd4] sm:$0xf] }
  0x3c   :  { %566 = vmatpush.bf16.msra.mxu2 %v6442_v37  ;;  %v6587_v13 = vld [vmem:[#allocation12 + $0x138] sm:$0xf0]  ;;  %v8838_v18 = vld [vmem:[#allocation12 + $0xec] sm:$0xf0]  ;;  %v6547_v21 = vld [vmem:[#allocation12 + $0xf0] sm:$0xf0] }
  0x3d   :  { %580 = vmatpush.bf16.msra.mxu3 %v6446_v40  ;;  %v6590_v20 = vor.u32 %v8843_v12, %v6587_v13  ;;  %v6553_v22 = vld [vmem:[#allocation12 + $0xd8] sm:$0xf]  ;;  %v8835_v24 = vld [vmem:[#allocation12 + $0xdc] sm:$0xf]  ;;  %v6546_v26 = vor.u32 %v8838_v18, %v6545_v17  ;;  %v6550_v27 = vor.u32 %v8834_v19, %v6547_v21  ;;  %v6513_v29 = vld [vmem:[#allocation12 + $0x90] sm:$0xf] }
  0x3e   :  { %539 = vmatmul.bf16.vlgmr.msra.gmra.mxu0 %v9943_v2  ;;  %553 = vmatmul.bf16.vlgmr.msra.gmra.mxu1 %v9943_v2  ;;  %v8839_v23 = vld [vmem:[#allocation12 + $0xf4] sm:$0xf0]  ;;  %v6555_v25 = vld [vmem:[#allocation12 + $0xf8] sm:$0xf0]  ;;  %v8830_v30 = vld [vmem:[#allocation12 + $0xac] sm:$0xf0] }
  0x3f   :  { %587 = vmatpush.bf16.msrb.mxu0 %v6674_v41  ;;  %601 = vmatpush.bf16.msrb.mxu1 %v6678_v42  ;;  %v6554_v28 = vor.u32 %v8839_v23, %v6553_v22  ;;  %v8826_v31 = vld [vmem:[#allocation12 + $0x94] sm:$0xf]  ;;  %v6558_v32 = vor.u32 %v8835_v24, %v6555_v25  ;;  %v6521_v34 = vld [vmem:[#allocation12 + $0x98] sm:$0xf]  ;;  %v8827_v36 = vld [vmem:[#allocation12 + $0x9c] sm:$0xf]  ;;  %v6514_v38 = vor.u32 %v8830_v30, %v6513_v29 }
  0x40   :  { %615 = vmatpush.bf16.msrb.mxu2 %v6682_v43  ;;  %581 = vmatmul.bf16.vlgmr.msra.gmra.mxu3 %v9943_v2  ;;  %v6515_v33 = vld [vmem:[#allocation12 + $0xb0] sm:$0xf0]  ;;  %v8831_v35 = vld [vmem:[#allocation12 + $0xb4] sm:$0xf0]  ;;  %v6523_v37 = vld [vmem:[#allocation12 + $0xb8] sm:$0xf0] }
  0x41   :  { %629 = vmatpush.bf16.msrb.mxu3 %v6686_v47  ;;  %567 = vmatmul.bf16.vlgmr.msra.gmra.mxu2 %v9943_v2  ;;  %v6518_v39 = vor.u32 %v8826_v31, %v6515_v33  ;;  %v6522_v40 = vor.u32 %v8831_v35, %v6521_v34  ;;  %v6481_v41 = vld [vmem:[#allocation12 + $0x50] sm:$0xf]  ;;  %v8818_v43 = vld [vmem:[#allocation12 + $0x54] sm:$0xf]  ;;  %v6526_v44 = vor.u32 %v8827_v36, %v6523_v37  ;;  %v6489_v46 = vld [vmem:[#allocation12 + $0x58] sm:$0xf] }
  0x42   :  { %v8822_v42 = vld [vmem:[#allocation12 + $0x6c] sm:$0xf0]  ;;  %v6483_v45 = vld [vmem:[#allocation12 + $0x70] sm:$0xf0]  ;;  %v8823_v47 = vld [vmem:[#allocation12 + $0x74] sm:$0xf0] }
  0x43   :  { %588 = vmatpush.bf16.msrb.mxu0 %v6642_v53  ;;  %602 = vmatpush.bf16.msrb.mxu1 %v6646_v54  ;;  %v8819_v48 = vld [vmem:[#allocation12 + $0x5c] sm:$0xf]  ;;  %v6482_v50 = vor.u32 %v8822_v42, %v6481_v41  ;;  %v6449_v51 = vld [vmem:[#allocation12 + $0x10] sm:$0xf]  ;;  %v6486_v53 = vor.u32 %v8818_v43, %v6483_v45  ;;  %v6490_v54 = vor.u32 %v8823_v47, %v6489_v46  ;;  %v6451_v56 = vld [vmem:[#allocation12 + $0x30] sm:$0xf0] }
  0x44   :  { %616 = vmatpush.bf16.msrb.mxu2 %v6650_v55  ;;  %v6491_v49 = vld [vmem:[#allocation12 + $0x78] sm:$0xf0]  ;;  %v8814_v52 = vld [vmem:[#allocation12 + $0x2c] sm:$0xf0]  ;;  %v8810_v55 = vld [vmem:[#allocation12 + $0x14] sm:$0xf] }
  0x45   :  { %630 = vmatpush.bf16.msrb.mxu3 %v6654_v59  ;;  %v6457_v57 = vld [vmem:[#allocation12 + $0x18] sm:$0xf]  ;;  %v6494_v58 = vor.u32 %v8819_v48, %v6491_v49  ;;  %v8811_v60 = vld [vmem:[#allocation12 + $0x1c] sm:$0xf]  ;;  %v6801_v62 = vld [vmem:[%s12827_s4 + $0xe0] sm:$0xf]  ;;  %v6454_v6 = vor.u32 %v8810_v55, %v6451_v56 }
  0x46   :  { %v8815_v59 = vld [vmem:[#allocation12 + $0x34] sm:$0xf0]  ;;  %v6459_v61 = vld [vmem:[#allocation12 + $0x38] sm:$0xf0]  ;;  %v8900_v0 = vld [vmem:[%s12827_s4 + $0xe4] sm:$0xf] }
  0x47   :  { %589 = vmatpush.bf16.msrb.mxu0 %v6610_v1  ;;  %603 = vmatpush.bf16.msrb.mxu1 %v6614_v3  ;;  %v8902_v63 = vld [vmem:[%s12827_s4 + $0xec] sm:$0xf0]  ;;  %v6450_v1 = vor.u32 %v8814_v52, %v6449_v51  ;;  %v6803_v3 = vld [vmem:[%s12827_s4 + $0xf0] sm:$0xf0]  ;;  %v8903_v5 = vld [vmem:[%s12827_s4 + $0xf4] sm:$0xf0]  ;;  %v6458_v7 = vor.u32 %v8815_v59, %v6457_v57  ;;  %v6462_v10 = vor.u32 %v8811_v60, %v6459_v61 }
  0x48   :  { %617 = vmatpush.bf16.msrb.mxu2 %v6618_v4  ;;  %v6809_v4 = vld [vmem:[%s12827_s4 + $0xe8] sm:$0xf]  ;;  %v6811_v9 = vld [vmem:[%s12827_s4 + $0xf8] sm:$0xf0]  ;;  %v6802_v11 = vor.u32 %v8902_v63, %v6801_v62  ;;  %v6806_v12 = vor.u32 %v8900_v0, %v6803_v3  ;;  %v6787_v18 = vld [vmem:[%s12827_s4 + $0xd0] sm:$0xf0] }
  0x49   :  { %631 = vmatpush.bf16.msrb.mxu3 %v6622_v8  ;;  %v8901_v8 = vld [vmem:[%s12827_s4 + $0xec] sm:$0xf]  ;;  %v6810_v13 = vor.u32 %v8903_v5, %v6809_v4  ;;  %v6793_v19 = vld [vmem:[%s12827_s4 + $0xc8] sm:$0xf]  ;;  %v6795_v22 = vld [vmem:[%s12827_s4 + $0xd8] sm:$0xf0] }
  0x4a   :  { %v6814_v17 = vor.u32 %v8901_v8, %v6811_v9  ;;  %v8897_v21 = vld [vmem:[%s12827_s4 + $0xcc] sm:$0xf]  ;;  %v6771_v30 = vld [vmem:[%s12827_s4 + $0xb0] sm:$0xf0]  ;;  %v6777_v31 = vld [vmem:[%s12827_s4 + $0xa8] sm:$0xf] }
  0x4b   :  { %590 = vmatpush.bf16.msrb.mxu0 %v6578_v14  ;;  %604 = vmatpush.bf16.msrb.mxu1 %v6582_v15  ;;  %v6785_v14 = vld [vmem:[%s12827_s4 + $0xc0] sm:$0xf]  ;;  %v8898_v15 = vld [vmem:[%s12827_s4 + $0xcc] sm:$0xf0]  ;;  %v6798_v29 = vor.u32 %v8897_v21, %v6795_v22  ;;  %v8893_v33 = vld [vmem:[%s12827_s4 + $0xac] sm:$0xf] }
  0x4c   :  { %618 = vmatpush.bf16.msrb.mxu2 %v6586_v16  ;;  %v8896_v16 = vld [vmem:[%s12827_s4 + $0xc4] sm:$0xf]  ;;  %v6786_v23 = vor.u32 %v8898_v15, %v6785_v14  ;;  %v6779_v34 = vld [vmem:[%s12827_s4 + $0xb8] sm:$0xf0]  ;;  %v6753_v36 = vld [vmem:[%s12827_s4 + $0x80] sm:$0xf] }
  0x4d   :  { %632 = vmatpush.bf16.msrb.mxu3 %v6590_v20  ;;  %v8899_v20 = vld [vmem:[%s12827_s4 + $0xd4] sm:$0xf0]  ;;  %v6790_v24 = vor.u32 %v8896_v16, %v6787_v18  ;;  %v6782_v41 = vor.u32 %v8893_v33, %v6779_v34  ;;  %v6755_v42 = vld [vmem:[%s12827_s4 + $0x90] sm:$0xf0]  ;;  %v8889_v45 = vld [vmem:[%s12827_s4 + $0x8c] sm:$0xf] }
  0x4e   :  { %v6794_v25 = vor.u32 %v8899_v20, %v6793_v19  ;;  %v8891_v43 = vld [vmem:[%s12827_s4 + $0x94] sm:$0xf0]  ;;  %v6763_v46 = vld [vmem:[%s12827_s4 + $0x98] sm:$0xf0]  ;;  %v8886_v51 = vld [vmem:[%s12827_s4 + $0x6c] sm:$0xf0] }
  0x4f   :  { %591 = vmatpush.bf16.msrb.mxu0 %v6546_v26  ;;  %605 = vmatpush.bf16.msrb.mxu1 %v6550_v27  ;;  %v6769_v26 = vld [vmem:[%s12827_s4 + $0xa0] sm:$0xf]  ;;  %v8894_v27 = vld [vmem:[%s12827_s4 + $0xac] sm:$0xf0]  ;;  %v8884_v52 = vld [vmem:[%s12827_s4 + $0x64] sm:$0xf] }
  0x50   :  { %619 = vmatpush.bf16.msrb.mxu2 %v6554_v28  ;;  %v8892_v28 = vld [vmem:[%s12827_s4 + $0xa4] sm:$0xf]  ;;  %v6770_v35 = vor.u32 %v8894_v27, %v6769_v26  ;;  %v6745_v55 = vld [vmem:[%s12827_s4 + $0x68] sm:$0xf]  ;;  %v8887_v56 = vld [vmem:[%s12827_s4 + $0x74] sm:$0xf0] }
  0x51   :  { %633 = vmatpush.bf16.msrb.mxu3 %v6558_v32  ;;  %v8895_v32 = vld [vmem:[%s12827_s4 + $0xb4] sm:$0xf0]  ;;  %v6774_v37 = vor.u32 %v8892_v28, %v6771_v30  ;;  %v8885_v57 = vld [vmem:[%s12827_s4 + $0x6c] sm:$0xf]  ;;  %v6721_v60 = vld [vmem:[%s12827_s4 + $0x40] sm:$0xf]  ;;  %v6746_v63 = vor.u32 %v8887_v56, %v6745_v55 }
  0x52   :  { %v8882_v61 = vld [vmem:[%s12827_s4 + $0x4c] sm:$0xf0]  ;;  %v8880_v0 = vld [vmem:[%s12827_s4 + $0x44] sm:$0xf]  ;;  %v6729_v3 = vld [vmem:[%s12827_s4 + $0x48] sm:$0xf] }
  0x53   :  { %592 = vmatpush.bf16.msrb.mxu0 %v6514_v38  ;;  %606 = vmatpush.bf16.msrb.mxu1 %v6518_v39  ;;  %v6778_v38 = vor.u32 %v8895_v32, %v6777_v31  ;;  %v8890_v39 = vld [vmem:[%s12827_s4 + $0x8c] sm:$0xf0]  ;;  %v8883_v5 = vld [vmem:[%s12827_s4 + $0x54] sm:$0xf0]  ;;  %v6722_v8 = vor.u32 %v8882_v61, %v6721_v60  ;;  %v6707_v15 = vld [vmem:[%s12827_s4 + $0x30] sm:$0xf0] }
  0x54   :  { %620 = vmatpush.bf16.msrb.mxu2 %v6522_v40  ;;  %v8888_v40 = vld [vmem:[%s12827_s4 + $0x84] sm:$0xf]  ;;  %v6754_v47 = vor.u32 %v8890_v39, %v6753_v36  ;;  %v6713_v16 = vld [vmem:[%s12827_s4 + $0x28] sm:$0xf]  ;;  %v8877_v18 = vld [vmem:[%s12827_s4 + $0x2c] sm:$0xf] }
  0x55   :  { %634 = vmatpush.bf16.msrb.mxu3 %v6526_v44  ;;  %v9858_v44 = vmov 0   ;;  %v6758_v48 = vor.u32 %v8888_v40, %v6755_v42  ;;  %v6715_v19 = vld [vmem:[%s12827_s4 + $0x38] sm:$0xf0]  ;;  %v6689_v21 = vld [vmem:[%s12827_s4] sm:$0xf]  ;;  %s9859_s23 = smov [#allocation16]  }
  0x56   :  { %9400 = vset.pattern.permute.xlu0 %v9858_v44  ;;  %9399 = vset.pattern.permute.xlu2 %v9858_v44  ;;  %v8874_v22 = vld [vmem:[%s12827_s4 + $0xc] sm:$0xf0]  ;;  %v6691_v26 = vld [vmem:[%s12827_s4 + $0x10] sm:$0xf0]  ;;  %v6697_v27 = vld [vmem:[%s12827_s4 + $0x8] sm:$0xf]  ;;  %v6718_v28 = vor.u32 %v8877_v18, %v6715_v19 }
  0x57   :  { %593 = vmatpush.bf16.msrb.mxu0 %v6482_v50  ;;  %607 = vmatpush.bf16.msrb.mxu1 %v6486_v53  ;;  %v6737_v50 = vld [vmem:[%s12827_s4 + $0x60] sm:$0xf]  ;;  %v6766_v53 = vor.u32 %v8889_v45, %v6763_v46  ;;  %v8873_v30 = vld [vmem:[%s12827_s4 + $0xc] sm:$0xf]  ;;  %v6699_v31 = vld [vmem:[%s12827_s4 + $0x18] sm:$0xf0] }
  0x58   :  { %621 = vmatpush.bf16.msrb.mxu2 %v6490_v54  ;;  %9398 = vset.pattern.permute.xlu1 %v9858_v44  ;;  %v6739_v54 = vld [vmem:[%s12827_s4 + $0x70] sm:$0xf0]  ;;  %v6738_v59 = vor.u32 %v8886_v51, %v6737_v50  ;;  %v6932_v32 = vld [vmem:[#allocation15 + $0xe0] sm:$0xf]  ;;  %v8932_v34 = vld [vmem:[#allocation15 + $0xe4] sm:$0xf] }
  0x59   :  { %635 = vmatpush.bf16.msrb.mxu3 %v6494_v58  ;;  %v6747_v58 = vld [vmem:[%s12827_s4 + $0x78] sm:$0xf0]  ;;  %v6742_v62 = vor.u32 %v8884_v52, %v6739_v54  ;;  %v8934_v33 = vld [vmem:[#allocation15 + $0xec] sm:$0xf0]  ;;  %v6934_v36 = vld [vmem:[#allocation15 + $0xf0] sm:$0xf0] }
  0x5a   :  { %v6750_v4 = vor.u32 %v8885_v57, %v6747_v58  ;;  %v6942_v42 = vld [vmem:[#allocation15 + $0xf8] sm:$0xf0]  ;;  %v6937_v45 = vor.u32 %v8932_v34, %v6934_v36  ;;  %v6918_v51 = vld [vmem:[#allocation15 + $0xd0] sm:$0xf0]  ;;  %v6924_v52 = vld [vmem:[#allocation15 + $0xc8] sm:$0xf] }
  0x5b   :  { %594 = vmatpush.bf16.msrb.mxu0 %v6450_v1  ;;  %608 = vmatpush.bf16.msrb.mxu1 %v6454_v6  ;;  %v6723_v1 = vld [vmem:[%s12827_s4 + $0x50] sm:$0xf0]  ;;  %v8881_v6 = vld [vmem:[%s12827_s4 + $0x4c] sm:$0xf]  ;;  %v6926_v55 = vld [vmem:[#allocation15 + $0xd8] sm:$0xf0] }
  0x5c   :  { %622 = vmatpush.bf16.msrb.mxu2 %v6458_v7  ;;  %v6731_v7 = vld [vmem:[%s12827_s4 + $0x58] sm:$0xf0]  ;;  %v6726_v9 = vor.u32 %v8880_v0, %v6723_v1  ;;  %v8929_v54 = vld [vmem:[#allocation15 + $0xcc] sm:$0xf]  ;;  %v8926_v60 = vld [vmem:[#allocation15 + $0xac] sm:$0xf0] }
  0x5d   :  { %636 = vmatpush.bf16.msrb.mxu3 %v6462_v10  ;;  %v6730_v10 = vor.u32 %v8883_v5, %v6729_v3  ;;  %v6734_v14 = vor.u32 %v8881_v6, %v6731_v7  ;;  %v8924_v61 = vld [vmem:[#allocation15 + $0xa4] sm:$0xf]  ;;  %v6908_v0 = vld [vmem:[#allocation15 + $0xa8] sm:$0xf]  ;;  %v8927_v1 = vld [vmem:[#allocation15 + $0xb4] sm:$0xf0] }
  0x5e   :  { %595 = vmatmul.bf16.vlgmr.msrb.gmra.mxu0 %v9943_v2  ;;  %609 = vmatmul.bf16.vlgmr.msrb.gmra.mxu1 %v9943_v2  ;;  %v8925_v3 = vld [vmem:[#allocation15 + $0xac] sm:$0xf]  ;;  %v6909_v7 = vor.u32 %v8927_v1, %v6908_v0  ;;  %v8912_v34 = vld [vmem:[#allocation15 + $0x44] sm:$0xf]  ;;  %v6854_v36 = vld [vmem:[#allocation15 + $0x50] sm:$0xf0] }
  0x5f   :  { %857 = vmatpush.bf16.msra.mxu0 %v6802_v11  ;;  %870 = vmatpush.bf16.msra.mxu1 %v6806_v12  ;;  %v6705_v11 = vld [vmem:[%s12827_s4 + $0x20] sm:$0xf]  ;;  %v8878_v12 = vld [vmem:[%s12827_s4 + $0x2c] sm:$0xf0]  ;;  %s6413_s24 = sshll.u32 %s9859_s23, 4  ;;  %s6415_s27 = sshll.u32 %s12835_s12, 4  ;;  %s6414_s24 = int_to_ptr.vmem [resolvable:$true] %s6413_s24  ;;  %s6416_s27 = int_to_ptr.hbm [resolvable:$true] %s6415_s27 }
  0x60   :  { %883 = vmatpush.bf16.msra.mxu2 %v6810_v13  ;;  %637 = vmatmul.bf16.vlgmr.msrb.gmra.mxu3 %v9943_v2  ;;  %v8876_v13 = vld [vmem:[%s12827_s4 + $0x24] sm:$0xf]  ;;  %v6706_v20 = vor.u32 %v8878_v12, %v6705_v11  ;;  %v6886_v12 = vld [vmem:[#allocation15 + $0x90] sm:$0xf0]  ;;  %v6830_v0 = vld [vmem:[#allocation15 + $0x18] sm:$0xf0] }
  0x61   :  { %896 = vmatpush.bf16.msra.mxu3 %v6814_v17  ;;  %623 = vmatmul.bf16.vlgmr.msrb.gmra.mxu2 %v9943_v2  ;;  %v6761_v2 = vld [vmem:[%s12827_s4 + $0x88] sm:$0xf]  ;;  %v8879_v17 = vld [vmem:[%s12827_s4 + $0x34] sm:$0xf0] }
  0x62   :  { %v6762_v49 = vor.u32 %v8891_v43, %v6761_v2  ;;  %v6702_v2 = vor.u32 %v8873_v30, %v6699_v31  ;;  %v6933_v43 = vor.u32 %v8934_v33, %v6932_v32  ;;  %v6852_v32 = vld [vmem:[#allocation15 + $0x40] sm:$0xf]  ;;  %v8914_v33 = vld [vmem:[#allocation15 + $0x4c] sm:$0xf0] }
  0x63   :  { %858 = vmatpush.bf16.msra.mxu0 %v6786_v23  ;;  %871 = vmatpush.bf16.msra.mxu1 %v6790_v24  ;;  %v6710_v23 = vor.u32 %v8876_v13, %v6707_v15  ;;  %v6714_v24 = vor.u32 %v8879_v17, %v6713_v16  ;;  %v6892_v13 = vld [vmem:[#allocation15 + $0x88] sm:$0xf]  ;;  %v8921_v15 = vld [vmem:[#allocation15 + $0x8c] sm:$0xf]  ;;  %v6894_v16 = vld [vmem:[#allocation15 + $0x98] sm:$0xf0] }
  0x64   :  { %884 = vmatpush.bf16.msra.mxu2 %v6794_v25  ;;  %v8872_v25 = vld [vmem:[%s12827_s4 + $0x4] sm:$0xf] }
  0x65   :  { %897 = vmatpush.bf16.msra.mxu3 %v6798_v29  ;;  %v8875_v29 = vld [vmem:[%s12827_s4 + $0x14] sm:$0xf0]  ;;  %v6694_v39 = vor.u32 %v8872_v25, %v6691_v26  ;;  %v6876_v25 = vld [vmem:[#allocation15 + $0x68] sm:$0xf] }
  0x66   :  { %v6698_v40 = vor.u32 %v8875_v29, %v6697_v27  ;;  %v8919_v26 = vld [vmem:[#allocation15 + $0x74] sm:$0xf0]  ;;  %v8917_v27 = vld [vmem:[#allocation15 + $0x6c] sm:$0xf] }
  0x67   :  { %859 = vmatpush.bf16.msra.mxu0 %v6770_v35  ;;  %872 = vmatpush.bf16.msra.mxu1 %v6774_v37  ;;  %v6690_v35 = vor.u32 %v8874_v22, %v6689_v21  ;;  %v6940_v37 = vld [vmem:[#allocation15 + $0xe8] sm:$0xf]  ;;  %v8918_v21 = vld [vmem:[#allocation15 + $0x6c] sm:$0xf0]  ;;  %v8916_v22 = vld [vmem:[#allocation15 + $0x64] sm:$0xf]  ;;  %v6877_v31 = vor.u32 %v8919_v26, %v6876_v25 }
  0x68   :  { %885 = vmatpush.bf16.msra.mxu2 %v6778_v38  ;;  %v8935_v38 = vld [vmem:[#allocation15 + $0xf4] sm:$0xf0] }
  0x69   :  { %898 = vmatpush.bf16.msra.mxu3 %v6782_v41  ;;  %v8933_v41 = vld [vmem:[#allocation15 + $0xec] sm:$0xf]  ;;  %v6941_v46 = vor.u32 %v8935_v38, %v6940_v37  ;;  %v6860_v37 = vld [vmem:[#allocation15 + $0x48] sm:$0xf]  ;;  %v8915_v38 = vld [vmem:[#allocation15 + $0x54] sm:$0xf0] }
  0x6a   :  { %v6945_v50 = vor.u32 %v8933_v41, %v6942_v42  ;;  %v6853_v41 = vor.u32 %v8914_v33, %v6852_v32  ;;  %v6857_v42 = vor.u32 %v8912_v34, %v6854_v36 }
  0x6b   :  { %860 = vmatpush.bf16.msra.mxu0 %v6754_v47  ;;  %873 = vmatpush.bf16.msra.mxu1 %v6758_v48  ;;  %v6916_v47 = vld [vmem:[#allocation15 + $0xc0] sm:$0xf]  ;;  %v8930_v48 = vld [vmem:[#allocation15 + $0xcc] sm:$0xf0] }
  0x6c   :  { %886 = vmatpush.bf16.msra.mxu2 %v6762_v49  ;;  %v8928_v49 = vld [vmem:[#allocation15 + $0xc4] sm:$0xf]  ;;  %v6917_v56 = vor.u32 %v8930_v48, %v6916_v47  ;;  %v6838_v48 = vld [vmem:[#allocation15 + $0x30] sm:$0xf0] }
  0x6d   :  { %899 = vmatpush.bf16.msra.mxu3 %v6766_v53  ;;  %v8931_v53 = vld [vmem:[#allocation15 + $0xd4] sm:$0xf0]  ;;  %v6921_v57 = vor.u32 %v8928_v49, %v6918_v51  ;;  %v6844_v49 = vld [vmem:[#allocation15 + $0x28] sm:$0xf]  ;;  %v8909_v51 = vld [vmem:[#allocation15 + $0x2c] sm:$0xf] }
  0x6e   :  { %v6925_v58 = vor.u32 %v8931_v53, %v6924_v52  ;;  %v6846_v52 = vld [vmem:[#allocation15 + $0x38] sm:$0xf0] }
  0x6f   :  { %861 = vmatpush.bf16.msra.mxu0 %v6738_v59  ;;  %874 = vmatpush.bf16.msra.mxu1 %v6742_v62  ;;  %v6900_v59 = vld [vmem:[#allocation15 + $0xa0] sm:$0xf]  ;;  %v6929_v62 = vor.u32 %v8929_v54, %v6926_v55 }
  0x70   :  { %887 = vmatpush.bf16.msra.mxu2 %v6746_v63  ;;  %v6902_v63 = vld [vmem:[#allocation15 + $0xb0] sm:$0xf0]  ;;  %v6901_v5 = vor.u32 %v8926_v60, %v6900_v59  ;;  %v6849_v59 = vor.u32 %v8909_v51, %v6846_v52  ;;  %v8965_v51 = vld [vmem:[%s12827_s4 + $0xec] sm:$0xf]  ;;  %v7073_v52 = vld [vmem:[%s12827_s4 + $0xf8] sm:$0xf0] }
  0x71   :  { %900 = vmatpush.bf16.msra.mxu3 %v6750_v4  ;;  %v6910_v4 = vld [vmem:[#allocation15 + $0xb8] sm:$0xf0]  ;;  %v6905_v6 = vor.u32 %v8924_v61, %v6902_v63  ;;  %v6822_v60 = vld [vmem:[#allocation15 + $0x10] sm:$0xf0]  ;;  %v6828_v61 = vld [vmem:[#allocation15 + $0x8] sm:$0xf] }
  0x72   :  { %v6913_v11 = vor.u32 %v8925_v3, %v6910_v4  ;;  %v8905_v63 = vld [vmem:[#allocation15 + $0xc] sm:$0xf] }
  0x73   :  { %862 = vmatpush.bf16.msra.mxu0 %v6722_v8  ;;  %875 = vmatpush.bf16.msra.mxu1 %v6726_v9  ;;  %v6884_v8 = vld [vmem:[#allocation15 + $0x80] sm:$0xf]  ;;  %v8922_v9 = vld [vmem:[#allocation15 + $0x8c] sm:$0xf0] }
  0x74   :  { %888 = vmatpush.bf16.msra.mxu2 %v6730_v10  ;;  %v8920_v10 = vld [vmem:[#allocation15 + $0x84] sm:$0xf]  ;;  %v6885_v17 = vor.u32 %v8922_v9, %v6884_v8 }
  0x75   :  { %901 = vmatpush.bf16.msra.mxu3 %v6734_v14  ;;  %v8923_v14 = vld [vmem:[#allocation15 + $0x94] sm:$0xf0]  ;;  %v6889_v18 = vor.u32 %v8920_v10, %v6886_v12 }
  0x76   :  { %v6893_v19 = vor.u32 %v8923_v14, %v6892_v13 }
  0x77   :  { %863 = vmatpush.bf16.msra.mxu0 %v6706_v20  ;;  %876 = vmatpush.bf16.msra.mxu1 %v6710_v23  ;;  %v6868_v20 = vld [vmem:[#allocation15 + $0x60] sm:$0xf]  ;;  %v6897_v23 = vor.u32 %v8921_v15, %v6894_v16 }
  0x78   :  { %889 = vmatpush.bf16.msra.mxu2 %v6714_v24  ;;  %v6870_v24 = vld [vmem:[#allocation15 + $0x70] sm:$0xf0]  ;;  %v6869_v29 = vor.u32 %v8918_v21, %v6868_v20 }
  0x79   :  { %902 = vmatpush.bf16.msra.mxu3 %v6718_v28  ;;  %v6878_v28 = vld [vmem:[#allocation15 + $0x78] sm:$0xf0]  ;;  %v6873_v30 = vor.u32 %v8916_v22, %v6870_v24 }
  0x7b   :  { %864 = vmatpush.bf16.msra.mxu0 %v6690_v35  ;;  %877 = vmatpush.bf16.msra.mxu1 %v6694_v39  ;;  %v6881_v35 = vor.u32 %v8917_v27, %v6878_v28  ;;  %v8913_v39 = vld [vmem:[#allocation15 + $0x4c] sm:$0xf] }
  0x7c   :  { %890 = vmatpush.bf16.msra.mxu2 %v6698_v40  ;;  %v6862_v40 = vld [vmem:[#allocation15 + $0x58] sm:$0xf0] }
  0x7d   :  { %903 = vmatpush.bf16.msra.mxu3 %v6702_v2  ;;  %v6861_v2 = vor.u32 %v8915_v38, %v6860_v37  ;;  %v6865_v47 = vor.u32 %v8913_v39, %v6862_v40 }
  0x7e   :  { %865 = vmatmul.bf16.vlgmr.msra.gmra.mxu0 %v9858_v44  ;;  %878 = vmatmul.bf16.vlgmr.msra.gmra.mxu1 %v9858_v44 }
  0x7f   :  { %1178 = vmatpush.bf16.msrb.mxu0 %v6933_v43  ;;  %1191 = vmatpush.bf16.msrb.mxu1 %v6937_v45  ;;  %v6836_v43 = vld [vmem:[#allocation15 + $0x20] sm:$0xf]  ;;  %v8910_v45 = vld [vmem:[#allocation15 + $0x2c] sm:$0xf0] }
  0x80   :  { %1204 = vmatpush.bf16.msrb.mxu2 %v6941_v46  ;;  %904 = vmatmul.bf16.vlgmr.msra.gmra.mxu3 %v9858_v44  ;;  %v8908_v46 = vld [vmem:[#allocation15 + $0x24] sm:$0xf]  ;;  %v6837_v53 = vor.u32 %v8910_v45, %v6836_v43 }
  0x81   :  { %1217 = vmatpush.bf16.msrb.mxu3 %v6945_v50  ;;  %891 = vmatmul.bf16.vlgmr.msra.gmra.mxu2 %v9858_v44  ;;  %v8911_v50 = vld [vmem:[#allocation15 + $0x34] sm:$0xf0]  ;;  %v6841_v54 = vor.u32 %v8908_v46, %v6838_v48  ;;  %v8964_v45 = vld [vmem:[%s12827_s4 + $0xe4] sm:$0xf]  ;;  %v7065_v46 = vld [vmem:[%s12827_s4 + $0xf0] sm:$0xf0] }
  0x82   :  { %v6845_v55 = vor.u32 %v8911_v50, %v6844_v49  ;;  %v7068_v49 = vor.u32 %v8964_v45, %v7065_v46  ;;  %v8967_v50 = vld [vmem:[%s12827_s4 + $0xf4] sm:$0xf0]  ;;  %v7009_v45 = vld [vmem:[%s12827_s4 + $0x78] sm:$0xf0] }
  0x83   :  { %1179 = vmatpush.bf16.msrb.mxu0 %v6917_v56  ;;  %1192 = vmatpush.bf16.msrb.mxu1 %v6921_v57  ;;  %v6820_v56 = vld [vmem:[#allocation15] sm:$0xf]  ;;  %v8906_v57 = vld [vmem:[#allocation15 + $0xc] sm:$0xf0] }
  0x84   :  { %1205 = vmatpush.bf16.msrb.mxu2 %v6925_v58  ;;  %v8904_v58 = vld [vmem:[#allocation15 + $0x4] sm:$0xf]  ;;  %v6821_v1 = vor.u32 %v8906_v57, %v6820_v56  ;;  %v7076_v56 = vor.u32 %v8965_v51, %v7073_v52 }
  0x85   :  { %1218 = vmatpush.bf16.msrb.mxu3 %v6929_v62  ;;  %v8907_v62 = vld [vmem:[#allocation15 + $0x14] sm:$0xf0]  ;;  %v6825_v3 = vor.u32 %v8904_v58, %v6822_v60  ;;  %v7047_v58 = vld [vmem:[%s12827_s4 + $0xc0] sm:$0xf]  ;;  %v8960_v60 = vld [vmem:[%s12827_s4 + $0xc4] sm:$0xf] }
  0x86   :  { %v6829_v4 = vor.u32 %v8907_v62, %v6828_v61  ;;  %v7049_v62 = vld [vmem:[%s12827_s4 + $0xd0] sm:$0xf0] }
  0x87   :  { %1180 = vmatpush.bf16.msrb.mxu0 %v6901_v5  ;;  %1193 = vmatpush.bf16.msrb.mxu1 %v6905_v6  ;;  %v6833_v5 = vor.u32 %v8905_v63, %v6830_v0  ;;  %v10156_v6 = vld [vmem:[#allocation13] sm:$0xff]  ;;  %v7055_v63 = vld [vmem:[%s12827_s4 + $0xc8] sm:$0xf]  ;;  %v7052_v0 = vor.u32 %v8960_v60, %v7049_v62 }
  0x88   :  { %1206 = vmatpush.bf16.msrb.mxu2 %v6909_v7  ;;  %v189_v7 = vperm.slane %v10156_v6, 0  ;;  %v190_v8 = vperm.slane %v10156_v6, 1  ;;  %v192_v13 = vperm.slane %v10156_v6, 3  ;;  %v191_v14 = vperm.slane %v10156_v6, 2 }
  0x89   :  { %1219 = vmatpush.bf16.msrb.mxu3 %v6913_v11  ;;  %v193_v26 = vperm.slane %v10156_v6, 4  ;;  %v194_v27 = vperm.slane %v10156_v6, 5  ;;  %v195_v32 = vperm.slane %v10156_v6, 6  ;;  %v196_v33 = vperm.slane %v10156_v6, 7 }
  0x8b   :  { %1181 = vmatpush.bf16.msrb.mxu0 %v6885_v17  ;;  %1194 = vmatpush.bf16.msrb.mxu1 %v6889_v18 }
  0x8c   :  { %1207 = vmatpush.bf16.msrb.mxu2 %v6893_v19 }
  0x8d   :  { %1220 = vmatpush.bf16.msrb.mxu3 %v6897_v23 }
  0x8f   :  { %1182 = vmatpush.bf16.msrb.mxu0 %v6869_v29  ;;  %1195 = vmatpush.bf16.msrb.mxu1 %v6873_v30 }
  0x90   :  { %1208 = vmatpush.bf16.msrb.mxu2 %v6877_v31 }
  0x91   :  { %1221 = vmatpush.bf16.msrb.mxu3 %v6881_v35 }
  0x93   :  { %1183 = vmatpush.bf16.msrb.mxu0 %v6853_v41  ;;  %1196 = vmatpush.bf16.msrb.mxu1 %v6857_v42  ;;  %v7063_v42 = vld [vmem:[%s12827_s4 + $0xe0] sm:$0xf] }
  0x94   :  { %1209 = vmatpush.bf16.msrb.mxu2 %v6861_v2  ;;  %v8966_v2 = vld [vmem:[%s12827_s4 + $0xec] sm:$0xf0] }
  0x95   :  { %1222 = vmatpush.bf16.msrb.mxu3 %v6865_v47  ;;  %v7064_v43 = vor.u32 %v8966_v2, %v7063_v42  ;;  %v7071_v47 = vld [vmem:[%s12827_s4 + $0xe8] sm:$0xf] }
  0x97   :  { %1184 = vmatpush.bf16.msrb.mxu0 %v6837_v53  ;;  %1197 = vmatpush.bf16.msrb.mxu1 %v6841_v54 }
  0x98   :  { %1210 = vmatpush.bf16.msrb.mxu2 %v6845_v55  ;;  %v7072_v55 = vor.u32 %v8967_v50, %v7071_v47  ;;  %v8946_v50 = vld [vmem:[%s12827_s4 + $0x4c] sm:$0xf0] }
  0x99   :  { %1223 = vmatpush.bf16.msrb.mxu3 %v6849_v59  ;;  %v8962_v59 = vld [vmem:[%s12827_s4 + $0xcc] sm:$0xf0] }
  0x9a   :  { %v7048_v61 = vor.u32 %v8962_v59, %v7047_v58  ;;  %v8945_v58 = vld [vmem:[%s12827_s4 + $0x4c] sm:$0xf] }
  0x9b   :  { %1185 = vmatpush.bf16.msrb.mxu0 %v6821_v1  ;;  %1198 = vmatpush.bf16.msrb.mxu1 %v6825_v3  ;;  %v8963_v1 = vld [vmem:[%s12827_s4 + $0xd4] sm:$0xf0]  ;;  %v8961_v3 = vld [vmem:[%s12827_s4 + $0xcc] sm:$0xf] }
  0x9c   :  { %1211 = vmatpush.bf16.msrb.mxu2 %v6829_v4  ;;  %v7056_v4 = vor.u32 %v8963_v1, %v7055_v63  ;;  %v8942_v1 = vld [vmem:[%s12827_s4 + $0x2c] sm:$0xf0] }
  0x9d   :  { %1224 = vmatpush.bf16.msrb.mxu3 %v6833_v5  ;;  %v7057_v5 = vld [vmem:[%s12827_s4 + $0xd8] sm:$0xf0] }
  0x9e   :  { %1186 = vmatmul.bf16.vlgmr.msrb.gmra.mxu0 %v9858_v44  ;;  %1199 = vmatmul.bf16.vlgmr.msrb.gmra.mxu1 %v9858_v44  ;;  %v7060_v6 = vor.u32 %v8961_v3, %v7057_v5  ;;  %v8940_v3 = vld [vmem:[%s12827_s4 + $0x24] sm:$0xf] }
  0x9f   :  { %1212 = vmatmul.bf16.vlgmr.msrb.gmra.mxu2 %v9858_v44  ;;  %1519 = vmatpush.bf16.msra.mxu0 %v7064_v43  ;;  %v8949_v43 = vld [vmem:[%s12827_s4 + $0x6c] sm:$0xf] }
  0xa0   :  { %1225 = vmatmul.bf16.vlgmr.msrb.gmra.mxu3 %v9858_v44  ;;  %1532 = vmatpush.bf16.msra.mxu1 %v7068_v49  ;;  %v7012_v47 = vor.u32 %v8949_v43, %v7009_v45  ;;  %v6983_v49 = vld [vmem:[%s12827_s4 + $0x40] sm:$0xf]  ;;  %v7214_v43 = vld [vmem:[#allocation15 + $0xe8] sm:$0xf]  ;;  %v8999_v45 = vld [vmem:[#allocation15 + $0xf4] sm:$0xf0] }
  0xa1   :  { %1545 = vmatpush.bf16.msra.mxu2 %v7072_v55  ;;  %1558 = vmatpush.bf16.msra.mxu3 %v7076_v56  ;;  %v6984_v52 = vor.u32 %v8946_v50, %v6983_v49  ;;  %v6991_v56 = vld [vmem:[%s12827_s4 + $0x48] sm:$0xf]  ;;  %v7215_v50 = vor.u32 %v8999_v45, %v7214_v43  ;;  %v8987_v45 = vld [vmem:[#allocation15 + $0x94] sm:$0xf0] }
  0xa2   :  { %v7166_v43 = vld [vmem:[#allocation15 + $0x88] sm:$0xf] }
  0xa3   :  { %1520 = vmatpush.bf16.msra.mxu0 %v7048_v61  ;;  %v6993_v61 = vld [vmem:[%s12827_s4 + $0x58] sm:$0xf0] }
  0xa4   :  { %1533 = vmatpush.bf16.msra.mxu1 %v7052_v0  ;;  %v6996_v63 = vor.u32 %v8945_v58, %v6993_v61  ;;  %v6967_v0 = vld [vmem:[%s12827_s4 + $0x20] sm:$0xf]  ;;  %v8992_v61 = vld [vmem:[#allocation15 + $0xc4] sm:$0xf] }
  0xa5   :  { %1546 = vmatpush.bf16.msra.mxu2 %v7056_v4  ;;  %1559 = vmatpush.bf16.msra.mxu3 %v7060_v6  ;;  %v6968_v6 = vor.u32 %v8942_v1, %v6967_v0  ;;  %v10381_v1 = vld [vmem:[#allocation10] sm:$0x3] }
  0xa6   :  { %vm660_vm6 = vcmp.gt.f32.partialorder %v10381_v1, 0.0 }
  0xa7   :  { %vm10462_vm13 = vmpackc.low %vm660_vm6, %vm660_vm6 }
  0xbb   :  { %v540_v9 = vpop.f32.mrf.mxu0  ;;  %v554_v11 = vpop.f32.mrf.mxu1 }
  0xbc   :  { %v541_v10 = vadd.f32 %v540_v9, %v189_v7  ;;  %v555_v12 = vadd.f32 %v554_v11, %v190_v8  ;;  %v8956_v9 = vld [vmem:[%s12827_s4 + $0xa4] sm:$0xf]  ;;  %v7033_v11 = vld [vmem:[%s12827_s4 + $0xb0] sm:$0xf0] }
  0xbe   :  { %643 = vst [vmem:[#allocation2 + $0x30] sm:$0xff] %v541_v10 }
  0xbf   :  { %644 = vst [vmem:[#allocation2] sm:$0xff] %v555_v12  ;;  %v7039_v12 = vld [vmem:[%s12827_s4 + $0xa8] sm:$0xf] }
  0xc3   :  { %v582_v15 = vpop.f32.mrf.mxu3  ;;  %v542_v16 = vpop.f32.mrf.mxu0 }
  0xc4   :  { %v583_v17 = vadd.f32 %v582_v15, %v192_v13  ;;  %v568_v44 = vpop.f32.mrf.mxu2  ;;  %v543_v18 = vadd.f32 %v542_v16, %v189_v7  ;;  %v556_v19 = vpop.f32.mrf.mxu1  ;;  %v7031_v7 = vld [vmem:[%s12827_s4 + $0xa0] sm:$0xf]  ;;  %v8957_v16 = vld [vmem:[%s12827_s4 + $0xac] sm:$0xf] }
  0xc5   :  { %v569_v20 = vadd.f32 %v568_v44, %v191_v14  ;;  %v557_v21 = vadd.f32 %v556_v19, %v190_v8  ;;  %v8958_v8 = vld [vmem:[%s12827_s4 + $0xac] sm:$0xf0] }
  0xc6   :  { %646 = vst [vmem:[#allocation2 + $0x10] sm:$0xff] %v583_v17  ;;  %v7032_v10 = vor.u32 %v8958_v8, %v7031_v7  ;;  %v7041_v17 = vld [vmem:[%s12827_s4 + $0xb8] sm:$0xf0]  ;;  %v8954_v19 = vld [vmem:[%s12827_s4 + $0x8c] sm:$0xf0] }
  0xc7   :  { %647 = vst [vmem:[#allocation2 + $0x8] sm:$0xff] %v543_v18  ;;  %v7044_v44 = vor.u32 %v8957_v16, %v7041_v17  ;;  %v7015_v18 = vld [vmem:[%s12827_s4 + $0x80] sm:$0xf]  ;;  %v6969_v7 = vld [vmem:[%s12827_s4 + $0x30] sm:$0xf0] }
  0xc8   :  { %648 = vst [vmem:[#allocation2 + $0x20] sm:$0xff] %v557_v21  ;;  %1521 = vmatpush.bf16.msra.mxu0 %v7032_v10  ;;  %v7016_v21 = vor.u32 %v8954_v19, %v7015_v18  ;;  %v6975_v8 = vld [vmem:[%s12827_s4 + $0x28] sm:$0xf]  ;;  %v6951_v18 = vld [vmem:[%s12827_s4] sm:$0xf] }
  0xc9   :  { %645 = vst [vmem:[#allocation2 + $0x18] sm:$0xff] %v569_v20  ;;  %v8952_v20 = vld [vmem:[%s12827_s4 + $0x84] sm:$0xf]  ;;  %1560 = vmatpush.bf16.msra.mxu3 %v7044_v44  ;;  %v8938_v19 = vld [vmem:[%s12827_s4 + $0xc] sm:$0xf0] }
  0xcb   :  { %v584_v22 = vpop.f32.mrf.mxu3 }
  0xcc   :  { %v585_v23 = vadd.f32 %v584_v22, %v192_v13  ;;  %v570_v24 = vpop.f32.mrf.mxu2  ;;  %v8959_v13 = vld [vmem:[%s12827_s4 + $0xb4] sm:$0xf0]  ;;  %v7017_v22 = vld [vmem:[%s12827_s4 + $0x90] sm:$0xf0]  ;;  %1522 = vmatpush.bf16.msra.mxu0 %v7016_v21 }
  0xcd   :  { %v571_v25 = vadd.f32 %v570_v24, %v191_v14  ;;  %v7036_v14 = vor.u32 %v8956_v9, %v7033_v11  ;;  %v7040_v15 = vor.u32 %v8959_v13, %v7039_v12  ;;  %v8955_v24 = vld [vmem:[%s12827_s4 + $0x94] sm:$0xf0]  ;;  %v664_v59 = vld [vmem:[#allocation2 + $0x10] sm:$0x3]  ;;  %v6972_v12 = vor.u32 %v8940_v3, %v6969_v7 }
  0xce   :  { %650 = vst [vmem:[#allocation2 + $0x38] sm:$0xff] %v585_v23  ;;  %v7023_v23 = vld [vmem:[%s12827_s4 + $0x88] sm:$0xf]  ;;  %v8943_v9 = vld [vmem:[%s12827_s4 + $0x34] sm:$0xf0] }
  0xcf   :  { %649 = vst [vmem:[#allocation2 + $0x28] sm:$0xff] %v571_v25  ;;  %1534 = vmatpush.bf16.msra.mxu1 %v7036_v14  ;;  %1547 = vmatpush.bf16.msra.mxu2 %v7040_v15  ;;  %v7020_v25 = vor.u32 %v8952_v20, %v7017_v22  ;;  %v6976_v13 = vor.u32 %v8943_v9, %v6975_v8  ;;  %v8941_v14 = vld [vmem:[%s12827_s4 + $0x2c] sm:$0xf]  ;;  %v6977_v15 = vld [vmem:[%s12827_s4 + $0x38] sm:$0xf0] }
  0xd0   :  { %v6980_v16 = vor.u32 %v8941_v14, %v6977_v15  ;;  %v6952_v22 = vor.u32 %v8938_v19, %v6951_v18  ;;  %v8995_v3 = vld [vmem:[#allocation15 + $0xd4] sm:$0xf0]  ;;  %v7200_v9 = vld [vmem:[#allocation15 + $0xd8] sm:$0xf0]  ;;  %v8990_v14 = vld [vmem:[#allocation15 + $0xac] sm:$0xf0] }
  0xd1   :  { %v8988_v19 = vld [vmem:[#allocation15 + $0xa4] sm:$0xf] }
  0xd3   :  { %1535 = vmatpush.bf16.msra.mxu1 %v7020_v25 }
  0xdb   :  { %v596_v28 = vpop.f32.mrf.mxu0  ;;  %v610_v30 = vpop.f32.mrf.mxu1 }
  0xdc   :  { %v597_v29 = vadd.f32 %v596_v28, %v193_v26  ;;  %v611_v31 = vadd.f32 %v610_v30, %v194_v27  ;;  %v7025_v28 = vld [vmem:[%s12827_s4 + $0x98] sm:$0xf0] }
  0xde   :  { %651 = vst [vmem:[#allocation3] sm:$0xff] %v597_v29  ;;  %v661_v29 = vld [vmem:[#allocation2 + $0x30] sm:$0x3] }
  0xdf   :  { %652 = vst [vmem:[#allocation3 + $0x18] sm:$0xff] %v611_v31  ;;  %v6999_v31 = vld [vmem:[%s12827_s4 + $0x60] sm:$0xf] }
  0xe3   :  { %v638_v36 = vpop.f32.mrf.mxu3  ;;  %v598_v37 = vpop.f32.mrf.mxu0 }
  0xe4   :  { %v624_v34 = vpop.f32.mrf.mxu2  ;;  %v639_v38 = vadd.f32 %v638_v36, %v196_v33  ;;  %v599_v39 = vadd.f32 %v598_v37, %v193_v26  ;;  %v612_v40 = vpop.f32.mrf.mxu1  ;;  %v7024_v26 = vor.u32 %v8955_v24, %v7023_v23  ;;  %v7001_v36 = vld [vmem:[%s12827_s4 + $0x70] sm:$0xf0]  ;;  %v7007_v37 = vld [vmem:[%s12827_s4 + $0x68] sm:$0xf]  ;;  %v8936_v23 = vld [vmem:[%s12827_s4 + $0x4] sm:$0xf] }
  0xe5   :  { %v625_v35 = vadd.f32 %v624_v34, %v195_v32  ;;  %v613_v41 = vadd.f32 %v612_v40, %v194_v27  ;;  %v8953_v27 = vld [vmem:[%s12827_s4 + $0x8c] sm:$0xf]  ;;  %v662_v40 = vld [vmem:[#allocation2] sm:$0x3]  ;;  %v6953_v24 = vld [vmem:[%s12827_s4 + $0x10] sm:$0xf0] }
  0xe6   :  { %654 = vst [vmem:[#allocation3 + $0x20] sm:$0xff] %v639_v38  ;;  %v7028_v30 = vor.u32 %v8953_v27, %v7025_v28  ;;  %1548 = vmatpush.bf16.msra.mxu2 %v7024_v26  ;;  %v8951_v38 = vld [vmem:[%s12827_s4 + $0x74] sm:$0xf0]  ;;  %v6956_v26 = vor.u32 %v8936_v23, %v6953_v24  ;;  %v6959_v27 = vld [vmem:[%s12827_s4 + $0x8] sm:$0xf] }
  0xe7   :  { %653 = vst [vmem:[#allocation3 + $0x10] sm:$0xff] %v625_v35  ;;  %v7008_v2 = vor.u32 %v8951_v38, %v7007_v37  ;;  %v8939_v28 = vld [vmem:[%s12827_s4 + $0x14] sm:$0xf0]  ;;  %v8998_v37 = vld [vmem:[#allocation15 + $0xec] sm:$0xf0] }
  0xe8   :  { %655 = vst [vmem:[#allocation3 + $0x28] sm:$0xff] %v599_v39  ;;  %1561 = vmatpush.bf16.msra.mxu3 %v7028_v30  ;;  %v7182_v23 = vld [vmem:[#allocation15 + $0xa8] sm:$0xf]  ;;  %v8991_v24 = vld [vmem:[#allocation15 + $0xb4] sm:$0xf0] }
  0xe9   :  { %656 = vst [vmem:[#allocation3 + $0x8] sm:$0xff] %v613_v41 }
  0xea   :  { %1549 = vmatpush.bf16.msra.mxu2 %v7008_v2 }
  0xeb   :  { %v640_v54 = vpop.f32.mrf.mxu3 }
  0xec   :  { %v626_v48 = vpop.f32.mrf.mxu2  ;;  %v641_v57 = vadd.f32 %v640_v54, %v196_v33  ;;  %v8948_v33 = vld [vmem:[%s12827_s4 + $0x64] sm:$0xf]  ;;  %v6985_v54 = vld [vmem:[%s12827_s4 + $0x50] sm:$0xf0]  ;;  %1562 = vmatpush.bf16.msra.mxu3 %v7012_v47 }
  0xed   :  { %v627_v53 = vadd.f32 %v626_v48, %v195_v32  ;;  %v8950_v32 = vld [vmem:[%s12827_s4 + $0x6c] sm:$0xf0]  ;;  %v7004_v42 = vor.u32 %v8948_v33, %v7001_v36  ;;  %v7206_v36 = vld [vmem:[#allocation15 + $0xe0] sm:$0xf] }
  0xee   :  { %658 = vst [vmem:[#allocation3 + $0x38] sm:$0xff] %v641_v57  ;;  %v7000_v35 = vor.u32 %v8950_v32, %v6999_v31  ;;  %v8947_v57 = vld [vmem:[%s12827_s4 + $0x54] sm:$0xf0]  ;;  %v6961_v31 = vld [vmem:[%s12827_s4 + $0x18] sm:$0xf0] }
  0xef   :  { %657 = vst [vmem:[#allocation3 + $0x30] sm:$0xff] %v627_v53  ;;  %1536 = vmatpush.bf16.msra.mxu1 %v7004_v42  ;;  %v8944_v53 = vld [vmem:[%s12827_s4 + $0x44] sm:$0xf]  ;;  %v6992_v60 = vor.u32 %v8947_v57, %v6991_v56  ;;  %v663_v32 = vld [vmem:[#allocation2 + $0x18] sm:$0x3] }
  0xf0   :  { %1523 = vmatpush.bf16.msra.mxu0 %v7000_v35  ;;  %v6988_v55 = vor.u32 %v8944_v53, %v6985_v54  ;;  %1563 = vmatpush.bf16.msra.mxu3 %v6996_v63  ;;  %v7208_v42 = vld [vmem:[#allocation15 + $0xf0] sm:$0xf0]  ;;  %v7190_v56 = vld [vmem:[#allocation15 + $0xc0] sm:$0xf]  ;;  %v8994_v57 = vld [vmem:[#allocation15 + $0xcc] sm:$0xf0] }
  0xf1   :  { %1550 = vmatpush.bf16.msra.mxu2 %v6992_v60  ;;  %v7191_v60 = vor.u32 %v8994_v57, %v7190_v56  ;;  %v7198_v63 = vld [vmem:[#allocation15 + $0xc8] sm:$0xf]  ;;  %v982_v57 = vld [vmem:[#allocation3 + $0x28] sm:$0xc0] }
  0xf3   :  { %1537 = vmatpush.bf16.msra.mxu1 %v6988_v55 }
  0xf4   :  { %1524 = vmatpush.bf16.msra.mxu0 %v6984_v52  ;;  %1564 = vmatpush.bf16.msra.mxu3 %v6980_v16 }
  0xf5   :  { %1551 = vmatpush.bf16.msra.mxu2 %v6976_v13  ;;  %v7174_v13 = vld [vmem:[#allocation15 + $0xa0] sm:$0xf] }
  0xf6   :  { %v7175_v18 = vor.u32 %v8990_v14, %v7174_v13  ;;  %v8983_v13 = vld [vmem:[#allocation15 + $0x74] sm:$0xf0]  ;;  %v8981_v14 = vld [vmem:[#allocation15 + $0x6c] sm:$0xf] }
  0xf7   :  { %1538 = vmatpush.bf16.msra.mxu1 %v6972_v12 }
  0xf8   :  { %1525 = vmatpush.bf16.msra.mxu0 %v6968_v6 }
  0xfb   :  { %v866_v34 = vpop.f32.mrf.mxu0  ;;  %v879_v41 = vpop.f32.mrf.mxu1  ;;  %1539 = vmatpush.bf16.msra.mxu1 %v6956_v26  ;;  %v8989_v26 = vld [vmem:[#allocation15 + $0xac] sm:$0xf] }
  0xfc   :  { %v909_v39 = vadd.f32 %v866_v34, %v661_v29  ;;  %v910_v46 = vadd.f32 %v879_v41, %v662_v40  ;;  %1526 = vmatpush.bf16.msra.mxu0 %v6952_v22  ;;  %v8937_v29 = vld [vmem:[%s12827_s4 + $0xc] sm:$0xf]  ;;  %v6960_v34 = vor.u32 %v8939_v28, %v6959_v27  ;;  %v7207_v40 = vor.u32 %v8998_v37, %v7206_v36  ;;  %v8996_v41 = vld [vmem:[#allocation15 + $0xe4] sm:$0xf]  ;;  %v7158_v36 = vld [vmem:[#allocation15 + $0x80] sm:$0xf] }
  0xfd   :  { %v6964_v35 = vor.u32 %v8937_v29, %v6961_v31  ;;  %v7211_v2 = vor.u32 %v8996_v41, %v7208_v42  ;;  %v8986_v37 = vld [vmem:[#allocation15 + $0x8c] sm:$0xf0]  ;;  %v7128_v29 = vld [vmem:[#allocation15 + $0x50] sm:$0xf0] }
  0xfe   :  { %v6815_v48 = vmul.f32 -1.442695, %v909_v39  ;;  %v6816_v51 = vmul.f32 -1.442695, %v910_v46  ;;  %1552 = vmatpush.bf16.msra.mxu2 %v6960_v34  ;;  %v8997_v46 = vld [vmem:[#allocation15 + $0xec] sm:$0xf]  ;;  %v7159_v42 = vor.u32 %v8986_v37, %v7158_v36 }
  0xff   :  { %1565 = vmatpush.bf16.msra.mxu3 %v6964_v35  ;;  %1877 = vmatpush.bf16.msrb.mxu1 %v7211_v2  ;;  %v7160_v2 = vld [vmem:[#allocation15 + $0x90] sm:$0xf0]  ;;  %v7134_v36 = vld [vmem:[#allocation15 + $0x48] sm:$0xf]  ;;  %v8979_v37 = vld [vmem:[#allocation15 + $0x54] sm:$0xf0] }
 0x100   :  { %9405 = vpow2.f32 %v6815_v48  ;;  %1864 = vmatpush.bf16.msrb.mxu0 %v7207_v40 }
 0x101   :  { %9407 = vpow2.f32 %v6816_v51  ;;  %v7216_v51 = vld [vmem:[#allocation15 + $0xf8] sm:$0xf0] }
 0x102   :  { %v7219_v55 = vor.u32 %v8997_v46, %v7216_v51  ;;  %1890 = vmatpush.bf16.msrb.mxu2 %v7215_v50  ;;  %v8985_v51 = vld [vmem:[#allocation15 + $0x8c] sm:$0xf] }
 0x103   :  { %v905_v4 = vpop.f32.mrf.mxu3  ;;  %v868_v5 = vpop.f32.mrf.mxu0 }
 0x104   :  { %v892_v62 = vpop.f32.mrf.mxu2  ;;  %v912_v10 = vadd.f32 %v905_v4, %v664_v59  ;;  %v881_v11 = vpop.f32.mrf.mxu1  ;;  %1903 = vmatpush.bf16.msrb.mxu3 %v7219_v55  ;;  %v8993_v4 = vld [vmem:[#allocation15 + $0xcc] sm:$0xf]  ;;  %1865 = vmatpush.bf16.msrb.mxu0 %v7191_v60 }
 0x105   :  { %v911_v38 = vadd.f32 %v892_v62, %v663_v32  ;;  %v7192_v62 = vld [vmem:[#allocation15 + $0xd0] sm:$0xf0]  ;;  %v7199_v11 = vor.u32 %v8995_v3, %v7198_v63  ;;  %v7203_v12 = vor.u32 %v8993_v4, %v7200_v9  ;;  %v7184_v32 = vld [vmem:[#allocation15 + $0xb8] sm:$0xf0]  ;;  %v7167_v63 = vor.u32 %v8987_v45, %v7166_v43  ;;  %v8982_v3 = vld [vmem:[#allocation15 + $0x6c] sm:$0xf0] }
 0x106   :  { %v9406_v17 = vpop.eup %9405  ;;  %v6817_v44 = vmul.f32 -1.442695, %v912_v10  ;;  %v7195_v8 = vor.u32 %v8992_v61, %v7192_v62  ;;  %v7187_v35 = vor.u32 %v8989_v26, %v7184_v32  ;;  %v7150_v9 = vld [vmem:[#allocation15 + $0x68] sm:$0xf]  ;;  %v8972_v45 = vld [vmem:[#allocation15 + $0x24] sm:$0xf] }
 0x107   :  { %v9408_v20 = vpop.eup %9407  ;;  %v10340_v21 = vadd.f32 1.0, %v9406_v17  ;;  %1891 = vmatpush.bf16.msrb.mxu2 %v7199_v11  ;;  %v7151_v17 = vor.u32 %v8983_v13, %v7150_v9 }
 0x108   :  { %v10348_v25 = vadd.f32 1.0, %v9408_v20  ;;  %9409 = vpow2.f32 %v6817_v44  ;;  %1878 = vmatpush.bf16.msrb.mxu1 %v7195_v8  ;;  %v7176_v20 = vld [vmem:[#allocation15 + $0xb0] sm:$0xf0]  ;;  %1904 = vmatpush.bf16.msrb.mxu3 %v7203_v12  ;;  %v7152_v44 = vld [vmem:[#allocation15 + $0x78] sm:$0xf0] }
 0x109   :  { %9411 = vrcp.f32 %v10340_v21  ;;  %v926_v39 = vand.u32 2147483647, %v10340_v21  ;;  %v928_v48 = vand.u32 2147483648, %v10340_v21  ;;  %vm922_vm0 = vweird.f32 %v10340_v21  ;;  %1866 = vmatpush.bf16.msrb.mxu0 %v7175_v18  ;;  %v7144_v8 = vld [vmem:[#allocation15 + $0x70] sm:$0xf0] }
 0x10a   :  { %9413 = vrcp.f32 %v10348_v25  ;;  %v945_v49 = vand.u32 2147483647, %v10348_v25  ;;  %v947_v53 = vand.u32 2147483648, %v10348_v25  ;;  %vm941_vm7 = vweird.f32 %v10348_v25 }
 0x10b   :  { %v907_v33 = vpop.f32.mrf.mxu3  ;;  %9415 = vtanh.f32 %v911_v38  ;;  %vm10383_vm2 = vcmp.eq.f32.partialorder %v926_v39, 8.507059e+37  ;;  %v929_v7 = vor.u32 1.1754944e-38, %v928_v48  ;;  %v8984_v38 = vld [vmem:[#allocation15 + $0x84] sm:$0xf] }
 0x10c   :  { %v894_v30 = vpop.f32.mrf.mxu2  ;;  %v948_v15 = vor.u32 1.1754944e-38, %v947_v53  ;;  %vm10397_vm5 = vcmp.eq.f32.partialorder %v945_v49, 8.507059e+37  ;;  %1905 = vmatpush.bf16.msrb.mxu3 %v7187_v35  ;;  %v7163_v50 = vor.u32 %v8984_v38, %v7160_v2  ;;  %v7110_v2 = vld [vmem:[#allocation15 + $0x20] sm:$0xf] }
 0x10d   :  { %1867 = vmatpush.bf16.msrb.mxu0 %v7159_v42  ;;  %v7136_v42 = vld [vmem:[#allocation15 + $0x58] sm:$0xf0] }
 0x10e   :  { %v9410_v47 = vpop.eup %9409 }
 0x10f   :  { %v10367_v52 = vpop.eup %9411  ;;  %v10370_v54 = vadd.f32 1.0, %v9410_v47 }
 0x110   :  { %v10372_v58 = vpop.eup %9413  ;;  %v918_v59 = vmul.f32 %v10367_v52, %v10340_v21  ;;  %vm923_vm1 = vweird.f32 %v10367_v52  ;;  %v7179_v21 = vor.u32 %v8988_v19, %v7176_v20  ;;  %v7155_v20 = vor.u32 %v8981_v14, %v7152_v44  ;;  %v8969_v14 = vld [vmem:[#allocation15 + $0xc] sm:$0xf] }
 0x111   :  { %v937_v0 = vmul.f32 %v10372_v58, %v10348_v25  ;;  %9417 = vrcp.f32 %v10370_v54  ;;  %vm942_vm3 = vweird.f32 %v10372_v58  ;;  %vm10393_vm4 = vmor %vm922_vm0, %vm923_vm1  ;;  %v9416_v27 = vpop.eup %9415  ;;  %v965_v30 = vand.u32 2147483647, %v10370_v54 }
 0x112   :  { %v919_v5 = vsub.f32 1.0, %v918_v59  ;;  %vm10407_vm8 = vmor %vm941_vm7, %vm942_vm3  ;;  %v967_v31 = vand.u32 2147483648, %v10370_v54  ;;  %v7183_v25 = vor.u32 %v8991_v24, %v7182_v23  ;;  %1879 = vmatpush.bf16.msrb.mxu1 %v7179_v21  ;;  %v983_v59 = vld [vmem:[#allocation3 + $0x8] sm:$0xc0]  ;;  %v8978_v21 = vld [vmem:[#allocation15 + $0x4c] sm:$0xf0]  ;;  %vm961_vm10 = vweird.f32 %v10370_v54 }
 0x113   :  { %v938_v10 = vsub.f32 1.0, %v937_v0  ;;  %v7142_v0 = vld [vmem:[#allocation15 + $0x60] sm:$0xf]  ;;  %v985_v24 = vld [vmem:[#allocation3 + $0x38] sm:$0xc0]  ;;  %vm10448_vm12 = vcmp.eq.f32.partialorder %v965_v30, 8.507059e+37 }
 0x114   :  { %v920_v16 = vmul.f32 %v10367_v52, %v919_v5  ;;  %1892 = vmatpush.bf16.msrb.mxu2 %v7183_v25  ;;  %v7143_v6 = vor.u32 %v8982_v3, %v7142_v0  ;;  %v968_v23 = vor.u32 1.1754944e-38, %v967_v31  ;;  %v8974_v30 = vld [vmem:[#allocation15 + $0x2c] sm:$0xf0] }
 0x115   :  { %v939_v22 = vmul.f32 %v10372_v58, %v938_v10 }
 0x116   :  { %v921_v28 = vadd.f32 %v10367_v52, %v920_v16  ;;  %1880 = vmatpush.bf16.msrb.mxu1 %v7163_v50  ;;  %1868 = vmatpush.bf16.msrb.mxu0 %v7143_v6  ;;  %v8975_v50 = vld [vmem:[#allocation15 + $0x34] sm:$0xf0] }
 0x117   :  { %v10413_v33 = vpop.eup %9417  ;;  %v940_v34 = vadd.f32 %v10372_v58, %v939_v22  ;;  %v7126_v22 = vld [vmem:[#allocation15 + $0x40] sm:$0xf] }
 0x118   :  { %v925_v39 = vsel %vm10393_vm4, %v10367_v52, %v921_v28  ;;  %v957_v40 = vmul.f32 %v10413_v33, %v10370_v54  ;;  %v7168_v52 = vld [vmem:[#allocation15 + $0x98] sm:$0xf0]  ;;  %1893 = vmatpush.bf16.msrb.mxu2 %v7167_v63  ;;  %vm962_vm9 = vweird.f32 %v10413_v33  ;;  %v8976_v28 = vld [vmem:[#allocation15 + $0x44] sm:$0xf]  ;;  %v7127_v35 = vor.u32 %v8978_v21, %v7126_v22  ;;  %v984_v22 = vld [vmem:[#allocation3 + $0x30] sm:$0xc0] }
 0x119   :  { %v930_v46 = vsel %vm10383_vm2, %v929_v7, %v925_v39  ;;  %v944_v47 = vsel %vm10407_vm8, %v10372_v58, %v940_v34  ;;  %v7171_v58 = vor.u32 %v8985_v51, %v7168_v52  ;;  %v8980_v7 = vld [vmem:[#allocation15 + $0x64] sm:$0xf]  ;;  %vm10442_vm11 = vmor %vm961_vm10, %vm962_vm9  ;;  %v7131_v39 = vor.u32 %v8976_v28, %v7128_v29  ;;  %v8973_v51 = vld [vmem:[#allocation15 + $0x2c] sm:$0xf] }
 0x11a   :  { %v949_v53 = vsel %vm10397_vm5, %v948_v15, %v944_v47  ;;  %v972_v55 = vmul.f32 %v9416_v27, %v930_v46  ;;  %v958_v56 = vsub.f32 1.0, %v957_v40  ;;  %v7147_v12 = vor.u32 %v8980_v7, %v7144_v8  ;;  %1869 = vmatpush.bf16.msrb.mxu0 %v7127_v35  ;;  %v7112_v46 = vld [vmem:[#allocation15 + $0x30] sm:$0xf0]  ;;  %v8968_v63 = vld [vmem:[#allocation15 + $0x4] sm:$0xf] }
 0x11b   :  { %v1187_v41 = vpop.f32.mrf.mxu0  ;;  %v1200_v49 = vpop.f32.mrf.mxu1  ;;  %v971_v61 = vmul.f32 0.0, %v949_v53  ;;  %1906 = vmatpush.bf16.msrb.mxu3 %v7171_v58  ;;  %v7135_v40 = vor.u32 %v8979_v37, %v7134_v36  ;;  %v7111_v47 = vor.u32 %v8974_v30, %v7110_v2  ;;  %v7096_v58 = vld [vmem:[#allocation15 + $0x10] sm:$0xf0]  ;;  %v7102_v7 = vld [vmem:[#allocation15 + $0x8] sm:$0xf] }
 0x11c   :  { %v1234_v48 = vrot.slane %v1187_v41, 2  ;;  %v1235_v60 = vrot.slane %v1200_v49, 2  ;;  %v959_v4 = vmul.f32 %v10413_v33, %v958_v56  ;;  %1881 = vmatpush.bf16.msrb.mxu1 %v7147_v12  ;;  %1894 = vmatpush.bf16.msrb.mxu2 %v7151_v17  ;;  %v8977_v41 = vld [vmem:[#allocation15 + $0x4c] sm:$0xf]  ;;  %v7118_v49 = vld [vmem:[#allocation15 + $0x28] sm:$0xf]  ;;  %v7099_v13 = vor.u32 %v8968_v63, %v7096_v58 }
 0x11d   :  { %v973_v10 = vadd.f32 %v972_v55, %v971_v61  ;;  %v7139_v54 = vor.u32 %v8977_v41, %v7136_v42  ;;  %v7119_v55 = vor.u32 %v8975_v50, %v7118_v49  ;;  %v7120_v56 = vld [vmem:[#allocation15 + $0x38] sm:$0xf0]  ;;  %v8971_v8 = vld [vmem:[#allocation15 + $0x14] sm:$0xf0] }
 0x11e   :  { %v1242_v62 = vadd.f32 %v1234_v48, %v982_v57  ;;  %v1243_v5 = vadd.f32 %v1235_v60, %v983_v59  ;;  %v960_v16 = vadd.f32 %v10413_v33, %v959_v4  ;;  %v7115_v48 = vor.u32 %v8972_v45, %v7112_v46  ;;  %v7094_v57 = vld [vmem:[#allocation15] sm:$0xf]  ;;  %1870 = vmatpush.bf16.msrb.mxu0 %v7111_v47 }
 0x11f   :  { %9419 = vtanh.f32 %v973_v10  ;;  %v10435_v19 = vsel %vm660_vm6, %v973_v10, 0.0  ;;  %1907 = vmatpush.bf16.msrb.mxu3 %v7155_v20  ;;  %v7123_v61 = vor.u32 %v8973_v51, %v7120_v56  ;;  %v10487_v20 = vld [vmem:[%s12829_s6] ss:$0 sm:$0xff] }
 0x120   :  { %v6946_v11 = vmul.f32 -1.442695, %v1242_v62  ;;  %v6947_v15 = vmul.f32 -1.442695, %v1243_v5  ;;  %v964_v38 = vsel %vm10442_vm11, %v10413_v33, %v960_v16  ;;  %1882 = vmatpush.bf16.msrb.mxu1 %v7131_v39  ;;  %1895 = vmatpush.bf16.msrb.mxu2 %v7135_v40  ;;  %v8970_v62 = vld [vmem:[#allocation15 + $0xc] sm:$0xf0]  ;;  %v7103_v16 = vor.u32 %v8971_v8, %v7102_v7 }
 0x121   :  { %v969_v33 = vsel %vm10448_vm12, %v968_v23, %v964_v38  ;;  %v7095_v6 = vor.u32 %v8970_v62, %v7094_v57  ;;  %v9030_v7 = vld [vmem:[%s12827_s4 + $0xec] sm:$0xf0]  ;;  %v9028_v8 = vld [vmem:[%s12827_s4 + $0xe4] sm:$0xf] }
 0x122   :  { %v10431_v18 = vpop.f32.mrf.mxu2  ;;  %9421 = vpow2.f32 %v6946_v11 }
 0x123   :  { %v1226_v26 = vpop.f32.mrf.mxu3  ;;  %v1189_v27 = vpop.f32.mrf.mxu0  ;;  %9423 = vpow2.f32 %v6947_v15  ;;  %1908 = vmatpush.bf16.msrb.mxu3 %v7139_v54  ;;  %v7104_v15 = vld [vmem:[#allocation15 + $0x18] sm:$0xf0]  ;;  %v1236_v1 = vrot.slane %v10431_v18, 2  ;;  %1871 = vmatpush.bf16.msrb.mxu0 %v7095_v6 }
 0x124   :  { %v1237_v32 = vrot.slane %v1226_v26, 2  ;;  %v1202_v34 = vpop.f32.mrf.mxu1  ;;  %1883 = vmatpush.bf16.msrb.mxu1 %v7115_v48  ;;  %1896 = vmatpush.bf16.msrb.mxu2 %v7119_v55  ;;  %v7107_v17 = vor.u32 %v8969_v14, %v7104_v15  ;;  %v7349_v6 = vld [vmem:[%s12827_s4 + $0xe0] sm:$0xf] }
 0x125   :  { %v9420_v52 = vpop.eup %9419  ;;  %v1244_v23 = vadd.f32 %v1236_v1, %v984_v22  ;;  %v7359_v1 = vld [vmem:[%s12827_s4 + $0xf8] sm:$0xf0]  ;;  %v9026_v22 = vld [vmem:[%s12827_s4 + $0xcc] sm:$0xf0] }
 0x126   :  { %v1245_v43 = vadd.f32 %v1237_v32, %v985_v24  ;;  %v975_v60 = vmul.f32 %v9420_v52, %v969_v33 }
 0x127   :  { %1909 = vmatpush.bf16.msrb.mxu3 %v7123_v61 }
 0x128   :  { %v6948_v53 = vmul.f32 -1.442695, %v1245_v43  ;;  %v9422_v59 = vpop.eup %9421  ;;  %v10470_v11 = vsel %vm660_vm6, %v975_v60, 0.0  ;;  %v7078_v12 = vpack.c.bf16 %v975_v60, %v975_v60  ;;  %1884 = vmatpush.bf16.msrb.mxu1 %v7099_v13  ;;  %1897 = vmatpush.bf16.msrb.mxu2 %v7103_v16  ;;  %v9031_v13 = vld [vmem:[%s12827_s4 + $0xf4] sm:$0xf0] }
 0x129   :  { %v9424_v0 = vpop.eup %9423  ;;  %v10457_v3 = vadd.f32 1.0, %v9422_v59  ;;  %977 = vst [vmem:[#allocation4] sm:$0x3] %v10470_v11  ;;  %v9029_v16 = vld [vmem:[%s12827_s4 + $0xec] sm:$0xf] }
 0x12a   :  { %9425 = vpow2.f32 %v6948_v53  ;;  %v1215_v5 = vpop.f32.mrf.mxu2  ;;  %v10466_v9 = vadd.f32 1.0, %v9424_v0  ;;  %7079 = vmatmul.msk.bf16.vlgmr.msra.gmra.mxu0 %vm10462_vm13, %v7078_v12  ;;  %7082 = vmatmul.msk.bf16.vlgmr.msra.gmra.mxu1 %vm10462_vm13, %v7078_v12  ;;  %v980_v53 = vld [vmem:[#allocation10 + $0xe] sm:$0x3] }
 0x12b   :  { %v1228_v10 = vpop.f32.mrf.mxu3  ;;  %9427 = vrcp.f32 %v10457_v3  ;;  %7085 = vmatmul.msk.bf16.vlgmr.msra.gmra.mxu2 %vm10462_vm13, %v7078_v12  ;;  %7088 = vmatmul.msk.bf16.vlgmr.msra.gmra.mxu3 %vm10462_vm13, %v7078_v12  ;;  %v1261_v34 = vand.u32 2147483648, %v10457_v3  ;;  %v1259_v37 = vand.u32 2147483647, %v10457_v3  ;;  %vm1255_vm1 = vweird.f32 %v10457_v3  ;;  %v7357_v12 = vld [vmem:[%s12827_s4 + $0xe8] sm:$0xf] }
 0x12c   :  { %9429 = vrcp.f32 %v10466_v9  ;;  %1910 = vmatpush.bf16.msrb.mxu3 %v7107_v17  ;;  %v1280_v35 = vand.u32 2147483648, %v10466_v9  ;;  %v1278_v39 = vand.u32 2147483647, %v10466_v9  ;;  %vm1274_vm2 = vweird.f32 %v10466_v9  ;;  %v7351_v10 = vld [vmem:[%s12827_s4 + $0xf0] sm:$0xf0] }
 0x12d   :  { %v1262_v42 = vor.u32 1.1754944e-38, %v1261_v34  ;;  %vm1260_vm4 = vcmp.eq.f32.partialorder %v1259_v37, 8.507059e+37  ;;  %vm981_vm7 = vcmp.gt.f32.partialorder %v980_v53, 0.0  ;;  %v7354_v14 = vor.u32 %v9028_v8, %v7351_v10  ;;  %v7317_v34 = vld [vmem:[%s12827_s4 + $0xa0] sm:$0xf] }
 0x12e   :  { %v1281_v54 = vor.u32 1.1754944e-38, %v1280_v35  ;;  %vm1279_vm6 = vcmp.eq.f32.partialorder %v1278_v39, 8.507059e+37  ;;  %vm7220_vm12 = vmpackc.low %vm981_vm7, %vm981_vm7  ;;  %v7358_v15 = vor.u32 %v9031_v13, %v7357_v12  ;;  %v7362_v17 = vor.u32 %v9029_v16, %v7359_v1  ;;  %v9020_v35 = vld [vmem:[%s12827_s4 + $0xa4] sm:$0xf]  ;;  %v7319_v37 = vld [vmem:[%s12827_s4 + $0xb0] sm:$0xf0] }
 0x12f   :  { %2222 = vmatpush.bf16.msra.mxu1 %v7354_v14  ;;  %v9023_v39 = vld [vmem:[%s12827_s4 + $0xb4] sm:$0xf0]  ;;  %v7303_v53 = vld [vmem:[%s12827_s4 + $0x90] sm:$0xf0]  ;;  %v7293_v12 = vld [vmem:[%s12827_s4 + $0x68] sm:$0xf] }
 0x130   :  { %v9426_v44 = vpop.eup %9425  ;;  %v6070_v27 = vld [vmem:[#allocation4] sm:$0x3]  ;;  %2235 = vmatpush.bf16.msra.mxu2 %v7358_v15  ;;  %2248 = vmatpush.bf16.msra.mxu3 %v7362_v17  ;;  %v9015_v13 = vld [vmem:[%s12827_s4 + $0x74] sm:$0xf0]  ;;  %v9013_v14 = vld [vmem:[%s12827_s4 + $0x6c] sm:$0xf] }
 0x131   :  { %v1288_v21 = vadd.f32 1.0, %v9426_v44  ;;  %v9428_v18 = vpop.eup %9427  ;;  %v6090_v29 = vmul.f32 %v10487_v20, %v6070_v27  ;;  %v7333_v44 = vld [vmem:[%s12827_s4 + $0xc0] sm:$0xf]  ;;  %v1325_v16 = vld [vmem:[#allocation2 + $0x10] sm:$0xc]  ;;  %v7294_v17 = vor.u32 %v9015_v13, %v7293_v12  ;;  %v1646_v12 = vrot.slane %v10435_v19, 6 }
 0x132   :  { %v9430_v24 = vpop.eup %9429  ;;  %v1251_v26 = vmul.f32 %v9428_v18, %v10457_v3  ;;  %vm1256_vm15 = vweird.f32 %v9428_v18 }
 0x133   :  { %9431 = vrcp.f32 %v1288_v21  ;;  %v1270_v28 = vmul.f32 %v9430_v24, %v10466_v9  ;;  %v6099_v31 = vsel %vm6098_vm14, %v6090_v29, 0.0  ;;  %vm1275_vm0 = vweird.f32 %v9430_v24  ;;  %vm1257_vm3 = vmor %vm1255_vm1, %vm1256_vm15  ;;  %v9025_v29 = vld [vmem:[%s12827_s4 + $0xcc] sm:$0xf] }
 0x134   :  { %v1252_v25 = vsub.f32 1.0, %v1251_v26  ;;  %9433 = vtanh.f32 %v1244_v23  ;;  %6100 = vadd.xlane.f32.xlu0 %v6099_v31  ;;  %vm1276_vm5 = vmor %vm1274_vm2, %vm1275_vm0  ;;  %v1300_v56 = vand.u32 2147483648, %v1288_v21  ;;  %vm1294_vm9 = vweird.f32 %v1288_v21  ;;  %v7335_v23 = vld [vmem:[%s12827_s4 + $0xd0] sm:$0xf0]  ;;  %v9027_v26 = vld [vmem:[%s12827_s4 + $0xd4] sm:$0xf0] }
 0x135   :  { %v1271_v32 = vsub.f32 1.0, %v1270_v28  ;;  %v1298_v59 = vand.u32 2147483647, %v1288_v21  ;;  %v7350_v9 = vor.u32 %v9030_v7, %v7349_v6  ;;  %v9022_v31 = vld [vmem:[%s12827_s4 + $0xac] sm:$0xf0] }
 0x136   :  { %v1253_v36 = vmul.f32 %v9428_v18, %v1252_v25  ;;  %v1301_v62 = vor.u32 1.1754944e-38, %v1300_v56  ;;  %v7343_v25 = vld [vmem:[%s12827_s4 + $0xd8] sm:$0xf0]  ;;  %v9019_v56 = vld [vmem:[%s12827_s4 + $0x94] sm:$0xf0] }
 0x137   :  { %v1272_v38 = vmul.f32 %v9430_v24, %v1271_v32  ;;  %vm1299_vm11 = vcmp.eq.f32.partialorder %v1298_v59, 8.507059e+37  ;;  %2209 = vmatpush.bf16.msra.mxu0 %v7350_v9  ;;  %v7346_v32 = vor.u32 %v9025_v29, %v7343_v25  ;;  %v7311_v59 = vld [vmem:[%s12827_s4 + $0x98] sm:$0xf0]  ;;  %v7287_v9 = vld [vmem:[%s12827_s4 + $0x70] sm:$0xf0] }
 0x138   :  { %v1254_v41 = vadd.f32 %v9428_v18, %v1253_v36  ;;  %v7318_v36 = vor.u32 %v9022_v31, %v7317_v34  ;;  %v7271_v29 = vld [vmem:[%s12827_s4 + $0x50] sm:$0xf0]  ;;  %v7277_v25 = vld [vmem:[%s12827_s4 + $0x48] sm:$0xf]  ;;  %v9011_v31 = vld [vmem:[%s12827_s4 + $0x54] sm:$0xf0] }
 0x139   :  { %v9432_v40 = vpop.eup %9431  ;;  %v1273_v2 = vadd.f32 %v9430_v24, %v1272_v38  ;;  %2249 = vmatpush.bf16.msra.mxu3 %v7346_v32  ;;  %v7325_v38 = vld [vmem:[%s12827_s4 + $0xa8] sm:$0xf] }
 0x13a   :  { %v1290_v43 = vmul.f32 %v9432_v40, %v1288_v21  ;;  %v1258_v30 = vsel %vm1257_vm3, %v9428_v18, %v1254_v41  ;;  %v9434_v45 = vpop.eup %9433  ;;  %vm1295_vm8 = vweird.f32 %v9432_v40  ;;  %v9024_v21 = vld [vmem:[%s12827_s4 + $0xc4] sm:$0xf]  ;;  %v7334_v18 = vor.u32 %v9026_v22, %v7333_v44  ;;  %v7295_v44 = vld [vmem:[%s12827_s4 + $0x78] sm:$0xf0] }
 0x13b   :  { %v1263_v46 = vsel %vm1260_vm4, %v1262_v42, %v1258_v30  ;;  %v1277_v47 = vsel %vm1276_vm5, %v9430_v24, %v1273_v2  ;;  %vm1296_vm10 = vmor %vm1294_vm9, %vm1295_vm8  ;;  %v7341_v24 = vld [vmem:[%s12827_s4 + $0xc8] sm:$0xf]  ;;  %v7338_v27 = vor.u32 %v9024_v21, %v7335_v23  ;;  %v7326_v41 = vor.u32 %v9023_v39, %v7325_v38  ;;  %v9021_v42 = vld [vmem:[%s12827_s4 + $0xac] sm:$0xf] }
 0x13c   :  { %v1291_v48 = vsub.f32 1.0, %v1290_v43  ;;  %v1282_v49 = vsel %vm1279_vm6, %v1281_v54, %v1277_v47  ;;  %v1305_v50 = vmul.f32 %v9434_v45, %v1263_v46  ;;  %v7342_v28 = vor.u32 %v9027_v26, %v7341_v24  ;;  %2210 = vmatpush.bf16.msra.mxu0 %v7334_v18  ;;  %v7327_v2 = vld [vmem:[%s12827_s4 + $0xb8] sm:$0xf0]  ;;  %v1322_v54 = vld [vmem:[#allocation2 + $0x30] sm:$0xc] }
 0x13d   :  { %v1304_v51 = vmul.f32 0.0, %v1282_v49  ;;  %2223 = vmatpush.bf16.msra.mxu1 %v7338_v27  ;;  %v7330_v43 = vor.u32 %v9021_v42, %v7327_v2  ;;  %v1323_v45 = vld [vmem:[#allocation2] sm:$0xc]  ;;  %v9016_v49 = vld [vmem:[%s12827_s4 + $0x84] sm:$0xf]  ;;  %v7298_v23 = vor.u32 %v9013_v14, %v7295_v44 }
 0x13e   :  { %v1292_v52 = vmul.f32 %v9432_v40, %v1291_v48  ;;  %2236 = vmatpush.bf16.msra.mxu2 %v7342_v28  ;;  %v7301_v47 = vld [vmem:[%s12827_s4 + $0x80] sm:$0xf]  ;;  %v9018_v48 = vld [vmem:[%s12827_s4 + $0x8c] sm:$0xf0]  ;;  %v9008_v28 = vld [vmem:[%s12827_s4 + $0x44] sm:$0xf] }
 0x13f   :  { %v1306_v33 = vadd.f32 %v1305_v50, %v1304_v51  ;;  %2250 = vmatpush.bf16.msra.mxu3 %v7330_v43  ;;  %v7269_v24 = vld [vmem:[%s12827_s4 + $0x40] sm:$0xf]  ;;  %v9010_v26 = vld [vmem:[%s12827_s4 + $0x4c] sm:$0xf0]  ;;  %v7274_v34 = vor.u32 %v9008_v28, %v7271_v29  ;;  %v9004_v43 = vld [vmem:[%s12827_s4 + $0x24] sm:$0xf] }
 0x140   :  { %v1293_v55 = vadd.f32 %v9432_v40, %v1292_v52  ;;  %2211 = vmatpush.bf16.msra.mxu0 %v7318_v36  ;;  %v7302_v52 = vor.u32 %v9018_v48, %v7301_v47  ;;  %v7270_v27 = vor.u32 %v9010_v26, %v7269_v24  ;;  %v7279_v36 = vld [vmem:[%s12827_s4 + $0x58] sm:$0xf0]  ;;  %v9060_v44 = vld [vmem:[#allocation15 + $0xe4] sm:$0xf] }
 0x141   :  { %9435 = vtanh.f32 %v1306_v33  ;;  %v1316_v57 = vrot.slane %v1306_v33, 6  ;;  %v7309_v33 = vld [vmem:[%s12827_s4 + $0x88] sm:$0xf]  ;;  %v9063_v24 = vld [vmem:[#allocation15 + $0xf4] sm:$0xf0] }
 0x142   :  { %v1297_v61 = vsel %vm1296_vm10, %v9432_v40, %v1293_v55  ;;  %v7322_v40 = vor.u32 %v9020_v35, %v7319_v37  ;;  %2237 = vmatpush.bf16.msra.mxu2 %v7326_v41  ;;  %v7306_v55 = vor.u32 %v9016_v49, %v7303_v53  ;;  %v9009_v35 = vld [vmem:[%s12827_s4 + $0x4c] sm:$0xf]  ;;  %v7278_v37 = vor.u32 %v9011_v31, %v7277_v25  ;;  %v9006_v41 = vld [vmem:[%s12827_s4 + $0x2c] sm:$0xf0]  ;;  %v9007_v49 = vld [vmem:[%s12827_s4 + $0x34] sm:$0xf0] }
 0x143   :  { %v10500_v60 = vsel %vm981_vm7, %v1316_v57, 0.0  ;;  %v1302_v58 = vsel %vm1299_vm11, %v1301_v62, %v1297_v61  ;;  %v9017_v57 = vld [vmem:[%s12827_s4 + $0x8c] sm:$0xf]  ;;  %v7282_v38 = vor.u32 %v9009_v35, %v7279_v36  ;;  %v7490_v36 = vld [vmem:[#allocation15 + $0xf8] sm:$0xf0] }
 0x144   :  { %2224 = vmatpush.bf16.msra.mxu1 %v7322_v40  ;;  %2212 = vmatpush.bf16.msra.mxu0 %v7302_v52  ;;  %v7253_v40 = vld [vmem:[%s12827_s4 + $0x20] sm:$0xf]  ;;  %v9061_v25 = vld [vmem:[#allocation15 + $0xec] sm:$0xf] }
 0x145   :  { %v7254_v2 = vor.u32 %v9006_v41, %v7253_v40  ;;  %v7493_v40 = vor.u32 %v9061_v25, %v7490_v36  ;;  %v7464_v41 = vld [vmem:[#allocation15 + $0xc0] sm:$0xf] }
 0x147   :  { %v9436_v63 = vpop.eup %9435 }
 0x148   :  { %v1308_v0 = vmul.f32 %v9436_v63, %v1302_v58  ;;  %v7310_v63 = vor.u32 %v9019_v56, %v7309_v33  ;;  %v7314_v58 = vor.u32 %v9017_v57, %v7311_v59  ;;  %2225 = vmatpush.bf16.msra.mxu1 %v7306_v55  ;;  %v9005_v33 = vld [vmem:[%s12827_s4 + $0x2c] sm:$0xf]  ;;  %v7263_v55 = vld [vmem:[%s12827_s4 + $0x38] sm:$0xf0]  ;;  %v7237_v56 = vld [vmem:[%s12827_s4] sm:$0xf] }
 0x149   :  { %v1324_v57 = vld [vmem:[#allocation2 + $0x18] sm:$0xc]  ;;  %v9002_v59 = vld [vmem:[%s12827_s4 + $0xc] sm:$0xf0] }
 0x14a   :  { %v1310_v3 = vrot.slane %v1308_v0, 6  ;;  %v7285_v0 = vld [vmem:[%s12827_s4 + $0x60] sm:$0xf]  ;;  %2238 = vmatpush.bf16.msra.mxu2 %v7310_v63  ;;  %2251 = vmatpush.bf16.msra.mxu3 %v7314_v58  ;;  %v7238_v63 = vor.u32 %v9002_v59, %v7237_v56  ;;  %v9000_v58 = vld [vmem:[%s12827_s4 + $0x4] sm:$0xf] }
 0x14b   :  { %v7368_v56 = vld [vmem:[#allocation15] sm:$0xf] }
 0x14c   :  { %v10505_v4 = vsel %vm981_vm7, %v1310_v3, 0.0  ;;  %v7221_v5 = vpack.c.bf16 %v1310_v3, %v1310_v3  ;;  %v9014_v3 = vld [vmem:[%s12827_s4 + $0x6c] sm:$0xf0] }
 0x14d   :  { %1314 = vst [vmem:[#allocation5 + $0xe] sm:$0x3] %v10505_v4  ;;  %v7286_v8 = vor.u32 %v9014_v3, %v7285_v0  ;;  %v7239_v0 = vld [vmem:[%s12827_s4 + $0x10] sm:$0xf0] }
 0x14e   :  { %7222 = vmatmul.msk.bf16.vlgmr.msrb.gmra.mxu0 %vm7220_vm12, %v7221_v5  ;;  %7225 = vmatmul.msk.bf16.vlgmr.msrb.gmra.mxu1 %vm7220_vm12, %v7221_v5  ;;  %v7242_v3 = vor.u32 %v9000_v58, %v7239_v0  ;;  %v7448_v0 = vld [vmem:[#allocation15 + $0xa0] sm:$0xf] }
 0x14f   :  { %7228 = vmatmul.msk.bf16.vlgmr.msrb.gmra.mxu2 %vm7220_vm12, %v7221_v5  ;;  %7231 = vmatmul.msk.bf16.vlgmr.msrb.gmra.mxu3 %vm7220_vm12, %v7221_v5  ;;  %v9012_v5 = vld [vmem:[%s12827_s4 + $0x64] sm:$0xf] }
 0x150   :  { %v7290_v10 = vor.u32 %v9012_v5, %v7287_v9  ;;  %2213 = vmatpush.bf16.msra.mxu0 %v7286_v8  ;;  %2239 = vmatpush.bf16.msra.mxu2 %v7294_v17  ;;  %v7245_v5 = vld [vmem:[%s12827_s4 + $0x8] sm:$0xf]  ;;  %v9001_v9 = vld [vmem:[%s12827_s4 + $0xc] sm:$0xf]  ;;  %v9062_v17 = vld [vmem:[#allocation15 + $0xec] sm:$0xf0] }
 0x151   :  { %2252 = vmatpush.bf16.msra.mxu3 %v7298_v23  ;;  %v7488_v23 = vld [vmem:[#allocation15 + $0xe8] sm:$0xf] }
 0x152   :  { %2226 = vmatpush.bf16.msra.mxu1 %v7290_v10  ;;  %v7247_v10 = vld [vmem:[%s12827_s4 + $0x18] sm:$0xf0]  ;;  %v7489_v35 = vor.u32 %v9063_v24, %v7488_v23 }
 0x153   :  { %v7458_v24 = vld [vmem:[#allocation15 + $0xb8] sm:$0xf0] }
 0x154   :  { %2214 = vmatpush.bf16.msra.mxu0 %v7270_v27  ;;  %2240 = vmatpush.bf16.msra.mxu2 %v7278_v37 }
 0x155   :  { %2253 = vmatpush.bf16.msra.mxu3 %v7282_v38 }
 0x156   :  { %2227 = vmatpush.bf16.msra.mxu1 %v7274_v34 }
 0x158   :  { %2215 = vmatpush.bf16.msra.mxu0 %v7254_v2  ;;  %v9058_v2 = vld [vmem:[#allocation15 + $0xcc] sm:$0xf0] }
 0x15c   :  { %2216 = vmatpush.bf16.msra.mxu0 %v7238_v63 }
 0x1a7   :  { %v1528_v30 = vpop.f32.mrf.mxu0  ;;  %v1541_v46 = vpop.f32.mrf.mxu1 }
 0x1a8   :  { %v1575_v50 = vrot.slane %v1528_v30, 6  ;;  %v1576_v51 = vrot.slane %v1541_v46, 6  ;;  %v7261_v30 = vld [vmem:[%s12827_s4 + $0x28] sm:$0xf] }
 0x1a9   :  { %v7262_v53 = vor.u32 %v9007_v49, %v7261_v30  ;;  %v7472_v49 = vld [vmem:[#allocation15 + $0xc8] sm:$0xf] }
 0x1aa   :  { %v1583_v61 = vadd.f32 %v1575_v50, %v1322_v54  ;;  %v1584_v62 = vadd.f32 %v1576_v51, %v1323_v45  ;;  %v7255_v54 = vld [vmem:[%s12827_s4 + $0x30] sm:$0xf0] }
 0x1ab   :  { %v7258_v48 = vor.u32 %v9004_v43, %v7255_v54  ;;  %2241 = vmatpush.bf16.msra.mxu2 %v7262_v53  ;;  %v9056_v43 = vld [vmem:[#allocation15 + $0xc4] sm:$0xf]  ;;  %v7466_v54 = vld [vmem:[#allocation15 + $0xd0] sm:$0xf0] }
 0x1ac   :  { %v7089_v6 = vmul.f32 -1.442695, %v1583_v61  ;;  %v7090_v7 = vmul.f32 -1.442695, %v1584_v62  ;;  %v7266_v62 = vor.u32 %v9005_v33, %v7263_v55 }
 0x1ad   :  { %2228 = vmatpush.bf16.msra.mxu1 %v7258_v48  ;;  %v7469_v48 = vor.u32 %v9056_v43, %v7466_v54  ;;  %v9051_v43 = vld [vmem:[#allocation15 + $0x94] sm:$0xf0]  ;;  %v9049_v54 = vld [vmem:[#allocation15 + $0x8c] sm:$0xf] }
 0x1ae   :  { %9437 = vpow2.f32 %v7089_v6  ;;  %v1554_v15 = vpop.f32.mrf.mxu2  ;;  %v1567_v1 = vpop.f32.mrf.mxu3  ;;  %v9003_v6 = vld [vmem:[%s12827_s4 + $0x14] sm:$0xf0]  ;;  %2254 = vmatpush.bf16.msra.mxu3 %v7266_v62 }
 0x1af   :  { %9439 = vpow2.f32 %v7090_v7  ;;  %v1578_v22 = vrot.slane %v1567_v1, 6  ;;  %v1530_v21 = vpop.f32.mrf.mxu0  ;;  %v1543_v18 = vpop.f32.mrf.mxu1  ;;  %v1577_v47 = vrot.slane %v1554_v15, 6  ;;  %v7246_v8 = vor.u32 %v9003_v6, %v7245_v5  ;;  %v7480_v1 = vld [vmem:[#allocation15 + $0xe0] sm:$0xf]  ;;  %v1670_v5 = vld [vmem:[#allocation3 + $0x38] sm:$0x30] }
 0x1b0   :  { %v7250_v15 = vor.u32 %v9001_v9, %v7247_v10  ;;  %v7482_v18 = vld [vmem:[#allocation15 + $0xf0] sm:$0xf0]  ;;  %v7481_v34 = vor.u32 %v9062_v17, %v7480_v1  ;;  %v7456_v9 = vld [vmem:[#allocation15 + $0xa8] sm:$0xf]  ;;  %v9053_v17 = vld [vmem:[#allocation15 + $0xac] sm:$0xf] }
 0x1b1   :  { %v1586_v32 = vadd.f32 %v1578_v22, %v1325_v16  ;;  %v1585_v61 = vadd.f32 %v1577_v47, %v1324_v57  ;;  %2229 = vmatpush.bf16.msra.mxu1 %v7242_v3  ;;  %2242 = vmatpush.bf16.msra.mxu2 %v7246_v8  ;;  %v7485_v31 = vor.u32 %v9060_v44, %v7482_v18  ;;  %v9054_v3 = vld [vmem:[#allocation15 + $0xac] sm:$0xf0]  ;;  %v7450_v8 = vld [vmem:[#allocation15 + $0xb0] sm:$0xf0] }
 0x1b2   :  { %2255 = vmatpush.bf16.msra.mxu3 %v7250_v15  ;;  %2554 = vmatpush.bf16.msrb.mxu0 %v7481_v34  ;;  %v7465_v47 = vor.u32 %v9058_v2, %v7464_v41  ;;  %v7432_v34 = vld [vmem:[#allocation15 + $0x80] sm:$0xf]  ;;  %v7440_v41 = vld [vmem:[#allocation15 + $0x88] sm:$0xf] }
 0x1b3   :  { %v7091_v39 = vmul.f32 -1.442695, %v1586_v32 }
 0x1b4   :  { %v9438_v42 = vpop.eup %9437 }
 0x1b5   :  { %v9440_v45 = vpop.eup %9439  ;;  %v10667_v46 = vadd.f32 1.0, %v9438_v42  ;;  %9441 = vpow2.f32 %v7091_v39  ;;  %v10727_v39 = vld [vmem:[#allocation10 + $0x2] sm:$0x3]  ;;  %2567 = vmatpush.bf16.msrb.mxu1 %v7485_v31  ;;  %2580 = vmatpush.bf16.msrb.mxu2 %v7489_v35  ;;  %v9050_v31 = vld [vmem:[#allocation15 + $0x8c] sm:$0xf0] }
 0x1b6   :  { %v10672_v50 = vadd.f32 1.0, %v9440_v45  ;;  %v1556_v51 = vpop.f32.mrf.mxu2  ;;  %v1569_v52 = vpop.f32.mrf.mxu3  ;;  %2593 = vmatpush.bf16.msrb.mxu3 %v7493_v40  ;;  %vm1321_vm3 = vcmp.gt.f32.partialorder %v10727_v39, 0.0  ;;  %2555 = vmatpush.bf16.msrb.mxu0 %v7465_v47  ;;  %v9048_v35 = vld [vmem:[#allocation15 + $0x84] sm:$0xf]  ;;  %v7433_v38 = vor.u32 %v9050_v31, %v7432_v34  ;;  %v7434_v40 = vld [vmem:[#allocation15 + $0x90] sm:$0xf0] }
 0x1b7   :  { %9443 = vrcp.f32 %v10667_v46  ;;  %v1600_v13 = vand.u32 2147483647, %v10667_v46  ;;  %v1602_v28 = vand.u32 2147483648, %v10667_v46  ;;  %vm1596_vm0 = vweird.f32 %v10667_v46  ;;  %v9059_v51 = vld [vmem:[#allocation15 + $0xd4] sm:$0xf0] }
 0x1b8   :  { %9445 = vrcp.f32 %v10672_v50  ;;  %v1621_v27 = vand.u32 2147483648, %v10672_v50  ;;  %v1619_v29 = vand.u32 2147483647, %v10672_v50  ;;  %v9057_v52 = vld [vmem:[#allocation15 + $0xcc] sm:$0xf]  ;;  %v7473_v59 = vor.u32 %v9059_v51, %v7472_v49 }
 0x1b9   :  { %9447 = vtanh.f32 %v1585_v61  ;;  %vm10723_vm15 = vcmp.eq.f32.partialorder %v1600_v13, 8.507059e+37  ;;  %v1603_v57 = vor.u32 1.1754944e-38, %v1602_v28  ;;  %v7474_v61 = vld [vmem:[#allocation15 + $0xd8] sm:$0xf0]  ;;  %vm1615_vm4 = vweird.f32 %v10672_v50  ;;  %2568 = vmatpush.bf16.msrb.mxu1 %v7469_v48  ;;  %v1667_v28 = vld [vmem:[#allocation3 + $0x28] sm:$0x30] }
 0x1ba   :  { %v1622_v33 = vor.u32 1.1754944e-38, %v1621_v27  ;;  %v7477_v58 = vor.u32 %v9057_v52, %v7474_v61  ;;  %vm1620_vm6 = vcmp.eq.f32.partialorder %v1619_v29, 8.507059e+37  ;;  %2581 = vmatpush.bf16.msrb.mxu2 %v7473_v59  ;;  %v7437_v2 = vor.u32 %v9048_v35, %v7434_v40  ;;  %v7384_v34 = vld [vmem:[#allocation15 + $0x20] sm:$0xf]  ;;  %v9038_v31 = vld [vmem:[#allocation15 + $0x2c] sm:$0xf0] }
 0x1bb   :  { %v9442_v7 = vpop.eup %9441  ;;  %v7441_v48 = vor.u32 %v9051_v43, %v7440_v41  ;;  %v9036_v35 = vld [vmem:[#allocation15 + $0x24] sm:$0xf]  ;;  %v9037_v43 = vld [vmem:[#allocation15 + $0x2c] sm:$0xf]  ;;  %v7376_v39 = vld [vmem:[#allocation15 + $0x8] sm:$0xf] }
 0x1bc   :  { %v10708_v14 = vadd.f32 1.0, %v9442_v7  ;;  %v7449_v7 = vor.u32 %v9054_v3, %v7448_v0  ;;  %2594 = vmatpush.bf16.msrb.mxu3 %v7477_v58  ;;  %v7418_v58 = vld [vmem:[#allocation15 + $0x70] sm:$0xf0]  ;;  %v7424_v0 = vld [vmem:[#allocation15 + $0x68] sm:$0xf] }
 0x1bd   :  { %v10710_v16 = vpop.eup %9443  ;;  %v9047_v3 = vld [vmem:[#allocation15 + $0x74] sm:$0xf0] }
 0x1be   :  { %v10712_v22 = vpop.eup %9445  ;;  %v1592_v21 = vmul.f32 %v10710_v16, %v10667_v46  ;;  %9449 = vrcp.f32 %v10708_v14  ;;  %vm1597_vm13 = vweird.f32 %v10710_v16  ;;  %v9052_v46 = vld [vmem:[#allocation15 + $0xa4] sm:$0xf]  ;;  %v1639_v18 = vand.u32 2147483647, %v10708_v14  ;;  %2556 = vmatpush.bf16.msrb.mxu0 %v7449_v7 }
 0x1bf   :  { %v1611_v26 = vmul.f32 %v10712_v22, %v10672_v50  ;;  %v9448_v30 = vpop.eup %9447  ;;  %vm1616_vm1 = vweird.f32 %v10712_v22  ;;  %vm10740_vm2 = vmor %vm1596_vm0, %vm1597_vm13  ;;  %v1641_v50 = vand.u32 2147483648, %v10708_v14  ;;  %v7453_v1 = vor.u32 %v9052_v46, %v7450_v8 }
 0x1c0   :  { %v1593_v32 = vsub.f32 1.0, %v1592_v21  ;;  %vm10751_vm5 = vmor %vm1615_vm4, %vm1616_vm1  ;;  %vm1635_vm8 = vweird.f32 %v10708_v14  ;;  %v7425_v8 = vor.u32 %v9047_v3, %v7424_v0  ;;  %vm1640_vm10 = vcmp.eq.f32.partialorder %v1639_v18, 8.507059e+37  ;;  %v9035_v0 = vld [vmem:[#allocation15 + $0x14] sm:$0xf0] }
 0x1c1   :  { %v1612_v37 = vsub.f32 1.0, %v1611_v26  ;;  %2569 = vmatpush.bf16.msrb.mxu1 %v7453_v1  ;;  %v1642_v52 = vor.u32 1.1754944e-38, %v1641_v50 }
 0x1c2   :  { %v1594_v42 = vmul.f32 %v10710_v16, %v1593_v32  ;;  %v7461_v32 = vor.u32 %v9053_v17, %v7458_v24  ;;  %2557 = vmatpush.bf16.msrb.mxu0 %v7433_v38  ;;  %v9042_v17 = vld [vmem:[#allocation15 + $0x4c] sm:$0xf0]  ;;  %v7392_v38 = vld [vmem:[#allocation15 + $0x28] sm:$0xf] }
 0x1c3   :  { %v1613_v45 = vmul.f32 %v10712_v22, %v1612_v37 }
 0x1c4   :  { %v10733_v53 = vpop.eup %9449  ;;  %v1595_v55 = vadd.f32 %v10710_v16, %v1594_v42  ;;  %2595 = vmatpush.bf16.msrb.mxu3 %v7461_v32 }
 0x1c5   :  { %v1614_v62 = vadd.f32 %v10712_v22, %v1613_v45  ;;  %v1631_v63 = vmul.f32 %v10733_v53, %v10708_v14  ;;  %vm1636_vm7 = vweird.f32 %v10733_v53  ;;  %2570 = vmatpush.bf16.msrb.mxu1 %v7437_v2  ;;  %v9039_v2 = vld [vmem:[#allocation15 + $0x34] sm:$0xf0] }
 0x1c6   :  { %v1599_v6 = vsel %vm10740_vm2, %v10710_v16, %v1595_v55  ;;  %v9055_v16 = vld [vmem:[#allocation15 + $0xb4] sm:$0xf0]  ;;  %v9046_v55 = vld [vmem:[#allocation15 + $0x6c] sm:$0xf0]  ;;  %vm10773_vm9 = vmor %vm1635_vm8, %vm1636_vm7 }
 0x1c7   :  { %v1604_v10 = vsel %vm10723_vm15, %v1603_v57, %v1599_v6  ;;  %v1618_v13 = vsel %vm10751_vm5, %v10712_v22, %v1614_v62  ;;  %v1632_v15 = vsub.f32 1.0, %v1631_v63  ;;  %v7457_v23 = vor.u32 %v9055_v16, %v7456_v9  ;;  %v1668_v22 = vld [vmem:[#allocation3 + $0x8] sm:$0x30]  ;;  %v9044_v62 = vld [vmem:[#allocation15 + $0x64] sm:$0xf] }
 0x1c8   :  { %v1623_v44 = vsel %vm1620_vm6, %v1622_v33, %v1618_v13  ;;  %v1649_v21 = vmul.f32 %v9448_v30, %v1604_v10  ;;  %v7442_v30 = vld [vmem:[#allocation15 + $0x98] sm:$0xf0]  ;;  %v7416_v33 = vld [vmem:[#allocation15 + $0x60] sm:$0xf]  ;;  %v7421_v7 = vor.u32 %v9044_v62, %v7418_v58  ;;  %v9045_v9 = vld [vmem:[#allocation15 + $0x6c] sm:$0xf] }
 0x1c9   :  { %v1648_v26 = vmul.f32 %v1646_v12, %v1623_v44  ;;  %v1633_v27 = vmul.f32 %v10733_v53, %v1632_v15  ;;  %2582 = vmatpush.bf16.msrb.mxu2 %v7457_v23  ;;  %v7445_v49 = vor.u32 %v9049_v54, %v7442_v30  ;;  %v7417_v61 = vor.u32 %v9046_v55, %v7416_v33  ;;  %v7426_v10 = vld [vmem:[#allocation15 + $0x78] sm:$0xf0]  ;;  %v7400_v16 = vld [vmem:[#allocation15 + $0x40] sm:$0xf]  ;;  %v7402_v23 = vld [vmem:[#allocation15 + $0x50] sm:$0xf0] }
 0x1ca   :  { %v7429_v1 = vor.u32 %v9045_v9, %v7426_v10  ;;  %2571 = vmatpush.bf16.msrb.mxu1 %v7421_v7  ;;  %v7401_v44 = vor.u32 %v9042_v17, %v7400_v16  ;;  %v1669_v9 = vld [vmem:[#allocation3 + $0x30] sm:$0x30] }
 0x1cb   :  { %v1873_v29 = vpop.f32.mrf.mxu0  ;;  %v1886_v25 = vpop.f32.mrf.mxu1  ;;  %v1650_v42 = vadd.f32 %v1649_v21, %v1648_v26  ;;  %v1634_v12 = vadd.f32 %v10733_v53, %v1633_v27  ;;  %2596 = vmatpush.bf16.msrb.mxu3 %v7445_v49  ;;  %2558 = vmatpush.bf16.msrb.mxu0 %v7417_v61  ;;  %v9040_v21 = vld [vmem:[#allocation15 + $0x44] sm:$0xf]  ;;  %v7370_v61 = vld [vmem:[#allocation15 + $0x10] sm:$0xf0] }
 0x1cc   :  { %v1920_v36 = vrot.slane %v1873_v29, 4  ;;  %v1921_v37 = vrot.slane %v1886_v25, 4  ;;  %v9043_v29 = vld [vmem:[#allocation15 + $0x54] sm:$0xf0]  ;;  %v7410_v25 = vld [vmem:[#allocation15 + $0x58] sm:$0xf0] }
 0x1cd   :  { %9451 = vtanh.f32 %v1650_v42  ;;  %v1661_v51 = vrot.slane %v1650_v42, 2  ;;  %2583 = vmatpush.bf16.msrb.mxu2 %v7441_v48  ;;  %v1638_v50 = vsel %vm10773_vm9, %v10733_v53, %v1634_v12  ;;  %v7408_v53 = vld [vmem:[#allocation15 + $0x48] sm:$0xf]  ;;  %v7385_v42 = vor.u32 %v9038_v31, %v7384_v34 }
 0x1ce   :  { %v1928_v45 = vadd.f32 %v1920_v36, %v1667_v28  ;;  %v1929_v47 = vadd.f32 %v1921_v37, %v1668_v22  ;;  %v1643_v27 = vsel %vm1640_vm10, %v1642_v52, %v1638_v50  ;;  %v7405_v28 = vor.u32 %v9040_v21, %v7402_v23  ;;  %v9041_v22 = vld [vmem:[#allocation15 + $0x4c] sm:$0xf]  ;;  %v7386_v37 = vld [vmem:[#allocation15 + $0x30] sm:$0xf0]  ;;  %v7378_v50 = vld [vmem:[#allocation15 + $0x18] sm:$0xf0] }
 0x1cf   :  { %v10780_v63 = vsel %vm1321_vm3, %v1661_v51, %v10435_v19  ;;  %2597 = vmatpush.bf16.msrb.mxu3 %v7429_v1  ;;  %v7409_v18 = vor.u32 %v9043_v29, %v7408_v53  ;;  %v7413_v32 = vor.u32 %v9041_v22, %v7410_v25  ;;  %2559 = vmatpush.bf16.msrb.mxu0 %v7401_v44 }
 0x1d0   :  { %v7232_v57 = vmul.f32 -1.442695, %v1928_v45  ;;  %v7233_v59 = vmul.f32 -1.442695, %v1929_v47  ;;  %2572 = vmatpush.bf16.msrb.mxu1 %v7405_v28  ;;  %v7389_v12 = vor.u32 %v9036_v35, %v7386_v37  ;;  %v7393_v45 = vor.u32 %v9039_v2, %v7392_v38  ;;  %v7394_v47 = vld [vmem:[#allocation15 + $0x38] sm:$0xf0] }
 0x1d1   :  { %2584 = vmatpush.bf16.msrb.mxu2 %v7425_v8  ;;  %v7397_v55 = vor.u32 %v9037_v43, %v7394_v47  ;;  %v1665_v2 = vld [vmem:[#allocation10 + $0xc] sm:$0x3] }
 0x1d2   :  { %9453 = vpow2.f32 %v7232_v57  ;;  %v10782_v46 = vpop.f32.mrf.mxu2  ;;  %v1912_v6 = vpop.f32.mrf.mxu3  ;;  %v9034_v57 = vld [vmem:[#allocation15 + $0xc] sm:$0xf0]  ;;  %vm1666_vm5 = vcmp.gt.f32.partialorder %v1665_v2, 0.0 }
 0x1d3   :  { %9455 = vpow2.f32 %v7233_v59  ;;  %v1923_v19 = vrot.slane %v1912_v6, 4  ;;  %v1875_v13 = vpop.f32.mrf.mxu0  ;;  %v1888_v15 = vpop.f32.mrf.mxu1  ;;  %2598 = vmatpush.bf16.msrb.mxu3 %v7413_v32  ;;  %v9032_v59 = vld [vmem:[#allocation15 + $0x4] sm:$0xf]  ;;  %2560 = vmatpush.bf16.msrb.mxu0 %v7385_v42  ;;  %v1922_v62 = vrot.slane %v10782_v46, 4  ;;  %v9033_v6 = vld [vmem:[#allocation15 + $0xc] sm:$0xf] }
 0x1d4   :  { %v9452_v24 = vpop.eup %9451  ;;  %2573 = vmatpush.bf16.msrb.mxu1 %v7389_v12  ;;  %v7373_v3 = vor.u32 %v9032_v59, %v7370_v61  ;;  %v7381_v8 = vor.u32 %v9033_v6, %v7378_v50  ;;  %v1991_v32 = vrot.slane %v10500_v60, 4  ;;  %v9093_v50 = vld [vmem:[%s12827_s4 + $0xec] sm:$0xf] }
 0x1d5   :  { %v1931_v26 = vadd.f32 %v1923_v19, %v1670_v5  ;;  %v1652_v14 = vmul.f32 %v9452_v24, %v1643_v27  ;;  %2585 = vmatpush.bf16.msrb.mxu2 %v7409_v18  ;;  %v7377_v5 = vor.u32 %v9035_v0, %v7376_v39  ;;  %v1930_v19 = vadd.f32 %v1922_v62, %v1669_v9  ;;  %v7613_v39 = vld [vmem:[%s12827_s4 + $0xf0] sm:$0xf0]  ;;  %v7619_v0 = vld [vmem:[%s12827_s4 + $0xe8] sm:$0xf]  ;;  %v7595_v9 = vld [vmem:[%s12827_s4 + $0xc0] sm:$0xf] }
 0x1d7   :  { %v7234_v36 = vmul.f32 -1.442695, %v1931_v26  ;;  %v1654_v41 = vrot.slane %v1652_v14, 2  ;;  %2599 = vmatpush.bf16.msrb.mxu3 %v7397_v55 }
 0x1d8   :  { %v9454_v40 = vpop.eup %9453  ;;  %2574 = vmatpush.bf16.msrb.mxu1 %v7373_v3  ;;  %v9095_v3 = vld [vmem:[%s12827_s4 + $0xf4] sm:$0xf0] }
 0x1d9   :  { %v9456_v54 = vpop.eup %9455  ;;  %v10789_v30 = vadd.f32 1.0, %v9454_v40  ;;  %9457 = vpow2.f32 %v7234_v36  ;;  %v1656_v52 = vsel %vm1321_vm3, %v1654_v41, 0.0  ;;  %v10798_v33 = vsel %vm1321_vm3, %v1654_v41, %v10470_v11  ;;  %2586 = vmatpush.bf16.msrb.mxu2 %v7393_v45 }
 0x1da   :  { %v10791_v48 = vadd.f32 1.0, %v9456_v54  ;;  %v1901_v49 = vpop.f32.mrf.mxu2  ;;  %v1914_v51 = vpop.f32.mrf.mxu3  ;;  %1658 = vst [vmem:[#allocation4 + $0x2] sm:$0x3] %v1656_v52  ;;  %v2016_v58 = vpack.c.bf16 %v10798_v33, %v10798_v33  ;;  %v7369_v11 = vor.u32 %v9034_v57, %v7368_v56  ;;  %v7620_v6 = vor.u32 %v9095_v3, %v7619_v0 }
 0x1db   :  { %9459 = vrcp.f32 %v10789_v30  ;;  %2600 = vmatpush.bf16.msrb.mxu3 %v7381_v8  ;;  %v1947_v23 = vand.u32 2147483648, %v10789_v30  ;;  %v1945_v27 = vand.u32 2147483647, %v10789_v30  ;;  %vm1941_vm13 = vweird.f32 %v10789_v30 }
 0x1dc   :  { %9461 = vrcp.f32 %v10791_v48  ;;  %2217 = vmatmul.bf16.vlgmr.msra.gmra.mxu0 %v2016_v58  ;;  %2230 = vmatmul.bf16.vlgmr.msra.gmra.mxu1 %v2016_v58  ;;  %v1966_v24 = vand.u32 2147483648, %v10791_v48  ;;  %v1964_v29 = vand.u32 2147483647, %v10791_v48  ;;  %vm1960_vm15 = vweird.f32 %v10791_v48 }
 0x1dd   :  { %2243 = vmatmul.bf16.vlgmr.msra.gmra.mxu2 %v2016_v58  ;;  %2256 = vmatmul.bf16.vlgmr.msra.gmra.mxu3 %v2016_v58  ;;  %v1948_v25 = vor.u32 1.1754944e-38, %v1947_v23  ;;  %vm1946_vm2 = vcmp.eq.f32.partialorder %v1945_v27, 8.507059e+37  ;;  %v9094_v58 = vld [vmem:[%s12827_s4 + $0xec] sm:$0xf0] }
 0x1de   :  { %2561 = vmatpush.bf16.msrb.mxu0 %v7369_v11  ;;  %2587 = vmatpush.bf16.msrb.mxu2 %v7377_v5  ;;  %v1967_v34 = vor.u32 1.1754944e-38, %v1966_v24  ;;  %vm1965_vm3 = vcmp.eq.f32.partialorder %v1964_v29, 8.507059e+37  ;;  %v9086_v24 = vld [vmem:[%s12827_s4 + $0xac] sm:$0xf0]  ;;  %v7587_v29 = vld [vmem:[%s12827_s4 + $0xa8] sm:$0xf] }
 0x1df   :  { %v9458_v7 = vpop.eup %9457 }
 0x1e0   :  { %v10805_v10 = vadd.f32 1.0, %v9458_v7  ;;  %v7621_v7 = vld [vmem:[%s12827_s4 + $0xf8] sm:$0xf0] }
 0x1e1   :  { %v9460_v46 = vpop.eup %9459  ;;  %v6071_v1 = vld [vmem:[#allocation4 + $0x2] sm:$0x3]  ;;  %v7624_v8 = vor.u32 %v9093_v50, %v7621_v7  ;;  %v2015_v7 = vld [vmem:[#allocation2 + $0x10] sm:$0x30] }
 0x1e2   :  { %v9462_v13 = vpop.eup %9461  ;;  %v1937_v15 = vmul.f32 %v9460_v46, %v10789_v30  ;;  %9463 = vrcp.f32 %v10805_v10  ;;  %v6091_v17 = vmul.f32 %v10487_v20, %v6071_v1  ;;  %vm1942_vm11 = vweird.f32 %v9460_v46  ;;  %2925 = vmatpush.bf16.msra.mxu2 %v7620_v6  ;;  %v9091_v1 = vld [vmem:[%s12827_s4 + $0xd4] sm:$0xf0]  ;;  %v7557_v6 = vld [vmem:[%s12827_s4 + $0x78] sm:$0xf0] }
 0x1e3   :  { %v1956_v16 = vmul.f32 %v9462_v13, %v10791_v48  ;;  %9465 = vtanh.f32 %v1930_v19  ;;  %vm1961_vm12 = vweird.f32 %v9462_v13  ;;  %vm1943_vm0 = vmor %vm1941_vm13, %vm1942_vm11  ;;  %v1986_v45 = vand.u32 2147483648, %v10805_v10  ;;  %2938 = vmatpush.bf16.msra.mxu3 %v7624_v8 }
 0x1e4   :  { %v1938_v44 = vsub.f32 1.0, %v1937_v15  ;;  %v6102_v53 = vsel %vm6098_vm14, %v6091_v17, 0.0  ;;  %vm1962_vm1 = vmor %vm1960_vm15, %vm1961_vm12  ;;  %vm1980_vm6 = vweird.f32 %v10805_v10  ;;  %v1984_v47 = vand.u32 2147483647, %v10805_v10  ;;  %v7603_v15 = vld [vmem:[%s12827_s4 + $0xc8] sm:$0xf] }
 0x1e5   :  { %v1957_v21 = vsub.f32 1.0, %v1956_v16  ;;  %6103 = vadd.xlane.f32.xlu0 %v6102_v53  ;;  %v1987_v51 = vor.u32 1.1754944e-38, %v1986_v45  ;;  %v7604_v17 = vor.u32 %v9091_v1, %v7603_v15  ;;  %v7579_v53 = vld [vmem:[%s12827_s4 + $0xa0] sm:$0xf]  ;;  %v7573_v45 = vld [vmem:[%s12827_s4 + $0x98] sm:$0xf0] }
 0x1e6   :  { %v1939_v26 = vmul.f32 %v9460_v46, %v1938_v44  ;;  %vm1985_vm8 = vcmp.eq.f32.partialorder %v1984_v47, 8.507059e+37  ;;  %v9089_v44 = vld [vmem:[%s12827_s4 + $0xcc] sm:$0xf]  ;;  %v7580_v27 = vor.u32 %v9086_v24, %v7579_v53  ;;  %v2012_v47 = vld [vmem:[#allocation2 + $0x30] sm:$0x30] }
 0x1e7   :  { %v1958_v28 = vmul.f32 %v9462_v13, %v1957_v21  ;;  %v7605_v21 = vld [vmem:[%s12827_s4 + $0xd8] sm:$0xf0]  ;;  %2926 = vmatpush.bf16.msra.mxu2 %v7604_v17  ;;  %v7533_v17 = vld [vmem:[%s12827_s4 + $0x50] sm:$0xf0]  ;;  %v9073_v53 = vld [vmem:[%s12827_s4 + $0x4c] sm:$0xf] }
 0x1e8   :  { %v9464_v22 = vpop.eup %9463  ;;  %v1940_v20 = vadd.f32 %v9460_v46, %v1939_v26  ;;  %v7608_v23 = vor.u32 %v9089_v44, %v7605_v21  ;;  %v9084_v26 = vld [vmem:[%s12827_s4 + $0xa4] sm:$0xf]  ;;  %v7539_v44 = vld [vmem:[%s12827_s4 + $0x48] sm:$0xf]  ;;  %v7541_v24 = vld [vmem:[%s12827_s4 + $0x58] sm:$0xf0] }
 0x1e9   :  { %v1959_v14 = vadd.f32 %v9462_v13, %v1958_v28  ;;  %v1976_v18 = vmul.f32 %v9464_v22, %v10805_v10  ;;  %v9466_v35 = vpop.eup %9465  ;;  %vm1981_vm4 = vweird.f32 %v9464_v22  ;;  %v9090_v10 = vld [vmem:[%s12827_s4 + $0xcc] sm:$0xf0]  ;;  %v7581_v28 = vld [vmem:[%s12827_s4 + $0xb0] sm:$0xf0] }
 0x1ea   :  { %v1944_v31 = vsel %vm1943_vm0, %v9460_v46, %v1940_v20  ;;  %vm1982_vm7 = vmor %vm1980_vm6, %vm1981_vm4  ;;  %v9088_v46 = vld [vmem:[%s12827_s4 + $0xc4] sm:$0xf]  ;;  %v7596_v19 = vor.u32 %v9090_v10, %v7595_v9  ;;  %2939 = vmatpush.bf16.msra.mxu3 %v7608_v23  ;;  %v7584_v20 = vor.u32 %v9084_v26, %v7581_v28  ;;  %v7531_v10 = vld [vmem:[%s12827_s4 + $0x40] sm:$0xf] }
 0x1eb   :  { %v1949_v36 = vsel %vm1946_vm2, %v1948_v25, %v1944_v31  ;;  %v1963_v37 = vsel %vm1962_vm1, %v9462_v13, %v1959_v14  ;;  %v1977_v38 = vsub.f32 1.0, %v1976_v18  ;;  %v7597_v13 = vld [vmem:[%s12827_s4 + $0xd0] sm:$0xf0]  ;;  %v9085_v14 = vld [vmem:[%s12827_s4 + $0xac] sm:$0xf] }
 0x1ec   :  { %v1968_v40 = vsel %vm1965_vm3, %v1967_v34, %v1963_v37  ;;  %v1994_v41 = vmul.f32 %v9466_v35, %v1949_v36  ;;  %v7600_v16 = vor.u32 %v9088_v46, %v7597_v13  ;;  %v7589_v18 = vld [vmem:[%s12827_s4 + $0xb8] sm:$0xf0]  ;;  %v7563_v34 = vld [vmem:[%s12827_s4 + $0x80] sm:$0xf]  ;;  %v9082_v31 = vld [vmem:[%s12827_s4 + $0x8c] sm:$0xf0] }
 0x1ed   :  { %v1993_v42 = vmul.f32 %v1991_v32, %v1968_v40  ;;  %v1978_v12 = vmul.f32 %v9464_v22, %v1977_v38  ;;  %v7592_v32 = vor.u32 %v9085_v14, %v7589_v18  ;;  %v9080_v35 = vld [vmem:[%s12827_s4 + $0x84] sm:$0xf]  ;;  %v7564_v38 = vor.u32 %v9082_v31, %v7563_v34  ;;  %v7565_v40 = vld [vmem:[%s12827_s4 + $0x90] sm:$0xf0]  ;;  %v9074_v46 = vld [vmem:[%s12827_s4 + $0x4c] sm:$0xf0] }
 0x1ee   :  { %v9075_v23 = vld [vmem:[%s12827_s4 + $0x54] sm:$0xf0]  ;;  %v7523_v34 = vld [vmem:[%s12827_s4 + $0x28] sm:$0xf] }
 0x1ef   :  { %v1995_v43 = vadd.f32 %v1994_v41, %v1993_v42  ;;  %v1979_v54 = vadd.f32 %v9464_v22, %v1978_v12  ;;  %2940 = vmatpush.bf16.msra.mxu3 %v7592_v32  ;;  %v7571_v41 = vld [vmem:[%s12827_s4 + $0x88] sm:$0xf]  ;;  %v9083_v42 = vld [vmem:[%s12827_s4 + $0x94] sm:$0xf0]  ;;  %v7540_v28 = vor.u32 %v9075_v23, %v7539_v44  ;;  %v7517_v32 = vld [vmem:[%s12827_s4 + $0x30] sm:$0xf0] }
 0x1f0   :  { %v7752_v44 = vld [vmem:[#allocation15 + $0xf8] sm:$0xf0]  ;;  %v9114_v23 = vld [vmem:[#allocation15 + $0x8c] sm:$0xf0] }
 0x1f1   :  { %9467 = vtanh.f32 %v1995_v43  ;;  %v2006_v30 = vrot.slane %v1995_v43, 4  ;;  %v1983_v49 = vsel %vm1982_vm7, %v9464_v22, %v1979_v54  ;;  %v9087_v22 = vld [vmem:[%s12827_s4 + $0xb4] sm:$0xf0]  ;;  %v7568_v43 = vor.u32 %v9080_v35, %v7565_v40 }
 0x1f2   :  { %v1988_v55 = vsel %vm1985_vm8, %v1987_v51, %v1983_v49  ;;  %v7588_v25 = vor.u32 %v9087_v22, %v7587_v29  ;;  %v7572_v54 = vor.u32 %v9083_v42, %v7571_v41  ;;  %v2013_v49 = vld [vmem:[#allocation2] sm:$0x30]  ;;  %v7544_v29 = vor.u32 %v9073_v53, %v7541_v24  ;;  %v7515_v22 = vld [vmem:[%s12827_s4 + $0x20] sm:$0xf]  ;;  %v11053_v24 = vld [vmem:[#allocation10 + $0x4] sm:$0x3] }
 0x1f3   :  { %v10825_v48 = vsel %vm1666_vm5, %v2006_v30, %v10500_v60  ;;  %v7611_v60 = vld [vmem:[%s12827_s4 + $0xe0] sm:$0xf]  ;;  %v9081_v30 = vld [vmem:[%s12827_s4 + $0x8c] sm:$0xf]  ;;  %vm2011_vm0 = vcmp.gt.f32.partialorder %v11053_v24, 0.0 }
 0x1f4   :  { %v7612_v11 = vor.u32 %v9094_v58, %v7611_v60  ;;  %2927 = vmatpush.bf16.msra.mxu2 %v7588_v25  ;;  %v7576_v51 = vor.u32 %v9081_v30, %v7573_v45  ;;  %v7549_v60 = vld [vmem:[%s12827_s4 + $0x70] sm:$0xf0]  ;;  %v7555_v58 = vld [vmem:[%s12827_s4 + $0x68] sm:$0xf]  ;;  %v9068_v25 = vld [vmem:[%s12827_s4 + $0x24] sm:$0xf] }
 0x1f5   :  { %v7520_v35 = vor.u32 %v9068_v25, %v7517_v32  ;;  %v7499_v30 = vld [vmem:[%s12827_s4] sm:$0xf]  ;;  %v9066_v45 = vld [vmem:[%s12827_s4 + $0xc] sm:$0xf0] }
 0x1f6   :  { %2899 = vmatpush.bf16.msra.mxu0 %v7612_v11  ;;  %2941 = vmatpush.bf16.msra.mxu3 %v7576_v51  ;;  %v7501_v51 = vld [vmem:[%s12827_s4 + $0x10] sm:$0xf0] }
 0x1f7   :  { %v9468_v52 = vpop.eup %9467 }
 0x1f8   :  { %v1997_v56 = vmul.f32 %v9468_v52, %v1988_v55  ;;  %2928 = vmatpush.bf16.msra.mxu2 %v7572_v54 }
 0x1fa   :  { %v1999_v57 = vrot.slane %v1997_v56, 4  ;;  %2900 = vmatpush.bf16.msra.mxu0 %v7596_v19  ;;  %v7547_v56 = vld [vmem:[%s12827_s4 + $0x60] sm:$0xf]  ;;  %v9072_v19 = vld [vmem:[%s12827_s4 + $0x44] sm:$0xf] }
 0x1fb   :  { %v7536_v21 = vor.u32 %v9072_v19, %v7533_v17  ;;  %v7744_v19 = vld [vmem:[#allocation15 + $0xf0] sm:$0xf0]  ;;  %v9125_v17 = vld [vmem:[#allocation15 + $0xec] sm:$0xf] }
 0x1fc   :  { %v2001_v59 = vsel %vm1666_vm5, %v1999_v57, 0.0  ;;  %v10830_v61 = vsel %vm1666_vm5, %v1999_v57, %v10505_v4  ;;  %v9092_v4 = vld [vmem:[%s12827_s4 + $0xe4] sm:$0xf]  ;;  %v9078_v57 = vld [vmem:[%s12827_s4 + $0x6c] sm:$0xf0] }
 0x1fd   :  { %2003 = vst [vmem:[#allocation5 + $0xc] sm:$0x3] %v2001_v59  ;;  %v2361_v62 = vpack.c.bf16 %v10830_v61, %v10830_v61  ;;  %v7616_v5 = vor.u32 %v9092_v4, %v7613_v39  ;;  %v9076_v59 = vld [vmem:[%s12827_s4 + $0x64] sm:$0xf]  ;;  %v9079_v4 = vld [vmem:[%s12827_s4 + $0x74] sm:$0xf0] }
 0x1fe   :  { %2901 = vmatpush.bf16.msra.mxu0 %v7580_v27  ;;  %v7552_v0 = vor.u32 %v9076_v59, %v7549_v60  ;;  %v7556_v3 = vor.u32 %v9079_v4, %v7555_v58  ;;  %v9067_v59 = vld [vmem:[%s12827_s4 + $0x14] sm:$0xf0]  ;;  %v9065_v58 = vld [vmem:[%s12827_s4 + $0xc] sm:$0xf]  ;;  %v7509_v4 = vld [vmem:[%s12827_s4 + $0x18] sm:$0xf0] }
 0x1ff   :  { %2562 = vmatmul.bf16.vlgmr.msrb.gmra.mxu0 %v2361_v62  ;;  %2575 = vmatmul.bf16.vlgmr.msrb.gmra.mxu1 %v2361_v62 }
 0x200   :  { %2588 = vmatmul.bf16.vlgmr.msrb.gmra.mxu2 %v2361_v62  ;;  %2601 = vmatmul.bf16.vlgmr.msrb.gmra.mxu3 %v2361_v62  ;;  %v7548_v62 = vor.u32 %v9078_v57, %v7547_v56  ;;  %v7507_v57 = vld [vmem:[%s12827_s4 + $0x8] sm:$0xf] }
 0x201   :  { %2912 = vmatpush.bf16.msra.mxu1 %v7616_v5  ;;  %v9077_v5 = vld [vmem:[%s12827_s4 + $0x6c] sm:$0xf]  ;;  %2929 = vmatpush.bf16.msra.mxu2 %v7556_v3  ;;  %v7508_v60 = vor.u32 %v9067_v59, %v7507_v57  ;;  %v7712_v59 = vld [vmem:[#allocation15 + $0xb0] sm:$0xf0] }
 0x202   :  { %2902 = vmatpush.bf16.msra.mxu0 %v7564_v38  ;;  %v7560_v9 = vor.u32 %v9077_v5, %v7557_v6  ;;  %v7525_v38 = vld [vmem:[%s12827_s4 + $0x38] sm:$0xf0]  ;;  %v7512_v5 = vor.u32 %v9065_v58, %v7509_v4 }
 0x203   :  { %v9119_v58 = vld [vmem:[#allocation15 + $0xb4] sm:$0xf0] }
 0x204   :  { %2942 = vmatpush.bf16.msra.mxu3 %v7560_v9 }
 0x205   :  { %2913 = vmatpush.bf16.msra.mxu1 %v7600_v16  ;;  %v7532_v16 = vor.u32 %v9074_v46, %v7531_v10  ;;  %2930 = vmatpush.bf16.msra.mxu2 %v7540_v28  ;;  %v9124_v46 = vld [vmem:[#allocation15 + $0xe4] sm:$0xf] }
 0x206   :  { %2903 = vmatpush.bf16.msra.mxu0 %v7548_v62  ;;  %v2336_v62 = vrot.slane %v10780_v63, 4 }
 0x208   :  { %2943 = vmatpush.bf16.msra.mxu3 %v7544_v29  ;;  %v7755_v29 = vor.u32 %v9125_v17, %v7752_v44 }
 0x209   :  { %2914 = vmatpush.bf16.msra.mxu1 %v7584_v20  ;;  %v9070_v20 = vld [vmem:[%s12827_s4 + $0x2c] sm:$0xf0] }
 0x20a   :  { %2904 = vmatpush.bf16.msra.mxu0 %v7532_v16  ;;  %v7516_v18 = vor.u32 %v9070_v20, %v7515_v22  ;;  %v9127_v16 = vld [vmem:[#allocation15 + $0xf4] sm:$0xf0]  ;;  %v7726_v22 = vld [vmem:[#allocation15 + $0xc0] sm:$0xf]  ;;  %v9122_v20 = vld [vmem:[#allocation15 + $0xcc] sm:$0xf0] }
 0x20b   :  { %v7727_v32 = vor.u32 %v9122_v20, %v7726_v22 }
 0x20d   :  { %2915 = vmatpush.bf16.msra.mxu1 %v7568_v43 }
 0x20e   :  { %2905 = vmatpush.bf16.msra.mxu0 %v7516_v18 }
 0x211   :  { %2916 = vmatpush.bf16.msra.mxu1 %v7552_v0 }
 0x215   :  { %2917 = vmatpush.bf16.msra.mxu1 %v7536_v21 }
 0x219   :  { %2918 = vmatpush.bf16.msra.mxu1 %v7520_v35  ;;  %v7728_v35 = vld [vmem:[#allocation15 + $0xd0] sm:$0xf0] }
 0x259   :  { %v2218_v36 = vpop.f32.mrf.mxu0  ;;  %v2231_v37 = vpop.f32.mrf.mxu1 }
 0x25a   :  { %v2265_v12 = vrot.slane %v2218_v36, 4  ;;  %v2266_v2 = vrot.slane %v2231_v37, 4  ;;  %v9071_v36 = vld [vmem:[%s12827_s4 + $0x34] sm:$0xf0]  ;;  %v9069_v37 = vld [vmem:[%s12827_s4 + $0x2c] sm:$0xf] }
 0x25b   :  { %v7524_v42 = vor.u32 %v9071_v36, %v7523_v34  ;;  %v9120_v34 = vld [vmem:[#allocation15 + $0xc4] sm:$0xf]  ;;  %v7734_v36 = vld [vmem:[#allocation15 + $0xc8] sm:$0xf] }
 0x25c   :  { %v2273_v52 = vadd.f32 %v2265_v12, %v2012_v47  ;;  %v2274_v55 = vadd.f32 %v2266_v2, %v2013_v49  ;;  %v7528_v12 = vor.u32 %v9069_v37, %v7525_v38  ;;  %v9064_v47 = vld [vmem:[%s12827_s4 + $0x4] sm:$0xf]  ;;  %v2014_v49 = vld [vmem:[#allocation2 + $0x18] sm:$0x30] }
 0x25d   :  { %2931 = vmatpush.bf16.msra.mxu2 %v7524_v42  ;;  %v7504_v56 = vor.u32 %v9064_v47, %v7501_v51  ;;  %v9123_v37 = vld [vmem:[#allocation15 + $0xd4] sm:$0xf0]  ;;  %v9118_v51 = vld [vmem:[#allocation15 + $0xac] sm:$0xf0] }
 0x25e   :  { %v7363_v11 = vmul.f32 -1.442695, %v2273_v52  ;;  %v7364_v39 = vmul.f32 -1.442695, %v2274_v55  ;;  %2944 = vmatpush.bf16.msra.mxu3 %v7528_v12  ;;  %v7500_v55 = vor.u32 %v9066_v45, %v7499_v30  ;;  %v7731_v12 = vor.u32 %v9120_v34, %v7728_v35 }
 0x25f   :  { %2919 = vmatpush.bf16.msra.mxu1 %v7504_v56 }
 0x260   :  { %9469 = vpow2.f32 %v7363_v11  ;;  %v2244_v50 = vpop.f32.mrf.mxu2  ;;  %v2257_v8 = vpop.f32.mrf.mxu3  ;;  %2906 = vmatpush.bf16.msra.mxu0 %v7500_v55 }
 0x261   :  { %9471 = vpow2.f32 %v7364_v39  ;;  %v2268_v13 = vrot.slane %v2257_v8, 4  ;;  %v2220_v15 = vpop.f32.mrf.mxu0  ;;  %v2233_v1 = vpop.f32.mrf.mxu1  ;;  %v2267_v26 = vrot.slane %v2244_v50, 4  ;;  %2932 = vmatpush.bf16.msra.mxu2 %v7508_v60  ;;  %v9126_v8 = vld [vmem:[#allocation15 + $0xec] sm:$0xf0]  ;;  %v7718_v60 = vld [vmem:[#allocation15 + $0xa8] sm:$0xf] }
 0x262   :  { %2945 = vmatpush.bf16.msra.mxu3 %v7512_v5  ;;  %v7720_v5 = vld [vmem:[#allocation15 + $0xb8] sm:$0xf0] }
 0x263   :  { %v2276_v27 = vadd.f32 %v2268_v13, %v2015_v7  ;;  %v2275_v52 = vadd.f32 %v2267_v26, %v2014_v49  ;;  %v7742_v7 = vld [vmem:[#allocation15 + $0xe0] sm:$0xf]  ;;  %v7750_v13 = vld [vmem:[#allocation15 + $0xe8] sm:$0xf] }
 0x264   :  { %v7743_v10 = vor.u32 %v9126_v8, %v7742_v7  ;;  %v7751_v28 = vor.u32 %v9127_v16, %v7750_v13  ;;  %v7710_v49 = vld [vmem:[#allocation15 + $0xa0] sm:$0xf] }
 0x265   :  { %v7365_v14 = vmul.f32 -1.442695, %v2276_v27  ;;  %v7747_v27 = vor.u32 %v9124_v46, %v7744_v19  ;;  %v7711_v57 = vor.u32 %v9118_v51, %v7710_v49  ;;  %v2358_v46 = vld [vmem:[#allocation3 + $0x8] sm:$0xc]  ;;  %v7680_v49 = vld [vmem:[#allocation15 + $0x70] sm:$0xf0] }
 0x266   :  { %v9470_v31 = vpop.eup %9469  ;;  %3244 = vmatpush.bf16.msrb.mxu0 %v7743_v10  ;;  %3270 = vmatpush.bf16.msrb.mxu2 %v7751_v28  ;;  %v7696_v28 = vld [vmem:[#allocation15 + $0x90] sm:$0xf0]  ;;  %v7686_v51 = vld [vmem:[#allocation15 + $0x68] sm:$0xf] }
 0x267   :  { %v9472_v40 = vpop.eup %9471  ;;  %v11002_v41 = vadd.f32 1.0, %v9470_v31  ;;  %9473 = vpow2.f32 %v7365_v14  ;;  %3257 = vmatpush.bf16.msrb.mxu1 %v7747_v27  ;;  %3283 = vmatpush.bf16.msrb.mxu3 %v7755_v29  ;;  %v9112_v27 = vld [vmem:[#allocation15 + $0x84] sm:$0xf]  ;;  %v7702_v29 = vld [vmem:[#allocation15 + $0x88] sm:$0xf] }
 0x268   :  { %v11004_v2 = vadd.f32 1.0, %v9472_v40  ;;  %v2246_v43 = vpop.f32.mrf.mxu2  ;;  %v2259_v54 = vpop.f32.mrf.mxu3  ;;  %v9115_v14 = vld [vmem:[#allocation15 + $0x94] sm:$0xf0] }
 0x269   :  { %9475 = vrcp.f32 %v11002_v41  ;;  %v2290_v39 = vand.u32 2147483647, %v11002_v41  ;;  %v2292_v0 = vand.u32 2147483648, %v11002_v41  ;;  %vm2286_vm12 = vweird.f32 %v11002_v41  ;;  %v9121_v43 = vld [vmem:[#allocation15 + $0xcc] sm:$0xf] }
 0x26a   :  { %9477 = vrcp.f32 %v11004_v2  ;;  %v2309_v3 = vand.u32 2147483647, %v11004_v2  ;;  %v2311_v6 = vand.u32 2147483648, %v11004_v2  ;;  %3245 = vmatpush.bf16.msrb.mxu0 %v7727_v32  ;;  %v7736_v54 = vld [vmem:[#allocation15 + $0xd8] sm:$0xf0]  ;;  %vm2305_vm1 = vweird.f32 %v11004_v2 }
 0x26b   :  { %9479 = vtanh.f32 %v2275_v52  ;;  %vm11049_vm10 = vcmp.eq.f32.partialorder %v2290_v39, 8.507059e+37  ;;  %v2293_v53 = vor.u32 1.1754944e-38, %v2292_v0  ;;  %v7739_v47 = vor.u32 %v9121_v43, %v7736_v54  ;;  %v9116_v52 = vld [vmem:[#allocation15 + $0xa4] sm:$0xf]  ;;  %3258 = vmatpush.bf16.msrb.mxu1 %v7731_v12  ;;  %v7704_v32 = vld [vmem:[#allocation15 + $0x98] sm:$0xf0] }
 0x26c   :  { %vm11055_vm11 = vcmp.eq.f32.partialorder %v2309_v3, 8.507059e+37  ;;  %v2312_v18 = vor.u32 1.1754944e-38, %v2311_v6  ;;  %v7715_v39 = vor.u32 %v9116_v52, %v7712_v59  ;;  %v7719_v0 = vor.u32 %v9119_v58, %v7718_v60  ;;  %v9117_v3 = vld [vmem:[#allocation15 + $0xac] sm:$0xf]  ;;  %v9108_v43 = vld [vmem:[#allocation15 + $0x64] sm:$0xf] }
 0x26d   :  { %v9474_v11 = vpop.eup %9473  ;;  %3284 = vmatpush.bf16.msrb.mxu3 %v7739_v47  ;;  %v7723_v13 = vor.u32 %v9117_v3, %v7720_v5  ;;  %v9111_v52 = vld [vmem:[#allocation15 + $0x74] sm:$0xf0]  ;;  %v9109_v58 = vld [vmem:[#allocation15 + $0x6c] sm:$0xf]  ;;  %v7662_v5 = vld [vmem:[#allocation15 + $0x40] sm:$0xf] }
 0x26e   :  { %v11037_v50 = vadd.f32 1.0, %v9474_v11  ;;  %3246 = vmatpush.bf16.msrb.mxu0 %v7711_v57  ;;  %v2360_v11 = vld [vmem:[#allocation3 + $0x38] sm:$0xc]  ;;  %v2359_v59 = vld [vmem:[#allocation3 + $0x30] sm:$0xc] }
 0x26f   :  { %v11039_v9 = vpop.eup %9475  ;;  %3259 = vmatpush.bf16.msrb.mxu1 %v7715_v39  ;;  %v7683_v39 = vor.u32 %v9108_v43, %v7680_v49 }
 0x270   :  { %v11041_v15 = vpop.eup %9477  ;;  %v2282_v1 = vmul.f32 %v11039_v9, %v11002_v41  ;;  %9481 = vrcp.f32 %v11037_v50  ;;  %vm2287_vm9 = vweird.f32 %v11039_v9  ;;  %v7735_v41 = vor.u32 %v9123_v37, %v7734_v36 }
 0x271   :  { %v2301_v21 = vmul.f32 %v11041_v15, %v11004_v2  ;;  %v9480_v38 = vpop.eup %9479  ;;  %vm11064_vm13 = vmor %vm2286_vm12, %vm2287_vm9  ;;  %vm2306_vm15 = vweird.f32 %v11041_v15  ;;  %v2331_v2 = vand.u32 2147483648, %v11037_v50  ;;  %3285 = vmatpush.bf16.msrb.mxu3 %v7723_v13  ;;  %vm2325_vm4 = vweird.f32 %v11037_v50  ;;  %v9105_v13 = vld [vmem:[#allocation15 + $0x4c] sm:$0xf] }
 0x272   :  { %v2283_v26 = vsub.f32 1.0, %v2282_v1  ;;  %vm11082_vm2 = vmor %vm2305_vm1, %vm2306_vm15  ;;  %3271 = vmatpush.bf16.msrb.mxu2 %v7735_v41  ;;  %v9110_v41 = vld [vmem:[#allocation15 + $0x6c] sm:$0xf0] }
 0x273   :  { %v2302_v25 = vsub.f32 1.0, %v2301_v21  ;;  %v7694_v21 = vld [vmem:[#allocation15 + $0x80] sm:$0xf]  ;;  %v2332_v12 = vor.u32 1.1754944e-38, %v2331_v2 }
 0x274   :  { %v2284_v31 = vmul.f32 %v11039_v9, %v2283_v26  ;;  %v7695_v26 = vor.u32 %v9114_v23, %v7694_v21  ;;  %v7646_v23 = vld [vmem:[#allocation15 + $0x20] sm:$0xf] }
 0x275   :  { %v2303_v40 = vmul.f32 %v11041_v15, %v2302_v25  ;;  %v7699_v25 = vor.u32 %v9112_v27, %v7696_v28  ;;  %v9100_v28 = vld [vmem:[#allocation15 + $0x24] sm:$0xf] }
 0x276   :  { %v11069_v30 = vpop.eup %9481  ;;  %v2285_v45 = vadd.f32 %v11039_v9, %v2284_v31  ;;  %3272 = vmatpush.bf16.msrb.mxu2 %v7719_v0  ;;  %v2329_v31 = vand.u32 2147483647, %v11037_v50  ;;  %3247 = vmatpush.bf16.msrb.mxu0 %v7695_v26  ;;  %v7687_v0 = vor.u32 %v9111_v52, %v7686_v51  ;;  %v7638_v51 = vld [vmem:[#allocation15 + $0x8] sm:$0xf] }
 0x277   :  { %v2304_v55 = vadd.f32 %v11041_v15, %v2303_v40  ;;  %v2321_v56 = vmul.f32 %v11069_v30, %v11037_v50  ;;  %vm2326_vm3 = vweird.f32 %v11069_v30  ;;  %v7678_v40 = vld [vmem:[#allocation15 + $0x60] sm:$0xf]  ;;  %3260 = vmatpush.bf16.msrb.mxu1 %v7699_v25 }
 0x278   :  { %v2289_v4 = vsel %vm11064_vm13, %v11039_v9, %v2285_v45  ;;  %v2357_v9 = vld [vmem:[#allocation3 + $0x28] sm:$0xc]  ;;  %v7679_v47 = vor.u32 %v9110_v41, %v7678_v40  ;;  %vm11105_vm5 = vmor %vm2325_vm4, %vm2326_vm3  ;;  %vm11109_vm6 = vcmp.eq.f32.partialorder %v2329_v31, 8.507059e+37  ;;  %v9098_v40 = vld [vmem:[#allocation15 + $0xc] sm:$0xf0] }
 0x279   :  { %v2294_v6 = vsel %vm11049_vm10, %v2293_v53, %v2289_v4  ;;  %v2308_v7 = vsel %vm11082_vm2, %v11041_v15, %v2304_v55  ;;  %v2322_v8 = vsub.f32 1.0, %v2321_v56  ;;  %v7688_v4 = vld [vmem:[#allocation15 + $0x78] sm:$0xf0] }
 0x27a   :  { %v2313_v1 = vsel %vm11055_vm11, %v2312_v18, %v2308_v7  ;;  %v2339_v16 = vmul.f32 %v9480_v38, %v2294_v6  ;;  %v9113_v18 = vld [vmem:[#allocation15 + $0x8c] sm:$0xf]  ;;  %3248 = vmatpush.bf16.msrb.mxu0 %v7679_v47  ;;  %v7691_v3 = vor.u32 %v9109_v58, %v7688_v4  ;;  %v9106_v6 = vld [vmem:[#allocation15 + $0x4c] sm:$0xf0] }
 0x27b   :  { %v2338_v53 = vmul.f32 %v2336_v62, %v2313_v1  ;;  %v2323_v15 = vmul.f32 %v11069_v30, %v2322_v8  ;;  %v7703_v62 = vor.u32 %v9115_v14, %v7702_v29  ;;  %v7707_v38 = vor.u32 %v9113_v18, %v7704_v32  ;;  %3261 = vmatpush.bf16.msrb.mxu1 %v7683_v39  ;;  %v7672_v1 = vld [vmem:[#allocation15 + $0x58] sm:$0xf0]  ;;  %v7648_v29 = vld [vmem:[#allocation15 + $0x30] sm:$0xf0]  ;;  %v9103_v14 = vld [vmem:[#allocation15 + $0x34] sm:$0xf0] }
 0x27c   :  { %v2563_v10 = vpop.f32.mrf.mxu0  ;;  %v2576_v19 = vpop.f32.mrf.mxu1  ;;  %v7663_v8 = vor.u32 %v9106_v6, %v7662_v5  ;;  %v7675_v21 = vor.u32 %v9105_v13, %v7672_v1 }
 0x27d   :  { %v2610_v17 = vrot.slane %v2563_v10, 6  ;;  %v2611_v44 = vrot.slane %v2576_v19, 6  ;;  %v2340_v34 = vadd.f32 %v2339_v16, %v2338_v53  ;;  %v2324_v37 = vadd.f32 %v11069_v30, %v2323_v15  ;;  %3273 = vmatpush.bf16.msrb.mxu2 %v7703_v62  ;;  %3286 = vmatpush.bf16.msrb.mxu3 %v7707_v38  ;;  %v7664_v10 = vld [vmem:[#allocation15 + $0x50] sm:$0xf0]  ;;  %v9107_v19 = vld [vmem:[#allocation15 + $0x54] sm:$0xf0] }
 0x27e   :  { %v9102_v53 = vld [vmem:[#allocation15 + $0x2c] sm:$0xf0]  ;;  %3249 = vmatpush.bf16.msrb.mxu0 %v7663_v8  ;;  %v7651_v62 = vor.u32 %v9100_v28, %v7648_v29  ;;  %v7630_v38 = vld [vmem:[#allocation15] sm:$0xf] }
 0x27f   :  { %v2618_v22 = vadd.f32 %v2610_v17, %v2357_v9  ;;  %v2619_v20 = vadd.f32 %v2611_v44, %v2358_v46  ;;  %9483 = vtanh.f32 %v2340_v34  ;;  %v2351_v42 = vrot.slane %v2340_v34, 4  ;;  %v9104_v9 = vld [vmem:[#allocation15 + $0x44] sm:$0xf] }
 0x280   :  { %v2328_v2 = vsel %vm11105_vm5, %v11069_v30, %v2324_v37  ;;  %v7667_v46 = vor.u32 %v9104_v9, %v7664_v10  ;;  %v7647_v27 = vor.u32 %v9102_v53, %v7646_v23  ;;  %v7656_v37 = vld [vmem:[#allocation15 + $0x38] sm:$0xf0]  ;;  %v7631_v55 = vor.u32 %v9098_v40, %v7630_v38 }
 0x281   :  { %v7494_v35 = vmul.f32 -1.442695, %v2618_v22  ;;  %v7495_v36 = vmul.f32 -1.442695, %v2619_v20  ;;  %v11116_v60 = vsel %vm2011_vm0, %v2351_v42, %v10780_v63  ;;  %v7670_v63 = vld [vmem:[#allocation15 + $0x48] sm:$0xf]  ;;  %3274 = vmatpush.bf16.msrb.mxu2 %v7687_v0  ;;  %v2333_v30 = vsel %vm11109_vm6, %v2332_v12, %v2328_v2  ;;  %3287 = vmatpush.bf16.msrb.mxu3 %v7691_v3 }
 0x282   :  { %v7671_v44 = vor.u32 %v9107_v19, %v7670_v63  ;;  %v7654_v22 = vld [vmem:[#allocation15 + $0x28] sm:$0xf]  ;;  %3262 = vmatpush.bf16.msrb.mxu1 %v7667_v46  ;;  %3250 = vmatpush.bf16.msrb.mxu0 %v7647_v27  ;;  %v9096_v42 = vld [vmem:[#allocation15 + $0x4] sm:$0xf]  ;;  %v11150_v63 = vld [vmem:[%s12829_s6] ss:$0 sm:$0xff] }
 0x283   :  { %9485 = vpow2.f32 %v7494_v35  ;;  %v11101_v54 = vpop.f32.mrf.mxu2  ;;  %v2602_v45 = vpop.f32.mrf.mxu3  ;;  %v7655_v35 = vor.u32 %v9103_v14, %v7654_v22  ;;  %v2681_v23 = vrot.slane %v10825_v48, 6 }
 0x284   :  { %9487 = vpow2.f32 %v7495_v36  ;;  %v2613_v56 = vrot.slane %v2602_v45, 6  ;;  %v2565_v57 = vpop.f32.mrf.mxu0  ;;  %v2578_v50 = vpop.f32.mrf.mxu1  ;;  %v9101_v36 = vld [vmem:[#allocation15 + $0x2c] sm:$0xf]  ;;  %v2612_v12 = vrot.slane %v11101_v54, 6  ;;  %v7632_v45 = vld [vmem:[#allocation15 + $0x10] sm:$0xf0] }
 0x285   :  { %v9484_v16 = vpop.eup %9483  ;;  %3275 = vmatpush.bf16.msrb.mxu2 %v7671_v44  ;;  %3288 = vmatpush.bf16.msrb.mxu3 %v7675_v21  ;;  %v7659_v49 = vor.u32 %v9101_v36, %v7656_v37  ;;  %v7635_v54 = vor.u32 %v9096_v42, %v7632_v45  ;;  %v9097_v57 = vld [vmem:[#allocation15 + $0xc] sm:$0xf]  ;;  %v7640_v50 = vld [vmem:[#allocation15 + $0x18] sm:$0xf0] }
 0x286   :  { %v2621_v7 = vadd.f32 %v2613_v56, %v2360_v11  ;;  %v2342_v26 = vmul.f32 %v9484_v16, %v2333_v30  ;;  %3263 = vmatpush.bf16.msrb.mxu1 %v7651_v62  ;;  %v9099_v56 = vld [vmem:[#allocation15 + $0x14] sm:$0xf0]  ;;  %v2620_v4 = vadd.f32 %v2612_v12, %v2359_v59  ;;  %3251 = vmatpush.bf16.msrb.mxu0 %v7631_v55  ;;  %v7875_v55 = vld [vmem:[%s12827_s4 + $0xf0] sm:$0xf0]  ;;  %v9157_v59 = vld [vmem:[%s12827_s4 + $0xec] sm:$0xf] }
 0x287   :  { %v7643_v39 = vor.u32 %v9097_v57, %v7640_v50 }
 0x288   :  { %v7496_v17 = vmul.f32 -1.442695, %v2621_v7  ;;  %v2344_v31 = vrot.slane %v2342_v26, 4 }
 0x289   :  { %v9486_v15 = vpop.eup %9485  ;;  %3276 = vmatpush.bf16.msrb.mxu2 %v7655_v35  ;;  %3289 = vmatpush.bf16.msrb.mxu3 %v7659_v49 }
 0x28a   :  { %v9488_v20 = vpop.eup %9487  ;;  %v11123_v25 = vadd.f32 1.0, %v9486_v15  ;;  %9489 = vpow2.f32 %v7496_v17  ;;  %v2346_v41 = vsel %vm2011_vm0, %v2344_v31, 0.0  ;;  %v11135_v43 = vsel %vm2011_vm0, %v2344_v31, %v10798_v33  ;;  %3264 = vmatpush.bf16.msrb.mxu1 %v7635_v54  ;;  %v7881_v54 = vld [vmem:[%s12827_s4 + $0xe8] sm:$0xf] }
 0x28b   :  { %v11125_v18 = vadd.f32 1.0, %v9488_v20  ;;  %v2591_v32 = vpop.f32.mrf.mxu2  ;;  %v2604_v34 = vpop.f32.mrf.mxu3  ;;  %2348 = vst [vmem:[#allocation4 + $0x4] sm:$0x3] %v2346_v41  ;;  %v2706_v47 = vpack.c.bf16 %v11135_v43, %v11135_v43  ;;  %v7639_v33 = vor.u32 %v9099_v56, %v7638_v51  ;;  %v9158_v51 = vld [vmem:[%s12827_s4 + $0xec] sm:$0xf0] }
 0x28c   :  { %9491 = vrcp.f32 %v11123_v25  ;;  %v2635_v6 = vand.u32 2147483647, %v11123_v25  ;;  %v2637_v7 = vand.u32 2147483648, %v11123_v25  ;;  %vm2631_vm9 = vweird.f32 %v11123_v25  ;;  %v9159_v56 = vld [vmem:[%s12827_s4 + $0xf4] sm:$0xf0] }
 0x28d   :  { %9493 = vrcp.f32 %v11125_v18  ;;  %2907 = vmatmul.bf16.vlgmr.msra.gmra.mxu0 %v2706_v47  ;;  %2920 = vmatmul.bf16.vlgmr.msra.gmra.mxu1 %v2706_v47  ;;  %v2656_v9 = vand.u32 2147483648, %v11125_v18  ;;  %v2654_v13 = vand.u32 2147483647, %v11125_v18  ;;  %vm2650_vm10 = vweird.f32 %v11125_v18 }
 0x28e   :  { %2933 = vmatmul.bf16.vlgmr.msra.gmra.mxu2 %v2706_v47  ;;  %2946 = vmatmul.bf16.vlgmr.msra.gmra.mxu3 %v2706_v47  ;;  %v2638_v30 = vor.u32 1.1754944e-38, %v2637_v7  ;;  %vm2636_vm13 = vcmp.eq.f32.partialorder %v2635_v6, 8.507059e+37  ;;  %v7882_v50 = vor.u32 %v9159_v56, %v7881_v54  ;;  %v9153_v7 = vld [vmem:[%s12827_s4 + $0xcc] sm:$0xf] }
 0x28f   :  { %3277 = vmatpush.bf16.msrb.mxu2 %v7639_v33  ;;  %3290 = vmatpush.bf16.msrb.mxu3 %v7643_v39  ;;  %v2657_v53 = vor.u32 1.1754944e-38, %v2656_v9  ;;  %vm2655_vm15 = vcmp.eq.f32.partialorder %v2654_v13, 8.507059e+37  ;;  %v7859_v39 = vld [vmem:[%s12827_s4 + $0xd0] sm:$0xf0] }
 0x290   :  { %v9490_v52 = vpop.eup %9489 }
 0x291   :  { %v11139_v58 = vadd.f32 1.0, %v9490_v52 }
 0x292   :  { %v9492_v24 = vpop.eup %9491  ;;  %v6072_v8 = vld [vmem:[#allocation4 + $0x4] sm:$0x3] }
 0x293   :  { %v9494_v11 = vpop.eup %9493  ;;  %v2627_v2 = vmul.f32 %v9492_v24, %v11123_v25  ;;  %9495 = vrcp.f32 %v11139_v58  ;;  %vm2632_vm7 = vweird.f32 %v9492_v24  ;;  %v6092_v46 = vmul.f32 %v11150_v63, %v6072_v8  ;;  %3593 = vmatpush.bf16.msra.mxu2 %v7882_v50  ;;  %v7867_v8 = vld [vmem:[%s12827_s4 + $0xd8] sm:$0xf0]  ;;  %v9141_v50 = vld [vmem:[%s12827_s4 + $0x6c] sm:$0xf] }
 0x294   :  { %v2646_v0 = vmul.f32 %v9494_v11, %v11125_v18  ;;  %9497 = vtanh.f32 %v2620_v4  ;;  %vm2651_vm8 = vweird.f32 %v9494_v11  ;;  %vm2633_vm11 = vmor %vm2631_vm9, %vm2632_vm7  ;;  %v2355_v18 = vld [vmem:[#allocation10 + $0xa] sm:$0x3]  ;;  %v2676_v62 = vand.u32 2147483648, %v11139_v58 }
 0x295   :  { %v2628_v3 = vsub.f32 1.0, %v2627_v2  ;;  %v6105_v17 = vsel %vm6098_vm14, %v6092_v46, 0.0  ;;  %vm2652_vm12 = vmor %vm2650_vm10, %vm2651_vm8  ;;  %vm2356_vm1 = vcmp.gt.f32.partialorder %v2355_v18, 0.0  ;;  %vm2670_vm2 = vweird.f32 %v11139_v58  ;;  %v9154_v4 = vld [vmem:[%s12827_s4 + $0xcc] sm:$0xf0] }
 0x296   :  { %v2647_v5 = vsub.f32 1.0, %v2646_v0  ;;  %6106 = vadd.xlane.f32.xlu1 %v6105_v17  ;;  %v2674_v35 = vand.u32 2147483647, %v11139_v58  ;;  %v2677_v38 = vor.u32 1.1754944e-38, %v2676_v62  ;;  %v7865_v0 = vld [vmem:[%s12827_s4 + $0xc8] sm:$0xf]  ;;  %v7870_v9 = vor.u32 %v9153_v7, %v7867_v8 }
 0x297   :  { %v2629_v10 = vmul.f32 %v9492_v24, %v2628_v3  ;;  %v9155_v3 = vld [vmem:[%s12827_s4 + $0xd4] sm:$0xf0]  ;;  %v9150_v46 = vld [vmem:[%s12827_s4 + $0xac] sm:$0xf0]  ;;  %v9145_v62 = vld [vmem:[%s12827_s4 + $0x8c] sm:$0xf] }
 0x298   :  { %v2648_v19 = vmul.f32 %v9494_v11, %v2647_v5  ;;  %vm2675_vm4 = vcmp.eq.f32.partialorder %v2674_v35, 8.507059e+37  ;;  %v7866_v6 = vor.u32 %v9155_v3, %v7865_v0  ;;  %v9151_v17 = vld [vmem:[%s12827_s4 + $0xb4] sm:$0xf0]  ;;  %v7835_v35 = vld [vmem:[%s12827_s4 + $0x98] sm:$0xf0] }
 0x299   :  { %v9496_v1 = vpop.eup %9495  ;;  %v2630_v16 = vadd.f32 %v9492_v24, %v2629_v10  ;;  %v7841_v10 = vld [vmem:[%s12827_s4 + $0xa0] sm:$0xf]  ;;  %v7795_v7 = vld [vmem:[%s12827_s4 + $0x50] sm:$0xf0]  ;;  %v7801_v8 = vld [vmem:[%s12827_s4 + $0x48] sm:$0xf] }
 0x29a   :  { %v2649_v44 = vadd.f32 %v9494_v11, %v2648_v19  ;;  %v2666_v21 = vmul.f32 %v9496_v1, %v11139_v58  ;;  %v9498_v26 = vpop.eup %9497  ;;  %vm2671_vm0 = vweird.f32 %v9496_v1  ;;  %v7883_v58 = vld [vmem:[%s12827_s4 + $0xf8] sm:$0xf0]  ;;  %3594 = vmatpush.bf16.msra.mxu2 %v7866_v6  ;;  %v9148_v19 = vld [vmem:[%s12827_s4 + $0xa4] sm:$0xf]  ;;  %v7842_v13 = vor.u32 %v9150_v46, %v7841_v10  ;;  %v9139_v10 = vld [vmem:[%s12827_s4 + $0x54] sm:$0xf0] }
 0x29b   :  { %v2634_v15 = vsel %vm2633_vm11, %v9492_v24, %v2630_v16  ;;  %vm2672_vm3 = vmor %vm2670_vm2, %vm2671_vm0  ;;  %v7886_v33 = vor.u32 %v9157_v59, %v7883_v58  ;;  %v7857_v24 = vld [vmem:[%s12827_s4 + $0xc0] sm:$0xf]  ;;  %v7849_v16 = vld [vmem:[%s12827_s4 + $0xa8] sm:$0xf] }
 0x29c   :  { %v2639_v27 = vsel %vm2636_vm13, %v2638_v30, %v2634_v15  ;;  %v2653_v28 = vsel %vm2652_vm12, %v9494_v11, %v2649_v44  ;;  %v2667_v29 = vsub.f32 1.0, %v2666_v21  ;;  %v9152_v11 = vld [vmem:[%s12827_s4 + $0xc4] sm:$0xf]  ;;  %v7858_v2 = vor.u32 %v9154_v4, %v7857_v24  ;;  %v9149_v21 = vld [vmem:[%s12827_s4 + $0xac] sm:$0xf] }
 0x29d   :  { %v2658_v22 = vsel %vm2655_vm15, %v2657_v53, %v2653_v28  ;;  %v2684_v20 = vmul.f32 %v9498_v26, %v2639_v27  ;;  %3606 = vmatpush.bf16.msra.mxu3 %v7886_v33  ;;  %v7862_v5 = vor.u32 %v9152_v11, %v7859_v39  ;;  %v7850_v44 = vor.u32 %v9151_v17, %v7849_v16  ;;  %v7825_v15 = vld [vmem:[%s12827_s4 + $0x80] sm:$0xf]  ;;  %v9146_v26 = vld [vmem:[%s12827_s4 + $0x8c] sm:$0xf0]  ;;  %v9144_v27 = vld [vmem:[%s12827_s4 + $0x84] sm:$0xf] }
 0x29e   :  { %v2683_v25 = vmul.f32 %v2681_v23, %v2658_v22  ;;  %v2668_v14 = vmul.f32 %v9496_v1, %v2667_v29  ;;  %v7851_v23 = vld [vmem:[%s12827_s4 + $0xb8] sm:$0xf0]  ;;  %v7826_v22 = vor.u32 %v9146_v26, %v7825_v15  ;;  %v2705_v33 = vld [vmem:[#allocation2 + $0x10] sm:$0xc0]  ;;  %v7793_v11 = vld [vmem:[%s12827_s4 + $0x40] sm:$0xf] }
 0x29f   :  { %v7854_v53 = vor.u32 %v9149_v21, %v7851_v23  ;;  %3595 = vmatpush.bf16.msra.mxu2 %v7850_v44  ;;  %v7819_v59 = vld [vmem:[%s12827_s4 + $0x78] sm:$0xf0]  ;;  %v9136_v39 = vld [vmem:[%s12827_s4 + $0x44] sm:$0xf]  ;;  %v9137_v46 = vld [vmem:[%s12827_s4 + $0x4c] sm:$0xf] }
 0x2a0   :  { %v2685_v32 = vadd.f32 %v2684_v20, %v2683_v25  ;;  %v2669_v34 = vadd.f32 %v9496_v1, %v2668_v14  ;;  %v7827_v20 = vld [vmem:[%s12827_s4 + $0x90] sm:$0xf0]  ;;  %v7833_v25 = vld [vmem:[%s12827_s4 + $0x88] sm:$0xf]  ;;  %v9147_v14 = vld [vmem:[%s12827_s4 + $0x94] sm:$0xf0]  ;;  %v7822_v4 = vor.u32 %v9141_v50, %v7819_v59 }
 0x2a1   :  { %3607 = vmatpush.bf16.msra.mxu3 %v7870_v9  ;;  %v7798_v9 = vor.u32 %v9136_v39, %v7795_v7  ;;  %v7777_v17 = vld [vmem:[%s12827_s4 + $0x20] sm:$0xf]  ;;  %v9132_v44 = vld [vmem:[%s12827_s4 + $0x24] sm:$0xf]  ;;  %v7785_v15 = vld [vmem:[%s12827_s4 + $0x28] sm:$0xf] }
 0x2a2   :  { %9499 = vtanh.f32 %v2685_v32  ;;  %v2696_v31 = vrot.slane %v2685_v32, 2  ;;  %v2673_v37 = vsel %vm2672_vm3, %v9496_v1, %v2669_v34  ;;  %v7843_v1 = vld [vmem:[%s12827_s4 + $0xb0] sm:$0xf0]  ;;  %v7830_v34 = vor.u32 %v9144_v27, %v7827_v20  ;;  %v9188_v59 = vld [vmem:[#allocation15 + $0xe4] sm:$0xf] }
 0x2a3   :  { %v2678_v42 = vsel %vm2675_vm4, %v2677_v38, %v2673_v37  ;;  %v7846_v30 = vor.u32 %v9148_v19, %v7843_v1  ;;  %v2702_v37 = vld [vmem:[#allocation2 + $0x30] sm:$0xc0]  ;;  %v2703_v38 = vld [vmem:[#allocation2] sm:$0xc0]  ;;  %v7803_v19 = vld [vmem:[%s12827_s4 + $0x58] sm:$0xf0]  ;;  %v7802_v1 = vor.u32 %v9139_v10, %v7801_v8 }
 0x2a4   :  { %v11164_v36 = vsel %vm2356_vm1, %v2696_v31, %v10825_v48  ;;  %v7873_v48 = vld [vmem:[%s12827_s4 + $0xe0] sm:$0xf]  ;;  %v7834_v31 = vor.u32 %v9147_v14, %v7833_v25  ;;  %v7806_v16 = vor.u32 %v9137_v46, %v7803_v19  ;;  %v9190_v50 = vld [vmem:[#allocation15 + $0xec] sm:$0xf0]  ;;  %v3026_v8 = vrot.slane %v11116_v60, 2 }
 0x2a5   :  { %v7874_v52 = vor.u32 %v9158_v51, %v7873_v48  ;;  %3608 = vmatpush.bf16.msra.mxu3 %v7854_v53  ;;  %v7811_v51 = vld [vmem:[%s12827_s4 + $0x70] sm:$0xf0] }
 0x2a6   :  { %3596 = vmatpush.bf16.msra.mxu2 %v7834_v31  ;;  %v7779_v53 = vld [vmem:[%s12827_s4 + $0x30] sm:$0xf0] }
 0x2a7   :  { %3567 = vmatpush.bf16.msra.mxu0 %v7874_v52  ;;  %v9143_v52 = vld [vmem:[%s12827_s4 + $0x74] sm:$0xf0]  ;;  %v7782_v27 = vor.u32 %v9132_v44, %v7779_v53  ;;  %v9184_v53 = vld [vmem:[#allocation15 + $0xc4] sm:$0xf] }
 0x2a8   :  { %v9500_v40 = vpop.eup %9499 }
 0x2a9   :  { %v2687_v12 = vmul.f32 %v9500_v40, %v2678_v42  ;;  %v7838_v40 = vor.u32 %v9145_v62, %v7835_v35  ;;  %v7761_v62 = vld [vmem:[%s12827_s4] sm:$0xf]  ;;  %v9130_v35 = vld [vmem:[%s12827_s4 + $0xc] sm:$0xf0] }
 0x2ab   :  { %v2689_v41 = vrot.slane %v2687_v12, 2  ;;  %3568 = vmatpush.bf16.msra.mxu0 %v7858_v2  ;;  %3609 = vmatpush.bf16.msra.mxu3 %v7838_v40  ;;  %v9138_v2 = vld [vmem:[%s12827_s4 + $0x4c] sm:$0xf0]  ;;  %v7763_v40 = vld [vmem:[%s12827_s4 + $0x10] sm:$0xf0] }
 0x2ac   :  { %v7794_v6 = vor.u32 %v9138_v2, %v7793_v11  ;;  %v8012_v11 = vld [vmem:[#allocation15 + $0xe8] sm:$0xf] }
 0x2ad   :  { %v2691_v45 = vsel %vm2356_vm1, %v2689_v41, 0.0  ;;  %v11169_v47 = vsel %vm2356_vm1, %v2689_v41, %v10830_v61  ;;  %v9156_v61 = vld [vmem:[%s12827_s4 + $0xe4] sm:$0xf]  ;;  %v7809_v41 = vld [vmem:[%s12827_s4 + $0x60] sm:$0xf] }
 0x2ae   :  { %2693 = vst [vmem:[#allocation5 + $0xa] sm:$0x3] %v2691_v45  ;;  %v3051_v49 = vpack.c.bf16 %v11169_v47, %v11169_v47  ;;  %v7878_v57 = vor.u32 %v9156_v61, %v7875_v55  ;;  %v9142_v45 = vld [vmem:[%s12827_s4 + $0x6c] sm:$0xf0]  ;;  %v7817_v61 = vld [vmem:[%s12827_s4 + $0x68] sm:$0xf] }
 0x2af   :  { %3569 = vmatpush.bf16.msra.mxu0 %v7842_v13  ;;  %v7810_v48 = vor.u32 %v9142_v45, %v7809_v41  ;;  %3610 = vmatpush.bf16.msra.mxu3 %v7822_v4  ;;  %v7769_v45 = vld [vmem:[%s12827_s4 + $0x8] sm:$0xf]  ;;  %v8006_v4 = vld [vmem:[#allocation15 + $0xf0] sm:$0xf0] }
 0x2b0   :  { %3252 = vmatmul.bf16.vlgmr.msrb.gmra.mxu0 %v3051_v49  ;;  %3265 = vmatmul.bf16.vlgmr.msrb.gmra.mxu1 %v3051_v49 }
 0x2b1   :  { %3278 = vmatmul.bf16.vlgmr.msrb.gmra.mxu2 %v3051_v49  ;;  %3291 = vmatmul.bf16.vlgmr.msrb.gmra.mxu3 %v3051_v49  ;;  %v9140_v49 = vld [vmem:[%s12827_s4 + $0x64] sm:$0xf] }
 0x2b2   :  { %3580 = vmatpush.bf16.msra.mxu1 %v7878_v57  ;;  %v7814_v56 = vor.u32 %v9140_v49, %v7811_v51  ;;  %v7818_v57 = vor.u32 %v9143_v52, %v7817_v61  ;;  %v9131_v49 = vld [vmem:[%s12827_s4 + $0x14] sm:$0xf0]  ;;  %v9129_v52 = vld [vmem:[%s12827_s4 + $0xc] sm:$0xf] }
 0x2b3   :  { %3570 = vmatpush.bf16.msra.mxu0 %v7826_v22  ;;  %3611 = vmatpush.bf16.msra.mxu3 %v7806_v16  ;;  %v7787_v22 = vld [vmem:[%s12827_s4 + $0x38] sm:$0xf0]  ;;  %v7770_v61 = vor.u32 %v9131_v49, %v7769_v45  ;;  %v9186_v16 = vld [vmem:[#allocation15 + $0xcc] sm:$0xf0]  ;;  %v9180_v45 = vld [vmem:[#allocation15 + $0xa4] sm:$0xf] }
 0x2b4   :  { %3597 = vmatpush.bf16.msra.mxu2 %v7818_v57  ;;  %v8004_v57 = vld [vmem:[#allocation15 + $0xe0] sm:$0xf]  ;;  %v7974_v49 = vld [vmem:[#allocation15 + $0xb0] sm:$0xf0] }
 0x2b6   :  { %3581 = vmatpush.bf16.msra.mxu1 %v7862_v5 }
 0x2b7   :  { %3571 = vmatpush.bf16.msra.mxu0 %v7810_v48  ;;  %v2704_v48 = vld [vmem:[#allocation2 + $0x18] sm:$0xc0] }
 0x2b8   :  { %3598 = vmatpush.bf16.msra.mxu2 %v7802_v1  ;;  %v7988_v1 = vld [vmem:[#allocation15 + $0xc0] sm:$0xf] }
 0x2ba   :  { %3582 = vmatpush.bf16.msra.mxu1 %v7846_v30  ;;  %v9134_v30 = vld [vmem:[%s12827_s4 + $0x2c] sm:$0xf0] }
 0x2bb   :  { %3572 = vmatpush.bf16.msra.mxu0 %v7794_v6  ;;  %v7778_v23 = vor.u32 %v9134_v30, %v7777_v17  ;;  %v8014_v6 = vld [vmem:[#allocation15 + $0xf8] sm:$0xf0] }
 0x2be   :  { %3583 = vmatpush.bf16.msra.mxu1 %v7830_v34 }
 0x2bf   :  { %3573 = vmatpush.bf16.msra.mxu0 %v7778_v23  ;;  %v7989_v23 = vor.u32 %v9186_v16, %v7988_v1 }
 0x2c2   :  { %3584 = vmatpush.bf16.msra.mxu1 %v7814_v56 }
 0x2c6   :  { %3585 = vmatpush.bf16.msra.mxu1 %v7798_v9 }
 0x2ca   :  { %3586 = vmatpush.bf16.msra.mxu1 %v7782_v27  ;;  %v7990_v27 = vld [vmem:[#allocation15 + $0xd0] sm:$0xf0] }
 0x30a   :  { %v2908_v28 = vpop.f32.mrf.mxu0  ;;  %v2921_v29 = vpop.f32.mrf.mxu1 }
 0x30b   :  { %v2955_v18 = vrot.slane %v2908_v28, 2  ;;  %v2956_v32 = vrot.slane %v2921_v29, 2  ;;  %v9135_v28 = vld [vmem:[%s12827_s4 + $0x34] sm:$0xf0]  ;;  %v9133_v29 = vld [vmem:[%s12827_s4 + $0x2c] sm:$0xf] }
 0x30c   :  { %v7786_v14 = vor.u32 %v9135_v28, %v7785_v15  ;;  %v7996_v28 = vld [vmem:[#allocation15 + $0xc8] sm:$0xf] }
 0x30d   :  { %v2963_v42 = vadd.f32 %v2955_v18, %v2702_v37  ;;  %v2964_v12 = vadd.f32 %v2956_v32, %v2703_v38  ;;  %v7790_v18 = vor.u32 %v9133_v29, %v7787_v22  ;;  %v9128_v37 = vld [vmem:[%s12827_s4 + $0x4] sm:$0xf] }
 0x30e   :  { %3599 = vmatpush.bf16.msra.mxu2 %v7786_v14  ;;  %v7766_v41 = vor.u32 %v9128_v37, %v7763_v40  ;;  %v7972_v37 = vld [vmem:[#allocation15 + $0xa0] sm:$0xf] }
 0x30f   :  { %v7625_v55 = vmul.f32 -1.442695, %v2963_v42  ;;  %v7626_v54 = vmul.f32 -1.442695, %v2964_v12  ;;  %3612 = vmatpush.bf16.msra.mxu3 %v7790_v18  ;;  %v7762_v12 = vor.u32 %v9130_v35, %v7761_v62  ;;  %v9187_v18 = vld [vmem:[#allocation15 + $0xd4] sm:$0xf0] }
 0x310   :  { %3587 = vmatpush.bf16.msra.mxu1 %v7766_v41  ;;  %v7997_v62 = vor.u32 %v9187_v18, %v7996_v28  ;;  %v7998_v35 = vld [vmem:[#allocation15 + $0xd8] sm:$0xf0]  ;;  %v7940_v22 = vld [vmem:[#allocation15 + $0x60] sm:$0xf] }
 0x311   :  { %9501 = vpow2.f32 %v7625_v55  ;;  %v11293_v58 = vpop.f32.mrf.mxu2  ;;  %v2947_v24 = vpop.f32.mrf.mxu3  ;;  %v7771_v55 = vld [vmem:[%s12827_s4 + $0x18] sm:$0xf0]  ;;  %3574 = vmatpush.bf16.msra.mxu0 %v7762_v12 }
 0x312   :  { %9503 = vpow2.f32 %v7626_v54  ;;  %v2958_v0 = vrot.slane %v2947_v24, 2  ;;  %v2910_v3 = vpop.f32.mrf.mxu0  ;;  %v2923_v5 = vpop.f32.mrf.mxu1  ;;  %v2957_v38 = vrot.slane %v11293_v58, 2  ;;  %v7774_v56 = vor.u32 %v9129_v52, %v7771_v55  ;;  %3600 = vmatpush.bf16.msra.mxu2 %v7770_v61  ;;  %v9183_v55 = vld [vmem:[#allocation15 + $0xb4] sm:$0xf0] }
 0x313   :  { %v8005_v24 = vor.u32 %v9190_v50, %v8004_v57  ;;  %v9191_v3 = vld [vmem:[#allocation15 + $0xf4] sm:$0xf0]  ;;  %v9189_v5 = vld [vmem:[#allocation15 + $0xec] sm:$0xf]  ;;  %v7977_v52 = vor.u32 %v9180_v45, %v7974_v49  ;;  %v3047_v50 = vld [vmem:[#allocation3 + $0x28] sm:$0x3] }
 0x314   :  { %v2966_v13 = vadd.f32 %v2958_v0, %v2705_v33  ;;  %v2965_v39 = vadd.f32 %v2957_v38, %v2704_v48  ;;  %3613 = vmatpush.bf16.msra.mxu3 %v7774_v56  ;;  %v8009_v0 = vor.u32 %v9188_v59, %v8006_v4  ;;  %v8017_v44 = vor.u32 %v9189_v5, %v8014_v6  ;;  %v9182_v38 = vld [vmem:[#allocation15 + $0xac] sm:$0xf0]  ;;  %v7980_v48 = vld [vmem:[#allocation15 + $0xa8] sm:$0xf]  ;;  %v7982_v56 = vld [vmem:[#allocation15 + $0xb8] sm:$0xf0] }
 0x315   :  { %3890 = vmatpush.bf16.msrb.mxu0 %v8005_v24  ;;  %v7973_v41 = vor.u32 %v9182_v38, %v7972_v37  ;;  %v7948_v37 = vld [vmem:[#allocation15 + $0x68] sm:$0xf]  ;;  %v9175_v38 = vld [vmem:[#allocation15 + $0x74] sm:$0xf0]  ;;  %v9168_v57 = vld [vmem:[#allocation15 + $0x44] sm:$0xf] }
 0x316   :  { %v7627_v21 = vmul.f32 -1.442695, %v2966_v13  ;;  %3903 = vmatpush.bf16.msrb.mxu1 %v8009_v0  ;;  %v8013_v13 = vor.u32 %v9191_v3, %v8012_v11  ;;  %v7981_v11 = vor.u32 %v9183_v55, %v7980_v48  ;;  %v7949_v48 = vor.u32 %v9175_v38, %v7948_v37 }
 0x317   :  { %v9502_v26 = vpop.eup %9501 }
 0x318   :  { %v9504_v20 = vpop.eup %9503  ;;  %v11343_v25 = vadd.f32 1.0, %v9502_v26  ;;  %9505 = vpow2.f32 %v7627_v21  ;;  %v11395_v21 = vld [vmem:[#allocation10 + $0x6] sm:$0x3]  ;;  %3916 = vmatpush.bf16.msrb.mxu2 %v8013_v13  ;;  %3929 = vmatpush.bf16.msrb.mxu3 %v8017_v44  ;;  %v7958_v44 = vld [vmem:[#allocation15 + $0x90] sm:$0xf0] }
 0x319   :  { %v11345_v32 = vadd.f32 1.0, %v9504_v20  ;;  %v2936_v34 = vpop.f32.mrf.mxu2  ;;  %v2949_v31 = vpop.f32.mrf.mxu3  ;;  %3891 = vmatpush.bf16.msrb.mxu0 %v7989_v23  ;;  %vm2701_vm11 = vcmp.gt.f32.partialorder %v11395_v21, 0.0  ;;  %v7964_v23 = vld [vmem:[#allocation15 + $0x88] sm:$0xf] }
 0x31a   :  { %9507 = vrcp.f32 %v11343_v25  ;;  %v2980_v42 = vand.u32 2147483647, %v11343_v25  ;;  %v2982_v51 = vand.u32 2147483648, %v11343_v25  ;;  %vm2976_vm7 = vweird.f32 %v11343_v25  ;;  %v9185_v34 = vld [vmem:[#allocation15 + $0xcc] sm:$0xf] }
 0x31b   :  { %9509 = vrcp.f32 %v11345_v32  ;;  %v3001_v58 = vand.u32 2147483648, %v11345_v32  ;;  %v2999_v10 = vand.u32 2147483647, %v11345_v32  ;;  %v8001_v12 = vor.u32 %v9185_v34, %v7998_v35  ;;  %v9174_v34 = vld [vmem:[#allocation15 + $0x6c] sm:$0xf0] }
 0x31c   :  { %vm11391_vm6 = vcmp.eq.f32.partialorder %v2980_v42, 8.507059e+37  ;;  %v2983_v30 = vor.u32 1.1754944e-38, %v2982_v51  ;;  %vm2995_vm12 = vweird.f32 %v11345_v32  ;;  %3917 = vmatpush.bf16.msrb.mxu2 %v7997_v62  ;;  %v7941_v62 = vor.u32 %v9174_v34, %v7940_v22 }
 0x31d   :  { %v3002_v26 = vor.u32 1.1754944e-38, %v3001_v58  ;;  %vm11405_vm9 = vcmp.eq.f32.partialorder %v2999_v10, 8.507059e+37  ;;  %v3048_v58 = vld [vmem:[#allocation3 + $0x8] sm:$0x3]  ;;  %3930 = vmatpush.bf16.msrb.mxu3 %v8001_v12  ;;  %3892 = vmatpush.bf16.msrb.mxu0 %v7973_v41  ;;  %v9178_v10 = vld [vmem:[#allocation15 + $0x8c] sm:$0xf0] }
 0x31e   :  { %v9506_v54 = vpop.eup %9505 }
 0x31f   :  { %v11377_v33 = vadd.f32 1.0, %v9506_v54  ;;  %v9181_v54 = vld [vmem:[#allocation15 + $0xac] sm:$0xf] }
 0x320   :  { %v11379_v2 = vpop.eup %9507  ;;  %3918 = vmatpush.bf16.msrb.mxu2 %v7981_v11  ;;  %v9169_v11 = vld [vmem:[#allocation15 + $0x4c] sm:$0xf] }
 0x321   :  { %v11381_v7 = vpop.eup %9509  ;;  %v2972_v9 = vmul.f32 %v11379_v2, %v11343_v25  ;;  %9511 = vrcp.f32 %v11377_v33  ;;  %vm2977_vm5 = vweird.f32 %v11379_v2  ;;  %v3021_v14 = vand.u32 2147483648, %v11377_v33 }
 0x322   :  { %v2991_v46 = vmul.f32 %v11381_v7, %v11345_v32  ;;  %9513 = vtanh.f32 %v2965_v39  ;;  %vm11401_vm8 = vmor %vm2976_vm7, %vm2977_vm5  ;;  %v7993_v25 = vor.u32 %v9184_v53, %v7990_v27  ;;  %vm2996_vm10 = vweird.f32 %v11381_v7  ;;  %v9177_v27 = vld [vmem:[#allocation15 + $0x8c] sm:$0xf] }
 0x323   :  { %v2973_v17 = vsub.f32 1.0, %v2972_v9  ;;  %vm11422_vm13 = vmor %vm2995_vm12, %vm2996_vm10  ;;  %v3019_v4 = vand.u32 2147483647, %v11377_v33  ;;  %v7985_v39 = vor.u32 %v9181_v54, %v7982_v56  ;;  %v7956_v9 = vld [vmem:[#allocation15 + $0x80] sm:$0xf]  ;;  %vm3015_vm0 = vweird.f32 %v11377_v33 }
 0x324   :  { %v2992_v15 = vsub.f32 1.0, %v2991_v46  ;;  %3904 = vmatpush.bf16.msrb.mxu1 %v7993_v25  ;;  %v7957_v16 = vor.u32 %v9178_v10, %v7956_v9  ;;  %v3050_v25 = vld [vmem:[#allocation3 + $0x38] sm:$0x3]  ;;  %v9170_v56 = vld [vmem:[#allocation15 + $0x4c] sm:$0xf0] }
 0x325   :  { %v2974_v29 = vmul.f32 %v11379_v2, %v2973_v17  ;;  %v9176_v17 = vld [vmem:[#allocation15 + $0x84] sm:$0xf]  ;;  %3931 = vmatpush.bf16.msrb.mxu3 %v7985_v39  ;;  %vm3020_vm2 = vcmp.eq.f32.partialorder %v3019_v4, 8.507059e+37  ;;  %v9163_v4 = vld [vmem:[#allocation15 + $0x14] sm:$0xf0] }
 0x326   :  { %v2993_v31 = vmul.f32 %v11381_v7, %v2992_v15  ;;  %v7961_v53 = vor.u32 %v9176_v17, %v7958_v44  ;;  %v9179_v15 = vld [vmem:[#allocation15 + $0x94] sm:$0xf0]  ;;  %3893 = vmatpush.bf16.msrb.mxu0 %v7957_v16 }
 0x327   :  { %v11412_v40 = vpop.eup %9511  ;;  %v2975_v42 = vadd.f32 %v11379_v2, %v2974_v29  ;;  %v7966_v29 = vld [vmem:[#allocation15 + $0x98] sm:$0xf0] }
 0x328   :  { %v2994_v51 = vadd.f32 %v11381_v7, %v2993_v31  ;;  %v3011_v61 = vmul.f32 %v11412_v40, %v11377_v33  ;;  %v9514_v0 = vpop.eup %9513  ;;  %3905 = vmatpush.bf16.msrb.mxu1 %v7977_v52  ;;  %v7969_v18 = vor.u32 %v9177_v27, %v7966_v29  ;;  %v9172_v31 = vld [vmem:[#allocation15 + $0x64] sm:$0xf]  ;;  %vm3016_vm15 = vweird.f32 %v11412_v40  ;;  %v7918_v27 = vld [vmem:[#allocation15 + $0x38] sm:$0xf0]  ;;  %v7900_v33 = vld [vmem:[#allocation15 + $0x8] sm:$0xf] }
 0x329   :  { %v2979_v32 = vsel %vm11401_vm8, %v11379_v2, %v2975_v42  ;;  %v9173_v42 = vld [vmem:[#allocation15 + $0x6c] sm:$0xf]  ;;  %vm11452_vm1 = vmor %vm3015_vm0, %vm3016_vm15 }
 0x32a   :  { %v2984_v3 = vsel %vm11391_vm6, %v2983_v30, %v2979_v32  ;;  %v2998_v5 = vsel %vm11422_vm13, %v11381_v7, %v2994_v51  ;;  %v3012_v6 = vsub.f32 1.0, %v3011_v61  ;;  %v7950_v51 = vld [vmem:[#allocation15 + $0x78] sm:$0xf0]  ;;  %v7924_v61 = vld [vmem:[#allocation15 + $0x40] sm:$0xf]  ;;  %3932 = vmatpush.bf16.msrb.mxu3 %v7969_v18  ;;  %3894 = vmatpush.bf16.msrb.mxu0 %v7941_v62 }
 0x32b   :  { %v3003_v46 = vsel %vm11405_vm9, %v3002_v26, %v2998_v5  ;;  %v3029_v13 = vmul.f32 %v9514_v0, %v2984_v3  ;;  %v7965_v26 = vor.u32 %v9179_v15, %v7964_v23  ;;  %v7926_v32 = vld [vmem:[#allocation15 + $0x50] sm:$0xf0]  ;;  %v9165_v15 = vld [vmem:[#allocation15 + $0x2c] sm:$0xf] }
 0x32c   :  { %v3028_v19 = vmul.f32 %v3026_v8, %v3003_v46  ;;  %v3013_v30 = vmul.f32 %v11412_v40, %v3012_v6  ;;  %v7942_v8 = vld [vmem:[#allocation15 + $0x70] sm:$0xf0]  ;;  %3906 = vmatpush.bf16.msrb.mxu1 %v7961_v53  ;;  %v7929_v5 = vor.u32 %v9168_v57, %v7926_v32  ;;  %v7934_v6 = vld [vmem:[#allocation15 + $0x58] sm:$0xf0]  ;;  %v3022_v53 = vor.u32 1.1754944e-38, %v3021_v14 }
 0x32d   :  { %v3253_v59 = vpop.f32.mrf.mxu0  ;;  %v3266_v24 = vpop.f32.mrf.mxu1  ;;  %v7945_v35 = vor.u32 %v9172_v31, %v7942_v8  ;;  %3919 = vmatpush.bf16.msrb.mxu2 %v7965_v26  ;;  %v7937_v44 = vor.u32 %v9169_v11, %v7934_v6  ;;  %v7892_v26 = vld [vmem:[#allocation15] sm:$0xf]  ;;  %v9162_v14 = vld [vmem:[#allocation15 + $0xc] sm:$0xf0]  ;;  %v7921_v34 = vor.u32 %v9165_v15, %v7918_v27  ;;  %v9160_v31 = vld [vmem:[#allocation15 + $0x4] sm:$0xf] }
 0x32e   :  { %v3296_v2 = vadd.f32 %v3253_v59, %v3047_v50  ;;  %v3297_v1 = vadd.f32 %v3266_v24, %v3048_v58  ;;  %v3030_v20 = vadd.f32 %v3029_v13, %v3028_v19  ;;  %v3014_v49 = vadd.f32 %v11412_v40, %v3013_v30  ;;  %v7932_v58 = vld [vmem:[#allocation15 + $0x48] sm:$0xf]  ;;  %v9171_v24 = vld [vmem:[#allocation15 + $0x54] sm:$0xf0]  ;;  %v9164_v13 = vld [vmem:[#allocation15 + $0x24] sm:$0xf] }
 0x32f   :  { %v7953_v50 = vor.u32 %v9173_v42, %v7950_v51  ;;  %v7925_v59 = vor.u32 %v9170_v56, %v7924_v61  ;;  %v7933_v46 = vor.u32 %v9171_v24, %v7932_v58  ;;  %v7916_v19 = vld [vmem:[#allocation15 + $0x28] sm:$0xf]  ;;  %v9167_v30 = vld [vmem:[#allocation15 + $0x34] sm:$0xf0]  ;;  %v7894_v8 = vld [vmem:[#allocation15 + $0x10] sm:$0xf0]  ;;  %v7893_v62 = vor.u32 %v9162_v14, %v7892_v26 }
 0x330   :  { %v7756_v7 = vmul.f32 -1.442695, %v3296_v2  ;;  %v7757_v28 = vmul.f32 -1.442695, %v3297_v1  ;;  %v3041_v12 = vrot.slane %v3030_v20, 6  ;;  %3907 = vmatpush.bf16.msrb.mxu1 %v7945_v35  ;;  %v3018_v10 = vsel %vm11452_vm1, %v11412_v40, %v3014_v49 }
 0x331   :  { %v7908_v2 = vld [vmem:[#allocation15 + $0x20] sm:$0xf]  ;;  %3920 = vmatpush.bf16.msrb.mxu2 %v7949_v48  ;;  %v7910_v1 = vld [vmem:[#allocation15 + $0x30] sm:$0xf0]  ;;  %3933 = vmatpush.bf16.msrb.mxu3 %v7953_v50  ;;  %v7897_v38 = vor.u32 %v9160_v31, %v7894_v8  ;;  %v9161_v42 = vld [vmem:[#allocation15 + $0xc] sm:$0xf]  ;;  %v7901_v48 = vor.u32 %v9163_v4, %v7900_v33 }
 0x332   :  { %9515 = vpow2.f32 %v7756_v7  ;;  %v11448_v39 = vsel %vm2701_vm11, %v3041_v12, %v11116_v60  ;;  %v9166_v60 = vld [vmem:[#allocation15 + $0x2c] sm:$0xf0]  ;;  %3895 = vmatpush.bf16.msrb.mxu0 %v7925_v59  ;;  %v7902_v12 = vld [vmem:[#allocation15 + $0x18] sm:$0xf0] }
 0x333   :  { %9517 = vpow2.f32 %v7757_v28  ;;  %v7909_v23 = vor.u32 %v9166_v60, %v7908_v2  ;;  %v7913_v28 = vor.u32 %v9164_v13, %v7910_v1  ;;  %v11511_v31 = vld [vmem:[%s12830_s7] ss:$0 sm:$0xff]  ;;  %v9222_v4 = vld [vmem:[%s12827_s4 + $0xec] sm:$0xf0] }
 0x334   :  { %9519 = vtanh.f32 %v3030_v20  ;;  %v11441_v41 = vpop.f32.mrf.mxu2  ;;  %v3292_v45 = vpop.f32.mrf.mxu3  ;;  %3908 = vmatpush.bf16.msrb.mxu1 %v7929_v5  ;;  %v3023_v20 = vsel %vm3020_vm2, %v3022_v53, %v3018_v10 }
 0x335   :  { %v3299_v52 = vadd.f32 %v3292_v45, %v3050_v25  ;;  %v3255_v55 = vpop.f32.mrf.mxu0  ;;  %v3268_v54 = vpop.f32.mrf.mxu1  ;;  %3921 = vmatpush.bf16.msrb.mxu2 %v7933_v46  ;;  %v7917_v25 = vor.u32 %v9167_v30, %v7916_v19  ;;  %3934 = vmatpush.bf16.msrb.mxu3 %v7937_v44  ;;  %v3049_v45 = vld [vmem:[#allocation3 + $0x30] sm:$0x3] }
 0x336   :  { %3896 = vmatpush.bf16.msrb.mxu0 %v7909_v23  ;;  %v3298_v61 = vadd.f32 %v11441_v41, %v3049_v45  ;;  %v7905_v54 = vor.u32 %v9161_v42, %v7902_v12  ;;  %v8143_v42 = vld [vmem:[%s12827_s4 + $0xe8] sm:$0xf]  ;;  %v9223_v12 = vld [vmem:[%s12827_s4 + $0xf4] sm:$0xf0] }
 0x337   :  { %v7758_v3 = vmul.f32 -1.442695, %v3299_v52 }
 0x338   :  { %v9516_v9 = vpop.eup %9515  ;;  %3909 = vmatpush.bf16.msrb.mxu1 %v7913_v28 }
 0x339   :  { %v9518_v16 = vpop.eup %9517  ;;  %v11459_v17 = vadd.f32 1.0, %v9516_v9  ;;  %9521 = vpow2.f32 %v7758_v3  ;;  %3922 = vmatpush.bf16.msrb.mxu2 %v7917_v25  ;;  %3935 = vmatpush.bf16.msrb.mxu3 %v7921_v34 }
 0x33a   :  { %v9520_v7 = vpop.eup %9519  ;;  %v11463_v40 = vadd.f32 1.0, %v9518_v16  ;;  %3897 = vmatpush.bf16.msrb.mxu0 %v7893_v62 }
 0x33b   :  { %9523 = vrcp.f32 %v11459_v17  ;;  %v3032_v18 = vmul.f32 %v9520_v7, %v3023_v20  ;;  %v3313_v24 = vand.u32 2147483647, %v11459_v17  ;;  %vm3309_vm5 = vweird.f32 %v11459_v17 }
 0x33c   :  { %9525 = vrcp.f32 %v11463_v40  ;;  %v3281_v29 = vpop.f32.mrf.mxu2  ;;  %v3294_v22 = vpop.f32.mrf.mxu3  ;;  %3910 = vmatpush.bf16.msrb.mxu1 %v7897_v38  ;;  %v3334_v59 = vand.u32 2147483648, %v11463_v40  ;;  %v3332_v0 = vand.u32 2147483647, %v11463_v40  ;;  %vm3328_vm6 = vweird.f32 %v11463_v40  ;;  %v8137_v38 = vld [vmem:[%s12827_s4 + $0xf0] sm:$0xf0] }
 0x33d   :  { %v3034_v37 = vrot.slane %v3032_v18, 6  ;;  %3923 = vmatpush.bf16.msrb.mxu2 %v7901_v48  ;;  %3936 = vmatpush.bf16.msrb.mxu3 %v7905_v54  ;;  %vm3314_vm9 = vcmp.eq.f32.partialorder %v3313_v24, 8.507059e+37  ;;  %v9221_v48 = vld [vmem:[%s12827_s4 + $0xec] sm:$0xf]  ;;  %v9218_v54 = vld [vmem:[%s12827_s4 + $0xcc] sm:$0xf0] }
 0x33e   :  { %v3335_v46 = vor.u32 1.1754944e-38, %v3334_v59  ;;  %vm3333_vm10 = vcmp.eq.f32.partialorder %v3332_v0, 8.507059e+37  ;;  %v9217_v59 = vld [vmem:[%s12827_s4 + $0xcc] sm:$0xf]  ;;  %v9214_v0 = vld [vmem:[%s12827_s4 + $0xac] sm:$0xf0] }
 0x33f   :  { %v9522_v35 = vpop.eup %9521  ;;  %v3036_v52 = vsel %vm2701_vm11, %v3034_v37, 0.0  ;;  %v11477_v55 = vsel %vm2701_vm11, %v3034_v37, %v11135_v43  ;;  %v3315_v43 = vand.u32 2147483648, %v11459_v17 }
 0x340   :  { %v11469_v49 = vadd.f32 1.0, %v9522_v35  ;;  %3038 = vst [vmem:[#allocation4 + $0x6] sm:$0x3] %v3036_v52  ;;  %v3374_v50 = vpack.c.bf16 %v11477_v55, %v11477_v55  ;;  %v9220_v35 = vld [vmem:[%s12827_s4 + $0xe4] sm:$0xf] }
 0x341   :  { %v9524_v51 = vpop.eup %9523  ;;  %v3316_v6 = vor.u32 1.1754944e-38, %v3315_v43  ;;  %v8140_v45 = vor.u32 %v9220_v35, %v8137_v38  ;;  %v8119_v52 = vld [vmem:[%s12827_s4 + $0xc0] sm:$0xf]  ;;  %v9205_v38 = vld [vmem:[%s12827_s4 + $0x6c] sm:$0xf] }
 0x342   :  { %v9526_v56 = vpop.eup %9525  ;;  %v3305_v57 = vmul.f32 %v9524_v51, %v11459_v17  ;;  %9527 = vrcp.f32 %v11469_v49  ;;  %vm3310_vm3 = vweird.f32 %v9524_v51  ;;  %3575 = vmatmul.bf16.vlgmr.msra.gmra.mxu0 %v3374_v50  ;;  %3588 = vmatmul.bf16.vlgmr.msra.gmra.mxu1 %v3374_v50  ;;  %v3045_v17 = vld [vmem:[#allocation10 + $0x8] sm:$0x3]  ;;  %vm3348_vm13 = vweird.f32 %v11469_v49 }
 0x343   :  { %v3324_v32 = vmul.f32 %v9526_v56, %v11463_v40  ;;  %9529 = vtanh.f32 %v3298_v61  ;;  %vm3329_vm4 = vweird.f32 %v9526_v56  ;;  %3601 = vmatmul.bf16.vlgmr.msra.gmra.mxu2 %v3374_v50  ;;  %3614 = vmatmul.bf16.vlgmr.msra.gmra.mxu3 %v3374_v50  ;;  %vm3311_vm7 = vmor %vm3309_vm5, %vm3310_vm3  ;;  %vm3046_vm11 = vcmp.gt.f32.partialorder %v3045_v17, 0.0  ;;  %v9219_v50 = vld [vmem:[%s12827_s4 + $0xd4] sm:$0xf0]  ;;  %v9208_v17 = vld [vmem:[%s12827_s4 + $0x84] sm:$0xf] }
 0x344   :  { %v3306_v41 = vsub.f32 1.0, %v3305_v57  ;;  %vm3330_vm8 = vmor %vm3328_vm6, %vm3329_vm4  ;;  %v3352_v26 = vand.u32 2147483647, %v11469_v49  ;;  %4247 = vmatpush.bf16.msra.mxu1 %v8140_v45  ;;  %v8120_v57 = vor.u32 %v9218_v54, %v8119_v52  ;;  %v8057_v52 = vld [vmem:[%s12827_s4 + $0x50] sm:$0xf0] }
 0x345   :  { %v3325_v21 = vsub.f32 1.0, %v3324_v32  ;;  %v8121_v32 = vld [vmem:[%s12827_s4 + $0xd0] sm:$0xf0] }
 0x346   :  { %v3307_v58 = vmul.f32 %v9524_v51, %v3306_v41  ;;  %vm3353_vm0 = vcmp.eq.f32.partialorder %v3352_v26, 8.507059e+37  ;;  %v8127_v41 = vld [vmem:[%s12827_s4 + $0xc8] sm:$0xf] }
 0x347   :  { %v3326_v11 = vmul.f32 %v9526_v56, %v3325_v21  ;;  %v6073_v10 = vld [vmem:[#allocation4 + $0x6] sm:$0x3]  ;;  %v8128_v43 = vor.u32 %v9219_v50, %v8127_v41  ;;  %v9201_v41 = vld [vmem:[%s12827_s4 + $0x4c] sm:$0xf]  ;;  %v3373_v50 = vld [vmem:[#allocation2 + $0x38] sm:$0x3] }
 0x348   :  { %v9528_v3 = vpop.eup %9527  ;;  %v3308_v5 = vadd.f32 %v9524_v51, %v3307_v58  ;;  %v6093_v13 = vmul.f32 %v11150_v63, %v6073_v10  ;;  %v3354_v63 = vand.u32 2147483648, %v11469_v49  ;;  %v8129_v58 = vld [vmem:[%s12827_s4 + $0xd8] sm:$0xf0] }
 0x349   :  { %v3327_v2 = vadd.f32 %v9526_v56, %v3326_v11  ;;  %v3344_v9 = vmul.f32 %v9528_v3, %v11469_v49  ;;  %v9530_v1 = vpop.eup %9529  ;;  %vm3349_vm12 = vweird.f32 %v9528_v3  ;;  %v8144_v49 = vor.u32 %v9223_v12, %v8143_v42  ;;  %v8103_v11 = vld [vmem:[%s12827_s4 + $0xa0] sm:$0xf]  ;;  %v8081_v42 = vld [vmem:[%s12827_s4 + $0x78] sm:$0xf0] }
 0x34a   :  { %v3312_v60 = vsel %vm3311_vm7, %v9524_v51, %v3308_v5  ;;  %v6108_v7 = vsel %vm6098_vm14, %v6093_v13, 0.0  ;;  %vm3350_vm15 = vmor %vm3348_vm13, %vm3349_vm12  ;;  %v3355_v22 = vor.u32 1.1754944e-38, %v3354_v63  ;;  %v8145_v51 = vld [vmem:[%s12827_s4 + $0xf8] sm:$0xf0]  ;;  %v8132_v24 = vor.u32 %v9217_v59, %v8129_v58  ;;  %v3371_v63 = vld [vmem:[#allocation2 + $0x20] sm:$0x3] }
 0x34b   :  { %v3317_v16 = vsel %vm3314_vm9, %v3316_v6, %v3312_v60  ;;  %v3331_v44 = vsel %vm3330_vm8, %v9526_v56, %v3327_v2  ;;  %v3345_v23 = vsub.f32 1.0, %v3344_v9  ;;  %6109 = vadd.xlane.f32.xlu1 %v6108_v7  ;;  %v8148_v61 = vor.u32 %v9221_v48, %v8145_v51  ;;  %4260 = vmatpush.bf16.msra.mxu2 %v8144_v49  ;;  %v9216_v56 = vld [vmem:[%s12827_s4 + $0xc4] sm:$0xf]  ;;  %v8105_v6 = vld [vmem:[%s12827_s4 + $0xb0] sm:$0xf0] }
 0x34c   :  { %v3336_v19 = vsel %vm3333_vm10, %v3335_v46, %v3331_v44  ;;  %v3359_v30 = vmul.f32 %v9530_v1, %v3317_v16  ;;  %v8124_v21 = vor.u32 %v9216_v56, %v8121_v32  ;;  %v8104_v5 = vor.u32 %v9214_v0, %v8103_v11  ;;  %v8111_v2 = vld [vmem:[%s12827_s4 + $0xa8] sm:$0xf]  ;;  %v9215_v9 = vld [vmem:[%s12827_s4 + $0xb4] sm:$0xf0]  ;;  %v9213_v60 = vld [vmem:[%s12827_s4 + $0xac] sm:$0xf] }
 0x34d   :  { %v3358_v53 = vmul.f32 %v3336_v19, %v11164_v36  ;;  %v3346_v40 = vmul.f32 %v9528_v3, %v3345_v23  ;;  %4273 = vmatpush.bf16.msra.mxu3 %v8148_v61  ;;  %v8112_v46 = vor.u32 %v9215_v9, %v8111_v2  ;;  %v8113_v13 = vld [vmem:[%s12827_s4 + $0xb8] sm:$0xf0]  ;;  %v8087_v16 = vld [vmem:[%s12827_s4 + $0x80] sm:$0xf]  ;;  %v9210_v44 = vld [vmem:[%s12827_s4 + $0x8c] sm:$0xf0]  ;;  %v8084_v12 = vor.u32 %v9205_v38, %v8081_v42 }
 0x34e   :  { %4248 = vmatpush.bf16.msra.mxu1 %v8124_v21  ;;  %v8116_v1 = vor.u32 %v9213_v60, %v8113_v13  ;;  %v8088_v23 = vor.u32 %v9210_v44, %v8087_v16  ;;  %v8089_v19 = vld [vmem:[%s12827_s4 + $0x90] sm:$0xf0]  ;;  %v8055_v48 = vld [vmem:[%s12827_s4 + $0x40] sm:$0xf]  ;;  %v9202_v51 = vld [vmem:[%s12827_s4 + $0x4c] sm:$0xf0] }
 0x34f   :  { %v3360_v15 = vadd.f32 %v3359_v30, %v3358_v53  ;;  %v3347_v27 = vadd.f32 %v9528_v3, %v3346_v40  ;;  %4261 = vmatpush.bf16.msra.mxu2 %v8128_v43  ;;  %v8095_v30 = vld [vmem:[%s12827_s4 + $0x88] sm:$0xf]  ;;  %v8092_v7 = vor.u32 %v9208_v17, %v8089_v19  ;;  %v9211_v53 = vld [vmem:[%s12827_s4 + $0x94] sm:$0xf0]  ;;  %v9209_v40 = vld [vmem:[%s12827_s4 + $0x8c] sm:$0xf]  ;;  %v8056_v54 = vor.u32 %v9202_v51, %v8055_v48 }
 0x350   :  { %v8096_v26 = vor.u32 %v9211_v53, %v8095_v30  ;;  %v9200_v61 = vld [vmem:[%s12827_s4 + $0x44] sm:$0xf]  ;;  %v9203_v32 = vld [vmem:[%s12827_s4 + $0x54] sm:$0xf0]  ;;  %v8065_v43 = vld [vmem:[%s12827_s4 + $0x58] sm:$0xf0] }
 0x351   :  { %9531 = vtanh.f32 %v3360_v15  ;;  %v11497_v28 = vsel %vm3046_vm11, %v3360_v15, %v11164_v36  ;;  %v3351_v29 = vsel %vm3350_vm15, %v9528_v3, %v3347_v27  ;;  %v9212_v3 = vld [vmem:[%s12827_s4 + $0xa4] sm:$0xf]  ;;  %4274 = vmatpush.bf16.msra.mxu3 %v8132_v24  ;;  %v8097_v15 = vld [vmem:[%s12827_s4 + $0x98] sm:$0xf0]  ;;  %v3370_v27 = vld [vmem:[#allocation2 + $0x8] sm:$0x3]  ;;  %v8060_v56 = vor.u32 %v9200_v61, %v8057_v52 }
 0x352   :  { %v3356_v25 = vsel %vm3353_vm0, %v3355_v22, %v3351_v29  ;;  %v8108_v10 = vor.u32 %v9212_v3, %v8105_v6  ;;  %v8100_v29 = vor.u32 %v9209_v40, %v8097_v15  ;;  %v8071_v22 = vld [vmem:[%s12827_s4 + $0x60] sm:$0xf]  ;;  %v8068_v24 = vor.u32 %v9201_v41, %v8065_v43  ;;  %v9198_v0 = vld [vmem:[%s12827_s4 + $0x2c] sm:$0xf0]  ;;  %v9196_v3 = vld [vmem:[%s12827_s4 + $0x24] sm:$0xf] }
 0x353   :  { %4262 = vmatpush.bf16.msra.mxu2 %v8112_v46  ;;  %v8039_v11 = vld [vmem:[%s12827_s4 + $0x20] sm:$0xf]  ;;  %v8047_v46 = vld [vmem:[%s12827_s4 + $0x28] sm:$0xf]  ;;  %v9199_v60 = vld [vmem:[%s12827_s4 + $0x34] sm:$0xf0] }
 0x354   :  { %4249 = vmatpush.bf16.msra.mxu1 %v8108_v10  ;;  %v8040_v9 = vor.u32 %v9198_v0, %v8039_v11  ;;  %v8041_v10 = vld [vmem:[%s12827_s4 + $0x30] sm:$0xf0]  ;;  %v9197_v16 = vld [vmem:[%s12827_s4 + $0x2c] sm:$0xf]  ;;  %v8049_v44 = vld [vmem:[%s12827_s4 + $0x38] sm:$0xf0] }
 0x355   :  { %4275 = vmatpush.bf16.msra.mxu3 %v8116_v1  ;;  %v8044_v13 = vor.u32 %v9196_v3, %v8041_v10  ;;  %v8048_v1 = vor.u32 %v9199_v60, %v8047_v46  ;;  %v8052_v17 = vor.u32 %v9197_v16, %v8049_v44  ;;  %v8023_v30 = vld [vmem:[%s12827_s4] sm:$0xf]  ;;  %v9192_v53 = vld [vmem:[%s12827_s4 + $0x4] sm:$0xf]  ;;  %v9254_v42 = vld [vmem:[#allocation15 + $0xec] sm:$0xf0] }
 0x356   :  { %v8266_v38 = vld [vmem:[#allocation15 + $0xe0] sm:$0xf]  ;;  %v8268_v48 = vld [vmem:[#allocation15 + $0xf0] sm:$0xf0]  ;;  %v8274_v52 = vld [vmem:[#allocation15 + $0xe8] sm:$0xf] }
 0x357   :  { %v9532_v20 = vpop.eup %9531  ;;  %4263 = vmatpush.bf16.msra.mxu2 %v8096_v26  ;;  %v8031_v26 = vld [vmem:[%s12827_s4 + $0x8] sm:$0xf]  ;;  %v8276_v41 = vld [vmem:[#allocation15 + $0xf8] sm:$0xf0]  ;;  %v3693_v16 = vld [vmem:[#allocation3] sm:$0xc0] }
 0x358   :  { %v3362_v14 = vmul.f32 %v9532_v20, %v3356_v25  ;;  %4250 = vmatpush.bf16.msra.mxu1 %v8092_v7  ;;  %v9206_v20 = vld [vmem:[%s12827_s4 + $0x6c] sm:$0xf0]  ;;  %v9204_v25 = vld [vmem:[%s12827_s4 + $0x64] sm:$0xf] }
 0x359   :  { %4276 = vmatpush.bf16.msra.mxu3 %v8100_v29  ;;  %v9194_v7 = vld [vmem:[%s12827_s4 + $0xc] sm:$0xf0] }
 0x35a   :  { %v3363_v18 = vsel %vm3046_vm11, %v3362_v14, 0.0  ;;  %v11504_v34 = vsel %vm3046_vm11, %v3362_v14, %v11169_v47  ;;  %v8135_v47 = vld [vmem:[%s12827_s4 + $0xe0] sm:$0xf] }
 0x35b   :  { %3365 = vst [vmem:[#allocation5 + $0x8] sm:$0x3] %v3363_v18  ;;  %v3697_v36 = vpack.c.bf16 %v11504_v34, %v11504_v34  ;;  %v8136_v37 = vor.u32 %v9222_v4, %v8135_v47 }
 0x35d   :  { %3898 = vmatmul.bf16.vlgmr.msrb.gmra.mxu0 %v3697_v36  ;;  %3911 = vmatmul.bf16.vlgmr.msrb.gmra.mxu1 %v3697_v36 }
 0x35e   :  { %3924 = vmatmul.bf16.vlgmr.msrb.gmra.mxu2 %v3697_v36  ;;  %3937 = vmatmul.bf16.vlgmr.msrb.gmra.mxu3 %v3697_v36  ;;  %v8072_v36 = vor.u32 %v9206_v20, %v8071_v22  ;;  %v9195_v20 = vld [vmem:[%s12827_s4 + $0x14] sm:$0xf0] }
 0x35f   :  { %4234 = vmatpush.bf16.msra.mxu0 %v8136_v37  ;;  %4277 = vmatpush.bf16.msra.mxu3 %v8084_v12 }
 0x362   :  { %v6082_v8 = vld [vmem:[#allocation5 + $0x8] sm:$0x3] }
 0x363   :  { %v6131_v62 = vmul.f32 %v11511_v31, %v6082_v8  ;;  %4235 = vmatpush.bf16.msra.mxu0 %v8120_v57  ;;  %v8073_v8 = vld [vmem:[%s12827_s4 + $0x70] sm:$0xf0]  ;;  %v8063_v57 = vld [vmem:[%s12827_s4 + $0x48] sm:$0xf]  ;;  %4278 = vmatpush.bf16.msra.mxu3 %v8068_v24 }
 0x364   :  { %v8076_v35 = vor.u32 %v9204_v25, %v8073_v8  ;;  %v8064_v21 = vor.u32 %v9203_v32, %v8063_v57  ;;  %v9193_v25 = vld [vmem:[%s12827_s4 + $0xc] sm:$0xf]  ;;  %v9248_v24 = vld [vmem:[#allocation15 + $0xc4] sm:$0xf] }
 0x365   :  { %v6147_v33 = vsel %vm6098_vm14, %v6131_v62, 0.0  ;;  %v8079_v62 = vld [vmem:[%s12827_s4 + $0x68] sm:$0xf] }
 0x366   :  { %6148 = vadd.xlane.f32.xlu0 %v6147_v33  ;;  %v9207_v33 = vld [vmem:[%s12827_s4 + $0x74] sm:$0xf0]  ;;  %4251 = vmatpush.bf16.msra.mxu1 %v8076_v35  ;;  %v8032_v35 = vor.u32 %v9195_v20, %v8031_v26  ;;  %v8234_v26 = vld [vmem:[#allocation15 + $0xa0] sm:$0xf] }
 0x367   :  { %4236 = vmatpush.bf16.msra.mxu0 %v8104_v5  ;;  %v8080_v37 = vor.u32 %v9207_v33, %v8079_v62  ;;  %4279 = vmatpush.bf16.msra.mxu3 %v8052_v17 }
 0x369   :  { %4264 = vmatpush.bf16.msra.mxu2 %v8080_v37 }
 0x36a   :  { %4252 = vmatpush.bf16.msra.mxu1 %v8060_v56  ;;  %v9253_v56 = vld [vmem:[#allocation15 + $0xec] sm:$0xf] }
 0x36b   :  { %4237 = vmatpush.bf16.msra.mxu0 %v8088_v23  ;;  %v8279_v43 = vor.u32 %v9253_v56, %v8276_v41  ;;  %v8218_v56 = vld [vmem:[#allocation15 + $0x80] sm:$0xf] }
 0x36d   :  { %4265 = vmatpush.bf16.msra.mxu2 %v8064_v21  ;;  %v11721_v21 = vld [vmem:[#allocation10 + $0x8] sm:$0x3] }
 0x36e   :  { %4253 = vmatpush.bf16.msra.mxu1 %v8044_v13  ;;  %v9249_v13 = vld [vmem:[#allocation15 + $0xcc] sm:$0xf]  ;;  %vm3369_vm4 = vcmp.gt.f32.partialorder %v11721_v21, 0.0 }
 0x36f   :  { %4238 = vmatpush.bf16.msra.mxu0 %v8072_v36 }
 0x371   :  { %4266 = vmatpush.bf16.msra.mxu2 %v8048_v1 }
 0x373   :  { %4239 = vmatpush.bf16.msra.mxu0 %v8056_v54  ;;  %v9255_v54 = vld [vmem:[#allocation15 + $0xf4] sm:$0xf0] }
 0x374   :  { %v8275_v32 = vor.u32 %v9255_v54, %v8274_v52 }
 0x375   :  { %4267 = vmatpush.bf16.msra.mxu2 %v8032_v35  ;;  %v9247_v35 = vld [vmem:[#allocation15 + $0xb4] sm:$0xf0] }
 0x377   :  { %4240 = vmatpush.bf16.msra.mxu0 %v8040_v9 }
 0x379   :  { %4604 = vmatpush.bf16.msrb.mxu2 %v8275_v32  ;;  %v9242_v32 = vld [vmem:[#allocation15 + $0x8c] sm:$0xf0] }
 0x3bf   :  { %v3576_v14 = vpop.f32.mrf.mxu0  ;;  %v3589_v18 = vpop.f32.mrf.mxu1 }
 0x3c0   :  { %v3619_v47 = vadd.f32 %v3576_v14, %v3370_v27  ;;  %v3620_v4 = vadd.f32 %v3589_v18, %v3371_v63  ;;  %v8024_v27 = vor.u32 %v9194_v7, %v8023_v30  ;;  %v8025_v63 = vld [vmem:[%s12827_s4 + $0x10] sm:$0xf0]  ;;  %v3372_v14 = vld [vmem:[#allocation2 + $0x28] sm:$0x3]  ;;  %v8033_v18 = vld [vmem:[%s12827_s4 + $0x18] sm:$0xf0] }
 0x3c1   :  { %v8028_v22 = vor.u32 %v9192_v53, %v8025_v63  ;;  %v8036_v37 = vor.u32 %v9193_v25, %v8033_v18  ;;  %v8260_v7 = vld [vmem:[#allocation15 + $0xd8] sm:$0xf0]  ;;  %v9244_v18 = vld [vmem:[#allocation15 + $0xa4] sm:$0xf] }
 0x3c2   :  { %v7887_v45 = vmul.f32 -1.442695, %v3619_v47  ;;  %v7888_v49 = vmul.f32 -1.442695, %v3620_v4  ;;  %4241 = vmatpush.bf16.msra.mxu0 %v8024_v27  ;;  %v3694_v63 = vld [vmem:[#allocation3 + $0x18] sm:$0xc0]  ;;  %v8263_v25 = vor.u32 %v9249_v13, %v8260_v7 }
 0x3c3   :  { %4254 = vmatpush.bf16.msra.mxu1 %v8028_v22  ;;  %4280 = vmatpush.bf16.msra.mxu3 %v8036_v37  ;;  %v9243_v13 = vld [vmem:[#allocation15 + $0x94] sm:$0xf0] }
 0x3c4   :  { %9533 = vpow2.f32 %v7887_v45  ;;  %v8267_v45 = vor.u32 %v9254_v42, %v8266_v38 }
 0x3c5   :  { %9535 = vpow2.f32 %v7888_v49  ;;  %v9252_v49 = vld [vmem:[#allocation15 + $0xe4] sm:$0xf] }
 0x3c6   :  { %v3602_v59 = vpop.f32.mrf.mxu2  ;;  %v3615_v58 = vpop.f32.mrf.mxu3  ;;  %v8271_v61 = vor.u32 %v9252_v49, %v8268_v48  ;;  %4578 = vmatpush.bf16.msrb.mxu0 %v8267_v45  ;;  %v9245_v49 = vld [vmem:[#allocation15 + $0xac] sm:$0xf]  ;;  %v8244_v48 = vld [vmem:[#allocation15 + $0xb8] sm:$0xf0] }
 0x3c7   :  { %v3622_v5 = vadd.f32 %v3615_v58, %v3373_v50  ;;  %v3578_v6 = vpop.f32.mrf.mxu0  ;;  %v3591_v2 = vpop.f32.mrf.mxu1  ;;  %v3621_v36 = vadd.f32 %v3602_v59, %v3372_v14  ;;  %v8250_v59 = vld [vmem:[#allocation15 + $0xc0] sm:$0xf]  ;;  %v9250_v58 = vld [vmem:[#allocation15 + $0xcc] sm:$0xf0]  ;;  %4617 = vmatpush.bf16.msrb.mxu3 %v8279_v43  ;;  %v8247_v43 = vor.u32 %v9245_v49, %v8244_v48 }
 0x3c8   :  { %4591 = vmatpush.bf16.msrb.mxu1 %v8271_v61  ;;  %v8258_v6 = vld [vmem:[#allocation15 + $0xc8] sm:$0xf]  ;;  %v9251_v2 = vld [vmem:[#allocation15 + $0xd4] sm:$0xf0]  ;;  %v8251_v17 = vor.u32 %v9250_v58, %v8250_v59  ;;  %v9246_v14 = vld [vmem:[#allocation15 + $0xac] sm:$0xf0]  ;;  %v8219_v59 = vor.u32 %v9242_v32, %v8218_v56 }
 0x3c9   :  { %v7889_v23 = vmul.f32 -1.442695, %v3622_v5  ;;  %v8252_v5 = vld [vmem:[#allocation15 + $0xd0] sm:$0xf0]  ;;  %v8259_v30 = vor.u32 %v9251_v2, %v8258_v6  ;;  %v9240_v58 = vld [vmem:[#allocation15 + $0x84] sm:$0xf] }
 0x3ca   :  { %v9534_v19 = vpop.eup %9533  ;;  %4579 = vmatpush.bf16.msrb.mxu0 %v8251_v17  ;;  %v8228_v17 = vld [vmem:[#allocation15 + $0x98] sm:$0xf0]  ;;  %v9235_v32 = vld [vmem:[#allocation15 + $0x54] sm:$0xf0] }
 0x3cb   :  { %v9536_v40 = vpop.eup %9535  ;;  %v11692_v15 = vadd.f32 1.0, %v9534_v19  ;;  %9537 = vpow2.f32 %v7889_v23  ;;  %v8255_v19 = vor.u32 %v9248_v24, %v8252_v5  ;;  %4605 = vmatpush.bf16.msrb.mxu2 %v8259_v30  ;;  %4618 = vmatpush.bf16.msrb.mxu3 %v8263_v25  ;;  %v8220_v24 = vld [vmem:[#allocation15 + $0x90] sm:$0xf0]  ;;  %v8210_v25 = vld [vmem:[#allocation15 + $0x68] sm:$0xf] }
 0x3cc   :  { %v11700_v29 = vadd.f32 1.0, %v9536_v40 }
 0x3cd   :  { %9539 = vrcp.f32 %v11692_v15  ;;  %v3636_v8 = vand.u32 2147483647, %v11692_v15  ;;  %v3638_v4 = vand.u32 2147483648, %v11692_v15  ;;  %vm3632_vm3 = vweird.f32 %v11692_v15  ;;  %4592 = vmatpush.bf16.msrb.mxu1 %v8255_v19 }
 0x3ce   :  { %9541 = vrcp.f32 %v11700_v29  ;;  %v3604_v62 = vpop.f32.mrf.mxu2  ;;  %v3617_v33 = vpop.f32.mrf.mxu3  ;;  %v3657_v47 = vand.u32 2147483648, %v11700_v29  ;;  %v3655_v12 = vand.u32 2147483647, %v11700_v29  ;;  %vm3651_vm7 = vweird.f32 %v11700_v29 }
 0x3cf   :  { %9543 = vtanh.f32 %v3621_v36  ;;  %vm11727_vm1 = vcmp.eq.f32.partialorder %v3636_v8, 8.507059e+37  ;;  %v3639_v46 = vor.u32 1.1754944e-38, %v3638_v4  ;;  %v8235_v33 = vor.u32 %v9246_v14, %v8234_v26  ;;  %v8242_v4 = vld [vmem:[#allocation15 + $0xa8] sm:$0xf]  ;;  %4619 = vmatpush.bf16.msrb.mxu3 %v8247_v43 }
 0x3d0   :  { %v11734_v10 = vor.u32 1.1754944e-38, %v3657_v47  ;;  %vm11736_vm2 = vcmp.eq.f32.partialorder %v3655_v12, 8.507059e+37  ;;  %v8236_v47 = vld [vmem:[#allocation15 + $0xb0] sm:$0xf0]  ;;  %v8243_v45 = vor.u32 %v9247_v35, %v8242_v4 }
 0x3d1   :  { %v9538_v51 = vpop.eup %9537  ;;  %v8239_v12 = vor.u32 %v9244_v18, %v8236_v47  ;;  %4580 = vmatpush.bf16.msrb.mxu0 %v8235_v33  ;;  %v8212_v33 = vld [vmem:[#allocation15 + $0x78] sm:$0xf0] }
 0x3d2   :  { %v11717_v57 = vadd.f32 1.0, %v9538_v51  ;;  %4606 = vmatpush.bf16.msrb.mxu2 %v8243_v45  ;;  %v8188_v51 = vld [vmem:[#allocation15 + $0x50] sm:$0xf0] }
 0x3d3   :  { %v11719_v50 = vpop.eup %9539  ;;  %4593 = vmatpush.bf16.msrb.mxu1 %v8239_v12  ;;  %v9232_v12 = vld [vmem:[#allocation15 + $0x44] sm:$0xf] }
 0x3d4   :  { %v11723_v11 = vpop.eup %9541  ;;  %v3628_v0 = vmul.f32 %v11719_v50, %v11692_v15  ;;  %9545 = vrcp.f32 %v11717_v57  ;;  %v3675_v40 = vand.u32 2147483647, %v11717_v57  ;;  %vm3633_vm5 = vweird.f32 %v11719_v50 }
 0x3d5   :  { %v3647_v9 = vmul.f32 %v11723_v11, %v11700_v29  ;;  %v9544_v36 = vpop.eup %9543  ;;  %vm3652_vm6 = vweird.f32 %v11723_v11  ;;  %vm11755_vm8 = vmor %vm3632_vm3, %vm3633_vm5  ;;  %v3677_v3 = vand.u32 2147483648, %v11717_v57  ;;  %4581 = vmatpush.bf16.msrb.mxu0 %v8219_v59  ;;  %vm3671_vm11 = vweird.f32 %v11717_v57  ;;  %v9233_v29 = vld [vmem:[#allocation15 + $0x4c] sm:$0xf] }
 0x3d6   :  { %v3629_v1 = vsub.f32 1.0, %v3628_v0  ;;  %vm11764_vm9 = vmor %vm3651_vm7, %vm3652_vm6  ;;  %v8191_v59 = vor.u32 %v9232_v12, %v8188_v51  ;;  %vm3676_vm13 = vcmp.eq.f32.partialorder %v3675_v40, 8.507059e+37 }
 0x3d7   :  { %v3648_v53 = vsub.f32 1.0, %v3647_v9 }
 0x3d8   :  { %v3630_v22 = vmul.f32 %v11719_v50, %v3629_v1 }
 0x3d9   :  { %v3649_v8 = vmul.f32 %v11723_v11, %v3648_v53  ;;  %v8223_v53 = vor.u32 %v9240_v58, %v8220_v24  ;;  %v8196_v58 = vld [vmem:[#allocation15 + $0x58] sm:$0xf0]  ;;  %v8170_v24 = vld [vmem:[#allocation15 + $0x20] sm:$0xf] }
 0x3da   :  { %v3899_v44 = vpop.f32.mrf.mxu0  ;;  %v3912_v23 = vpop.f32.mrf.mxu1  ;;  %v3631_v38 = vadd.f32 %v11719_v50, %v3630_v22  ;;  %v9236_v22 = vld [vmem:[#allocation15 + $0x64] sm:$0xf] }
 0x3db   :  { %v3946_v27 = vrot.slane %v3899_v44, 2  ;;  %v3947_v20 = vrot.slane %v3912_v23, 2  ;;  %v11747_v37 = vpop.eup %9545  ;;  %v3650_v61 = vadd.f32 %v11723_v11, %v3649_v8  ;;  %4594 = vmatpush.bf16.msrb.mxu1 %v8223_v53  ;;  %v9239_v8 = vld [vmem:[#allocation15 + $0x74] sm:$0xf0]  ;;  %v8154_v53 = vld [vmem:[#allocation15] sm:$0xf] }
 0x3dc   :  { %v3667_v52 = vmul.f32 %v11747_v37, %v11717_v57  ;;  %v3635_v15 = vsel %vm11755_vm8, %v11719_v50, %v3631_v38  ;;  %v8226_v50 = vld [vmem:[#allocation15 + $0x88] sm:$0xf]  ;;  %vm3672_vm10 = vweird.f32 %v11747_v37  ;;  %v8211_v4 = vor.u32 %v9239_v8, %v8210_v25  ;;  %v8186_v38 = vld [vmem:[#allocation15 + $0x40] sm:$0xf]  ;;  %v9226_v57 = vld [vmem:[#allocation15 + $0xc] sm:$0xf0] }
 0x3dd   :  { %v3954_v62 = vadd.f32 %v3946_v27, %v3693_v16  ;;  %v3955_v42 = vadd.f32 %v3947_v20, %v3694_v63  ;;  %v3640_v0 = vsel %vm11727_vm1, %v3639_v46, %v3635_v15  ;;  %v3654_v5 = vsel %vm11764_vm9, %v11723_v11, %v3650_v61  ;;  %v3696_v46 = vld [vmem:[#allocation3 + $0x20] sm:$0xc0]  ;;  %v9241_v11 = vld [vmem:[#allocation15 + $0x8c] sm:$0xf]  ;;  %v8202_v27 = vld [vmem:[#allocation15 + $0x60] sm:$0xf] }
 0x3de   :  { %v3668_v6 = vsub.f32 1.0, %v3667_v52  ;;  %v3659_v1 = vsel %vm11736_vm2, %v11734_v10, %v3654_v5  ;;  %v3682_v16 = vmul.f32 %v9544_v36, %v3640_v0  ;;  %v9238_v63 = vld [vmem:[#allocation15 + $0x6c] sm:$0xf0]  ;;  %v8227_v10 = vor.u32 %v9243_v13, %v8226_v50  ;;  %v8204_v20 = vld [vmem:[#allocation15 + $0x70] sm:$0xf0]  ;;  %vm11796_vm12 = vmor %vm3671_vm11, %vm3672_vm10 }
 0x3df   :  { %v8018_v54 = vmul.f32 -1.442695, %v3954_v62  ;;  %v8019_v41 = vmul.f32 -1.442695, %v3955_v42  ;;  %v3681_v19 = vmul.f32 %v3659_v1, %v11448_v39  ;;  %v8231_v60 = vor.u32 %v9241_v11, %v8228_v17  ;;  %v9237_v62 = vld [vmem:[#allocation15 + $0x6c] sm:$0xf] }
 0x3e0   :  { %v3669_v30 = vmul.f32 %v11747_v37, %v3668_v6  ;;  %v8203_v26 = vor.u32 %v9238_v63, %v8202_v27  ;;  %v8207_v36 = vor.u32 %v9236_v22, %v8204_v20  ;;  %4607 = vmatpush.bf16.msrb.mxu2 %v8227_v10  ;;  %v8215_v35 = vor.u32 %v9237_v62, %v8212_v33  ;;  %v9234_v42 = vld [vmem:[#allocation15 + $0x4c] sm:$0xf0]  ;;  %v8194_v61 = vld [vmem:[#allocation15 + $0x48] sm:$0xf]  ;;  %v9228_v13 = vld [vmem:[#allocation15 + $0x24] sm:$0xf] }
 0x3e1   :  { %9547 = vpow2.f32 %v8018_v54  ;;  %v11776_v2 = vpop.f32.mrf.mxu2  ;;  %v3938_v9 = vpop.f32.mrf.mxu3  ;;  %v3683_v14 = vadd.f32 %v3682_v16, %v3681_v19  ;;  %4620 = vmatpush.bf16.msrb.mxu3 %v8231_v60  ;;  %v8187_v56 = vor.u32 %v9234_v42, %v8186_v38  ;;  %v8195_v5 = vor.u32 %v9235_v32, %v8194_v61  ;;  %v9230_v6 = vld [vmem:[#allocation15 + $0x2c] sm:$0xf0]  ;;  %v8172_v16 = vld [vmem:[#allocation15 + $0x30] sm:$0xf0]  ;;  %v9231_v19 = vld [vmem:[#allocation15 + $0x34] sm:$0xf0] }
 0x3e2   :  { %9549 = vpow2.f32 %v8019_v41  ;;  %v3901_v44 = vpop.f32.mrf.mxu0  ;;  %v3914_v23 = vpop.f32.mrf.mxu1  ;;  %v3949_v7 = vrot.slane %v3938_v9, 2  ;;  %v3670_v47 = vadd.f32 %v11747_v37, %v3669_v30  ;;  %4582 = vmatpush.bf16.msrb.mxu0 %v8203_v26  ;;  %4595 = vmatpush.bf16.msrb.mxu1 %v8207_v36  ;;  %v3678_v9 = vor.u32 1.1754944e-38, %v3677_v3  ;;  %v9229_v3 = vld [vmem:[#allocation15 + $0x2c] sm:$0xf]  ;;  %v9224_v10 = vld [vmem:[#allocation15 + $0x4] sm:$0xf] }
 0x3e3   :  { %9551 = vtanh.f32 %v3683_v14  ;;  %v11789_v49 = vsel %vm3369_vm4, %v3683_v14, %v11448_v39  ;;  %v3948_v50 = vrot.slane %v11776_v2, 2  ;;  %v8199_v1 = vor.u32 %v9233_v29, %v8196_v58  ;;  %v3695_v23 = vld [vmem:[#allocation3 + $0x10] sm:$0xc0]  ;;  %v8162_v26 = vld [vmem:[#allocation15 + $0x8] sm:$0xf] }
 0x3e4   :  { %v3957_v18 = vadd.f32 %v3949_v7, %v3696_v46  ;;  %v3674_v0 = vsel %vm11796_vm12, %v11747_v37, %v3670_v47  ;;  %4608 = vmatpush.bf16.msrb.mxu2 %v8211_v4  ;;  %v8171_v37 = vor.u32 %v9230_v6, %v8170_v24  ;;  %v8178_v46 = vld [vmem:[#allocation15 + $0x28] sm:$0xf]  ;;  %v8175_v17 = vor.u32 %v9228_v13, %v8172_v16  ;;  %v8180_v7 = vld [vmem:[#allocation15 + $0x38] sm:$0xf0]  ;;  %v8156_v60 = vld [vmem:[#allocation15 + $0x10] sm:$0xf0] }
 0x3e5   :  { %4621 = vmatpush.bf16.msrb.mxu3 %v8215_v35  ;;  %v3679_v11 = vsel %vm3676_vm13, %v3678_v9, %v3674_v0  ;;  %v8179_v2 = vor.u32 %v9231_v19, %v8178_v46  ;;  %v3956_v27 = vadd.f32 %v3948_v50, %v3695_v23  ;;  %v8183_v63 = vor.u32 %v9229_v3, %v8180_v7  ;;  %v9227_v36 = vld [vmem:[#allocation15 + $0x14] sm:$0xf0]  ;;  %v9225_v8 = vld [vmem:[#allocation15 + $0xc] sm:$0xf]  ;;  %v8164_v35 = vld [vmem:[#allocation15 + $0x18] sm:$0xf0] }
 0x3e6   :  { %v8020_v48 = vmul.f32 -1.442695, %v3957_v18  ;;  %4583 = vmatpush.bf16.msrb.mxu0 %v8187_v56  ;;  %4596 = vmatpush.bf16.msrb.mxu1 %v8191_v59  ;;  %v8155_v18 = vor.u32 %v9226_v57, %v8154_v53  ;;  %v8159_v4 = vor.u32 %v9224_v10, %v8156_v60  ;;  %v8167_v42 = vor.u32 %v9225_v8, %v8164_v35  ;;  %v11836_v0 = vld [vmem:[%s12829_s6] ss:$0 sm:$0xff]  ;;  %v3691_v46 = vld [vmem:[#allocation10 + $0x6] sm:$0x3] }
 0x3e7   :  { %v9548_v45 = vpop.eup %9547  ;;  %vm3692_vm8 = vcmp.gt.f32.partialorder %v3691_v46, 0.0  ;;  %v9287_v8 = vld [vmem:[%s12827_s4 + $0xf4] sm:$0xf0] }
 0x3e8   :  { %v9550_v52 = vpop.eup %9549  ;;  %v11792_v54 = vadd.f32 1.0, %v9548_v45  ;;  %9553 = vpow2.f32 %v8020_v48  ;;  %4609 = vmatpush.bf16.msrb.mxu2 %v8195_v5 }
 0x3e9   :  { %v11800_v39 = vadd.f32 1.0, %v9550_v52  ;;  %v3927_v41 = vpop.f32.mrf.mxu2  ;;  %v3940_v43 = vpop.f32.mrf.mxu3  ;;  %4622 = vmatpush.bf16.msrb.mxu3 %v8199_v1 }
 0x3ea   :  { %9555 = vrcp.f32 %v11792_v54  ;;  %v9552_v44 = vpop.eup %9551  ;;  %4584 = vmatpush.bf16.msrb.mxu0 %v8171_v37  ;;  %4597 = vmatpush.bf16.msrb.mxu1 %v8175_v17  ;;  %v3971_v45 = vand.u32 2147483647, %v11792_v54  ;;  %v3973_v48 = vand.u32 2147483648, %v11792_v54  ;;  %vm3967_vm1 = vweird.f32 %v11792_v54 }
 0x3eb   :  { %9557 = vrcp.f32 %v11800_v39  ;;  %v3685_v30 = vmul.f32 %v9552_v44, %v3679_v11  ;;  %v3992_v51 = vand.u32 2147483648, %v11800_v39  ;;  %v3990_v56 = vand.u32 2147483647, %v11800_v39 }
 0x3ec   :  { %4610 = vmatpush.bf16.msrb.mxu2 %v8179_v2  ;;  %vm3986_vm2 = vweird.f32 %v11800_v39  ;;  %v3974_v15 = vor.u32 1.1754944e-38, %v3973_v48  ;;  %v9283_v48 = vld [vmem:[%s12827_s4 + $0xd4] sm:$0xf0] }
 0x3ed   :  { %v3686_v25 = vsel %vm3369_vm4, %v3685_v30, 0.0  ;;  %v11819_v14 = vsel %vm3369_vm4, %v3685_v30, %v11477_v55  ;;  %4623 = vmatpush.bf16.msrb.mxu3 %v8183_v63  ;;  %v8163_v55 = vor.u32 %v9227_v36, %v8162_v26  ;;  %vm3972_vm4 = vcmp.eq.f32.partialorder %v3971_v45, 8.507059e+37  ;;  %v8405_v36 = vld [vmem:[%s12827_s4 + $0xe8] sm:$0xf] }
 0x3ee   :  { %v9554_v40 = vpop.eup %9553  ;;  %3688 = vst [vmem:[#allocation4 + $0x8] sm:$0x3] %v3686_v25  ;;  %v4041_v47 = vpack.c.bf16 %v11819_v14, %v11819_v14  ;;  %4585 = vmatpush.bf16.msrb.mxu0 %v8155_v18  ;;  %4598 = vmatpush.bf16.msrb.mxu1 %v8159_v4  ;;  %v3993_v59 = vor.u32 1.1754944e-38, %v3992_v51  ;;  %vm3991_vm6 = vcmp.eq.f32.partialorder %v3990_v56, 8.507059e+37  ;;  %v9284_v25 = vld [vmem:[%s12827_s4 + $0xe4] sm:$0xf] }
 0x3ef   :  { %v11812_v20 = vadd.f32 1.0, %v9554_v40  ;;  %v8407_v4 = vld [vmem:[%s12827_s4 + $0xf8] sm:$0xf0]  ;;  %v8389_v45 = vld [vmem:[%s12827_s4 + $0xc8] sm:$0xf] }
 0x3f0   :  { %v9556_v22 = vpop.eup %9555  ;;  %4242 = vmatmul.bf16.vlgmr.msra.gmra.mxu0 %v4041_v47  ;;  %4255 = vmatmul.bf16.vlgmr.msra.gmra.mxu1 %v4041_v47  ;;  %v8391_v56 = vld [vmem:[%s12827_s4 + $0xd8] sm:$0xf0] }
 0x3f1   :  { %v9558_v62 = vpop.eup %9557  ;;  %v3963_v33 = vmul.f32 %v9556_v22, %v11792_v54  ;;  %9559 = vrcp.f32 %v11812_v20  ;;  %4268 = vmatmul.bf16.vlgmr.msra.gmra.mxu2 %v4041_v47  ;;  %4281 = vmatmul.bf16.vlgmr.msra.gmra.mxu3 %v4041_v47  ;;  %vm3968_vm15 = vweird.f32 %v9556_v22  ;;  %v4012_v19 = vand.u32 2147483648, %v11812_v20  ;;  %v9285_v47 = vld [vmem:[%s12827_s4 + $0xec] sm:$0xf] }
 0x3f2   :  { %v3982_v38 = vmul.f32 %v9558_v62, %v11800_v39  ;;  %9561 = vtanh.f32 %v3956_v27  ;;  %vm3987_vm0 = vweird.f32 %v9558_v62  ;;  %4611 = vmatpush.bf16.msrb.mxu2 %v8163_v55  ;;  %4624 = vmatpush.bf16.msrb.mxu3 %v8167_v42  ;;  %vm3969_vm3 = vmor %vm3967_vm1, %vm3968_vm15  ;;  %v4017_v39 = vrot.slane %v11497_v28, 2  ;;  %v9282_v55 = vld [vmem:[%s12827_s4 + $0xcc] sm:$0xf0] }
 0x3f3   :  { %v3964_v21 = vsub.f32 1.0, %v3963_v33  ;;  %vm3988_vm5 = vmor %vm3986_vm2, %vm3987_vm0  ;;  %vm4006_vm9 = vweird.f32 %v11812_v20  ;;  %v4010_v3 = vand.u32 2147483647, %v11812_v20  ;;  %v4013_v7 = vor.u32 1.1754944e-38, %v4012_v19 }
 0x3f4   :  { %v3983_v12 = vsub.f32 1.0, %v3982_v38  ;;  %v8406_v33 = vor.u32 %v9287_v8, %v8405_v36  ;;  %v8410_v35 = vor.u32 %v9285_v47, %v8407_v4  ;;  %v8381_v38 = vld [vmem:[%s12827_s4 + $0xc0] sm:$0xf]  ;;  %v9270_v47 = vld [vmem:[%s12827_s4 + $0x6c] sm:$0xf0] }
 0x3f5   :  { %v3965_v61 = vmul.f32 %v9556_v22, %v3964_v21  ;;  %v6074_v43 = vld [vmem:[#allocation4 + $0x8] sm:$0x3]  ;;  %vm4011_vm11 = vcmp.eq.f32.partialorder %v4010_v3, 8.507059e+37  ;;  %v9280_v21 = vld [vmem:[%s12827_s4 + $0xc4] sm:$0xf]  ;;  %v8382_v42 = vor.u32 %v9282_v55, %v8381_v38 }
 0x3f6   :  { %v3984_v52 = vmul.f32 %v9558_v62, %v3983_v12  ;;  %v6094_v54 = vmul.f32 %v11836_v0, %v6074_v43  ;;  %4948 = vmatpush.bf16.msra.mxu2 %v8406_v33  ;;  %4961 = vmatpush.bf16.msra.mxu3 %v8410_v35  ;;  %v8383_v12 = vld [vmem:[%s12827_s4 + $0xd0] sm:$0xf0]  ;;  %v8333_v33 = vld [vmem:[%s12827_s4 + $0x60] sm:$0xf]  ;;  %v9268_v4 = vld [vmem:[%s12827_s4 + $0x64] sm:$0xf] }
 0x3f7   :  { %v3966_v32 = vadd.f32 %v9556_v22, %v3965_v61  ;;  %v9560_v29 = vpop.eup %9559  ;;  %v8386_v51 = vor.u32 %v9280_v21, %v8383_v12  ;;  %v8390_v61 = vor.u32 %v9283_v48, %v8389_v45  ;;  %v8334_v55 = vor.u32 %v9270_v47, %v8333_v33  ;;  %v8335_v21 = vld [vmem:[%s12827_s4 + $0x70] sm:$0xf0] }
 0x3f8   :  { %v3985_v41 = vadd.f32 %v9558_v62, %v3984_v52  ;;  %v4002_v24 = vmul.f32 %v9560_v29, %v11812_v20  ;;  %v9562_v5 = vpop.eup %9561  ;;  %v6111_v37 = vsel %vm6098_vm14, %v6094_v54, 0.0  ;;  %vm4007_vm7 = vweird.f32 %v9560_v29  ;;  %v8397_v20 = vld [vmem:[%s12827_s4 + $0xe0] sm:$0xf]  ;;  %v9281_v52 = vld [vmem:[%s12827_s4 + $0xcc] sm:$0xf] }
 0x3f9   :  { %v3970_v58 = vsel %vm3969_vm3, %v9556_v22, %v3966_v32  ;;  %6112 = vadd.xlane.f32.xlu2 %v6111_v37  ;;  %vm4008_vm10 = vmor %vm4006_vm9, %vm4007_vm7  ;;  %v8394_v32 = vor.u32 %v9281_v52, %v8391_v56  ;;  %v9269_v52 = vld [vmem:[%s12827_s4 + $0x6c] sm:$0xf]  ;;  %v8303_v33 = vld [vmem:[%s12827_s4 + $0x30] sm:$0xf0] }
 0x3fa   :  { %v3975_v6 = vsel %vm3972_vm4, %v3974_v15, %v3970_v58  ;;  %v3989_v9 = vsel %vm3988_vm5, %v9558_v62, %v3985_v41  ;;  %v4003_v1 = vsub.f32 1.0, %v4002_v24  ;;  %4949 = vmatpush.bf16.msra.mxu2 %v8390_v61  ;;  %v9278_v15 = vld [vmem:[%s12827_s4 + $0xac] sm:$0xf0]  ;;  %v9276_v41 = vld [vmem:[%s12827_s4 + $0xa4] sm:$0xf] }
 0x3fb   :  { %v3994_v50 = vsel %vm3991_vm6, %v3993_v59, %v3989_v9  ;;  %v4020_v13 = vmul.f32 %v9562_v5, %v3975_v6  ;;  %4962 = vmatpush.bf16.msra.mxu3 %v8394_v32  ;;  %v8367_v59 = vld [vmem:[%s12827_s4 + $0xb0] sm:$0xf0]  ;;  %v8373_v58 = vld [vmem:[%s12827_s4 + $0xa8] sm:$0xf]  ;;  %v9279_v24 = vld [vmem:[%s12827_s4 + $0xb4] sm:$0xf0] }
 0x3fc   :  { %v4019_v16 = vmul.f32 %v4017_v39, %v3994_v50  ;;  %v4004_v44 = vmul.f32 %v9560_v29, %v4003_v1  ;;  %v8370_v54 = vor.u32 %v9276_v41, %v8367_v59  ;;  %v8374_v5 = vor.u32 %v9279_v24, %v8373_v58  ;;  %v9277_v39 = vld [vmem:[%s12827_s4 + $0xac] sm:$0xf]  ;;  %v8375_v6 = vld [vmem:[%s12827_s4 + $0xb8] sm:$0xf0]  ;;  %v8349_v50 = vld [vmem:[%s12827_s4 + $0x80] sm:$0xf] }
 0x3fd   :  { %v8378_v9 = vor.u32 %v9277_v39, %v8375_v6  ;;  %v9272_v1 = vld [vmem:[%s12827_s4 + $0x84] sm:$0xf]  ;;  %v9271_v61 = vld [vmem:[%s12827_s4 + $0x74] sm:$0xf0]  ;;  %v8343_v32 = vld [vmem:[%s12827_s4 + $0x78] sm:$0xf0] }
 0x3fe   :  { %v4021_v23 = vadd.f32 %v4020_v13, %v4019_v16  ;;  %v4005_v11 = vadd.f32 %v9560_v29, %v4004_v44  ;;  %4950 = vmatpush.bf16.msra.mxu2 %v8374_v5  ;;  %v9274_v13 = vld [vmem:[%s12827_s4 + $0x8c] sm:$0xf0]  ;;  %v8351_v44 = vld [vmem:[%s12827_s4 + $0x90] sm:$0xf0]  ;;  %v4039_v41 = vld [vmem:[#allocation2 + $0x28] sm:$0xc] }
 0x3ff   :  { %4963 = vmatpush.bf16.msra.mxu3 %v8378_v9  ;;  %v8350_v46 = vor.u32 %v9274_v13, %v8349_v50  ;;  %v8354_v3 = vor.u32 %v9272_v1, %v8351_v44  ;;  %v4361_v5 = vrot.slane %v11789_v49, 6  ;;  %v8317_v13 = vld [vmem:[%s12827_s4 + $0x40] sm:$0xf]  ;;  %v9266_v1 = vld [vmem:[%s12827_s4 + $0x4c] sm:$0xf0] }
 0x400   :  { %9563 = vtanh.f32 %v4021_v23  ;;  %v4032_v17 = vrot.slane %v4021_v23, 6  ;;  %v4009_v2 = vsel %vm4008_vm10, %v9560_v29, %v4005_v11  ;;  %v8365_v29 = vld [vmem:[%s12827_s4 + $0xa0] sm:$0xf]  ;;  %v8357_v23 = vld [vmem:[%s12827_s4 + $0x88] sm:$0xf] }
 0x401   :  { %v4014_v57 = vsel %vm4011_vm11, %v4013_v7, %v4009_v2  ;;  %v8366_v43 = vor.u32 %v9278_v15, %v8365_v29  ;;  %v9275_v11 = vld [vmem:[%s12827_s4 + $0x94] sm:$0xf0]  ;;  %v9273_v7 = vld [vmem:[%s12827_s4 + $0x8c] sm:$0xf]  ;;  %v8346_v15 = vor.u32 %v9269_v52, %v8343_v32  ;;  %v8319_v44 = vld [vmem:[%s12827_s4 + $0x50] sm:$0xf0] }
 0x402   :  { %v11846_v30 = vsel %vm3692_vm8, %v4032_v17, %v11497_v28  ;;  %v8358_v2 = vor.u32 %v9275_v11, %v8357_v23  ;;  %v9261_v32 = vld [vmem:[%s12827_s4 + $0x2c] sm:$0xf] }
 0x404   :  { %4951 = vmatpush.bf16.msra.mxu2 %v8358_v2  ;;  %v9267_v2 = vld [vmem:[%s12827_s4 + $0x54] sm:$0xf0] }
 0x406   :  { %v9564_v53 = vpop.eup %9563 }
 0x407   :  { %v4023_v40 = vmul.f32 %v9564_v53, %v4014_v57  ;;  %v8359_v53 = vld [vmem:[%s12827_s4 + $0x98] sm:$0xf0]  ;;  %v4037_v57 = vld [vmem:[#allocation2 + $0x8] sm:$0xc] }
 0x409   :  { %v4025_v27 = vrot.slane %v4023_v40, 6  ;;  %v4038_v40 = vld [vmem:[#allocation2 + $0x20] sm:$0xc] }
 0x40b   :  { %v4027_v63 = vsel %vm3692_vm8, %v4025_v27, 0.0  ;;  %v11851_v10 = vsel %vm3692_vm8, %v4025_v27, %v11504_v34  ;;  %v9286_v34 = vld [vmem:[%s12827_s4 + $0xec] sm:$0xf0]  ;;  %v8362_v27 = vor.u32 %v9273_v7, %v8359_v53 }
 0x40c   :  { %4029 = vst [vmem:[#allocation5 + $0x6] sm:$0x3] %v4027_v63  ;;  %v4385_v60 = vpack.c.bf16 %v11851_v10, %v11851_v10  ;;  %v8398_v18 = vor.u32 %v9286_v34, %v8397_v20 }
 0x40d   :  { %4964 = vmatpush.bf16.msra.mxu3 %v8362_v27  ;;  %v9265_v27 = vld [vmem:[%s12827_s4 + $0x4c] sm:$0xf] }
 0x40e   :  { %4586 = vmatmul.bf16.vlgmr.msrb.gmra.mxu0 %v4385_v60  ;;  %4599 = vmatmul.bf16.vlgmr.msrb.gmra.mxu1 %v4385_v60 }
 0x40f   :  { %4612 = vmatmul.bf16.vlgmr.msrb.gmra.mxu2 %v4385_v60  ;;  %4625 = vmatmul.bf16.vlgmr.msrb.gmra.mxu3 %v4385_v60 }
 0x410   :  { %4922 = vmatpush.bf16.msra.mxu0 %v8398_v18 }
 0x411   :  { %4965 = vmatpush.bf16.msra.mxu3 %v8346_v15 }
 0x413   :  { %v6081_v28 = vld [vmem:[#allocation5 + $0x6] sm:$0x3] }
 0x414   :  { %v6130_v26 = vmul.f32 %v11511_v31, %v6081_v28  ;;  %v8399_v31 = vld [vmem:[%s12827_s4 + $0xf0] sm:$0xf0]  ;;  %4923 = vmatpush.bf16.msra.mxu0 %v8382_v42  ;;  %v8341_v42 = vld [vmem:[%s12827_s4 + $0x68] sm:$0xf] }
 0x415   :  { %v8402_v62 = vor.u32 %v9284_v25, %v8399_v31  ;;  %v4040_v31 = vld [vmem:[#allocation2 + $0x38] sm:$0xc]  ;;  %v8342_v29 = vor.u32 %v9271_v61, %v8341_v42  ;;  %v8309_v42 = vld [vmem:[%s12827_s4 + $0x28] sm:$0xf] }
 0x416   :  { %v6144_v22 = vsel %vm6098_vm14, %v6130_v26, 0.0 }
 0x417   :  { %6145 = vadd.xlane.f32.xlu2 %v6144_v22  ;;  %4935 = vmatpush.bf16.msra.mxu1 %v8402_v62 }
 0x418   :  { %4924 = vmatpush.bf16.msra.mxu0 %v8366_v43  ;;  %4952 = vmatpush.bf16.msra.mxu2 %v8342_v29 }
 0x41b   :  { %4936 = vmatpush.bf16.msra.mxu1 %v8386_v51  ;;  %v8338_v51 = vor.u32 %v9268_v4, %v8335_v21 }
 0x41c   :  { %4925 = vmatpush.bf16.msra.mxu0 %v8350_v46 }
 0x41f   :  { %4937 = vmatpush.bf16.msra.mxu1 %v8370_v54 }
 0x420   :  { %4926 = vmatpush.bf16.msra.mxu0 %v8334_v55 }
 0x423   :  { %4938 = vmatpush.bf16.msra.mxu1 %v8354_v3  ;;  %v8325_v3 = vld [vmem:[%s12827_s4 + $0x48] sm:$0xf] }
 0x427   :  { %4939 = vmatpush.bf16.msra.mxu1 %v8338_v51 }
 0x46d   :  { %v4243_v37 = vpop.f32.mrf.mxu0  ;;  %v4256_v16 = vpop.f32.mrf.mxu1 }
 0x46e   :  { %v4290_v17 = vrot.slane %v4243_v37, 6  ;;  %v4291_v19 = vrot.slane %v4256_v16, 6  ;;  %v9264_v37 = vld [vmem:[%s12827_s4 + $0x44] sm:$0xf] }
 0x470   :  { %v4298_v63 = vadd.f32 %v4290_v17, %v4037_v57  ;;  %v4299_v60 = vadd.f32 %v4291_v19, %v4038_v40  ;;  %v8318_v17 = vor.u32 %v9266_v1, %v8317_v13  ;;  %v8322_v19 = vor.u32 %v9264_v37, %v8319_v44  ;;  %v9256_v13 = vld [vmem:[%s12827_s4 + $0x4] sm:$0xf]  ;;  %v12102_v1 = vld [vmem:[#allocation10 + $0xa] sm:$0x3] }
 0x471   :  { %v8326_v40 = vor.u32 %v9267_v2, %v8325_v3  ;;  %v4384_v3 = vld [vmem:[#allocation3 + $0x20] sm:$0x30]  ;;  %vm4036_vm7 = vcmp.gt.f32.partialorder %v12102_v1, 0.0  ;;  %v9295_v1 = vld [vmem:[#allocation15 + $0x34] sm:$0xf0] }
 0x472   :  { %v8149_v28 = vmul.f32 -1.442695, %v4298_v63  ;;  %v8150_v26 = vmul.f32 -1.442695, %v4299_v60  ;;  %v4381_v60 = vld [vmem:[#allocation3] sm:$0x30]  ;;  %4927 = vmatpush.bf16.msra.mxu0 %v8318_v17  ;;  %4940 = vmatpush.bf16.msra.mxu1 %v8322_v19 }
 0x473   :  { %4953 = vmatpush.bf16.msra.mxu2 %v8326_v40 }
 0x474   :  { %9565 = vpow2.f32 %v8149_v28  ;;  %v4269_v22 = vpop.f32.mrf.mxu2  ;;  %v4282_v20 = vpop.f32.mrf.mxu3 }
 0x475   :  { %9567 = vpow2.f32 %v8150_v26  ;;  %v4293_v34 = vrot.slane %v4282_v20, 6  ;;  %v4245_v25 = vpop.f32.mrf.mxu0  ;;  %v4258_v18 = vpop.f32.mrf.mxu1  ;;  %v4292_v56 = vrot.slane %v4269_v22, 6  ;;  %v8327_v22 = vld [vmem:[%s12827_s4 + $0x58] sm:$0xf0]  ;;  %v8301_v20 = vld [vmem:[%s12827_s4 + $0x20] sm:$0xf] }
 0x477   :  { %v4301_v36 = vadd.f32 %v4293_v34, %v4040_v31  ;;  %v4300_v59 = vadd.f32 %v4292_v56, %v4039_v41  ;;  %v9262_v34 = vld [vmem:[%s12827_s4 + $0x2c] sm:$0xf0]  ;;  %v4382_v31 = vld [vmem:[#allocation3 + $0x18] sm:$0x30] }
 0x478   :  { %v8302_v55 = vor.u32 %v9262_v34, %v8301_v20 }
 0x479   :  { %v8151_v8 = vmul.f32 -1.442695, %v4301_v36 }
 0x47a   :  { %v9566_v62 = vpop.eup %9565  ;;  %4928 = vmatpush.bf16.msra.mxu0 %v8302_v55 }
 0x47b   :  { %v9568_v35 = vpop.eup %9567  ;;  %v11962_v38 = vadd.f32 1.0, %v9566_v62  ;;  %9569 = vpow2.f32 %v8151_v8  ;;  %v8330_v8 = vor.u32 %v9265_v27, %v8327_v22  ;;  %v9260_v62 = vld [vmem:[%s12827_s4 + $0x24] sm:$0xf] }
 0x47c   :  { %v11970_v12 = vadd.f32 1.0, %v9568_v35  ;;  %v4271_v45 = vpop.f32.mrf.mxu2  ;;  %v4284_v48 = vpop.f32.mrf.mxu3  ;;  %v8306_v21 = vor.u32 %v9260_v62, %v8303_v33  ;;  %v9317_v35 = vld [vmem:[#allocation15 + $0xec] sm:$0xf] }
 0x47d   :  { %9571 = vrcp.f32 %v11962_v38  ;;  %v4315_v58 = vand.u32 2147483647, %v11962_v38  ;;  %v4317_v6 = vand.u32 2147483648, %v11962_v38  ;;  %vm4311_vm12 = vweird.f32 %v11962_v38  ;;  %v9263_v45 = vld [vmem:[%s12827_s4 + $0x34] sm:$0xf0]  ;;  %4966 = vmatpush.bf16.msra.mxu3 %v8330_v8 }
 0x47e   :  { %9573 = vrcp.f32 %v11970_v12  ;;  %v4336_v39 = vand.u32 2147483648, %v11970_v12  ;;  %v4334_v46 = vand.u32 2147483647, %v11970_v12  ;;  %vm4330_vm15 = vweird.f32 %v11970_v12  ;;  %4941 = vmatpush.bf16.msra.mxu1 %v8306_v21 }
 0x47f   :  { %vm12012_vm13 = vcmp.eq.f32.partialorder %v4315_v58, 8.507059e+37  ;;  %v4318_v57 = vor.u32 1.1754944e-38, %v4317_v6  ;;  %v8285_v58 = vld [vmem:[%s12827_s4] sm:$0xf] }
 0x480   :  { %v4337_v53 = vor.u32 1.1754944e-38, %v4336_v39  ;;  %vm12048_vm2 = vcmp.eq.f32.partialorder %v4334_v46, 8.507059e+37 }
 0x481   :  { %v9570_v43 = vpop.eup %9569 }
 0x482   :  { %v11984_v24 = vadd.f32 1.0, %v9570_v43 }
 0x483   :  { %v11986_v54 = vpop.eup %9571 }
 0x484   :  { %v11991_v9 = vpop.eup %9573  ;;  %v4307_v50 = vmul.f32 %v11986_v54, %v11962_v38  ;;  %9575 = vrcp.f32 %v11984_v24  ;;  %vm4312_vm1 = vweird.f32 %v11986_v54  ;;  %vm4350_vm4 = vweird.f32 %v11984_v24  ;;  %v8311_v38 = vld [vmem:[%s12827_s4 + $0x38] sm:$0xf0] }
 0x485   :  { %v4326_v16 = vmul.f32 %v11991_v9, %v11970_v12  ;;  %9577 = vtanh.f32 %v4300_v59  ;;  %vm4331_vm0 = vweird.f32 %v11991_v9  ;;  %vm12062_vm3 = vmor %vm4311_vm12, %vm4312_vm1  ;;  %v4354_v41 = vand.u32 2147483647, %v11984_v24  ;;  %v9258_v12 = vld [vmem:[%s12827_s4 + $0xc] sm:$0xf0] }
 0x486   :  { %v4308_v23 = vsub.f32 1.0, %v4307_v50  ;;  %vm12080_vm5 = vmor %vm4330_vm15, %vm4331_vm0  ;;  %v8310_v59 = vor.u32 %v9263_v45, %v8309_v42  ;;  %v8314_v44 = vor.u32 %v9261_v32, %v8311_v38  ;;  %v4356_v8 = vand.u32 2147483648, %v11984_v24  ;;  %v8538_v45 = vld [vmem:[#allocation15 + $0xf8] sm:$0xf0]  ;;  %v9312_v32 = vld [vmem:[#allocation15 + $0xc4] sm:$0xf] }
 0x487   :  { %v4327_v7 = vsub.f32 1.0, %v4326_v16  ;;  %vm4355_vm9 = vcmp.eq.f32.partialorder %v4354_v41, 8.507059e+37 }
 0x488   :  { %v4309_v63 = vmul.f32 %v11986_v54, %v4308_v23  ;;  %4954 = vmatpush.bf16.msra.mxu2 %v8310_v59  ;;  %v8287_v23 = vld [vmem:[%s12827_s4 + $0x10] sm:$0xf0]  ;;  %4967 = vmatpush.bf16.msra.mxu3 %v8314_v44 }
 0x489   :  { %v4328_v25 = vmul.f32 %v11991_v9, %v4327_v7  ;;  %v8286_v7 = vor.u32 %v9258_v12, %v8285_v58  ;;  %v8514_v59 = vld [vmem:[#allocation15 + $0xd0] sm:$0xf0]  ;;  %v8520_v58 = vld [vmem:[#allocation15 + $0xc8] sm:$0xf]  ;;  %v9315_v12 = vld [vmem:[#allocation15 + $0xd4] sm:$0xf0] }
 0x48a   :  { %v12045_v47 = vpop.eup %9575  ;;  %v4310_v4 = vadd.f32 %v11986_v54, %v4309_v63 }
 0x48b   :  { %v4587_v28 = vpop.f32.mrf.mxu0  ;;  %v4600_v26 = vpop.f32.mrf.mxu1  ;;  %v4329_v61 = vadd.f32 %v11991_v9, %v4328_v25  ;;  %v4346_v52 = vmul.f32 %v12045_v47, %v11984_v24  ;;  %vm4351_vm6 = vweird.f32 %v12045_v47  ;;  %4929 = vmatpush.bf16.msra.mxu0 %v8286_v7 }
 0x48c   :  { %v4634_v18 = vrot.slane %v4587_v28, 4  ;;  %v4635_v36 = vrot.slane %v4600_v26, 4  ;;  %v9578_v48 = vpop.eup %9577  ;;  %v4314_v15 = vsel %vm12062_vm3, %v11986_v54, %v4310_v4  ;;  %v8528_v28 = vld [vmem:[#allocation15 + $0xe0] sm:$0xf]  ;;  %v9318_v26 = vld [vmem:[#allocation15 + $0xec] sm:$0xf0]  ;;  %vm12137_vm8 = vmor %vm4350_vm4, %vm4351_vm6 }
 0x48d   :  { %v4319_v39 = vsel %vm12012_vm13, %v4318_v57, %v4314_v15  ;;  %v4333_v54 = vsel %vm12080_vm5, %v11991_v9, %v4329_v61  ;;  %v4347_v6 = vsub.f32 1.0, %v4346_v52  ;;  %v8293_v9 = vld [vmem:[%s12827_s4 + $0x8] sm:$0xf]  ;;  %v9257_v57 = vld [vmem:[%s12827_s4 + $0xc] sm:$0xf]  ;;  %v8529_v33 = vor.u32 %v9318_v26, %v8528_v28 }
 0x48e   :  { %v4642_v56 = vadd.f32 %v4634_v18, %v4381_v60  ;;  %v4643_v43 = vadd.f32 %v4635_v36, %v4382_v31  ;;  %v4338_v37 = vsel %vm12048_vm2, %v4337_v53, %v4333_v54  ;;  %v4364_v16 = vmul.f32 %v9578_v48, %v4319_v39  ;;  %v9259_v53 = vld [vmem:[%s12827_s4 + $0x14] sm:$0xf0]  ;;  %v9316_v18 = vld [vmem:[#allocation15 + $0xe4] sm:$0xf]  ;;  %v8536_v36 = vld [vmem:[#allocation15 + $0xe8] sm:$0xf] }
 0x48f   :  { %v4363_v11 = vmul.f32 %v4361_v5, %v4338_v37  ;;  %v4348_v17 = vmul.f32 %v12045_v47, %v4347_v6  ;;  %v8295_v5 = vld [vmem:[%s12827_s4 + $0x18] sm:$0xf0]  ;;  %v8290_v60 = vor.u32 %v9256_v13, %v8287_v23  ;;  %v8294_v34 = vor.u32 %v9259_v53, %v8293_v9  ;;  %v8530_v31 = vld [vmem:[#allocation15 + $0xf0] sm:$0xf0]  ;;  %v8512_v48 = vld [vmem:[#allocation15 + $0xc0] sm:$0xf]  ;;  %5266 = vmatpush.bf16.msrb.mxu0 %v8529_v33 }
 0x490   :  { %v8280_v50 = vmul.f32 -1.442695, %v4642_v56  ;;  %v8281_v46 = vmul.f32 -1.442695, %v4643_v43  ;;  %v8298_v25 = vor.u32 %v9257_v57, %v8295_v5  ;;  %v9319_v4 = vld [vmem:[#allocation15 + $0xf4] sm:$0xf0]  ;;  %v8533_v42 = vor.u32 %v9316_v18, %v8530_v31 }
 0x491   :  { %v4365_v22 = vadd.f32 %v4364_v16, %v4363_v11  ;;  %v12128_v20 = vadd.f32 %v12045_v47, %v4348_v17  ;;  %4942 = vmatpush.bf16.msra.mxu1 %v8290_v60  ;;  %4955 = vmatpush.bf16.msra.mxu2 %v8294_v34  ;;  %v8537_v52 = vor.u32 %v9319_v4, %v8536_v36  ;;  %v9314_v56 = vld [vmem:[#allocation15 + $0xcc] sm:$0xf0]  ;;  %v9313_v37 = vld [vmem:[#allocation15 + $0xcc] sm:$0xf]  ;;  %v4357_v16 = vor.u32 1.1754944e-38, %v4356_v8 }
 0x492   :  { %9579 = vpow2.f32 %v8280_v50  ;;  %v12115_v19 = vpop.f32.mrf.mxu2  ;;  %v4626_v2 = vpop.f32.mrf.mxu3  ;;  %4968 = vmatpush.bf16.msra.mxu3 %v8298_v25  ;;  %v8541_v15 = vor.u32 %v9317_v35, %v8538_v45  ;;  %v8513_v43 = vor.u32 %v9314_v56, %v8512_v48  ;;  %v8517_v50 = vor.u32 %v9312_v32, %v8514_v59  ;;  %v8496_v11 = vld [vmem:[#allocation15 + $0xa0] sm:$0xf]  ;;  %v9310_v17 = vld [vmem:[#allocation15 + $0xac] sm:$0xf0]  ;;  %v8498_v53 = vld [vmem:[#allocation15 + $0xb0] sm:$0xf0] }
 0x493   :  { %9581 = vpow2.f32 %v8281_v46  ;;  %v4637_v40 = vrot.slane %v4626_v2, 4  ;;  %v4589_v27 = vpop.f32.mrf.mxu0  ;;  %v4602_v63 = vpop.f32.mrf.mxu1  ;;  %v4376_v55 = vrot.slane %v4365_v22, 2  ;;  %v4636_v21 = vrot.slane %v12115_v19, 4  ;;  %v9308_v19 = vld [vmem:[#allocation15 + $0xa4] sm:$0xf] }
 0x494   :  { %9583 = vtanh.f32 %v4365_v22  ;;  %v4353_v29 = vsel %vm12137_vm8, %v12045_v47, %v12128_v20  ;;  %v8521_v13 = vor.u32 %v9315_v12, %v8520_v58  ;;  %v8522_v47 = vld [vmem:[#allocation15 + $0xd8] sm:$0xf0]  ;;  %5267 = vmatpush.bf16.msrb.mxu0 %v8513_v43  ;;  %v8497_v5 = vor.u32 %v9310_v17, %v8496_v11  ;;  %v9311_v27 = vld [vmem:[#allocation15 + $0xb4] sm:$0xf0]  ;;  %v9309_v60 = vld [vmem:[#allocation15 + $0xac] sm:$0xf] }
 0x495   :  { %v4645_v62 = vadd.f32 %v4637_v40, %v4384_v3  ;;  %5279 = vmatpush.bf16.msrb.mxu1 %v8533_v42  ;;  %v12148_v39 = vsel %vm4036_vm7, %v4376_v55, %v11789_v49  ;;  %5292 = vmatpush.bf16.msrb.mxu2 %v8537_v52  ;;  %v8525_v9 = vor.u32 %v9313_v37, %v8522_v47  ;;  %v4383_v49 = vld [vmem:[#allocation3 + $0x10] sm:$0x30]  ;;  %v8504_v40 = vld [vmem:[#allocation15 + $0xa8] sm:$0xf]  ;;  %v8506_v28 = vld [vmem:[#allocation15 + $0xb8] sm:$0xf0] }
 0x496   :  { %5305 = vmatpush.bf16.msrb.mxu3 %v8541_v15  ;;  %v4644_v2 = vadd.f32 %v4636_v21, %v4383_v49  ;;  %v4358_v7 = vsel %vm4355_vm9, %v4357_v16, %v4353_v29  ;;  %v8501_v41 = vor.u32 %v9308_v19, %v8498_v53  ;;  %v8505_v63 = vor.u32 %v9311_v27, %v8504_v40  ;;  %v8480_v25 = vld [vmem:[#allocation15 + $0x80] sm:$0xf]  ;;  %v9306_v18 = vld [vmem:[#allocation15 + $0x8c] sm:$0xf0]  ;;  %v8482_v33 = vld [vmem:[#allocation15 + $0x90] sm:$0xf0] }
 0x497   :  { %v8282_v61 = vmul.f32 -1.442695, %v4645_v62  ;;  %v4705_v22 = vrot.slane %v11846_v30, 4  ;;  %v8509_v34 = vor.u32 %v9309_v60, %v8506_v28  ;;  %v8481_v8 = vor.u32 %v9306_v18, %v8480_v25  ;;  %v9304_v62 = vld [vmem:[#allocation15 + $0x84] sm:$0xf] }
 0x498   :  { %v9580_v38 = vpop.eup %9579  ;;  %5268 = vmatpush.bf16.msrb.mxu0 %v8497_v5  ;;  %v8485_v42 = vor.u32 %v9304_v62, %v8482_v33  ;;  %v8488_v45 = vld [vmem:[#allocation15 + $0x88] sm:$0xf]  ;;  %v9307_v48 = vld [vmem:[#allocation15 + $0x94] sm:$0xf0]  ;;  %v9305_v52 = vld [vmem:[#allocation15 + $0x8c] sm:$0xf] }
 0x499   :  { %v9582_v54 = vpop.eup %9581  ;;  %v12150_v6 = vadd.f32 1.0, %v9580_v38  ;;  %9585 = vpow2.f32 %v8282_v61  ;;  %5280 = vmatpush.bf16.msrb.mxu1 %v8517_v50  ;;  %5293 = vmatpush.bf16.msrb.mxu2 %v8521_v13  ;;  %v8490_v56 = vld [vmem:[#allocation15 + $0x98] sm:$0xf0]  ;;  %v8464_v38 = vld [vmem:[#allocation15 + $0x60] sm:$0xf]  ;;  %v8489_v43 = vor.u32 %v9307_v48, %v8488_v45 }
 0x49a   :  { %v12152_v46 = vadd.f32 1.0, %v9582_v54  ;;  %v4615_v44 = vpop.f32.mrf.mxu2  ;;  %v4628_v23 = vpop.f32.mrf.mxu3  ;;  %5306 = vmatpush.bf16.msrb.mxu3 %v8525_v9  ;;  %v8493_v59 = vor.u32 %v9305_v52, %v8490_v56  ;;  %v9302_v58 = vld [vmem:[#allocation15 + $0x6c] sm:$0xf0]  ;;  %v9300_v12 = vld [vmem:[#allocation15 + $0x64] sm:$0xf] }
 0x49b   :  { %9587 = vrcp.f32 %v12150_v6  ;;  %v9584_v3 = vpop.eup %9583  ;;  %v4659_v24 = vand.u32 2147483647, %v12150_v6  ;;  %v4661_v31 = vand.u32 2147483648, %v12150_v6  ;;  %vm4655_vm11 = vweird.f32 %v12150_v6  ;;  %v8466_v47 = vld [vmem:[#allocation15 + $0x70] sm:$0xf0] }
 0x49c   :  { %9589 = vrcp.f32 %v12152_v46  ;;  %v4367_v57 = vmul.f32 %v9584_v3, %v4358_v7  ;;  %v4680_v35 = vand.u32 2147483648, %v12152_v46  ;;  %v4678_v32 = vand.u32 2147483647, %v12152_v46  ;;  %5269 = vmatpush.bf16.msrb.mxu0 %v8481_v8  ;;  %v8472_v9 = vld [vmem:[#allocation15 + $0x68] sm:$0xf] }
 0x49d   :  { %9591 = vtanh.f32 %v4644_v2  ;;  %5281 = vmatpush.bf16.msrb.mxu1 %v8501_v41  ;;  %5294 = vmatpush.bf16.msrb.mxu2 %v8505_v63  ;;  %vm12182_vm12 = vcmp.eq.f32.partialorder %v4659_v24, 8.507059e+37  ;;  %v4662_v13 = vor.u32 1.1754944e-38, %v4661_v31  ;;  %v8465_v37 = vor.u32 %v9302_v58, %v8464_v38  ;;  %v9303_v11 = vld [vmem:[#allocation15 + $0x74] sm:$0xf0]  ;;  %v9301_v17 = vld [vmem:[#allocation15 + $0x6c] sm:$0xf] }
 0x49e   :  { %v4369_v20 = vrot.slane %v4367_v57, 2  ;;  %5307 = vmatpush.bf16.msrb.mxu3 %v8509_v34  ;;  %v4681_v50 = vor.u32 1.1754944e-38, %v4680_v35  ;;  %v8469_v23 = vor.u32 %v9300_v12, %v8466_v47  ;;  %v8474_v19 = vld [vmem:[#allocation15 + $0x78] sm:$0xf0]  ;;  %v8448_v3 = vld [vmem:[#allocation15 + $0x40] sm:$0xf]  ;;  %v8473_v57 = vor.u32 %v9303_v11, %v8472_v9 }
 0x49f   :  { %v9586_v26 = vpop.eup %9585  ;;  %v9298_v2 = vld [vmem:[#allocation15 + $0x4c] sm:$0xf0]  ;;  %v8477_v5 = vor.u32 %v9301_v17, %v8474_v19  ;;  %v9296_v40 = vld [vmem:[#allocation15 + $0x44] sm:$0xf]  ;;  %v8450_v27 = vld [vmem:[#allocation15 + $0x50] sm:$0xf0]  ;;  %vm4674_vm0 = vweird.f32 %v12152_v46 }
 0x4a0   :  { %v12161_v36 = vadd.f32 1.0, %v9586_v26  ;;  %v4371_v55 = vsel %vm4036_vm7, %v4369_v20, 0.0  ;;  %v12171_v21 = vsel %vm4036_vm7, %v4369_v20, %v11819_v14  ;;  %v8456_v24 = vld [vmem:[#allocation15 + $0x48] sm:$0xf]  ;;  %5270 = vmatpush.bf16.msrb.mxu0 %v8465_v37  ;;  %v8449_v28 = vor.u32 %v9298_v2, %v8448_v3  ;;  %v9299_v26 = vld [vmem:[#allocation15 + $0x54] sm:$0xf0] }
 0x4a1   :  { %v12163_v4 = vpop.eup %9587  ;;  %4373 = vst [vmem:[#allocation4 + $0xa] sm:$0x3] %v4371_v55  ;;  %v4729_v15 = vpack.c.bf16 %v12171_v21, %v12171_v21  ;;  %5282 = vmatpush.bf16.msrb.mxu1 %v8485_v42  ;;  %5295 = vmatpush.bf16.msrb.mxu2 %v8489_v43  ;;  %v9297_v20 = vld [vmem:[#allocation15 + $0x4c] sm:$0xf]  ;;  %vm4679_vm2 = vcmp.eq.f32.partialorder %v4678_v32, 8.507059e+37  ;;  %v8453_v25 = vor.u32 %v9296_v40, %v8450_v27 }
 0x4a2   :  { %v12173_v51 = vpop.eup %9589  ;;  %v4651_v61 = vmul.f32 %v12163_v4, %v12150_v6  ;;  %vm4656_vm10 = vweird.f32 %v12163_v4  ;;  %9593 = vrcp.f32 %v12161_v36  ;;  %5308 = vmatpush.bf16.msrb.mxu3 %v8493_v59  ;;  %v8458_v18 = vld [vmem:[#allocation15 + $0x58] sm:$0xf0]  ;;  %v8432_v31 = vld [vmem:[#allocation15 + $0x20] sm:$0xf]  ;;  %v8457_v35 = vor.u32 %v9299_v26, %v8456_v24  ;;  %v9294_v55 = vld [vmem:[#allocation15 + $0x2c] sm:$0xf0] }
 0x4a3   :  { %v4670_v14 = vmul.f32 %v12173_v51, %v12152_v46  ;;  %vm12191_vm13 = vmor %vm4655_vm11, %vm4656_vm10  ;;  %v9592_v16 = vpop.eup %9591  ;;  %4930 = vmatmul.bf16.vlgmr.msra.gmra.mxu0 %v4729_v15  ;;  %4943 = vmatmul.bf16.vlgmr.msra.gmra.mxu1 %v4729_v15  ;;  %vm4675_vm15 = vweird.f32 %v12173_v51  ;;  %v9292_v42 = vld [vmem:[#allocation15 + $0x24] sm:$0xf]  ;;  %v8440_v52 = vld [vmem:[#allocation15 + $0x28] sm:$0xf]  ;;  %v4700_v58 = vand.u32 2147483648, %v12161_v36  ;;  %vm4694_vm4 = vweird.f32 %v12161_v36 }
 0x4a4   :  { %v4652_v29 = vsub.f32 1.0, %v4651_v61  ;;  %4956 = vmatmul.bf16.vlgmr.msra.gmra.mxu2 %v4729_v15  ;;  %4969 = vmatmul.bf16.vlgmr.msra.gmra.mxu3 %v4729_v15  ;;  %vm4676_vm1 = vmor %vm4674_vm0, %vm4675_vm15  ;;  %v9293_v32 = vld [vmem:[#allocation15 + $0x2c] sm:$0xf]  ;;  %v8442_v38 = vld [vmem:[#allocation15 + $0x38] sm:$0xf0] }
 0x4a5   :  { %v4671_v54 = vsub.f32 1.0, %v4670_v14  ;;  %5283 = vmatpush.bf16.msrb.mxu1 %v8469_v23  ;;  %5296 = vmatpush.bf16.msrb.mxu2 %v8473_v57  ;;  %v8416_v15 = vld [vmem:[#allocation15] sm:$0xf]  ;;  %v9290_v43 = vld [vmem:[#allocation15 + $0xc] sm:$0xf0]  ;;  %v8445_v6 = vor.u32 %v9293_v32, %v8442_v38  ;;  %v4701_v19 = vor.u32 1.1754944e-38, %v4700_v58 }
 0x4a6   :  { %v4653_v44 = vmul.f32 %v12163_v4, %v4652_v29  ;;  %5309 = vmatpush.bf16.msrb.mxu3 %v8477_v5  ;;  %5271 = vmatpush.bf16.msrb.mxu0 %v8449_v28  ;;  %v9288_v12 = vld [vmem:[#allocation15 + $0x4] sm:$0xf]  ;;  %v8417_v37 = vor.u32 %v9290_v43, %v8416_v15  ;;  %v9291_v47 = vld [vmem:[#allocation15 + $0x14] sm:$0xf0]  ;;  %v4698_v23 = vand.u32 2147483647, %v12161_v36 }
 0x4a7   :  { %v4672_v49 = vmul.f32 %v12173_v51, %v4671_v54  ;;  %v8418_v54 = vld [vmem:[#allocation15 + $0x10] sm:$0xf0]  ;;  %v8669_v32 = vld [vmem:[%s12827_s4 + $0xf8] sm:$0xf0]  ;;  %v8643_v15 = vld [vmem:[%s12827_s4 + $0xc0] sm:$0xf] }
 0x4a8   :  { %v12198_v7 = vpop.eup %9593  ;;  %v4654_v53 = vadd.f32 %v12163_v4, %v4653_v44  ;;  %v6075_v60 = vld [vmem:[#allocation4 + $0xa] sm:$0x3]  ;;  %v8426_v44 = vld [vmem:[#allocation15 + $0x18] sm:$0xf0]  ;;  %v8421_v9 = vor.u32 %v9288_v12, %v8418_v54  ;;  %vm4699_vm6 = vcmp.eq.f32.partialorder %v4698_v23, 8.507059e+37 }
 0x4a9   :  { %v4673_v41 = vadd.f32 %v12173_v51, %v4672_v49  ;;  %v4690_v63 = vmul.f32 %v12198_v7, %v12161_v36  ;;  %v6095_v46 = vmul.f32 %v11836_v0, %v6075_v60  ;;  %v8434_v0 = vld [vmem:[#allocation15 + $0x30] sm:$0xf0]  ;;  %5284 = vmatpush.bf16.msrb.mxu1 %v8453_v25  ;;  %vm4695_vm3 = vweird.f32 %v12198_v7  ;;  %5297 = vmatpush.bf16.msrb.mxu2 %v8457_v35  ;;  %v4379_v36 = vld [vmem:[#allocation10 + $0x4] sm:$0x3]  ;;  %v4726_v25 = vld [vmem:[#allocation2 + $0x20] sm:$0x30] }
 0x4aa   :  { %v4658_v34 = vsel %vm12191_vm13, %v12163_v4, %v4654_v53  ;;  %v8461_v4 = vor.u32 %v9297_v20, %v8458_v18  ;;  %v8437_v29 = vor.u32 %v9292_v42, %v8434_v0  ;;  %vm4696_vm5 = vmor %vm4694_vm4, %vm4695_vm3  ;;  %vm4380_vm7 = vcmp.gt.f32.partialorder %v4379_v36, 0.0  ;;  %v9348_v35 = vld [vmem:[%s12827_s4 + $0xe4] sm:$0xf]  ;;  %v4728_v42 = vld [vmem:[#allocation2 + $0x38] sm:$0x30] }
 0x4ab   :  { %v4663_v8 = vsel %vm12182_vm12, %v4662_v13, %v4658_v34  ;;  %v4677_v62 = vsel %vm4676_vm1, %v12173_v51, %v4673_v41  ;;  %v4691_v33 = vsub.f32 1.0, %v4690_v63  ;;  %v6114_v61 = vsel %vm6098_vm14, %v6095_v46, 0.0  ;;  %v8424_v13 = vld [vmem:[#allocation15 + $0x8] sm:$0xf]  ;;  %v12234_v41 = vld [vmem:[%s12830_s7] ss:$0 sm:$0xff] }
 0x4ac   :  { %v4682_v45 = vsel %vm4679_vm2, %v4681_v50, %v4677_v62  ;;  %v4708_v48 = vmul.f32 %v9592_v16, %v4663_v8  ;;  %6115 = vadd.xlane.f32.xlu2 %v6114_v61  ;;  %v8433_v51 = vor.u32 %v9294_v55, %v8432_v31  ;;  %5310 = vmatpush.bf16.msrb.mxu3 %v8461_v4  ;;  %v9289_v16 = vld [vmem:[#allocation15 + $0xc] sm:$0xf]  ;;  %v8661_v61 = vld [vmem:[%s12827_s4 + $0xf0] sm:$0xf0]  ;;  %v8667_v4 = vld [vmem:[%s12827_s4 + $0xe8] sm:$0xf] }
 0x4ad   :  { %v4707_v56 = vmul.f32 %v4705_v22, %v4682_v45  ;;  %v4692_v14 = vmul.f32 %v12198_v7, %v4691_v33  ;;  %v8441_v22 = vor.u32 %v9295_v1, %v8440_v52  ;;  %5285 = vmatpush.bf16.msrb.mxu1 %v8437_v29  ;;  %v8425_v17 = vor.u32 %v9291_v47, %v8424_v13  ;;  %v4725_v46 = vld [vmem:[#allocation2 + $0x8] sm:$0x30]  ;;  %v8659_v33 = vld [vmem:[%s12827_s4 + $0xe0] sm:$0xf]  ;;  %v9351_v0 = vld [vmem:[%s12827_s4 + $0xf4] sm:$0xf0] }
 0x4ae   :  { %5272 = vmatpush.bf16.msrb.mxu0 %v8433_v51  ;;  %v8429_v49 = vor.u32 %v9289_v16, %v8426_v44  ;;  %v8664_v51 = vor.u32 %v9348_v35, %v8661_v61  ;;  %v9349_v1 = vld [vmem:[%s12827_s4 + $0xec] sm:$0xf]  ;;  %v8668_v38 = vor.u32 %v9351_v0, %v8667_v4  ;;  %v9346_v43 = vld [vmem:[%s12827_s4 + $0xcc] sm:$0xf0]  ;;  %v8645_v54 = vld [vmem:[%s12827_s4 + $0xd0] sm:$0xf0] }
 0x4af   :  { %v4709_v59 = vadd.f32 %v4708_v48, %v4707_v56  ;;  %v4693_v50 = vadd.f32 %v12198_v7, %v4692_v14  ;;  %5298 = vmatpush.bf16.msrb.mxu2 %v8441_v22  ;;  %v8672_v29 = vor.u32 %v9349_v1, %v8669_v32  ;;  %v8644_v12 = vor.u32 %v9346_v43, %v8643_v15  ;;  %v9347_v22 = vld [vmem:[%s12827_s4 + $0xd4] sm:$0xf0]  ;;  %v8653_v47 = vld [vmem:[%s12827_s4 + $0xd8] sm:$0xf0]  ;;  %v8627_v16 = vld [vmem:[%s12827_s4 + $0xa0] sm:$0xf] }
 0x4b0   :  { %5311 = vmatpush.bf16.msrb.mxu3 %v8445_v6  ;;  %v8595_v0 = vld [vmem:[%s12827_s4 + $0x60] sm:$0xf]  ;;  %v8597_v1 = vld [vmem:[%s12827_s4 + $0x70] sm:$0xf0]  ;;  %v8603_v32 = vld [vmem:[%s12827_s4 + $0x68] sm:$0xf] }
 0x4b1   :  { %9595 = vtanh.f32 %v4709_v59  ;;  %v4697_v11 = vsel %vm4696_vm5, %v12198_v7, %v4693_v50  ;;  %5286 = vmatpush.bf16.msrb.mxu1 %v8421_v9  ;;  %v4720_v27 = vrot.slane %v4709_v59, 4  ;;  %v9344_v59 = vld [vmem:[%s12827_s4 + $0xc4] sm:$0xf]  ;;  %v8651_v50 = vld [vmem:[%s12827_s4 + $0xc8] sm:$0xf]  ;;  %v5049_v15 = vrot.slane %v12148_v39, 4 }
 0x4b2   :  { %5273 = vmatpush.bf16.msrb.mxu0 %v8417_v37  ;;  %v4702_v2 = vsel %vm4699_vm6, %v4701_v19, %v4697_v11  ;;  %v8648_v6 = vor.u32 %v9344_v59, %v8645_v54  ;;  %v8652_v13 = vor.u32 %v9347_v22, %v8651_v50  ;;  %v9345_v37 = vld [vmem:[%s12827_s4 + $0xcc] sm:$0xf]  ;;  %v9342_v9 = vld [vmem:[%s12827_s4 + $0xac] sm:$0xf0]  ;;  %v9340_v11 = vld [vmem:[%s12827_s4 + $0xa4] sm:$0xf] }
 0x4b3   :  { %5299 = vmatpush.bf16.msrb.mxu2 %v8425_v17  ;;  %v12239_v60 = vsel %vm4380_vm7, %v4720_v27, %v11846_v30  ;;  %v9350_v30 = vld [vmem:[%s12827_s4 + $0xec] sm:$0xf0]  ;;  %v8656_v23 = vor.u32 %v9345_v37, %v8653_v47  ;;  %v8629_v19 = vld [vmem:[%s12827_s4 + $0xb0] sm:$0xf0]  ;;  %v8637_v27 = vld [vmem:[%s12827_s4 + $0xb8] sm:$0xf0] }
 0x4b4   :  { %5312 = vmatpush.bf16.msrb.mxu3 %v8429_v49  ;;  %v8660_v48 = vor.u32 %v9350_v30, %v8659_v33  ;;  %v8628_v49 = vor.u32 %v9342_v9, %v8627_v16  ;;  %v8619_v33 = vld [vmem:[%s12827_s4 + $0x88] sm:$0xf]  ;;  %v9339_v30 = vld [vmem:[%s12827_s4 + $0x94] sm:$0xf0]  ;;  %v9333_v54 = vld [vmem:[%s12827_s4 + $0x6c] sm:$0xf] }
 0x4b5   :  { %5623 = vmatpush.bf16.msra.mxu1 %v8664_v51  ;;  %v8620_v35 = vor.u32 %v9339_v30, %v8619_v33  ;;  %v9332_v51 = vld [vmem:[%s12827_s4 + $0x64] sm:$0xf]  ;;  %v9335_v43 = vld [vmem:[%s12827_s4 + $0x74] sm:$0xf0]  ;;  %v8605_v50 = vld [vmem:[%s12827_s4 + $0x78] sm:$0xf0] }
 0x4b6   :  { %5610 = vmatpush.bf16.msra.mxu0 %v8660_v48  ;;  %v8600_v47 = vor.u32 %v9332_v51, %v8597_v1  ;;  %v8604_v16 = vor.u32 %v9335_v43, %v8603_v32  ;;  %v8589_v43 = vld [vmem:[%s12827_s4 + $0x58] sm:$0xf0] }
 0x4b7   :  { %v9596_v3 = vpop.eup %9595  ;;  %5636 = vmatpush.bf16.msra.mxu2 %v8668_v38 }
 0x4b8   :  { %v4711_v53 = vmul.f32 %v9596_v3, %v4702_v2  ;;  %5649 = vmatpush.bf16.msra.mxu3 %v8672_v29  ;;  %v8635_v3 = vld [vmem:[%s12827_s4 + $0xa8] sm:$0xf]  ;;  %v9343_v2 = vld [vmem:[%s12827_s4 + $0xb4] sm:$0xf0] }
 0x4b9   :  { %5624 = vmatpush.bf16.msra.mxu1 %v8648_v6 }
 0x4ba   :  { %v4713_v57 = vrot.slane %v4711_v53, 4  ;;  %5611 = vmatpush.bf16.msra.mxu0 %v8644_v12 }
 0x4bb   :  { %5637 = vmatpush.bf16.msra.mxu2 %v8652_v13 }
 0x4bc   :  { %v4715_v5 = vsel %vm4380_vm7, %v4713_v57, 0.0  ;;  %v12227_v40 = vsel %vm4380_vm7, %v4713_v57, %v11851_v10  ;;  %5650 = vmatpush.bf16.msra.mxu3 %v8656_v23 }
 0x4bd   :  { %4717 = vst [vmem:[#allocation5 + $0x4] sm:$0x3] %v4715_v5  ;;  %v5073_v7 = vpack.c.bf16 %v12227_v40, %v12227_v40  ;;  %v8632_v5 = vor.u32 %v9340_v11, %v8629_v19  ;;  %v8608_v19 = vor.u32 %v9333_v54, %v8605_v50  ;;  %v8563_v54 = vld [vmem:[%s12827_s4 + $0x20] sm:$0xf]  ;;  %v9324_v50 = vld [vmem:[%s12827_s4 + $0x24] sm:$0xf] }
 0x4be   :  { %5612 = vmatpush.bf16.msra.mxu0 %v8628_v49 }
 0x4bf   :  { %5274 = vmatmul.bf16.vlgmr.msrb.gmra.mxu0 %v5073_v7  ;;  %5287 = vmatmul.bf16.vlgmr.msrb.gmra.mxu1 %v5073_v7 }
 0x4c0   :  { %5300 = vmatmul.bf16.vlgmr.msrb.gmra.mxu2 %v5073_v7  ;;  %5313 = vmatmul.bf16.vlgmr.msrb.gmra.mxu3 %v5073_v7  ;;  %v9341_v7 = vld [vmem:[%s12827_s4 + $0xac] sm:$0xf] }
 0x4c1   :  { %5625 = vmatpush.bf16.msra.mxu1 %v8632_v5  ;;  %v5070_v5 = vld [vmem:[#allocation3 + $0x18] sm:$0xc] }
 0x4c4   :  { %v6080_v24 = vld [vmem:[#allocation5 + $0x4] sm:$0x3] }
 0x4c5   :  { %v6129_v63 = vmul.f32 %v12234_v41, %v6080_v24 }
 0x4c7   :  { %v6141_v10 = vsel %vm6098_vm14, %v6129_v63, 0.0 }
 0x4c8   :  { %6142 = vadd.xlane.f32.xlu1 %v6141_v10 }
 0x520   :  { %v4931_v28 = vpop.f32.mrf.mxu0  ;;  %v4944_v26 = vpop.f32.mrf.mxu1 }
 0x521   :  { %v4978_v20 = vrot.slane %v4931_v28, 4  ;;  %v4979_v34 = vrot.slane %v4944_v26, 4  ;;  %v8636_v28 = vor.u32 %v9343_v2, %v8635_v3  ;;  %v8640_v26 = vor.u32 %v9341_v7, %v8637_v27 }
 0x523   :  { %v4986_v18 = vadd.f32 %v4978_v20, %v4725_v46  ;;  %v4987_v31 = vadd.f32 %v4979_v34, %v4726_v25  ;;  %v8611_v20 = vld [vmem:[%s12827_s4 + $0x80] sm:$0xf]  ;;  %v9338_v34 = vld [vmem:[%s12827_s4 + $0x8c] sm:$0xf0]  ;;  %v9336_v46 = vld [vmem:[%s12827_s4 + $0x84] sm:$0xf]  ;;  %5638 = vmatpush.bf16.msra.mxu2 %v8636_v28  ;;  %5651 = vmatpush.bf16.msra.mxu3 %v8640_v26 }
 0x524   :  { %v4727_v25 = vld [vmem:[#allocation2 + $0x28] sm:$0x30] }
 0x525   :  { %v8411_v8 = vmul.f32 -1.442695, %v4986_v18  ;;  %v8412_v62 = vmul.f32 -1.442695, %v4987_v31  ;;  %v8613_v18 = vld [vmem:[%s12827_s4 + $0x90] sm:$0xf0] }
 0x527   :  { %9597 = vpow2.f32 %v8411_v8  ;;  %v12250_v55 = vpop.f32.mrf.mxu2  ;;  %v4970_v45 = vpop.f32.mrf.mxu3  ;;  %v8612_v8 = vor.u32 %v9338_v34, %v8611_v20  ;;  %5639 = vmatpush.bf16.msra.mxu2 %v8620_v35  ;;  %v9328_v35 = vld [vmem:[%s12827_s4 + $0x44] sm:$0xf] }
 0x528   :  { %9599 = vpow2.f32 %v8412_v62  ;;  %v4981_v52 = vrot.slane %v4970_v45, 4  ;;  %v4933_v56 = vpop.f32.mrf.mxu0  ;;  %v4946_v14 = vpop.f32.mrf.mxu1  ;;  %v4980_v57 = vrot.slane %v12250_v55, 4  ;;  %v8616_v62 = vor.u32 %v9336_v46, %v8613_v18  ;;  %v9337_v55 = vld [vmem:[%s12827_s4 + $0x8c] sm:$0xf] }
 0x529   :  { %5613 = vmatpush.bf16.msra.mxu0 %v8612_v8 }
 0x52a   :  { %v4989_v58 = vadd.f32 %v4981_v52, %v4728_v42  ;;  %v4988_v31 = vadd.f32 %v4980_v57, %v4727_v25  ;;  %v8621_v42 = vld [vmem:[%s12827_s4 + $0x98] sm:$0xf0]  ;;  %v9334_v52 = vld [vmem:[%s12827_s4 + $0x6c] sm:$0xf0]  ;;  %5626 = vmatpush.bf16.msra.mxu1 %v8616_v62 }
 0x52b   :  { %v8624_v61 = vor.u32 %v9337_v55, %v8621_v42  ;;  %v8596_v14 = vor.u32 %v9334_v52, %v8595_v0  ;;  %5640 = vmatpush.bf16.msra.mxu2 %v8604_v16  ;;  %v8581_v55 = vld [vmem:[%s12827_s4 + $0x50] sm:$0xf0]  ;;  %v8587_v0 = vld [vmem:[%s12827_s4 + $0x48] sm:$0xf]  ;;  %v9331_v52 = vld [vmem:[%s12827_s4 + $0x54] sm:$0xf0] }
 0x52c   :  { %v8413_v44 = vmul.f32 -1.442695, %v4989_v58  ;;  %v9327_v16 = vld [vmem:[%s12827_s4 + $0x34] sm:$0xf0] }
 0x52d   :  { %v9598_v17 = vpop.eup %9597  ;;  %5652 = vmatpush.bf16.msra.mxu3 %v8624_v61  ;;  %5614 = vmatpush.bf16.msra.mxu0 %v8596_v14  ;;  %v5072_v61 = vld [vmem:[#allocation3 + $0x20] sm:$0xc] }
 0x52e   :  { %v9600_v36 = vpop.eup %9599  ;;  %v12309_v53 = vadd.f32 1.0, %v9598_v17  ;;  %9601 = vpow2.f32 %v8413_v44  ;;  %v5069_v17 = vld [vmem:[#allocation3] sm:$0xc]  ;;  %5627 = vmatpush.bf16.msra.mxu1 %v8600_v47  ;;  %v8571_v47 = vld [vmem:[%s12827_s4 + $0x28] sm:$0xf] }
 0x52f   :  { %v12318_v24 = vadd.f32 1.0, %v9600_v36  ;;  %v4959_v63 = vpop.f32.mrf.mxu2  ;;  %v4972_v10 = vpop.f32.mrf.mxu3 }
 0x530   :  { %9603 = vrcp.f32 %v12309_v53  ;;  %v5003_v48 = vand.u32 2147483647, %v12309_v53  ;;  %vm4999_vm8 = vweird.f32 %v12309_v53  ;;  %v5005_v12 = vand.u32 2147483648, %v12309_v53  ;;  %v9320_v10 = vld [vmem:[%s12827_s4 + $0x4] sm:$0xf] }
 0x531   :  { %9605 = vrcp.f32 %v12318_v24  ;;  %v5024_v58 = vand.u32 2147483648, %v12318_v24  ;;  %v5022_v6 = vand.u32 2147483647, %v12318_v24  ;;  %vm5018_vm9 = vweird.f32 %v12318_v24  ;;  %5653 = vmatpush.bf16.msra.mxu3 %v8608_v19 }
 0x532   :  { %9607 = vtanh.f32 %v4988_v31  ;;  %vm12385_vm10 = vcmp.eq.f32.partialorder %v5003_v48, 8.507059e+37  ;;  %v5006_v36 = vor.u32 1.1754944e-38, %v5005_v12  ;;  %v9330_v31 = vld [vmem:[%s12827_s4 + $0x4c] sm:$0xf0] }
 0x533   :  { %v5025_v27 = vor.u32 1.1754944e-38, %v5024_v58  ;;  %vm12393_vm13 = vcmp.eq.f32.partialorder %v5022_v6, 8.507059e+37  ;;  %v8588_v58 = vor.u32 %v9331_v52, %v8587_v0  ;;  %v8790_v52 = vld [vmem:[#allocation15 + $0xe0] sm:$0xf] }
 0x534   :  { %v9602_v45 = vpop.eup %9601 }
 0x535   :  { %v12347_v4 = vadd.f32 1.0, %v9602_v45  ;;  %5641 = vmatpush.bf16.msra.mxu2 %v8588_v58 }
 0x536   :  { %v9604_v56 = vpop.eup %9603 }
 0x537   :  { %v12364_v38 = vpop.eup %9605  ;;  %v4995_v29 = vmul.f32 %v9604_v56, %v12309_v53  ;;  %9609 = vrcp.f32 %v12347_v4  ;;  %vm5000_vm11 = vweird.f32 %v9604_v56  ;;  %v5042_v34 = vand.u32 2147483647, %v12347_v4  ;;  %v8579_v53 = vld [vmem:[%s12827_s4 + $0x40] sm:$0xf] }
 0x538   :  { %v5014_v59 = vmul.f32 %v12364_v38, %v12318_v24  ;;  %v9608_v3 = vpop.eup %9607  ;;  %vm5019_vm12 = vweird.f32 %v12364_v38  ;;  %vm5001_vm15 = vmor %vm4999_vm8, %vm5000_vm11  ;;  %v5044_v48 = vand.u32 2147483648, %v12347_v4  ;;  %vm5038_vm2 = vweird.f32 %v12347_v4 }
 0x539   :  { %v4996_v22 = vsub.f32 1.0, %v4995_v29  ;;  %vm5020_vm0 = vmor %vm5018_vm9, %vm5019_vm12  ;;  %v9329_v29 = vld [vmem:[%s12827_s4 + $0x4c] sm:$0xf]  ;;  %vm12497_vm4 = vcmp.eq.f32.partialorder %v5042_v34, 8.507059e+37  ;;  %v5071_v34 = vld [vmem:[#allocation3 + $0x10] sm:$0xc] }
 0x53a   :  { %v5015_v44 = vsub.f32 1.0, %v5014_v59  ;;  %v8584_v59 = vor.u32 %v9328_v35, %v8581_v55  ;;  %v8592_v12 = vor.u32 %v9329_v29, %v8589_v43  ;;  %v9380_v29 = vld [vmem:[#allocation15 + $0xe4] sm:$0xf]  ;;  %v8792_v43 = vld [vmem:[#allocation15 + $0xf0] sm:$0xf0] }
 0x53b   :  { %v4997_v11 = vmul.f32 %v9604_v56, %v4996_v22 }
 0x53c   :  { %v5275_v13 = vpop.f32.mrf.mxu0  ;;  %v5288_v37 = vpop.f32.mrf.mxu1  ;;  %v5016_v2 = vmul.f32 %v12364_v38, %v5015_v44  ;;  %5628 = vmatpush.bf16.msra.mxu1 %v8584_v59  ;;  %5654 = vmatpush.bf16.msra.mxu3 %v8592_v12  ;;  %v8798_v59 = vld [vmem:[#allocation15 + $0xe8] sm:$0xf]  ;;  %v8795_v12 = vor.u32 %v9380_v29, %v8792_v43  ;;  %v8742_v43 = vld [vmem:[#allocation15 + $0x80] sm:$0xf] }
 0x53d   :  { %v5322_v9 = vrot.slane %v5275_v13, 6  ;;  %v5323_v49 = vrot.slane %v5288_v37, 6  ;;  %v12391_v7 = vpop.eup %9609  ;;  %v4998_v63 = vadd.f32 %v9604_v56, %v4997_v11  ;;  %v8565_v37 = vld [vmem:[%s12827_s4 + $0x30] sm:$0xf0]  ;;  %v9325_v11 = vld [vmem:[%s12827_s4 + $0x2c] sm:$0xf] }
 0x53e   :  { %v5017_v26 = vadd.f32 %v12364_v38, %v5016_v2  ;;  %v5034_v20 = vmul.f32 %v12391_v7, %v12347_v4  ;;  %vm5039_vm1 = vweird.f32 %v12391_v7  ;;  %v8568_v23 = vor.u32 %v9324_v50, %v8565_v37  ;;  %v8800_v50 = vld [vmem:[#allocation15 + $0xf8] sm:$0xf0] }
 0x53f   :  { %v5330_v57 = vadd.f32 %v5322_v9, %v5069_v17  ;;  %v5331_v28 = vadd.f32 %v5323_v49, %v5070_v5  ;;  %v5002_v25 = vsel %vm5001_vm15, %v9604_v56, %v4998_v63  ;;  %v8572_v9 = vor.u32 %v9327_v16, %v8571_v47  ;;  %v8573_v17 = vld [vmem:[%s12827_s4 + $0x38] sm:$0xf0]  ;;  %v8547_v49 = vld [vmem:[%s12827_s4] sm:$0xf]  ;;  %vm12491_vm3 = vmor %vm5038_vm2, %vm5039_vm1 }
 0x540   :  { %v5007_v8 = vsel %vm12385_vm10, %v5006_v36, %v5002_v25  ;;  %v5021_v62 = vsel %vm5020_vm0, %v12364_v38, %v5017_v26  ;;  %v5035_v33 = vsub.f32 1.0, %v5034_v20  ;;  %v8580_v38 = vor.u32 %v9330_v31, %v8579_v53  ;;  %v8555_v31 = vld [vmem:[%s12827_s4 + $0x8] sm:$0xf]  ;;  %5629 = vmatpush.bf16.msra.mxu1 %v8568_v23  ;;  %v9378_v23 = vld [vmem:[#allocation15 + $0xcc] sm:$0xf0] }
 0x541   :  { %v8542_v46 = vmul.f32 -1.442695, %v5330_v57  ;;  %v8543_v18 = vmul.f32 -1.442695, %v5331_v28  ;;  %v5026_v42 = vsel %vm12393_vm13, %v5025_v27, %v5021_v62  ;;  %v5052_v45 = vmul.f32 %v9608_v3, %v5007_v8  ;;  %v9322_v57 = vld [vmem:[%s12827_s4 + $0xc] sm:$0xf0]  ;;  %5642 = vmatpush.bf16.msra.mxu2 %v8572_v9 }
 0x542   :  { %v5051_v51 = vmul.f32 %v5049_v15, %v5026_v42  ;;  %v5036_v1 = vmul.f32 %v12391_v7, %v5035_v33  ;;  %v9326_v15 = vld [vmem:[%s12827_s4 + $0x2c] sm:$0xf0]  ;;  %5615 = vmatpush.bf16.msra.mxu0 %v8580_v38  ;;  %v8576_v36 = vor.u32 %v9325_v11, %v8573_v17  ;;  %v5393_v63 = vrot.slane %v12239_v60, 6  ;;  %v8549_v28 = vld [vmem:[%s12827_s4 + $0x10] sm:$0xf0] }
 0x543   :  { %9611 = vpow2.f32 %v8542_v46  ;;  %v12417_v30 = vpop.f32.mrf.mxu2  ;;  %v5314_v24 = vpop.f32.mrf.mxu3  ;;  %v8564_v13 = vor.u32 %v9326_v15, %v8563_v54  ;;  %v8548_v53 = vor.u32 %v9322_v57, %v8547_v49  ;;  %v9323_v8 = vld [vmem:[%s12827_s4 + $0x14] sm:$0xf0]  ;;  %v5045_v4 = vor.u32 1.1754944e-38, %v5044_v48  ;;  %v9321_v33 = vld [vmem:[%s12827_s4 + $0xc] sm:$0xf] }
 0x544   :  { %9613 = vpow2.f32 %v8543_v18  ;;  %v5277_v56 = vpop.f32.mrf.mxu0  ;;  %v5290_v14 = vpop.f32.mrf.mxu1  ;;  %v5325_v32 = vrot.slane %v5314_v24, 6  ;;  %v12452_v22 = vadd.f32 %v5052_v45, %v5051_v51  ;;  %v5037_v44 = vadd.f32 %v12391_v7, %v5036_v1  ;;  %5655 = vmatpush.bf16.msra.mxu3 %v8576_v36  ;;  %v8557_v42 = vld [vmem:[%s12827_s4 + $0x18] sm:$0xf0]  ;;  %v9382_v1 = vld [vmem:[#allocation15 + $0xec] sm:$0xf0] }
 0x545   :  { %v5324_v3 = vrot.slane %v12417_v30, 6  ;;  %v8552_v62 = vor.u32 %v9320_v10, %v8549_v28  ;;  %v8560_v0 = vor.u32 %v9321_v33, %v8557_v42  ;;  %v12525_v14 = vld [vmem:[#allocation10 + $0xc] sm:$0x3]  ;;  %v8791_v38 = vor.u32 %v9382_v1, %v8790_v52  ;;  %v9383_v54 = vld [vmem:[#allocation15 + $0xf4] sm:$0xf0] }
 0x546   :  { %v5333_v6 = vadd.f32 %v5325_v32, %v5072_v61  ;;  %9615 = vtanh.f32 %v12452_v22  ;;  %5616 = vmatpush.bf16.msra.mxu0 %v8564_v13  ;;  %v5041_v30 = vsel %vm12491_vm3, %v12391_v7, %v5037_v44  ;;  %v5064_v24 = vrot.slane %v12452_v22, 4  ;;  %v9381_v15 = vld [vmem:[#allocation15 + $0xec] sm:$0xf]  ;;  %v8774_v44 = vld [vmem:[#allocation15 + $0xc0] sm:$0xf] }
 0x547   :  { %v5332_v35 = vadd.f32 %v5324_v3, %v5071_v34  ;;  %v8556_v61 = vor.u32 %v9323_v8, %v8555_v31  ;;  %v5046_v51 = vsel %vm12497_vm4, %v5045_v4, %v5041_v30  ;;  %5630 = vmatpush.bf16.msra.mxu1 %v8552_v62  ;;  %v8799_v47 = vor.u32 %v9383_v54, %v8798_v59  ;;  %v9376_v49 = vld [vmem:[#allocation15 + $0xc4] sm:$0xf]  ;;  %v8782_v3 = vld [vmem:[#allocation15 + $0xc8] sm:$0xf]  ;;  %v9379_v36 = vld [vmem:[#allocation15 + $0xd4] sm:$0xf0] }
 0x548   :  { %v8544_v2 = vmul.f32 -1.442695, %v5333_v6  ;;  %5656 = vmatpush.bf16.msra.mxu3 %v8560_v0  ;;  %v8803_v16 = vor.u32 %v9381_v15, %v8800_v50  ;;  %v8775_v17 = vor.u32 %v9378_v23, %v8774_v44  ;;  %vm4724_vm9 = vcmp.gt.f32.partialorder %v12525_v14, 0.0  ;;  %v9377_v26 = vld [vmem:[#allocation15 + $0xcc] sm:$0xf] }
 0x549   :  { %v9612_v19 = vpop.eup %9611  ;;  %5643 = vmatpush.bf16.msra.mxu2 %v8556_v61  ;;  %v8783_v31 = vor.u32 %v9379_v36, %v8782_v3  ;;  %v8784_v8 = vld [vmem:[#allocation15 + $0xd8] sm:$0xf0]  ;;  %v8758_v30 = vld [vmem:[#allocation15 + $0xa0] sm:$0xf]  ;;  %v9372_v61 = vld [vmem:[#allocation15 + $0xa4] sm:$0xf] }
 0x54a   :  { %v9614_v5 = vpop.eup %9613  ;;  %v12480_v27 = vadd.f32 1.0, %v9612_v19  ;;  %9617 = vpow2.f32 %v8544_v2  ;;  %5617 = vmatpush.bf16.msra.mxu0 %v8548_v53  ;;  %v8776_v19 = vld [vmem:[#allocation15 + $0xd0] sm:$0xf0]  ;;  %v8787_v42 = vor.u32 %v9377_v26, %v8784_v8  ;;  %v8766_v52 = vld [vmem:[#allocation15 + $0xa8] sm:$0xf] }
 0x54b   :  { %v12501_v46 = vadd.f32 1.0, %v9614_v5  ;;  %v5303_v25 = vpop.f32.mrf.mxu2  ;;  %v5316_v18 = vpop.f32.mrf.mxu3  ;;  %5962 = vmatpush.bf16.msrb.mxu1 %v8795_v12  ;;  %v8779_v53 = vor.u32 %v9376_v49, %v8776_v19  ;;  %v8760_v0 = vld [vmem:[#allocation15 + $0xb0] sm:$0xf0]  ;;  %v9370_v59 = vld [vmem:[#allocation15 + $0x8c] sm:$0xf0] }
 0x54c   :  { %9619 = vrcp.f32 %v12480_v27  ;;  %v5347_v55 = vand.u32 2147483647, %v12480_v27  ;;  %v5349_v48 = vand.u32 2147483648, %v12480_v27  ;;  %v9616_v7 = vpop.eup %9615  ;;  %vm5343_vm5 = vweird.f32 %v12480_v27  ;;  %5988 = vmatpush.bf16.msrb.mxu3 %v8803_v16  ;;  %v8744_v50 = vld [vmem:[#allocation15 + $0x90] sm:$0xf0] }
 0x54d   :  { %9621 = vrcp.f32 %v12501_v46  ;;  %v5368_v45 = vand.u32 2147483648, %v12501_v46  ;;  %v5366_v56 = vand.u32 2147483647, %v12501_v46  ;;  %v5055_v32 = vmul.f32 %v9616_v7, %v5046_v51  ;;  %5975 = vmatpush.bf16.msrb.mxu2 %v8799_v47  ;;  %v9375_v7 = vld [vmem:[#allocation15 + $0xb4] sm:$0xf0] }
 0x54e   :  { %9623 = vtanh.f32 %v5332_v35  ;;  %5949 = vmatpush.bf16.msrb.mxu0 %v8791_v38  ;;  %vm5362_vm6 = vweird.f32 %v12501_v46  ;;  %vm12545_vm10 = vcmp.eq.f32.partialorder %v5347_v55, 8.507059e+37  ;;  %v5350_v10 = vor.u32 1.1754944e-38, %v5349_v48  ;;  %v9374_v35 = vld [vmem:[#allocation15 + $0xac] sm:$0xf0]  ;;  %v8768_v51 = vld [vmem:[#allocation15 + $0xb8] sm:$0xf0] }
 0x54f   :  { %v5057_v37 = vrot.slane %v5055_v32, 4  ;;  %v5369_v34 = vor.u32 1.1754944e-38, %v5368_v45  ;;  %vm12573_vm13 = vcmp.eq.f32.partialorder %v5366_v56, 8.507059e+37  ;;  %5963 = vmatpush.bf16.msrb.mxu1 %v8779_v53  ;;  %v8759_v48 = vor.u32 %v9374_v35, %v8758_v30  ;;  %v9373_v56 = vld [vmem:[#allocation15 + $0xac] sm:$0xf] }
 0x550   :  { %v9618_v58 = vpop.eup %9617  ;;  %v8763_v45 = vor.u32 %v9372_v61, %v8760_v0  ;;  %v8767_v38 = vor.u32 %v9375_v7, %v8766_v52  ;;  %v8771_v29 = vor.u32 %v9373_v56, %v8768_v51  ;;  %5989 = vmatpush.bf16.msrb.mxu3 %v8787_v42  ;;  %v8743_v15 = vor.u32 %v9370_v59, %v8742_v43  ;;  %v9371_v47 = vld [vmem:[#allocation15 + $0x94] sm:$0xf0]  ;;  %v9364_v26 = vld [vmem:[#allocation15 + $0x64] sm:$0xf]  ;;  %v9365_v8 = vld [vmem:[#allocation15 + $0x6c] sm:$0xf] }
 0x551   :  { %v12532_v13 = vadd.f32 1.0, %v9618_v58  ;;  %v5059_v28 = vsel %vm4724_vm9, %v5057_v37, 0.0  ;;  %v5062_v18 = vsel %vm4724_vm9, %v5057_v37, %v12171_v21  ;;  %5976 = vmatpush.bf16.msrb.mxu2 %v8783_v31  ;;  %v9368_v58 = vld [vmem:[#allocation15 + $0x84] sm:$0xf]  ;;  %v8750_v37 = vld [vmem:[#allocation15 + $0x88] sm:$0xf]  ;;  %v12623_v51 = vsel %vm4724_vm9, %v5064_v24, %v12148_v39 }
 0x552   :  { %v12530_v6 = vpop.eup %9619  ;;  %5061 = vst [vmem:[#allocation4 + $0xc] sm:$0x3] %v5059_v28  ;;  %5950 = vmatpush.bf16.msrb.mxu0 %v8775_v17  ;;  %v5417_v33 = vpack.c.bf16 %v5062_v18, %v5062_v18  ;;  %v8752_v17 = vld [vmem:[#allocation15 + $0x98] sm:$0xf0]  ;;  %v8751_v36 = vor.u32 %v9371_v47, %v8750_v37  ;;  %v9366_v28 = vld [vmem:[#allocation15 + $0x6c] sm:$0xf0] }
 0x553   :  { %v12534_v9 = vpop.eup %9621  ;;  %v5339_v11 = vmul.f32 %v12530_v6, %v12480_v27  ;;  %vm5344_vm7 = vweird.f32 %v12530_v6  ;;  %9625 = vrcp.f32 %v12532_v13  ;;  %v5386_v23 = vand.u32 2147483647, %v12532_v13  ;;  %5964 = vmatpush.bf16.msrb.mxu1 %v8763_v45  ;;  %v8734_v31 = vld [vmem:[#allocation15 + $0x68] sm:$0xf]  ;;  %v8736_v21 = vld [vmem:[#allocation15 + $0x78] sm:$0xf0] }
 0x554   :  { %v5358_v2 = vmul.f32 %v12534_v9, %v12501_v46  ;;  %vm5363_vm8 = vweird.f32 %v12534_v9  ;;  %vm12555_vm11 = vmor %vm5343_vm5, %vm5344_vm7  ;;  %v9624_v4 = vpop.eup %9623  ;;  %5618 = vmatmul.bf16.vlgmr.msra.gmra.mxu0 %v5417_v33  ;;  %5631 = vmatmul.bf16.vlgmr.msra.gmra.mxu1 %v5417_v33  ;;  %v9362_v35 = vld [vmem:[#allocation15 + $0x4c] sm:$0xf0]  ;;  %v8712_v42 = vld [vmem:[#allocation15 + $0x50] sm:$0xf0]  ;;  %vm5382_vm0 = vweird.f32 %v12532_v13 }
 0x555   :  { %v5340_v57 = vsub.f32 1.0, %v5339_v11  ;;  %vm12566_vm12 = vmor %vm5362_vm6, %vm5363_vm8  ;;  %5644 = vmatmul.bf16.vlgmr.msra.gmra.mxu2 %v5417_v33  ;;  %5657 = vmatmul.bf16.vlgmr.msra.gmra.mxu3 %v5417_v33  ;;  %v9369_v11 = vld [vmem:[#allocation15 + $0x8c] sm:$0xf]  ;;  %v8710_v33 = vld [vmem:[#allocation15 + $0x40] sm:$0xf]  ;;  %vm12630_vm2 = vcmp.eq.f32.partialorder %v5386_v23, 8.507059e+37 }
 0x556   :  { %v5359_v20 = vsub.f32 1.0, %v5358_v2  ;;  %5951 = vmatpush.bf16.msrb.mxu0 %v8759_v48  ;;  %5977 = vmatpush.bf16.msrb.mxu2 %v8767_v38  ;;  %v8755_v18 = vor.u32 %v9369_v11, %v8752_v17  ;;  %v5388_v48 = vand.u32 2147483648, %v12532_v13  ;;  %v8718_v61 = vld [vmem:[#allocation15 + $0x48] sm:$0xf]  ;;  %v9363_v0 = vld [vmem:[#allocation15 + $0x54] sm:$0xf0]  ;;  %v8711_v45 = vor.u32 %v9362_v35, %v8710_v33 }
 0x557   :  { %v5341_v62 = vmul.f32 %v12530_v6, %v5340_v57  ;;  %v8726_v57 = vld [vmem:[#allocation15 + $0x60] sm:$0xf]  ;;  %5990 = vmatpush.bf16.msrb.mxu3 %v8771_v29  ;;  %v9361_v7 = vld [vmem:[#allocation15 + $0x4c] sm:$0xf]  ;;  %v8720_v56 = vld [vmem:[#allocation15 + $0x58] sm:$0xf0]  ;;  %v8719_v38 = vor.u32 %v9363_v0, %v8718_v61 }
 0x558   :  { %v5360_v55 = vmul.f32 %v12534_v9, %v5359_v20  ;;  %v8728_v20 = vld [vmem:[#allocation15 + $0x70] sm:$0xf0]  ;;  %v8727_v53 = vor.u32 %v9366_v28, %v8726_v57  ;;  %v8694_v29 = vld [vmem:[#allocation15 + $0x20] sm:$0xf]  ;;  %v9358_v43 = vld [vmem:[#allocation15 + $0x2c] sm:$0xf0]  ;;  %v8723_v24 = vor.u32 %v9361_v7, %v8720_v56 }
 0x559   :  { %v5342_v46 = vadd.f32 %v12530_v6, %v5341_v62  ;;  %v12579_v1 = vpop.eup %9625  ;;  %v6076_v2 = vld [vmem:[#allocation4 + $0xc] sm:$0x3]  ;;  %v9356_v59 = vld [vmem:[#allocation15 + $0x24] sm:$0xf]  ;;  %v5389_v39 = vor.u32 1.1754944e-38, %v5388_v48  ;;  %v8695_v14 = vor.u32 %v9358_v43, %v8694_v29 }
 0x55a   :  { %v5361_v32 = vadd.f32 %v12534_v9, %v5360_v55  ;;  %v5378_v54 = vmul.f32 %v12579_v1, %v12532_v13  ;;  %vm5383_vm15 = vweird.f32 %v12579_v1  ;;  %5952 = vmatpush.bf16.msrb.mxu0 %v8743_v15  ;;  %5978 = vmatpush.bf16.msrb.mxu2 %v8751_v36  ;;  %v9360_v55 = vld [vmem:[#allocation15 + $0x44] sm:$0xf]  ;;  %v8704_v37 = vld [vmem:[#allocation15 + $0x38] sm:$0xf0]  ;;  %v8678_v47 = vld [vmem:[#allocation15] sm:$0xf] }
 0x55b   :  { %v5346_v12 = vsel %vm12555_vm11, %v12530_v6, %v5342_v46  ;;  %v8747_v6 = vor.u32 %v9368_v58, %v8744_v50  ;;  %vm12614_vm1 = vmor %vm5382_vm0, %vm5383_vm15  ;;  %5991 = vmatpush.bf16.msrb.mxu3 %v8755_v18  ;;  %v8739_v46 = vor.u32 %v9365_v8, %v8736_v21  ;;  %v8696_v58 = vld [vmem:[#allocation15 + $0x30] sm:$0xf0]  ;;  %v9357_v50 = vld [vmem:[#allocation15 + $0x2c] sm:$0xf] }
 0x55c   :  { %v5351_v16 = vsel %vm12545_vm10, %v5350_v10, %v5346_v12  ;;  %v5365_v44 = vsel %vm12566_vm12, %v12534_v9, %v5361_v32  ;;  %v5379_v3 = vsub.f32 1.0, %v5378_v54  ;;  %v12600_v9 = vld [vmem:[%s12829_s6] ss:$0 sm:$0xff]  ;;  %v8715_v32 = vor.u32 %v9360_v55, %v8712_v42  ;;  %v8702_v12 = vld [vmem:[#allocation15 + $0x28] sm:$0xf] }
 0x55d   :  { %v5370_v49 = vsel %vm12573_vm13, %v5369_v34, %v5365_v44  ;;  %v5396_v19 = vmul.f32 %v9624_v4, %v5351_v16  ;;  %v6096_v10 = vmul.f32 %v12600_v9, %v6076_v2  ;;  %5965 = vmatpush.bf16.msrb.mxu1 %v8747_v6  ;;  %v8731_v34 = vor.u32 %v9364_v26, %v8728_v20  ;;  %v9359_v54 = vld [vmem:[#allocation15 + $0x34] sm:$0xf0]  ;;  %v9352_v11 = vld [vmem:[#allocation15 + $0x4] sm:$0xf]  ;;  %v8680_v13 = vld [vmem:[#allocation15 + $0x10] sm:$0xf0] }
 0x55e   :  { %v5395_v5 = vmul.f32 %v5393_v63, %v5370_v49  ;;  %v5380_v25 = vmul.f32 %v12579_v1, %v5379_v3  ;;  %v9367_v63 = vld [vmem:[#allocation15 + $0x74] sm:$0xf0]  ;;  %5953 = vmatpush.bf16.msrb.mxu0 %v8727_v53  ;;  %v8699_v44 = vor.u32 %v9356_v59, %v8696_v58  ;;  %v8703_v6 = vor.u32 %v9359_v54, %v8702_v12  ;;  %v8686_v17 = vld [vmem:[#allocation15 + $0x8] sm:$0xf]  ;;  %v9353_v28 = vld [vmem:[#allocation15 + $0xc] sm:$0xf] }
 0x55f   :  { %v6117_v27 = vsel %vm6098_vm14, %v6096_v10, 0.0  ;;  %v8735_v62 = vor.u32 %v9367_v63, %v8734_v31  ;;  %5992 = vmatpush.bf16.msrb.mxu3 %v8739_v46  ;;  %v9355_v49 = vld [vmem:[#allocation15 + $0x14] sm:$0xf0]  ;;  %v8707_v2 = vor.u32 %v9357_v50, %v8704_v37  ;;  %v8688_v26 = vld [vmem:[#allocation15 + $0x18] sm:$0xf0] }
 0x560   :  { %v12605_v4 = vadd.f32 %v5396_v19, %v5395_v5  ;;  %v5381_v30 = vadd.f32 %v12579_v1, %v5380_v25  ;;  %6118 = vadd.xlane.f32.xlu0 %v6117_v27  ;;  %v5067_v19 = vld [vmem:[#allocation10 + $0x2] sm:$0x3]  ;;  %v8683_v5 = vor.u32 %v9352_v11, %v8680_v13  ;;  %v8687_v10 = vor.u32 %v9355_v49, %v8686_v17  ;;  %v5413_v42 = vld [vmem:[#allocation2 + $0x8] sm:$0xc0]  ;;  %v5414_v48 = vld [vmem:[#allocation2 + $0x20] sm:$0xc0] }
 0x561   :  { %5966 = vmatpush.bf16.msrb.mxu1 %v8731_v34  ;;  %5979 = vmatpush.bf16.msrb.mxu2 %v8735_v62  ;;  %vm5068_vm3 = vcmp.gt.f32.partialorder %v5067_v19, 0.0  ;;  %v8691_v53 = vor.u32 %v9353_v28, %v8688_v26  ;;  %v5753_v19 = vld [vmem:[#allocation3 + $0x18] sm:$0x3] }
 0x562   :  { %9627 = vtanh.f32 %v12605_v4  ;;  %v5385_v15 = vsel %vm12614_vm1, %v12579_v1, %v5381_v30  ;;  %5954 = vmatpush.bf16.msrb.mxu0 %v8711_v45  ;;  %v9354_v1 = vld [vmem:[#allocation15 + $0xc] sm:$0xf0]  ;;  %v5408_v34 = vrot.slane %v12605_v4, 2 }
 0x563   :  { %v5390_v23 = vsel %vm12630_vm2, %v5389_v39, %v5385_v15  ;;  %5993 = vmatpush.bf16.msrb.mxu3 %v8723_v24  ;;  %v8679_v36 = vor.u32 %v9354_v1, %v8678_v47  ;;  %v5415_v39 = vld [vmem:[#allocation2 + $0x28] sm:$0xc0]  ;;  %v5752_v1 = vld [vmem:[#allocation3] sm:$0x3] }
 0x564   :  { %v12652_v21 = vsel %vm5068_vm3, %v5408_v34, %v12239_v60 }
 0x565   :  { %5967 = vmatpush.bf16.msrb.mxu1 %v8715_v32  ;;  %5980 = vmatpush.bf16.msrb.mxu2 %v8719_v38  ;;  %v5416_v32 = vld [vmem:[#allocation2 + $0x38] sm:$0xc0] }
 0x566   :  { %5955 = vmatpush.bf16.msrb.mxu0 %v8695_v14 }
 0x567   :  { %5994 = vmatpush.bf16.msrb.mxu3 %v8707_v2 }
 0x568   :  { %v9628_v16 = vpop.eup %9627 }
 0x569   :  { %v5399_v3 = vmul.f32 %v9628_v16, %v5390_v23  ;;  %5968 = vmatpush.bf16.msrb.mxu1 %v8699_v44  ;;  %5981 = vmatpush.bf16.msrb.mxu2 %v8703_v6  ;;  %v5737_v6 = vrot.slane %v12623_v51, 2 }
 0x56a   :  { %5956 = vmatpush.bf16.msrb.mxu0 %v8679_v36 }
 0x56b   :  { %v5401_v57 = vrot.slane %v5399_v3, 2  ;;  %5995 = vmatpush.bf16.msrb.mxu3 %v8691_v53 }
 0x56d   :  { %v5403_v20 = vsel %vm5068_vm3, %v5401_v57, 0.0  ;;  %v5406_v25 = vsel %vm5068_vm3, %v5401_v57, %v12227_v40  ;;  %5969 = vmatpush.bf16.msrb.mxu1 %v8683_v5  ;;  %5982 = vmatpush.bf16.msrb.mxu2 %v8687_v10  ;;  %v12644_v40 = vld [vmem:[#allocation5 + $0xe] sm:$0x3] }
 0x56e   :  { %5405 = vst [vmem:[#allocation5 + $0x2] sm:$0x3] %v5403_v20  ;;  %v5756_v18 = vpack.c.bf16 %v5406_v25, %v5406_v25  ;;  %v6134_v27 = vmul.f32 %v12234_v41, %v12644_v40 }
 0x570   :  { %5957 = vmatmul.bf16.vlgmr.msrb.gmra.mxu0 %v5756_v18  ;;  %5970 = vmatmul.bf16.vlgmr.msrb.gmra.mxu1 %v5756_v18  ;;  %v6156_v62 = vsel %vm6098_vm14, %v6134_v27, 0.0 }
 0x571   :  { %5983 = vmatmul.bf16.vlgmr.msrb.gmra.mxu2 %v5756_v18  ;;  %5996 = vmatmul.bf16.vlgmr.msrb.gmra.mxu3 %v5756_v18 }
 0x575   :  { %v12639_v31 = vld [vmem:[#allocation5 + $0x2] sm:$0x3] }
 0x576   :  { %v6128_v63 = vmul.f32 %v12234_v41, %v12639_v31 }
 0x578   :  { %v6138_v8 = vsel %vm6098_vm14, %v6128_v63, 0.0 }
 0x579   :  { %6139 = vadd.xlane.f32.xlu0 %v6138_v8 }
 0x581   :  { %6157 = vadd.xlane.f32.xlu0 %v6156_v62 }
 0x5d1   :  { %v5619_v33 = vpop.f32.mrf.mxu0  ;;  %v5632_v30 = vpop.f32.mrf.mxu1 }
 0x5d2   :  { %v5666_v35 = vrot.slane %v5619_v33, 2  ;;  %v5667_v55 = vrot.slane %v5632_v30, 2 }
 0x5d4   :  { %v5674_v61 = vadd.f32 %v5666_v35, %v5413_v42  ;;  %v5675_v0 = vadd.f32 %v5667_v55, %v5414_v48 }
 0x5d6   :  { %v8673_v52 = vmul.f32 -1.442695, %v5674_v61  ;;  %v8674_v46 = vmul.f32 -1.442695, %v5675_v0 }
 0x5d8   :  { %9629 = vpow2.f32 %v8673_v52  ;;  %v5645_v41 = vpop.f32.mrf.mxu2  ;;  %v5658_v4 = vpop.f32.mrf.mxu3  ;;  %v5755_v52 = vld [vmem:[#allocation3 + $0x20] sm:$0x3] }
 0x5d9   :  { %9631 = vpow2.f32 %v8674_v46  ;;  %v5669_v45 = vrot.slane %v5658_v4, 2  ;;  %v5621_v7 = vpop.f32.mrf.mxu0  ;;  %v5634_v56 = vpop.f32.mrf.mxu1  ;;  %v5668_v15 = vrot.slane %v5645_v41, 2 }
 0x5db   :  { %v5677_v60 = vadd.f32 %v5669_v45, %v5416_v32  ;;  %v5676_v24 = vadd.f32 %v5668_v15, %v5415_v39  ;;  %v5754_v15 = vld [vmem:[#allocation3 + $0x10] sm:$0x3] }
 0x5dd   :  { %v8675_v38 = vmul.f32 -1.442695, %v5677_v60 }
 0x5de   :  { %v9630_v29 = vpop.eup %9629 }
 0x5df   :  { %v9632_v43 = vpop.eup %9631  ;;  %v5681_v59 = vadd.f32 1.0, %v9630_v29  ;;  %9633 = vpow2.f32 %v8675_v38 }
 0x5e0   :  { %v5700_v58 = vadd.f32 1.0, %v9632_v43  ;;  %v5647_v12 = vpop.f32.mrf.mxu2  ;;  %v5660_v54 = vpop.f32.mrf.mxu3 }
 0x5e1   :  { %9635 = vrcp.f32 %v5681_v59  ;;  %v5691_v23 = vand.u32 2147483647, %v5681_v59  ;;  %v5693_v17 = vand.u32 2147483648, %v5681_v59  ;;  %vm5687_vm7 = vweird.f32 %v5681_v59  ;;  %v5411_v54 = vld [vmem:[#allocation10 + $0xe] sm:$0x3] }
 0x5e2   :  { %9637 = vrcp.f32 %v5700_v58  ;;  %v5712_v2 = vand.u32 2147483648, %v5700_v58  ;;  %v5710_v10 = vand.u32 2147483647, %v5700_v58  ;;  %vm5706_vm6 = vweird.f32 %v5700_v58 }
 0x5e3   :  { %v5694_v25 = vor.u32 1.1754944e-38, %v5693_v17  ;;  %vm5692_vm10 = vcmp.eq.f32.partialorder %v5691_v23, 8.507059e+37  ;;  %vm5412_vm1 = vcmp.gt.f32.partialorder %v5411_v54, 0.0  ;;  %v6101_v54 = vpop.xlane.xlu0 %6100 }
 0x5e4   :  { %v5713_v8 = vor.u32 1.1754944e-38, %v5712_v2  ;;  %vm5711_vm11 = vcmp.eq.f32.partialorder %v5710_v10, 8.507059e+37 }
 0x5e5   :  { %v9634_v22 = vpop.eup %9633 }
 0x5e6   :  { %v12654_v14 = vadd.f32 1.0, %v9634_v22 }
 0x5e7   :  { %v9636_v50 = vpop.eup %9635 }
 0x5e8   :  { %v9638_v37 = vpop.eup %9637  ;;  %v5683_v47 = vmul.f32 %v9636_v50, %v5681_v59  ;;  %9639 = vrcp.f32 %v12654_v14  ;;  %vm5688_vm4 = vweird.f32 %v9636_v50  ;;  %v5732_v60 = vand.u32 2147483648, %v12654_v14 }
 0x5e9   :  { %v5702_v16 = vmul.f32 %v9638_v37, %v5700_v58  ;;  %9641 = vtanh.f32 %v5676_v24  ;;  %vm5707_vm5 = vweird.f32 %v9638_v37  ;;  %vm5689_vm8 = vmor %vm5687_vm7, %vm5688_vm4  ;;  %vm5726_vm13 = vweird.f32 %v12654_v14 }
 0x5ea   :  { %v5684_v44 = vsub.f32 1.0, %v5683_v47  ;;  %vm5708_vm9 = vmor %vm5706_vm6, %vm5707_vm5  ;;  %v5730_v43 = vand.u32 2147483647, %v12654_v14  ;;  %v5733_v12 = vor.u32 1.1754944e-38, %v5732_v60 }
 0x5eb   :  { %v5703_v13 = vsub.f32 1.0, %v5702_v16 }
 0x5ec   :  { %v5685_v36 = vmul.f32 %v9636_v50, %v5684_v44  ;;  %vm5731_vm0 = vcmp.eq.f32.partialorder %v5730_v43, 8.507059e+37 }
 0x5ed   :  { %v5958_v11 = vpop.f32.mrf.mxu0  ;;  %v5971_v3 = vpop.f32.mrf.mxu1  ;;  %v5704_v5 = vmul.f32 %v9638_v37, %v5703_v13 }
 0x5ee   :  { %v6001_v49 = vadd.f32 %v5958_v11, %v5752_v1  ;;  %v6002_v57 = vadd.f32 %v5971_v3, %v5753_v19  ;;  %v9640_v26 = vpop.eup %9639  ;;  %v5686_v20 = vadd.f32 %v9636_v50, %v5685_v36 }
 0x5ef   :  { %v5705_v18 = vadd.f32 %v9638_v37, %v5704_v5  ;;  %v5722_v53 = vmul.f32 %v9640_v26, %v12654_v14  ;;  %v9642_v63 = vpop.eup %9641  ;;  %vm5727_vm12 = vweird.f32 %v9640_v26 }
 0x5f0   :  { %v8804_v28 = vmul.f32 -1.442695, %v6001_v49  ;;  %v8805_v51 = vmul.f32 -1.442695, %v6002_v57  ;;  %v5690_v27 = vsel %vm5689_vm8, %v9636_v50, %v5686_v20  ;;  %vm5728_vm15 = vmor %vm5726_vm13, %vm5727_vm12 }
 0x5f1   :  { %v5695_v34 = vsel %vm5692_vm10, %v5694_v25, %v5690_v27  ;;  %v5709_v62 = vsel %vm5708_vm9, %v9638_v37, %v5705_v18  ;;  %v5723_v33 = vsub.f32 1.0, %v5722_v53 }
 0x5f2   :  { %9643 = vpow2.f32 %v8804_v28  ;;  %v5714_v30 = vsel %vm5711_vm11, %v5713_v8, %v5709_v62  ;;  %v5740_v35 = vmul.f32 %v9642_v63, %v5695_v34 }
 0x5f3   :  { %9645 = vpow2.f32 %v8805_v51  ;;  %v5739_v48 = vmul.f32 %v5737_v6, %v5714_v30  ;;  %v5724_v61 = vmul.f32 %v9640_v26, %v5723_v33 }
 0x5f4   :  { %v5984_v55 = vpop.f32.mrf.mxu2  ;;  %v5997_v46 = vpop.f32.mrf.mxu3 }
 0x5f5   :  { %v5960_v42 = vpop.f32.mrf.mxu0  ;;  %v5973_v0 = vpop.f32.mrf.mxu1  ;;  %v5741_v4 = vadd.f32 %v5740_v35, %v5739_v48  ;;  %v6004_v45 = vadd.f32 %v5997_v46, %v5755_v52  ;;  %v5725_v56 = vadd.f32 %v9640_v26, %v5724_v61  ;;  %v6003_v50 = vadd.f32 %v5984_v55, %v5754_v15  ;;  %v12668_v61 = vld [vmem:[#allocation5 + $0xa] sm:$0x3] }
 0x5f6   :  { %v6107_v15 = vpop.xlane.xlu1 %6106 }
 0x5f7   :  { %9647 = vtanh.f32 %v5741_v4  ;;  %v8806_v29 = vmul.f32 -1.442695, %v6004_v45  ;;  %v5729_v59 = vsel %vm5728_vm15, %v9640_v26, %v5725_v56 }
 0x5f8   :  { %v9644_v41 = vpop.eup %9643  ;;  %v5734_v24 = vsel %vm5731_vm0, %v5733_v12, %v5729_v59  ;;  %v12679_v59 = vld [vmem:[#allocation5 + $0xc] sm:$0x3]  ;;  %vm6179_vm0 = vcmask 1024  }
 0x5f9   :  { %v9646_v7 = vpop.eup %9645  ;;  %v6008_v32 = vadd.f32 1.0, %v9644_v41 }
 0x5fa   :  { %v6027_v38 = vadd.f32 1.0, %v9646_v7 }
 0x5fb   :  { %9649 = vrcp.f32 %v6008_v32  ;;  %v6018_v49 = vand.u32 2147483647, %v6008_v32  ;;  %v6020_v19 = vand.u32 2147483648, %v6008_v32  ;;  %vm6014_vm4 = vweird.f32 %v6008_v32 }
 0x5fc   :  { %9651 = vrcp.f32 %v6027_v38  ;;  %v5986_v58 = vpop.f32.mrf.mxu2  ;;  %v5999_v22 = vpop.f32.mrf.mxu3  ;;  %v6039_v3 = vand.u32 2147483648, %v6027_v38  ;;  %v6037_v57 = vand.u32 2147483647, %v6027_v38  ;;  %vm6033_vm5 = vweird.f32 %v6027_v38 }
 0x5fd   :  { %9653 = vpow2.f32 %v8806_v29  ;;  %v9648_v39 = vpop.eup %9647  ;;  %v6021_v10 = vor.u32 1.1754944e-38, %v6020_v19  ;;  %vm6019_vm8 = vcmp.eq.f32.partialorder %v6018_v49, 8.507059e+37  ;;  %v6104_v22 = vpop.xlane.xlu0 %6103 }
 0x5fe   :  { %v5743_v47 = vmul.f32 %v9648_v39, %v5734_v24  ;;  %9655 = vtanh.f32 %v6003_v50  ;;  %v6040_v20 = vor.u32 1.1754944e-38, %v6039_v3  ;;  %vm6038_vm9 = vcmp.eq.f32.partialorder %v6037_v57, 8.507059e+37  ;;  %v6110_v39 = vpop.xlane.xlu1 %6109  ;;  %v6113_v50 = vpop.xlane.xlu2 %6112 }
 0x600   :  { %v5745_v6 = vrot.slane %v5743_v47, 6 }
 0x601   :  { %v9650_v37 = vpop.eup %9649 }
 0x602   :  { %v9652_v16 = vpop.eup %9651  ;;  %v6010_v44 = vmul.f32 %v9650_v37, %v6008_v32  ;;  %v5747_v23 = vsel %vm5412_vm1, %v5745_v6, 0.0  ;;  %vm6015_vm2 = vweird.f32 %v9650_v37  ;;  %vm6406_vm1 = vcmask 25600  }
 0x603   :  { %v9654_v14 = vpop.eup %9653  ;;  %v6029_v1 = vmul.f32 %v9652_v16, %v6027_v38  ;;  %5749 = vst [vmem:[#allocation4 + $0xe] sm:$0x3] %v5747_v23  ;;  %vm6034_vm3 = vweird.f32 %v9652_v16  ;;  %vm6016_vm6 = vmor %vm6014_vm4, %vm6015_vm2 }
 0x604   :  { %v6011_v11 = vsub.f32 1.0, %v6010_v44  ;;  %v6047_v13 = vadd.f32 1.0, %v9654_v14  ;;  %v9656_v26 = vpop.eup %9655  ;;  %vm6035_vm7 = vmor %vm6033_vm5, %vm6034_vm3 }
 0x605   :  { %v6030_v17 = vsub.f32 1.0, %v6029_v1  ;;  %v6149_v24 = vpop.xlane.xlu0 %6148 }
 0x606   :  { %v6012_v2 = vmul.f32 %v9650_v37, %v6011_v11  ;;  %9657 = vrcp.f32 %v6047_v13  ;;  %v6059_v48 = vand.u32 2147483648, %v6047_v13  ;;  %v6057_v0 = vand.u32 2147483647, %v6047_v13  ;;  %v6146_v47 = vpop.xlane.xlu2 %6145 }
 0x607   :  { %v6031_v36 = vmul.f32 %v9652_v16, %v6030_v17  ;;  %vm6053_vm11 = vweird.f32 %v6047_v13  ;;  %v9403_v17 = vld [vmem:[#allocation6] ss:$0 sm:$0xff]  ;;  %v6163_v49 = vadd.f32 %v6149_v24, %v6113_v50 }
 0x608   :  { %v6013_v5 = vadd.f32 %v9650_v37, %v6012_v2  ;;  %v6060_v4 = vor.u32 1.1754944e-38, %v6059_v48  ;;  %vm6058_vm13 = vcmp.eq.f32.partialorder %v6057_v0, 8.507059e+37  ;;  %v6162_v2 = vadd.f32 %v6146_v47, %v6110_v39 }
 0x609   :  { %v6032_v28 = vadd.f32 %v9652_v16, %v6031_v36 }
 0x60a   :  { %v6017_v51 = vsel %vm6016_vm6, %v9650_v37, %v6013_v5  ;;  %v12663_v62 = vld [vmem:[#allocation4 + $0xe] sm:$0x3]  ;;  %v6143_v37 = vpop.xlane.xlu1 %6142 }
 0x60b   :  { %v6022_v25 = vsel %vm6019_vm8, %v6021_v10, %v6017_v51  ;;  %v6036_v18 = vsel %vm6035_vm7, %v9652_v16, %v6032_v28  ;;  %v6097_v33 = vmul.f32 %v12600_v9, %v12663_v62  ;;  %v9683_v9 = vld [vmem:[%s12830_s7] ss:$0 sm:$0xff]  ;;  %v6161_v36 = vadd.f32 %v6143_v37, %v6107_v15 }
 0x60c   :  { %v9658_v53 = vpop.eup %9657  ;;  %v6041_v63 = vsel %vm6038_vm9, %v6040_v20, %v6036_v18  ;;  %v6064_v8 = vmul.f32 %v9656_v26, %v6022_v25  ;;  %v6132_v46 = vmul.f32 %v9683_v9, %v12668_v61  ;;  %v6133_v58 = vmul.f32 %v9683_v9, %v12679_v59 }
 0x60d   :  { %v6063_v27 = vmul.f32 %v6041_v63, %v12652_v21  ;;  %v6049_v34 = vmul.f32 %v9658_v53, %v6047_v13  ;;  %v6120_v55 = vsel %vm6098_vm14, %v6097_v33, 0.0  ;;  %vm6054_vm10 = vweird.f32 %v9658_v53  ;;  %v5750_v21 = vld [vmem:[#allocation10] sm:$0x3]  ;;  %v6119_v16 = vpop.xlane.xlu0 %6118 }
 0x60e   :  { %6121 = vadd.xlane.f32.xlu1 %v6120_v55  ;;  %vm6055_vm12 = vmor %vm6053_vm11, %vm6054_vm10  ;;  %vm5751_vm15 = vcmp.gt.f32.partialorder %v5750_v21, 0.0  ;;  %v6150_v32 = vsel %vm6098_vm14, %v6132_v46, 0.0  ;;  %v6153_v12 = vsel %vm6098_vm14, %v6133_v58, 0.0  ;;  %v6116_v14 = vpop.xlane.xlu2 %6115  ;;  %v6175_v10 = vadd.f32 %v9403_v17, %v6163_v49 }
 0x60f   :  { %v6065_v30 = vadd.f32 %v6064_v8, %v6063_v27  ;;  %v6050_v35 = vsub.f32 1.0, %v6049_v34  ;;  %v6174_v20 = vadd.f32 %v9403_v17, %v6162_v2  ;;  %v6173_v25 = vadd.f32 %v9403_v17, %v6161_v36 }
 0x610   :  { %v6184_v8 = vsel %vm6179_vm0, %v6175_v10, -inf }
 0x611   :  { %9659 = vtanh.f32 %v6065_v30  ;;  %v6051_v42 = vmul.f32 %v9658_v53, %v6050_v35  ;;  %v6183_v35 = vsel %vm6179_vm0, %v6174_v20, -inf  ;;  %v6182_v55 = vsel %vm6179_vm0, %v6173_v25, -inf }
 0x613   :  { %v6052_v52 = vadd.f32 %v9658_v53, %v6051_v42 }
 0x615   :  { %v6056_v41 = vsel %vm6055_vm12, %v9658_v53, %v6052_v52  ;;  %v6140_v6 = vpop.xlane.xlu0 %6139 }
 0x616   :  { %v6061_v7 = vsel %vm6058_vm13, %v6060_v4, %v6056_v41  ;;  %6151 = vadd.xlane.f32.xlu1 %v6150_v32  ;;  %v6160_v57 = vadd.f32 %v6140_v6, %v6104_v22 }
 0x617   :  { %v9660_v45 = vpop.eup %9659 }
 0x618   :  { %v6067_v56 = vmul.f32 %v9660_v45, %v6061_v7  ;;  %v6172_v18 = vadd.f32 %v9403_v17, %v6160_v57 }
 0x61a   :  { %v6068_v60 = vsel %vm5751_vm15, %v6067_v56, 0.0  ;;  %v6181_v42 = vsel %vm6179_vm0, %v6172_v18, -inf }
 0x61b   :  { %6069 = vst [vmem:[#allocation5] sm:$0x3] %v6068_v60 }
 0x61d   :  { %v6158_v23 = vpop.xlane.xlu0 %6157 }
 0x622   :  { %v12675_v38 = vld [vmem:[#allocation5] sm:$0x3] }
 0x623   :  { %v6127_v29 = vmul.f32 %v9683_v9, %v12675_v38 }
 0x625   :  { %v6135_v43 = vsel %vm6098_vm14, %v6127_v29, 0.0 }
 0x626   :  { %6136 = vadd.xlane.f32.xlu2 %v6135_v43 }
 0x62e   :  { %6154 = vadd.xlane.f32.xlu2 %v6153_v12 }
 0x681   :  { %v6122_v44 = vpop.xlane.xlu1 %6121 }
 0x682   :  { %v6166_v19 = vadd.f32 %v6158_v23, %v6122_v44 }
 0x684   :  { %v6178_v28 = vadd.f32 %v9403_v17, %v6166_v19 }
 0x686   :  { %v6190_v27 = vsel %vm6179_vm0, %v6178_v28, -inf }
 0x687   :  { %v6191_v0 = vmax.f32 %v6183_v35, %v6190_v27  ;;  %v6360_v35 = vld [vmem:[%s12833_s10 + $0x78] sm:$0xff] }
 0x688   :  { %6361 = vmatpush.msra.mxu0 %v6360_v35 }
 0x689   :  { %v6152_v1 = vpop.xlane.xlu1 %6151 }
 0x68a   :  { %v6164_v3 = vadd.f32 %v6152_v1, %v6116_v14 }
 0x68c   :  { %v6176_v26 = vadd.f32 %v9403_v17, %v6164_v3 }
 0x68e   :  { %v6186_v34 = vsel %vm6179_vm0, %v6176_v26, -inf }
 0x68f   :  { %v6187_v52 = vmax.f32 %v6181_v42, %v6186_v34  ;;  %v6359_v42 = vld [vmem:[%s12833_s10 + $0x70] sm:$0xff] }
 0x690   :  { %6362 = vmatpush.msra.mxu0 %v6359_v42  ;;  %v9690_v42 = vld [vmem:[#allocation4 + $0x8] sm:$0x3] }
 0x699   :  { %v6137_v11 = vpop.xlane.xlu2 %6136 }
 0x69a   :  { %v6159_v13 = vadd.f32 %v6137_v11, %v6101_v54 }
 0x69c   :  { %v6171_v5 = vadd.f32 %v9403_v17, %v6159_v13 }
 0x69e   :  { %v6180_v53 = vsel %vm6179_vm0, %v6171_v5, -inf }
 0x69f   :  { %v6185_v30 = vmax.f32 %v6180_v53, %v6184_v8 }
 0x6a1   :  { %v6155_v51 = vpop.xlane.xlu2 %6154  ;;  %v6192_v9 = vmax.f32 %v6185_v30, %v6187_v52  ;;  %v6342_v52 = vld [vmem:[%s12832_s9 + $0x68] sm:$0xff] }
 0x6a2   :  { %v6165_v63 = vadd.f32 %v6155_v51, %v6119_v16 }
 0x6a4   :  { %v6177_v33 = vadd.f32 %v9403_v17, %v6165_v63 }
 0x6a6   :  { %v6188_v48 = vsel %vm6179_vm0, %v6177_v33, -inf }
 0x6a7   :  { %v6189_v21 = vmax.f32 %v6182_v55, %v6188_v48  ;;  %v6344_v55 = vld [vmem:[%s12832_s9 + $0x78] sm:$0xff]  ;;  %v6343_v48 = vld [vmem:[%s12832_s9 + $0x70] sm:$0xff] }
 0x6a8   :  { %6381 = vmatpush.msra.mxu1 %v6344_v55 }
 0x6a9   :  { %v6193_v46 = vmax.f32 %v6189_v21, %v6191_v0  ;;  %v6358_v0 = vld [vmem:[%s12833_s10 + $0x68] sm:$0xff]  ;;  %v6357_v21 = vld [vmem:[%s12833_s10 + $0x60] sm:$0xff] }
 0x6aa   :  { %6382 = vmatpush.msra.mxu1 %v6343_v48  ;;  %6363 = vmatpush.msra.mxu0 %v6358_v0  ;;  %v9691_v0 = vld [vmem:[#allocation5 + $0x8] sm:$0x3] }
 0x6ab   :  { %v6194_v41 = vmax.f32 %v6192_v9, %v6193_v46  ;;  %v6341_v9 = vld [vmem:[%s12832_s9 + $0x60] sm:$0xff]  ;;  %v6356_v46 = vld [vmem:[%s12833_s10 + $0x58] sm:$0xff] }
 0x6ac   :  { %6383 = vmatpush.msra.mxu1 %v6342_v52  ;;  %6364 = vmatpush.msra.mxu0 %v6357_v21 }
 0x6ad   :  { %v6195_v4 = vsub.f32 %v6171_v5, %v6194_v41  ;;  %v6196_v45 = vsub.f32 %v6172_v18, %v6194_v41  ;;  %v6197_v7 = vsub.f32 %v6173_v25, %v6194_v41  ;;  %v6198_v56 = vsub.f32 %v6174_v20, %v6194_v41 }
 0x6ae   :  { %v6199_v32 = vsub.f32 %v6175_v10, %v6194_v41  ;;  %v6200_v58 = vsub.f32 %v6176_v26, %v6194_v41  ;;  %v6201_v54 = vsub.f32 %v6177_v33, %v6194_v41  ;;  %v6202_v22 = vsub.f32 %v6178_v28, %v6194_v41  ;;  %6384 = vmatpush.msra.mxu1 %v6341_v9  ;;  %v6340_v41 = vld [vmem:[%s12832_s9 + $0x58] sm:$0xff] }
 0x6af   :  { %v6203_v60 = vmul.f32 1.442695, %v6195_v4  ;;  %v6205_v29 = vmul.f32 1.442695, %v6196_v45  ;;  %v6207_v43 = vmul.f32 1.442695, %v6197_v7  ;;  %6365 = vmatpush.msra.mxu0 %v6356_v46 }
 0x6b0   :  { %v6209_v12 = vmul.f32 1.442695, %v6198_v56  ;;  %v6211_v15 = vmul.f32 1.442695, %v6199_v32  ;;  %v6213_v39 = vmul.f32 1.442695, %v6200_v58  ;;  %6385 = vmatpush.msra.mxu1 %v6340_v41 }
 0x6b1   :  { %9661 = vpow2.f32 %v6203_v60  ;;  %v6215_v24 = vmul.f32 1.442695, %v6201_v54  ;;  %v6217_v47 = vmul.f32 1.442695, %v6202_v22  ;;  %v6355_v4 = vld [vmem:[%s12833_s10 + $0x50] sm:$0xff]  ;;  %v6354_v7 = vld [vmem:[%s12833_s10 + $0x48] sm:$0xff] }
 0x6b2   :  { %9663 = vpow2.f32 %v6205_v29  ;;  %v6339_v45 = vld [vmem:[%s12832_s9 + $0x50] sm:$0xff]  ;;  %v6338_v56 = vld [vmem:[%s12832_s9 + $0x48] sm:$0xff]  ;;  %6366 = vmatpush.msra.mxu0 %v6355_v4  ;;  %v6353_v32 = vld [vmem:[%s12833_s10 + $0x40] sm:$0xff] }
 0x6b3   :  { %9665 = vpow2.f32 %v6207_v43  ;;  %6386 = vmatpush.msra.mxu1 %v6339_v45  ;;  %v6337_v60 = vld [vmem:[%s12832_s9 + $0x40] sm:$0xff]  ;;  %v6352_v29 = vld [vmem:[%s12833_s10 + $0x38] sm:$0xff]  ;;  %v6351_v58 = vld [vmem:[%s12833_s10 + $0x30] sm:$0xff] }
 0x6b4   :  { %9667 = vpow2.f32 %v6209_v12  ;;  %6367 = vmatpush.msra.mxu0 %v6354_v7  ;;  %v6336_v43 = vld [vmem:[%s12832_s9 + $0x38] sm:$0xff]  ;;  %v6335_v12 = vld [vmem:[%s12832_s9 + $0x30] sm:$0xff]  ;;  %v6334_v22 = vld [vmem:[%s12832_s9 + $0x28] sm:$0xff] }
 0x6b5   :  { %9669 = vpow2.f32 %v6211_v15  ;;  %6387 = vmatpush.msra.mxu1 %v6338_v56  ;;  %v6350_v15 = vld [vmem:[%s12833_s10 + $0x28] sm:$0xff] }
 0x6b6   :  { %9671 = vpow2.f32 %v6213_v39  ;;  %6368 = vmatpush.msra.mxu0 %v6353_v32  ;;  %v6349_v39 = vld [vmem:[%s12833_s10 + $0x20] sm:$0xff]  ;;  %v9692_v4 = vld [vmem:[#allocation4 + $0xa] sm:$0x3] }
 0x6b7   :  { %v9662_v50 = vpop.eup %9661  ;;  %9673 = vpow2.f32 %v6215_v24  ;;  %6388 = vmatpush.msra.mxu1 %v6337_v60  ;;  %v6333_v24 = vld [vmem:[%s12832_s9 + $0x20] sm:$0xff] }
 0x6b8   :  { %v9664_v37 = vpop.eup %9663  ;;  %v6219_v16 = vsel %vm6179_vm0, %v9662_v50, 0.0  ;;  %9675 = vpow2.f32 %v6217_v47  ;;  %6369 = vmatpush.msra.mxu0 %v6352_v29  ;;  %v6347_v47 = vld [vmem:[%s12833_s10 + $0x10] sm:$0xff] }
 0x6b9   :  { %v9666_v44 = vpop.eup %9665  ;;  %v6220_v14 = vsel %vm6179_vm0, %v9664_v37, 0.0  ;;  %6389 = vmatpush.msra.mxu1 %v6336_v43 }
 0x6ba   :  { %v9668_v6 = vpop.eup %9667  ;;  %v6221_v1 = vadd.f32 %v6220_v14, %v6219_v16  ;;  %v6222_v11 = vsel %vm6179_vm0, %v9666_v44, 0.0  ;;  %6370 = vmatpush.msra.mxu0 %v6351_v58  ;;  %v6331_v16 = vld [vmem:[%s12832_s9 + $0x10] sm:$0xff]  ;;  %v6330_v14 = vld [vmem:[%s12832_s9 + $0x8] sm:$0xff] }
 0x6bb   :  { %v9670_v13 = vpop.eup %9669  ;;  %v6224_v17 = vsel %vm6179_vm0, %v9668_v6, 0.0  ;;  %6390 = vmatpush.msra.mxu1 %v6335_v12 }
 0x6bc   :  { %v6223_v23 = vadd.f32 %v6222_v11, %v6221_v1  ;;  %v9672_v49 = vpop.eup %9671  ;;  %v6226_v3 = vsel %vm6179_vm0, %v9670_v13, 0.0  ;;  %6371 = vmatpush.msra.mxu0 %v6350_v15  ;;  %v6345_v1 = vld [vmem:[%s12833_s10] sm:$0xff] }
 0x6bd   :  { %v9674_v2 = vpop.eup %9673  ;;  %v6228_v57 = vsel %vm6179_vm0, %v9672_v49, 0.0  ;;  %6391 = vmatpush.msra.mxu1 %v6334_v22  ;;  %v6329_v11 = vld [vmem:[%s12832_s9] sm:$0xff] }
 0x6be   :  { %v6225_v19 = vadd.f32 %v6224_v17, %v6223_v23  ;;  %v9676_v5 = vpop.eup %9675  ;;  %v6230_v28 = vsel %vm6179_vm0, %v9674_v2, 0.0  ;;  %6372 = vmatpush.msra.mxu0 %v6349_v39  ;;  %v9693_v39 = vld [vmem:[#allocation4 + $0xc] sm:$0x3] }
 0x6bf   :  { %v6232_v20 = vsel %vm6179_vm0, %v9676_v5, 0.0  ;;  %6392 = vmatpush.msra.mxu1 %v6333_v24 }
 0x6c0   :  { %v6227_v36 = vadd.f32 %v6226_v3, %v6225_v19  ;;  %v9685_v3 = vld [vmem:[#allocation4] sm:$0x3] }
 0x6c2   :  { %v6229_v10 = vadd.f32 %v6228_v57, %v6227_v36 }
 0x6c4   :  { %v6231_v26 = vadd.f32 %v6230_v28, %v6229_v10  ;;  %v9686_v10 = vld [vmem:[#allocation4 + $0x4] sm:$0x3] }
 0x6c6   :  { %v6233_v51 = vadd.f32 %v6232_v20, %v6231_v26  ;;  %v9687_v26 = vld [vmem:[#allocation5 + $0x4] sm:$0x3] }
 0x6c8   :  { %9677 = vrcp.f32 %v6233_v51 }
 0x6ce   :  { %v9678_v25 = vpop.eup %9677 }
 0x6cf   :  { %v6237_v18 = vmul.f32 %v9678_v25, %v9666_v44  ;;  %v6236_v53 = vmul.f32 %v9678_v25, %v9664_v37  ;;  %v6235_v63 = vmul.f32 %v9678_v25, %v9662_v50  ;;  %v6238_v8 = vmul.f32 %v9678_v25, %v9668_v6  ;;  %v6348_v50 = vld [vmem:[%s12833_s10 + $0x18] sm:$0xff]  ;;  %v6346_v44 = vld [vmem:[%s12833_s10 + $0x8] sm:$0xff] }
 0x6d0   :  { %v6239_v27 = vmul.f32 %v9678_v25, %v9670_v13  ;;  %v6240_v34 = vmul.f32 %v9678_v25, %v9672_v49  ;;  %v6241_v33 = vmul.f32 %v9678_v25, %v9674_v2  ;;  %v6242_v30 = vmul.f32 %v9678_v25, %v9676_v5  ;;  %v6332_v37 = vld [vmem:[%s12832_s9 + $0x18] sm:$0xff]  ;;  %6373 = vmatpush.msra.mxu0 %v6348_v50  ;;  %v9684_v13 = vld [vmem:[#allocation4 + $0x2] sm:$0x3] }
 0x6d1   :  { %6255 = vperm.xlu0 %9400, %v6237_v18   ;;  %6250 = vperm.xlu2 %9399, %v6236_v53  }
 0x6d2   :  { %6245 = vperm.xlu1 %9398, %v6235_v63   ;;  %6393 = vmatpush.msra.mxu1 %v6332_v37  ;;  %v9688_v63 = vld [vmem:[#allocation4 + $0x6] sm:$0x3] }
 0x6d3   :  { %6374 = vmatpush.msra.mxu0 %v6347_v47 }
 0x6d4   :  { %6394 = vmatpush.msra.mxu1 %v6331_v16 }
 0x6d5   :  { %6375 = vmatpush.msra.mxu0 %v6346_v44 }
 0x6d6   :  { %6395 = vmatpush.msra.mxu1 %v6330_v14 }
 0x6d7   :  { %6376 = vmatpush.msra.mxu0 %v6345_v1 }
 0x6d8   :  { %6396 = vmatpush.msra.mxu1 %v6329_v11 }
 0x6d9   :  { %6260 = vperm.xlu2 %9399, %v6238_v8  }
 0x6da   :  { %6265 = vperm.xlu1 %9398, %v6239_v27   ;;  %v9689_v27 = vld [vmem:[#allocation5 + $0x6] sm:$0x3] }
 0x6e1   :  { %6270 = vperm.xlu2 %9399, %v6240_v34  }
 0x6e2   :  { %6275 = vperm.xlu1 %9398, %v6241_v33  }
 0x6e9   :  { %6280 = vperm.xlu2 %9399, %v6242_v30  }
 0x72b   :  { %v6251_v54 = vpop.permute.xlu2 %6250 }
 0x72c   :  { %v6284_v23 = vmul.f32 %v9684_v13, %v6251_v54  ;;  %v6307_v17 = vmul.f32 %v6251_v54, %v12639_v31 }
 0x72e   :  { %v6292_v57 = vsel %vm6098_vm14, %v6284_v23, 0.0  ;;  %v6315_v5 = vsel %vm6098_vm14, %v6307_v17, 0.0 }
 0x733   :  { %v6261_v6 = vpop.permute.xlu2 %6260 }
 0x734   :  { %v6286_v8 = vmul.f32 %v9688_v63, %v6261_v6  ;;  %v6309_v34 = vmul.f32 %v9689_v27, %v6261_v6 }
 0x736   :  { %v6296_v21 = vsel %vm6098_vm14, %v6286_v8, 0.0  ;;  %v6319_v9 = vsel %vm6098_vm14, %v6309_v34, 0.0 }
 0x73b   :  { %v6271_v18 = vpop.permute.xlu2 %6270 }
 0x73c   :  { %v6288_v45 = vmul.f32 %v9692_v4, %v6271_v18  ;;  %v6311_v7 = vmul.f32 %v6271_v18, %v12668_v61 }
 0x73e   :  { %v6300_v58 = vsel %vm6098_vm14, %v6288_v45, 0.0  ;;  %v6323_v12 = vsel %vm6098_vm14, %v6311_v7, 0.0 }
 0x743   :  { %v6256_v49 = vpop.permute.xlu0 %6255  ;;  %v6281_v60 = vpop.permute.xlu2 %6280 }
 0x744   :  { %v6246_v19 = vpop.permute.xlu1 %6245  ;;  %v6285_v28 = vmul.f32 %v9686_v10, %v6256_v49  ;;  %v6308_v20 = vmul.f32 %v9687_v26, %v6256_v49  ;;  %v6290_v15 = vmul.f32 %v6281_v60, %v12663_v62  ;;  %v6313_v22 = vmul.f32 %v6281_v60, %v12644_v40  ;;  %v9404_v40 = vld [vmem:[%s12834_s11] ss:$0 sm:$0xff] }
 0x745   :  { %v6283_v2 = vmul.f32 %v9685_v3, %v6246_v19  ;;  %v6306_v36 = vmul.f32 %v6246_v19, %v12675_v38 }
 0x746   :  { %v6294_v38 = vsel %vm6098_vm14, %v6285_v28, 0.0  ;;  %v6317_v33 = vsel %vm6098_vm14, %v6308_v20, 0.0  ;;  %v6304_v6 = vsel %vm6098_vm14, %v6290_v15, 0.0  ;;  %v6327_v1 = vsel %vm6098_vm14, %v6313_v22, 0.0 }
 0x747   :  { %v6291_v51 = vsel %vm6098_vm14, %v6283_v2, 0.0  ;;  %v6314_v25 = vsel %vm6098_vm14, %v6306_v36, 0.0 }
 0x748   :  { %v6293_v31 = vadd.f32 %v6292_v57, %v6291_v51  ;;  %v6316_v53 = vadd.f32 %v6315_v5, %v6314_v25 }
 0x74a   :  { %v6295_v30 = vadd.f32 %v6294_v38, %v6293_v31  ;;  %v6318_v35 = vadd.f32 %v6317_v33, %v6316_v53 }
 0x74c   :  { %v6266_v55 = vpop.permute.xlu1 %6265  ;;  %v6297_v56 = vadd.f32 %v6296_v21, %v6295_v30  ;;  %v6320_v32 = vadd.f32 %v6319_v9, %v6318_v35 }
 0x74d   :  { %v6287_v48 = vmul.f32 %v9690_v42, %v6266_v55  ;;  %v6310_v52 = vmul.f32 %v9691_v0, %v6266_v55 }
 0x74f   :  { %v6298_v46 = vsel %vm6098_vm14, %v6287_v48, 0.0  ;;  %v6321_v41 = vsel %vm6098_vm14, %v6310_v52, 0.0 }
 0x750   :  { %v6299_v29 = vadd.f32 %v6298_v46, %v6297_v56  ;;  %v6322_v43 = vadd.f32 %v6321_v41, %v6320_v32 }
 0x752   :  { %v6301_v37 = vadd.f32 %v6300_v58, %v6299_v29  ;;  %v6324_v61 = vadd.f32 %v6323_v12, %v6322_v43 }
 0x754   :  { %v6276_v54 = vpop.permute.xlu1 %6275 }
 0x755   :  { %v6289_v24 = vmul.f32 %v9693_v39, %v6276_v54  ;;  %v6312_v50 = vmul.f32 %v6276_v54, %v12679_v59 }
 0x757   :  { %v6302_v47 = vsel %vm6098_vm14, %v6289_v24, 0.0  ;;  %v6325_v16 = vsel %vm6098_vm14, %v6312_v50, 0.0 }
 0x758   :  { %v6303_v44 = vadd.f32 %v6302_v47, %v6301_v37  ;;  %v6326_v14 = vadd.f32 %v6325_v16, %v6324_v61 }
 0x75a   :  { %v6305_v11 = vadd.f32 %v6304_v6, %v6303_v44  ;;  %v6328_v62 = vadd.f32 %v6327_v1, %v6326_v14 }
 0x75c   :  { %6377 = vmatmul.f32.vlgmr.msra.gmra.mxu0 %v6328_v62  ;;  %6397 = vmatmul.f32.vlgmr.msra.gmra.mxu1 %v6305_v11 }
 0x7d9   :  { %v6378_v59 = vpop.f32.mrf.mxu0  ;;  %v6398_v13 = vpop.f32.mrf.mxu1 }
 0x7da   :  { %v6399_v23 = vadd.f32 %v6398_v13, %v6378_v59 }
 0x7dc   :  { %v6405_v17 = vadd.f32 %v9404_v40, %v6399_v23 }
 0x7de   :  { %6407 = vst.msk [vmem:[#allocation16] sm:$0x3] %vm6406_vm1, %v6405_v17 }
 0x7df   :  { %6418 = dma.vmem_to_hbm [thread:$0]  %s6414_s24, 32, %s6416_s27, [#allocation9]  }
 0x7e0   :  { %9844 = dma.done.wait [#allocation9], 32  }
 0x7e1   :  { %9845 = vsyncadd [#allocation9], 4294967264 }
 0x7e2   :  { %6423 = vsyncpa [#allocation8], 1 }
 0x7e3   :  { %6424 = vsyncpa [#allocation11], 1 }
 0x7e4   :  { %6425 = vsyncpa [#allocation14], 1 }
 0x7e5   :  { %6426 = vsyncpa [#allocation9], 1 }

</bundles_post_ra>
